<compile_context>
chip_gen: v7x
topology: tpu7x:2x2x1
jax: 0.10.0
libtpu: 0.0.40
codegen_flags: <defaults>
</compile_context>

<pallas_src>
import jax
import jax.numpy as jnp
from jax import lax
from jax.experimental import pallas as pl
from jax.experimental.pallas import tpu as pltpu

IN_FEATURES = 196608
OUT_FEATURES = 10


def _linear_kernel(x_ref, w_ref, o_ref):
    # Grid axis 0 ("parallel") indexes the K-split; this step owns its own
    # output slice, so there is no cross-step accumulation and no race.
    #   w_ref: (N, tk)  -- LHS, natural MXU layout (contraction on lane axis)
    #   x_ref: (B, tk)  -- RHS (trans-B); the small tile takes any relayout
    #   o_ref: (N, B)   -- partial result for this K half
    o_ref[...] = lax.dot_general(
        w_ref[...],
        x_ref[...],
        dimension_numbers=(((1,), (1,)), ((), ())),
        preferred_element_type=jnp.float32,
    )


def linear_pallas(x, w, b, *, num_k_splits=2):
    """x: (B, K) f32; w: (N, K) f32 (natural nn.Linear layout); b: (N,) f32."""
    B, K = x.shape
    N, Kw = w.shape
    assert K == Kw
    assert K % num_k_splits == 0
    tk = K // num_k_splits
    assert tk % 128 == 0

    partials = pl.pallas_call(
        _linear_kernel,
        out_shape=jax.ShapeDtypeStruct((num_k_splits, N, B), jnp.float32),
        grid_spec=pltpu.PrefetchScalarGridSpec(
            num_scalar_prefetch=0,
            grid=(num_k_splits,),
            in_specs=[
                # Block dims equal to the full (small) array dims are legal
                # even though they are not multiples of 8 / 128.
                pl.BlockSpec((B, tk), lambda c: (0, c)),   # x half (B, tk)
                pl.BlockSpec((N, tk), lambda c: (0, c)),   # weight half (N, tk)
            ],
            # Leading dim squeezed: each step writes its own (N, B) slice.
            out_specs=pl.BlockSpec((None, N, B), lambda c: (c, 0, 0)),
        ),
        compiler_params=pltpu.CompilerParams(
            # Split-K axis: sharded across the 2 TensorCores on v7x,
            # plain 2-step sequential loop on v5e/v6e.
            dimension_semantics=("parallel",),
            vmem_limit_bytes=32 * 1024 * 1024,
        ),
    )(x, w)

    # Combine the split-K partials, transpose (N, B) -> (B, N), add bias.
    # This is a ~40-float epilogue; negligible next to the 9.4 MB stream.
    return partials.sum(axis=0).T + b


if __name__ == "__main__":
    key = jax.random.PRNGKey(0)
    k_x, k_w, k_b = jax.random.split(key, 3)

    # Deterministic parameter init mimicking nn.Linear default:
    # U(-1/sqrt(in_features), 1/sqrt(in_features)).
    bound = 1.0 / (IN_FEATURES ** 0.5)
    w = jax.random.uniform(
        k_w, (OUT_FEATURES, IN_FEATURES), jnp.float32, -bound, bound
    )
    b = jax.random.uniform(k_b, (OUT_FEATURES,), jnp.float32, -bound, bound)

    # Small batch of flattened inputs (B, 196608).
    B = 2
    x = jax.random.normal(k_x, (B, IN_FEATURES), jnp.float32)

    out = linear_pallas(x, w, b)
    out = jax.block_until_ready(out)

    # Correctness check against plain JAX reference.
    ref = x @ w.T + b
    assert out.shape == (B, OUT_FEATURES)
    assert jnp.allclose(out, ref, atol=1e-3, rtol=1e-3)

    print("KERNEL_OK")
</pallas_src>

<mosaic_0001>
module attributes {stable_mosaic.version = 11 : i64} {
  func.func @_linear_kernel(%arg0: i32, %arg1: memref<2x98304xf32, #tpu.memory_space<vmem>>, %arg2: memref<10x98304xf32, #tpu.memory_space<vmem>>, %arg3: memref<1x10x2xf32, #tpu.memory_space<vmem>>) attributes {dimension_semantics = [#tpu.dimension_semantics<parallel>], iteration_bounds = array<i64: 2>, scalar_prefetch = 0 : i64, scratch_operands = 0 : i64, tpu.core_type = #tpu.core_type<tc>, window_params = [{transform_indices = @transform_0, window_bounds = array<i64: 2, 98304>}, {transform_indices = @transform_1, window_bounds = array<i64: 10, 98304>}, {transform_indices = @transform_2, window_bounds = array<i64: 1, 10, 2>}]} {
    %c0 = arith.constant 0 : index
    %c0_0 = arith.constant 0 : index
    %0 = vector.load %arg2[%c0, %c0_0] : memref<10x98304xf32, #tpu.memory_space<vmem>>, vector<10x98304xf32>
    %c0_1 = arith.constant 0 : index
    %c0_2 = arith.constant 0 : index
    %1 = vector.load %arg1[%c0_1, %c0_2] : memref<2x98304xf32, #tpu.memory_space<vmem>>, vector<2x98304xf32>
    %cst = arith.constant dense<0.000000e+00> : vector<10x2xf32>
    %2 = tpu.matmul %0, %1, %cst {dimension_numbers = #tpu.dot_dimension_numbers<[1], [1], [0], [0], [0, 0, 1, 0], [], []>} : vector<10x98304xf32>, vector<2x98304xf32>, vector<10x2xf32> -> vector<10x2xf32>
    %c0_3 = arith.constant 0 : index
    %c0_4 = arith.constant 0 : index
    %c0_5 = arith.constant 0 : index
    %3 = vector.load %arg3[%c0_3, %c0_4, %c0_5] : memref<1x10x2xf32, #tpu.memory_space<vmem>>, vector<1x10x2xf32>
    %4 = vector.shape_cast %3 : vector<1x10x2xf32> to vector<10x2xf32>
    %5 = vector.shape_cast %2 : vector<10x2xf32> to vector<1x10x2xf32>
    tpu.vector_store %arg3[%c0_3, %c0_4, %c0_5], %5 {strides = array<i32>} : memref<1x10x2xf32, #tpu.memory_space<vmem>>, vector<1x10x2xf32>,
    return
  }
  func.func @transform_0(%arg0: i32) -> (i32, i32) {
    %c0_i32 = arith.constant 0 : i32
    %c0_i32_0 = arith.constant 0 : i32
    return %c0_i32, %arg0 : i32, i32
  }
  func.func @transform_1(%arg0: i32) -> (i32, i32) {
    %c0_i32 = arith.constant 0 : i32
    %c0_i32_0 = arith.constant 0 : i32
    return %c0_i32, %arg0 : i32, i32
  }
  func.func @transform_2(%arg0: i32) -> (i32, i32, i32) {
    %c0_i32 = arith.constant 0 : i32
    %c0_i32_0 = arith.constant 0 : i32
    %c0_i32_1 = arith.constant 0 : i32
    return %arg0, %c0_i32, %c0_i32_0 : i32, i32, i32
  }
}

</mosaic_0001>

<bundles_post_ra>
// kernel: tpu_custom_call.1
= control target key start
LH: loop header
LB: loop body
LE: loop exit
PB: predicated region body
PF: predicated region fallthrough
CT: control target
= control target key end

     0   :  { %7 = vsyncpa [#allocation3], 0  ;;  %s39228_s0 = inlined_call_operand.hbm [shape: f32[2,196608], index: 0, kind: input, shape index: {}]   ;;  %s39229_s1 = inlined_call_operand.hbm [shape: f32[10,196608], index: 1, kind: input, shape index: {}]   ;;  %s39230_s2 = inlined_call_operand.vmem [shape: f32[2,10,2], index: 2, kind: output, shape index: {}]  }
   0x1   :  { %9 = vsyncpa [#allocation3 + $0x1], 0 }
   0x2   :  { %10 = vsyncpa [#allocation5], 0 }
   0x3   :  { %12 = vsyncpa [#allocation5 + $0x1], 0  ;;  %s36958_s9 = smov 0   ;;  %s36960_s10 = smov 0  }
   0x4   :  { %s36962_s11 = smov 0   ;;  %s36964_s12 = smov 0  }
   0x5 LB: > { %s36977_s13 = sadd.s32 4294967295, %s36935_s12   ;;  %s36980_s14 = sadd.s32 1, %s36935_s12   ;;  %s36935_s12 = sphi %s36964_s12, %s39239_s12   ;;  %s36931_s11 = sphi %s36962_s11, %s39238_s11   ;;  %s36927_s10 = sphi %s36960_s10, %s39237_s10   ;;  %s36923_s9 = sphi %s36958_s9, %s39236_s9  }
   0x6   : > { %s22_s15 = ssub.s32 %s36935_s12, %s36980_s14  ;;  %s25_s16 = sadd.s32 1, %s36931_s11 }
   0x7   : > { %p23_p0 = scmp.eq.s32.totalorder %s22_s15, 0  ;;  %p32_p1 = scmp.ne.s32.totalorder %s36931_s11, %s36927_s10 }
   0x8   : > { %p33_p2 = scmp.eq.s32.totalorder %s36935_s12, 0  ;;  %p38_p3 = scmp.ne.s32.totalorder %s36927_s10, %s36923_s9 }
   0x9   : > { %s36990_s17 = scalar_select %p23_p0, %s36931_s11, %s25_s16  }
   0xa   : > { %p34_p4 = por %p33_p2, %p32_p1  ;;  %p39_p5 = scmp.eq.s32.totalorder %s36977_s13, 0 }
   0xb   : > { %p36608_p6 = scmp.lt.s32.totalorder %s36935_s12, 2  ;;  %s36999_s19 = sand.u32 1, %s36931_s11  }
   0xc   : > { %p36994_p7 = por %p39_p5, %p38_p3  ;;  %s36593_s20 = smul.u32 1536, %s36999_s19 }
   0xd   : > { %s35060_s21 = smul.u32 24576, %s36935_s12  ;;  %p37003_p8 = pnand %p36608_p6, %p34_p4 }
   0xe   : > { %s39232_s18 = scalar_select %p36994_p7, 1, 0 }
   0xf   : > { %s37010_s25 = scalar_lea.hbm %s39228_s0, %s35060_s21  ;;  %s118_s26 = scalar_lea.vmem [#allocation2], %s36593_s20 }
  0x10   : > { %s126_s27 = sshll.u32 %s118_s26, 4  ;;  %s115_s28 = scalar_lea.sflag [#allocation3], %s36999_s19  ;;  %s37012_s27 = int_to_ptr.vmem [resolvable:$true] %s126_s27 }
  0x11   : > { %s36837_s29 = scalar_lea.hbm %s37010_s25, 24576  ;;  %p36839_p10 = pneg %p37003_p8 }
  0x12   : > { %p36838_p9 = scmp.ne.s32.totalorder %s37010_s25, %s36837_s29  ;;  %s36842_s4 = scalar_lea.hbm %s39228_s0, 49152 }
  0x13   : > { %p36843_p13 = scmp.lt.u32.totalorder %s37010_s25, %s39228_s0  ;;  %p36844_p0 = scmp.lt.u32.totalorder %s36842_s4, %s36837_s29 }
  0x14   : > { %p36840_p11 = pnand %p36839_p10, %p36838_p9  ;;  %p36846_p2 = scmp.lt.u32.totalorder %s36837_s29, %s37010_s25 }
  0x15   : > { %p36845_p1 = por %p36844_p0, %p36843_p13 }
  0x16   : > { %p36841_p12 = pneg %p36840_p11 }
  0x17   : > { %p36847_p3 = por %p36846_p2, %p36845_p1 }
  0x19   : > { %p36848_p4 = pnand %p36847_p3, %p36841_p12 }
  0x1b   : > { %36851 = shalt.err (!%p36848_p4)
}
  0x1c   : > { %s36852_s7 = scalar_lea.vmem %s37012_s27, 24576  ;;  %s36937_s8 = smov [#allocation2]  }
  0x1d   : > { %p36853_p5 = scmp.ne.s32.totalorder %s37012_s27, %s36852_s7  ;;  %s36857_s9 = sshll.u32 %s36937_s8, 4  ;;  %s36858_s9 = int_to_ptr.vmem [resolvable:$false] %s36857_s9 }
  0x1e   : > { %s36859_s15 = scalar_lea.vmem %s36858_s9, 49152  ;;  %p36860_p11 = scmp.lt.s32.totalorder %s37012_s27, %s36858_s9 }
  0x1f   : > { %p36855_p6 = pnand %p36853_p5, %p36839_p10  ;;  %p36861_p13 = scmp.lt.s32.totalorder %s36859_s15, %s36852_s7 }
  0x21   : > { %p36856_p9 = pneg %p36855_p6  ;;  %p36862_p0 = por %p36861_p13, %p36860_p11 }
  0x23   : > { %p36863_p1 = pnand %p36862_p0, %p36856_p9 }
  0x25   : > { %36866 = shalt.err (!%p36863_p1)
}
  0x26   : > { %36604 = dma.hbm_to_vmem [thread:$0]  (!%p37003_p8), %s37010_s25, 24576, %s37012_s27, %s115_s28  }
  0x27   : > { %s36594_s16 = smul.u32 12288, %s36999_s19  ;;  %p35055_p12 = scmp.ge.s32.totalorder %s36935_s12, 1 }
  0x28   : > { %p152_p2 = scmp.lt.s32.totalorder %s36935_s12, 3  ;;  %s35061_s20 = smul.u32 98304, %s36935_s12 }
  0x29   : > { %s137_s29 = scalar_lea.vmem [#allocation4], %s36594_s16  ;;  %s134_s25 = scalar_lea.sflag [#allocation5], %s36999_s19 }
  0x2a   : > { %p37044_p3 = pnand %p35055_p12, %p152_p2  ;;  %s37051_s26 = scalar_lea.hbm %s39229_s1, %s35061_s20 }
  0x2b   : > { %s144_s30 = sshll.u32 %s137_s29, 4  ;;  %s36867_s27 = scalar_lea.hbm %s37051_s26, 196608  ;;  %s37053_s30 = int_to_ptr.vmem [resolvable:$true] %s144_s30 }
  0x2c   : > { %p36868_p4 = scmp.ne.s32.totalorder %s37051_s26, %s36867_s27  ;;  %s36872_s3 = scalar_lea.hbm %s39229_s1, 393216 }
  0x2d   : > { %p36873_p9 = scmp.lt.u32.totalorder %s37051_s26, %s39229_s1  ;;  %p36874_p11 = scmp.lt.u32.totalorder %s36872_s3, %s36867_s27 }
  0x2e   : > { %p36870_p5 = pnand %p36868_p4, %p36839_p10  ;;  %p36876_p0 = scmp.lt.u32.totalorder %s36867_s27, %s37051_s26 }
  0x2f   : > { %p36875_p13 = por %p36874_p11, %p36873_p9 }
  0x30   : > { %p36871_p6 = pneg %p36870_p5 }
  0x31   : > { %p36877_p1 = por %p36876_p0, %p36875_p13 }
  0x33   : > { %p36878_p12 = pnand %p36877_p1, %p36871_p6 }
  0x35   : > { %36881 = shalt.err (!%p36878_p12)
}
  0x36   : > { %s36882_s6 = scalar_lea.vmem %s37053_s30, 196608  ;;  %s36938_s7 = smov [#allocation4]  }
  0x37   : > { %p36883_p2 = scmp.ne.s32.totalorder %s37053_s30, %s36882_s6  ;;  %s36887_s8 = sshll.u32 %s36938_s7, 4  ;;  %s36888_s8 = int_to_ptr.vmem [resolvable:$false] %s36887_s8 }
  0x38   : > { %s36889_s9 = scalar_lea.vmem %s36888_s8, 393216  ;;  %p36890_p7 = scmp.lt.s32.totalorder %s37053_s30, %s36888_s8 }
  0x39   : > { %p36885_p4 = pnand %p36883_p2, %p36839_p10  ;;  %p36891_p9 = scmp.lt.s32.totalorder %s36889_s9, %s36882_s6 }
  0x3b   : > { %p36886_p5 = pneg %p36885_p4  ;;  %p36892_p11 = por %p36891_p9, %p36890_p7 }
  0x3d   : > { %p36893_p13 = pnand %p36892_p11, %p36886_p5 }
  0x3f   : > { %36896 = shalt.err (!%p36893_p13)
}
  0x40   : > { %s36939_s15 = smov 196608   ;;  %s36940_s16 = smov 98304  }
  0x41   : > { %s36941_s20 = smov 6144   ;;  %156 = sbr.rel (%p37044_p3) target bundleno = 1839 (0x72f), region = 28 }
  0x42   : > { %36607 = dma.hbm_to_vmem [thread:$0]  (!%p37003_p8), %s37051_s26, 196608, %s37053_s30, %s134_s25, %s36939_s15, %s36940_s16, %s36941_s20  }
  0x43   : > { %s158_s23 = sand.u32 (!%p37044_p3), 1, %s36927_s10   ;;  %p39235_p7 = scmp.ne.s32.totalorder (!%p37044_p3), %s39232_s18, 0 }
  0x44   : > { %s36595_s24 = smul.u32 (!%p37044_p3), 1536, %s158_s23  ;;  %s159_s29 = scalar_lea.sflag (!%p37044_p3), [#allocation3], %s158_s23 }
  0x46   : > { %s37084_s27 = scalar_lea.vmem (!%p37044_p3), [#allocation2], %s36595_s24 }
  0x48   : > { %36914 = dma.done.wait (%p39235_p7), %s159_s29, 24576  }
  0x49   : > { %36916 = vsyncadd (%p39235_p7), %s159_s29, 4294942720  ;;  %s36596_s12 = smul.u32 12288, %s158_s23  ;;  %s168_s22 = scalar_lea.sflag [#allocation5], %s158_s23 }
  0x4b   : > { %s37090_s19 = scalar_lea.vmem [#allocation4], %s36596_s12 }
  0x4c   : > { %36918 = dma.done.wait (%p39235_p7), %s168_s22, 196608  }
  0x4d   : > { %36920 = vsyncadd (%p39235_p7), %s168_s22, 4294770688  ;;  %v2128_v0 = vlaneseq  ;;  %v36942_v1 = vmov 1983009808   ;;  %v1740_v6 = vld [vmem:[%s37084_s27] sm:$0xff]  ;;  %v205_v8 = vld [vmem:[%s37090_s19 + $0x8] sm:$0xff]  ;;  %p199_p8 = scmp.lt.s32.totalorder %s36977_s13, 1 }
  0x4e   : > { %v2126_v2 = vunpack.c.l.s4 %v36942_v1  ;;  %v1836_v7 = vld [vmem:[%s37084_s27 + $0x300] sm:$0xff]  ;;  %v2124_v9 = vcombine.high %v1740_v6, %v1740_v6  ;;  %6220 = vmatprep.mubr.f32.mxu1 %v205_v8  ;;  %v589_v13 = vld [vmem:[%s37090_s19 + $0xc08] sm:$0xff]  ;;  %v207_v34 = vld [vmem:[%s37090_s19 + $0x18] sm:$0xff]  ;;  %vm34956_vm0 = vcmask 15360   ;;  %vm34958_vm1 = vcmask 9216  }
  0x4f   : > { %v2129_v3 = vshrl.u32 %v2128_v0, 7  ;;  %v3756_v11 = vcombine.high %v1836_v7, %v1836_v7  ;;  %20620 = vmatprep.mubr.f32.mxu0 %v589_v13  ;;  %v1741_v18 = vld [vmem:[%s37084_s27 + $0x8] sm:$0xff]  ;;  %v204_v23 = vld [vmem:[%s37090_s19] sm:$0xff]  ;;  %v591_v35 = vld [vmem:[%s37090_s19 + $0xc18] sm:$0xff]  ;;  %s39241_s13 = smov (!%p199_p8, %s36977_s13), 1 }
  0x50   : > { %v2127_v4 = vunpack.c.0.s8 %v2126_v2  ;;  %v1837_v22 = vld [vmem:[%s37084_s27 + $0x308] sm:$0xff]  ;;  %v588_v24 = vld [vmem:[%s37090_s19 + $0xc00] sm:$0xff]  ;;  %v2141_v30 = vcombine.high %v1741_v18, %v1741_v18  ;;  %v206_v38 = vld [vmem:[%s37090_s19 + $0x10] sm:$0xff]  ;;  %s35062_s18 = sshll.u32 %s39241_s13, 4 }
  0x51   : > { %v973_v26 = vld [vmem:[%s37090_s19 + $0x1808] sm:$0x3]  ;;  %v3773_v31 = vcombine.high %v1837_v22, %v1837_v22  ;;  %v972_v32 = vld [vmem:[%s37090_s19 + $0x1800] sm:$0x3]  ;;  %v590_v39 = vld [vmem:[%s37090_s19 + $0xc10] sm:$0xff]  ;;  %s203_s30 = scalar_lea.vmem %s39230_s2, %s35062_s18 }
  0x52   : > { %v37096_v5 = vsub.s32 %v2127_v4, %v2129_v3  ;;  %v1357_v27 = vld [vmem:[%s37090_s19 + $0x2408] sm:$0x3]  ;;  %v1356_v33 = vld [vmem:[%s37090_s19 + $0x2400] sm:$0x3]  ;;  %v975_v40 = vld [vmem:[%s37090_s19 + $0x1818] sm:$0x3] }
  0x53   : > { %v1359_v41 = vld [vmem:[%s37090_s19 + $0x2418] sm:$0x3]  ;;  %v1742_v44 = vld [vmem:[%s37084_s27 + $0x10] sm:$0xff]  ;;  %v209_v48 = vld [vmem:[%s37090_s19 + $0x28] sm:$0xff] }
  0x54   : > { %v2131_v10 = vrot.slane %v1740_v6, %v37096_v5  ;;  %v3763_v12 = vrot.slane %v1836_v7, %v37096_v5  ;;  %v2138_v16 = vrot.slane %v2124_v9, %v37096_v5  ;;  %v3770_v17 = vrot.slane %v3756_v11, %v37096_v5  ;;  %v1838_v45 = vld [vmem:[%s37084_s27 + $0x310] sm:$0xff]  ;;  %v593_v49 = vld [vmem:[%s37090_s19 + $0xc28] sm:$0xff]  ;;  %v208_v52 = vld [vmem:[%s37090_s19 + $0x20] sm:$0xff] }
  0x55   : > { %v2148_v21 = vrot.slane %v1741_v18, %v37096_v5  ;;  %v3780_v25 = vrot.slane %v1837_v22, %v37096_v5  ;;  %v2155_v36 = vrot.slane %v2141_v30, %v37096_v5  ;;  %v3787_v37 = vrot.slane %v3773_v31, %v37096_v5  ;;  %v974_v46 = vld [vmem:[%s37090_s19 + $0x1810] sm:$0x3]  ;;  %v592_v53 = vld [vmem:[%s37090_s19 + $0xc20] sm:$0xff]  ;;  %v977_v54 = vld [vmem:[%s37090_s19 + $0x1828] sm:$0x3] }
  0x56   : > { %v2139_v14 = vcombine.high %v2131_v10, %v2131_v10  ;;  %v3771_v15 = vcombine.high %v3763_v12, %v3763_v12  ;;  %v2140_v19 = vcombine.high %v2138_v16, %v2138_v16  ;;  %v3772_v20 = vcombine.high %v3770_v17, %v3770_v17  ;;  %v1358_v47 = vld [vmem:[%s37090_s19 + $0x2410] sm:$0x3]  ;;  %v1361_v55 = vld [vmem:[%s37090_s19 + $0x2428] sm:$0x3]  ;;  %v976_v60 = vld [vmem:[%s37090_s19 + $0x1820] sm:$0x3] }
  0x57   : > { %v2156_v28 = vcombine.high %v2148_v21, %v2148_v21  ;;  %v3788_v29 = vcombine.high %v3780_v25, %v3780_v25  ;;  %v2157_v42 = vcombine.high %v2155_v36, %v2155_v36  ;;  %v3789_v43 = vcombine.high %v3787_v37, %v3787_v37  ;;  %v1360_v61 = vld [vmem:[%s37090_s19 + $0x2420] sm:$0x3]  ;;  %v211_v62 = vld [vmem:[%s37090_s19 + $0x38] sm:$0xff]  ;;  %v210_v2 = vld [vmem:[%s37090_s19 + $0x30] sm:$0xff] }
  0x58   : > { %6156 = vmatprep.subr.mxu1 %v2139_v14  ;;  %20556 = vmatprep.subr.mxu0 %v3771_v15  ;;  %v2165_v50 = vrot.slane %v1742_v44, %v37096_v5  ;;  %v3797_v51 = vrot.slane %v1838_v45, %v37096_v5  ;;  %v2158_v58 = vcombine.high %v1742_v44, %v1742_v44  ;;  %v595_v63 = vld [vmem:[%s37090_s19 + $0xc38] sm:$0xff]  ;;  %v594_v3 = vld [vmem:[%s37090_s19 + $0xc30] sm:$0xff]  ;;  %v213_v13 = vld [vmem:[%s37090_s19 + $0x48] sm:$0xff] }
  0x59   : > { %6157 = vmatpush1.xpose.msra.mxu1 %v2131_v10  ;;  %20557 = vmatpush1.xpose.msra.mxu0 %v3763_v12  ;;  %v3790_v59 = vcombine.high %v1838_v45, %v1838_v45  ;;  %v979_v4 = vld [vmem:[%s37090_s19 + $0x1838] sm:$0x3]  ;;  %v978_v11 = vld [vmem:[%s37090_s19 + $0x1830] sm:$0x3]  ;;  %v597_v14 = vld [vmem:[%s37090_s19 + $0xc48] sm:$0xff] }
  0x5a   : > { %6231 = vmatprep.subr.mxu1 %v2140_v19  ;;  %20631 = vmatprep.subr.mxu0 %v3772_v20  ;;  %v2173_v56 = vcombine.high %v2165_v50, %v2165_v50  ;;  %v3805_v57 = vcombine.high %v3797_v51, %v3797_v51  ;;  %v2172_v0 = vrot.slane %v2158_v58, %v37096_v5  ;;  %v1363_v6 = vld [vmem:[%s37090_s19 + $0x2438] sm:$0x3]  ;;  %v1362_v12 = vld [vmem:[%s37090_s19 + $0x2430] sm:$0x3]  ;;  %v596_v18 = vld [vmem:[%s37090_s19 + $0xc40] sm:$0xff] }
  0x5b   : > { %v3804_v1 = vrot.slane %v3790_v59, %v37096_v5  ;;  %v1743_v9 = vld [vmem:[%s37084_s27 + $0x18] sm:$0xff]  ;;  %v981_v19 = vld [vmem:[%s37090_s19 + $0x1848] sm:$0x3]  ;;  %v214_v31 = vld [vmem:[%s37090_s19 + $0x50] sm:$0xff] }
  0x5c   : > { %6221 = vmatmul.mubr.f32.vlgmr.msra.gmra.mrb[0].mxu1 %v204_v23  ;;  %20621 = vmatmul.mubr.f32.vlgmr.msra.gmra.mrb[0].mxu0 %v588_v24  ;;  %v2174_v7 = vcombine.high %v2172_v0, %v2172_v0  ;;  %v1839_v10 = vld [vmem:[%s37084_s27 + $0x318] sm:$0xff]  ;;  %v2182_v15 = vrot.slane %v1743_v9, %v37096_v5  ;;  %v1365_v20 = vld [vmem:[%s37090_s19 + $0x2448] sm:$0x3]  ;;  %v2175_v23 = vcombine.high %v1743_v9, %v1743_v9  ;;  %v216_v45 = vld [vmem:[%s37090_s19 + $0x60] sm:$0xff] }
  0x5d   : > { %6232 = vmatpush1.xpose.msra.mxu1 %v2138_v16  ;;  %20632 = vmatpush1.xpose.msra.mxu0 %v3770_v17  ;;  %v3806_v8 = vcombine.high %v3804_v1, %v3804_v1  ;;  %v3814_v16 = vrot.slane %v1839_v10, %v37096_v5  ;;  %v212_v17 = vld [vmem:[%s37090_s19 + $0x40] sm:$0xff]  ;;  %v3807_v24 = vcombine.high %v1839_v10, %v1839_v10  ;;  %v218_v59 = vld [vmem:[%s37090_s19 + $0x70] sm:$0xff] }
  0x5e   : > { %6225 = vmatprep.mubr.f32.mxu1 %v973_v26  ;;  %20625 = vmatprep.mubr.f32.mxu0 %v1357_v27  ;;  %v1364_v26 = vld [vmem:[%s37090_s19 + $0x2440] sm:$0x3]  ;;  %v215_v27 = vld [vmem:[%s37090_s19 + $0x58] sm:$0xff] }
  0x5f   : > { %6306 = vmatprep.subr.mxu1 %v2156_v28  ;;  %20706 = vmatprep.subr.mxu0 %v3788_v29  ;;  %v3822_v22 = vcombine.high %v3814_v16, %v3814_v16  ;;  %v599_v28 = vld [vmem:[%s37090_s19 + $0xc58] sm:$0xff]  ;;  %v2189_v29 = vrot.slane %v2175_v23, %v37096_v5  ;;  %v3821_v30 = vrot.slane %v3807_v24, %v37096_v5  ;;  %v220_v10 = vld [vmem:[%s37090_s19 + $0x80] sm:$0xff]  ;;  %v222_v24 = vld [vmem:[%s37090_s19 + $0x90] sm:$0xff] }
  0x60   : > { %6226 = vmatmul.mubr.f32.gmra.mrb[2].mxu1 %v972_v32  ;;  %20626 = vmatmul.mubr.f32.gmra.mrb[2].mxu0 %v1356_v33  ;;  %v598_v32 = vld [vmem:[%s37090_s19 + $0xc50] sm:$0xff]  ;;  %v983_v33 = vld [vmem:[%s37090_s19 + $0x1858] sm:$0x3] }
  0x61   : > { %6295 = vmatprep.mubr.f32.mxu1 %v207_v34  ;;  %20695 = vmatprep.mubr.f32.mxu0 %v591_v35  ;;  %v1367_v34 = vld [vmem:[%s37090_s19 + $0x2458] sm:$0x3]  ;;  %v2191_v35 = vcombine.high %v2189_v29, %v2189_v29 }
  0x64   : > { %6296 = vmatmul.mubr.f32.vlgmr.msra.gmra.mrb[0].mxu1 %v206_v38  ;;  %20696 = vmatmul.mubr.f32.vlgmr.msra.gmra.mrb[0].mxu0 %v590_v39  ;;  %v1840_v38 = vld [vmem:[%s37084_s27 + $0x320] sm:$0xff]  ;;  %v982_v39 = vld [vmem:[%s37090_s19 + $0x1850] sm:$0x3] }
  0x65   : > { %6307 = vmatpush1.xpose.msra.mxu1 %v2148_v21  ;;  %20707 = vmatpush1.xpose.msra.mxu0 %v3780_v25  ;;  %v2190_v21 = vcombine.high %v2182_v15, %v2182_v15  ;;  %v980_v25 = vld [vmem:[%s37090_s19 + $0x1840] sm:$0x3]  ;;  %v3831_v44 = vrot.slane %v1840_v38, %v37096_v5 }
  0x66   : > { %6300 = vmatprep.mubr.f32.mxu1 %v975_v40  ;;  %20700 = vmatprep.mubr.f32.mxu0 %v1359_v41  ;;  %v1366_v40 = vld [vmem:[%s37090_s19 + $0x2450] sm:$0x3]  ;;  %v217_v41 = vld [vmem:[%s37090_s19 + $0x68] sm:$0xff] }
  0x67   : > { %6381 = vmatprep.subr.mxu1 %v2157_v42  ;;  %20781 = vmatprep.subr.mxu0 %v3789_v43  ;;  %v601_v42 = vld [vmem:[%s37090_s19 + $0xc68] sm:$0xff] }
  0x68   : > { %6301 = vmatmul.mubr.f32.gmra.mrb[2].mxu1 %v974_v46  ;;  %20701 = vmatmul.mubr.f32.gmra.mrb[2].mxu0 %v1358_v47  ;;  %v600_v46 = vld [vmem:[%s37090_s19 + $0xc60] sm:$0xff]  ;;  %v985_v47 = vld [vmem:[%s37090_s19 + $0x1868] sm:$0x3] }
  0x69   : > { %6370 = vmatprep.mubr.f32.mxu1 %v209_v48  ;;  %20770 = vmatprep.mubr.f32.mxu0 %v593_v49  ;;  %v1369_v48 = vld [vmem:[%s37090_s19 + $0x2468] sm:$0x3] }
  0x6c   : > { %6371 = vmatmul.mubr.f32.vlgmr.msra.gmra.mrb[0].mxu1 %v208_v52  ;;  %20771 = vmatmul.mubr.f32.vlgmr.msra.gmra.mrb[0].mxu0 %v592_v53  ;;  %v3824_v52 = vcombine.high %v1840_v38, %v1840_v38  ;;  %v984_v53 = vld [vmem:[%s37090_s19 + $0x1860] sm:$0x3] }
  0x6d   : > { %6382 = vmatpush1.xpose.msra.mxu1 %v2155_v36  ;;  %20782 = vmatpush1.xpose.msra.mxu0 %v3787_v37  ;;  %v3823_v36 = vcombine.high %v3821_v30, %v3821_v30  ;;  %v1744_v37 = vld [vmem:[%s37084_s27 + $0x20] sm:$0xff] }
  0x6e   : > { %6375 = vmatprep.mubr.f32.mxu1 %v977_v54  ;;  %20775 = vmatprep.mubr.f32.mxu0 %v1361_v55  ;;  %v2199_v43 = vrot.slane %v1744_v37, %v37096_v5  ;;  %v1368_v54 = vld [vmem:[%s37090_s19 + $0x2460] sm:$0x3]  ;;  %v219_v55 = vld [vmem:[%s37090_s19 + $0x78] sm:$0xff]  ;;  %v3838_v58 = vrot.slane %v3824_v52, %v37096_v5  ;;  %v226_v52 = vld [vmem:[%s37090_s19 + $0xb0] sm:$0xff] }
  0x6f   : > { %6456 = vmatprep.subr.mxu1 %v2173_v56  ;;  %20856 = vmatprep.subr.mxu0 %v3805_v57  ;;  %v603_v56 = vld [vmem:[%s37090_s19 + $0xc78] sm:$0xff]  ;;  %v224_v38 = vld [vmem:[%s37090_s19 + $0xa0] sm:$0xff] }
  0x70   : > { %6376 = vmatmul.mubr.f32.gmra.mrb[2].mxu1 %v976_v60  ;;  %20776 = vmatmul.mubr.f32.gmra.mrb[2].mxu0 %v1360_v61  ;;  %v2207_v49 = vcombine.high %v2199_v43, %v2199_v43  ;;  %v602_v60 = vld [vmem:[%s37090_s19 + $0xc70] sm:$0xff]  ;;  %v987_v61 = vld [vmem:[%s37090_s19 + $0x1878] sm:$0x3] }
  0x71   : > { %6445 = vmatprep.mubr.f32.mxu1 %v211_v62  ;;  %20845 = vmatprep.mubr.f32.mxu0 %v595_v63  ;;  %v1371_v62 = vld [vmem:[%s37090_s19 + $0x2478] sm:$0x3] }
  0x74   : > { %6446 = vmatmul.mubr.f32.vlgmr.msra.gmra.mrb[0].mxu1 %v210_v2  ;;  %20846 = vmatmul.mubr.f32.vlgmr.msra.gmra.mrb[0].mxu0 %v594_v3  ;;  %v1841_v2 = vld [vmem:[%s37084_s27 + $0x328] sm:$0xff]  ;;  %v986_v3 = vld [vmem:[%s37090_s19 + $0x1870] sm:$0x3] }
  0x75   : > { %6457 = vmatpush1.xpose.msra.mxu1 %v2165_v50  ;;  %20857 = vmatpush1.xpose.msra.mxu0 %v3797_v51  ;;  %v3839_v50 = vcombine.high %v3831_v44, %v3831_v44  ;;  %v2192_v51 = vcombine.high %v1744_v37, %v1744_v37  ;;  %v3848_v9 = vrot.slane %v1841_v2, %v37096_v5 }
  0x76   : > { %6450 = vmatprep.mubr.f32.mxu1 %v979_v4  ;;  %20850 = vmatprep.mubr.f32.mxu0 %v1363_v6  ;;  %v1370_v4 = vld [vmem:[%s37090_s19 + $0x2470] sm:$0x3]  ;;  %v221_v6 = vld [vmem:[%s37090_s19 + $0x88] sm:$0xff] }
  0x77   : > { %6531 = vmatprep.subr.mxu1 %v2174_v7  ;;  %20931 = vmatprep.subr.mxu0 %v3806_v8  ;;  %v2206_v57 = vrot.slane %v2192_v51, %v37096_v5  ;;  %v605_v7 = vld [vmem:[%s37090_s19 + $0xc88] sm:$0xff] }
  0x78   : > { %6451 = vmatmul.mubr.f32.gmra.mrb[2].mxu1 %v978_v11  ;;  %20851 = vmatmul.mubr.f32.gmra.mrb[2].mxu0 %v1362_v12  ;;  %v604_v11 = vld [vmem:[%s37090_s19 + $0xc80] sm:$0xff]  ;;  %v989_v12 = vld [vmem:[%s37090_s19 + $0x1888] sm:$0x3] }
  0x79   : > { %6520 = vmatprep.mubr.f32.mxu1 %v213_v13  ;;  %20920 = vmatprep.mubr.f32.mxu0 %v597_v14  ;;  %v2208_v63 = vcombine.high %v2206_v57, %v2206_v57  ;;  %v1373_v13 = vld [vmem:[%s37090_s19 + $0x2488] sm:$0x3] }
  0x7c   : > { %6521 = vmatmul.mubr.f32.vlgmr.msra.gmra.mrb[0].mxu1 %v212_v17  ;;  %20921 = vmatmul.mubr.f32.vlgmr.msra.gmra.mrb[0].mxu0 %v596_v18  ;;  %v3841_v17 = vcombine.high %v1841_v2, %v1841_v2  ;;  %v988_v18 = vld [vmem:[%s37090_s19 + $0x1880] sm:$0x3] }
  0x7d   : > { %6532 = vmatpush1.xpose.msra.mxu1 %v2172_v0  ;;  %20932 = vmatpush1.xpose.msra.mxu0 %v3804_v1  ;;  %v3840_v0 = vcombine.high %v3838_v58, %v3838_v58  ;;  %v1745_v1 = vld [vmem:[%s37084_s27 + $0x28] sm:$0xff]  ;;  %v228_v2 = vld [vmem:[%s37090_s19 + $0xc0] sm:$0xff] }
  0x7e   : > { %6525 = vmatprep.mubr.f32.mxu1 %v981_v19  ;;  %20925 = vmatprep.mubr.f32.mxu0 %v1365_v20  ;;  %v2216_v8 = vrot.slane %v1745_v1, %v37096_v5  ;;  %v1372_v19 = vld [vmem:[%s37090_s19 + $0x2480] sm:$0x3]  ;;  %v223_v20 = vld [vmem:[%s37090_s19 + $0x98] sm:$0xff]  ;;  %v3855_v23 = vrot.slane %v3841_v17, %v37096_v5  ;;  %v230_v17 = vld [vmem:[%s37090_s19 + $0xd0] sm:$0xff] }
  0x7f   : > { %6606 = vmatprep.subr.mxu1 %v2190_v21  ;;  %21006 = vmatprep.subr.mxu0 %v3822_v22  ;;  %v607_v21 = vld [vmem:[%s37090_s19 + $0xc98] sm:$0xff] }
  0x80   : > { %6526 = vmatmul.mubr.f32.gmra.mrb[2].mxu1 %v980_v25  ;;  %20926 = vmatmul.mubr.f32.gmra.mrb[2].mxu0 %v1364_v26  ;;  %v2224_v14 = vcombine.high %v2216_v8, %v2216_v8  ;;  %v606_v25 = vld [vmem:[%s37090_s19 + $0xc90] sm:$0xff]  ;;  %v991_v26 = vld [vmem:[%s37090_s19 + $0x1898] sm:$0x3] }
  0x81   : > { %6595 = vmatprep.mubr.f32.mxu1 %v215_v27  ;;  %20995 = vmatprep.mubr.f32.mxu0 %v599_v28  ;;  %v1375_v27 = vld [vmem:[%s37090_s19 + $0x2498] sm:$0x3] }
  0x84   : > { %6596 = vmatmul.mubr.f32.vlgmr.msra.gmra.mrb[0].mxu1 %v214_v31  ;;  %20996 = vmatmul.mubr.f32.vlgmr.msra.gmra.mrb[0].mxu0 %v598_v32  ;;  %v1842_v31 = vld [vmem:[%s37084_s27 + $0x330] sm:$0xff] }
  0x85   : > { %6607 = vmatpush1.xpose.msra.mxu1 %v2182_v15  ;;  %21007 = vmatpush1.xpose.msra.mxu0 %v3814_v16  ;;  %v3856_v15 = vcombine.high %v3848_v9, %v3848_v9  ;;  %v2209_v16 = vcombine.high %v1745_v1, %v1745_v1  ;;  %v990_v32 = vld [vmem:[%s37090_s19 + $0x1890] sm:$0x3]  ;;  %v3865_v37 = vrot.slane %v1842_v31, %v37096_v5 }
  0x86   : > { %6600 = vmatprep.mubr.f32.mxu1 %v983_v33  ;;  %21000 = vmatprep.mubr.f32.mxu0 %v1367_v34  ;;  %v1374_v33 = vld [vmem:[%s37090_s19 + $0x2490] sm:$0x3]  ;;  %v225_v34 = vld [vmem:[%s37090_s19 + $0xa8] sm:$0xff] }
  0x87   : > { %6681 = vmatprep.subr.mxu1 %v2191_v35  ;;  %21081 = vmatprep.subr.mxu0 %v3823_v36  ;;  %v2223_v22 = vrot.slane %v2209_v16, %v37096_v5  ;;  %v609_v35 = vld [vmem:[%s37090_s19 + $0xca8] sm:$0xff] }
  0x88   : > { %6601 = vmatmul.mubr.f32.gmra.mrb[2].mxu1 %v982_v39  ;;  %21001 = vmatmul.mubr.f32.gmra.mrb[2].mxu0 %v1366_v40  ;;  %v608_v39 = vld [vmem:[%s37090_s19 + $0xca0] sm:$0xff]  ;;  %v993_v40 = vld [vmem:[%s37090_s19 + $0x18a8] sm:$0x3] }
  0x89   : > { %6670 = vmatprep.mubr.f32.mxu1 %v217_v41  ;;  %21070 = vmatprep.mubr.f32.mxu0 %v601_v42  ;;  %v2225_v28 = vcombine.high %v2223_v22, %v2223_v22  ;;  %v1377_v41 = vld [vmem:[%s37090_s19 + $0x24a8] sm:$0x3] }
  0x8c   : > { %6671 = vmatmul.mubr.f32.vlgmr.msra.gmra.mrb[0].mxu1 %v216_v45  ;;  %21071 = vmatmul.mubr.f32.vlgmr.msra.gmra.mrb[0].mxu0 %v600_v46  ;;  %v3858_v45 = vcombine.high %v1842_v31, %v1842_v31  ;;  %v992_v46 = vld [vmem:[%s37090_s19 + $0x18a0] sm:$0x3] }
  0x8d   : > { %6682 = vmatpush1.xpose.msra.mxu1 %v2189_v29  ;;  %21082 = vmatpush1.xpose.msra.mxu0 %v3821_v30  ;;  %v3857_v29 = vcombine.high %v3855_v23, %v3855_v23  ;;  %v1746_v30 = vld [vmem:[%s37084_s27 + $0x30] sm:$0xff]  ;;  %v232_v31 = vld [vmem:[%s37090_s19 + $0xe0] sm:$0xff] }
  0x8e   : > { %6675 = vmatprep.mubr.f32.mxu1 %v985_v47  ;;  %21075 = vmatprep.mubr.f32.mxu0 %v1369_v48  ;;  %v2233_v36 = vrot.slane %v1746_v30, %v37096_v5  ;;  %v1376_v47 = vld [vmem:[%s37090_s19 + $0x24a0] sm:$0x3]  ;;  %v227_v48 = vld [vmem:[%s37090_s19 + $0xb8] sm:$0xff]  ;;  %v3872_v51 = vrot.slane %v3858_v45, %v37096_v5  ;;  %v234_v45 = vld [vmem:[%s37090_s19 + $0xf0] sm:$0xff] }
  0x8f   : > { %6756 = vmatprep.subr.mxu1 %v2207_v49  ;;  %21156 = vmatprep.subr.mxu0 %v3839_v50  ;;  %v611_v49 = vld [vmem:[%s37090_s19 + $0xcb8] sm:$0xff] }
  0x90   : > { %6676 = vmatmul.mubr.f32.gmra.mrb[2].mxu1 %v984_v53  ;;  %21076 = vmatmul.mubr.f32.gmra.mrb[2].mxu0 %v1368_v54  ;;  %v2241_v42 = vcombine.high %v2233_v36, %v2233_v36  ;;  %v610_v53 = vld [vmem:[%s37090_s19 + $0xcb0] sm:$0xff]  ;;  %v995_v54 = vld [vmem:[%s37090_s19 + $0x18b8] sm:$0x3] }
  0x91   : > { %6745 = vmatprep.mubr.f32.mxu1 %v219_v55  ;;  %21145 = vmatprep.mubr.f32.mxu0 %v603_v56  ;;  %v1379_v55 = vld [vmem:[%s37090_s19 + $0x24b8] sm:$0x3] }
  0x94   : > { %6746 = vmatmul.mubr.f32.vlgmr.msra.gmra.mrb[0].mxu1 %v218_v59  ;;  %21146 = vmatmul.mubr.f32.vlgmr.msra.gmra.mrb[0].mxu0 %v602_v60  ;;  %v1843_v59 = vld [vmem:[%s37084_s27 + $0x338] sm:$0xff]  ;;  %v994_v60 = vld [vmem:[%s37090_s19 + $0x18b0] sm:$0x3] }
  0x95   : > { %6757 = vmatpush1.xpose.msra.mxu1 %v2199_v43  ;;  %21157 = vmatpush1.xpose.msra.mxu0 %v3831_v44  ;;  %v3873_v43 = vcombine.high %v3865_v37, %v3865_v37  ;;  %v2226_v44 = vcombine.high %v1746_v30, %v1746_v30  ;;  %v3882_v1 = vrot.slane %v1843_v59, %v37096_v5 }
  0x96   : > { %6750 = vmatprep.mubr.f32.mxu1 %v987_v61  ;;  %21150 = vmatprep.mubr.f32.mxu0 %v1371_v62  ;;  %v1378_v61 = vld [vmem:[%s37090_s19 + $0x24b0] sm:$0x3]  ;;  %v229_v62 = vld [vmem:[%s37090_s19 + $0xc8] sm:$0xff] }
  0x97   : > { %6831 = vmatprep.subr.mxu1 %v2208_v63  ;;  %21231 = vmatprep.subr.mxu0 %v3840_v0  ;;  %v2240_v50 = vrot.slane %v2226_v44, %v37096_v5  ;;  %v613_v63 = vld [vmem:[%s37090_s19 + $0xcc8] sm:$0xff] }
  0x98   : > { %6751 = vmatmul.mubr.f32.gmra.mrb[2].mxu1 %v986_v3  ;;  %21151 = vmatmul.mubr.f32.gmra.mrb[2].mxu0 %v1370_v4  ;;  %v612_v3 = vld [vmem:[%s37090_s19 + $0xcc0] sm:$0xff]  ;;  %v997_v4 = vld [vmem:[%s37090_s19 + $0x18c8] sm:$0x3] }
  0x99   : > { %6820 = vmatprep.mubr.f32.mxu1 %v221_v6  ;;  %21220 = vmatprep.mubr.f32.mxu0 %v605_v7  ;;  %v2242_v56 = vcombine.high %v2240_v50, %v2240_v50  ;;  %v1381_v6 = vld [vmem:[%s37090_s19 + $0x24c8] sm:$0x3] }
  0x9c   : > { %6821 = vmatmul.mubr.f32.vlgmr.msra.gmra.mrb[0].mxu1 %v220_v10  ;;  %21221 = vmatmul.mubr.f32.vlgmr.msra.gmra.mrb[0].mxu0 %v604_v11  ;;  %v3875_v10 = vcombine.high %v1843_v59, %v1843_v59  ;;  %v996_v11 = vld [vmem:[%s37090_s19 + $0x18c0] sm:$0x3] }
  0x9d   : > { %6832 = vmatpush1.xpose.msra.mxu1 %v2206_v57  ;;  %21232 = vmatpush1.xpose.msra.mxu0 %v3838_v58  ;;  %v3874_v57 = vcombine.high %v3872_v51, %v3872_v51  ;;  %v1747_v58 = vld [vmem:[%s37084_s27 + $0x38] sm:$0xff]  ;;  %v236_v59 = vld [vmem:[%s37090_s19 + $0x100] sm:$0xff] }
  0x9e   : > { %6825 = vmatprep.mubr.f32.mxu1 %v989_v12  ;;  %21225 = vmatprep.mubr.f32.mxu0 %v1373_v13  ;;  %v2250_v0 = vrot.slane %v1747_v58, %v37096_v5  ;;  %v1380_v12 = vld [vmem:[%s37090_s19 + $0x24c0] sm:$0x3]  ;;  %v231_v13 = vld [vmem:[%s37090_s19 + $0xd8] sm:$0xff]  ;;  %v3889_v16 = vrot.slane %v3875_v10, %v37096_v5  ;;  %v238_v10 = vld [vmem:[%s37090_s19 + $0x110] sm:$0xff] }
  0x9f   : > { %6906 = vmatprep.subr.mxu1 %v2224_v14  ;;  %21306 = vmatprep.subr.mxu0 %v3856_v15  ;;  %v615_v14 = vld [vmem:[%s37090_s19 + $0xcd8] sm:$0xff] }
  0xa0   : > { %6826 = vmatmul.mubr.f32.gmra.mrb[2].mxu1 %v988_v18  ;;  %21226 = vmatmul.mubr.f32.gmra.mrb[2].mxu0 %v1372_v19  ;;  %v2258_v7 = vcombine.high %v2250_v0, %v2250_v0  ;;  %v614_v18 = vld [vmem:[%s37090_s19 + $0xcd0] sm:$0xff]  ;;  %v999_v19 = vld [vmem:[%s37090_s19 + $0x18d8] sm:$0x3] }
  0xa1   : > { %6895 = vmatprep.mubr.f32.mxu1 %v223_v20  ;;  %21295 = vmatprep.mubr.f32.mxu0 %v607_v21  ;;  %v1383_v20 = vld [vmem:[%s37090_s19 + $0x24d8] sm:$0x3] }
  0xa4   : > { %6896 = vmatmul.mubr.f32.vlgmr.msra.gmra.mrb[0].mxu1 %v222_v24  ;;  %21296 = vmatmul.mubr.f32.vlgmr.msra.gmra.mrb[0].mxu0 %v606_v25  ;;  %v1844_v24 = vld [vmem:[%s37084_s27 + $0x340] sm:$0xff]  ;;  %v998_v25 = vld [vmem:[%s37090_s19 + $0x18d0] sm:$0x3] }
  0xa5   : > { %6907 = vmatpush1.xpose.msra.mxu1 %v2216_v8  ;;  %21307 = vmatpush1.xpose.msra.mxu0 %v3848_v9  ;;  %v3890_v8 = vcombine.high %v3882_v1, %v3882_v1  ;;  %v2243_v9 = vcombine.high %v1747_v58, %v1747_v58  ;;  %v3899_v30 = vrot.slane %v1844_v24, %v37096_v5 }
  0xa6   : > { %6900 = vmatprep.mubr.f32.mxu1 %v991_v26  ;;  %21300 = vmatprep.mubr.f32.mxu0 %v1375_v27  ;;  %v1382_v26 = vld [vmem:[%s37090_s19 + $0x24d0] sm:$0x3]  ;;  %v233_v27 = vld [vmem:[%s37090_s19 + $0xe8] sm:$0xff] }
  0xa7   : > { %6981 = vmatprep.subr.mxu1 %v2225_v28  ;;  %21381 = vmatprep.subr.mxu0 %v3857_v29  ;;  %v2257_v15 = vrot.slane %v2243_v9, %v37096_v5  ;;  %v617_v28 = vld [vmem:[%s37090_s19 + $0xce8] sm:$0xff] }
  0xa8   : > { %6901 = vmatmul.mubr.f32.gmra.mrb[2].mxu1 %v990_v32  ;;  %21301 = vmatmul.mubr.f32.gmra.mrb[2].mxu0 %v1374_v33  ;;  %v616_v32 = vld [vmem:[%s37090_s19 + $0xce0] sm:$0xff]  ;;  %v1001_v33 = vld [vmem:[%s37090_s19 + $0x18e8] sm:$0x3] }
  0xa9   : > { %6970 = vmatprep.mubr.f32.mxu1 %v225_v34  ;;  %21370 = vmatprep.mubr.f32.mxu0 %v609_v35  ;;  %v2259_v21 = vcombine.high %v2257_v15, %v2257_v15  ;;  %v1385_v34 = vld [vmem:[%s37090_s19 + $0x24e8] sm:$0x3] }
  0xac   : > { %6971 = vmatmul.mubr.f32.vlgmr.msra.gmra.mrb[0].mxu1 %v224_v38  ;;  %21371 = vmatmul.mubr.f32.vlgmr.msra.gmra.mrb[0].mxu0 %v608_v39  ;;  %v3892_v38 = vcombine.high %v1844_v24, %v1844_v24  ;;  %v1000_v39 = vld [vmem:[%s37090_s19 + $0x18e0] sm:$0x3] }
  0xad   : > { %6982 = vmatpush1.xpose.msra.mxu1 %v2223_v22  ;;  %21382 = vmatpush1.xpose.msra.mxu0 %v3855_v23  ;;  %v3891_v22 = vcombine.high %v3889_v16, %v3889_v16  ;;  %v1748_v23 = vld [vmem:[%s37084_s27 + $0x40] sm:$0xff] }
  0xae   : > { %6975 = vmatprep.mubr.f32.mxu1 %v993_v40  ;;  %21375 = vmatprep.mubr.f32.mxu0 %v1377_v41  ;;  %v2267_v29 = vrot.slane %v1748_v23, %v37096_v5  ;;  %v1384_v40 = vld [vmem:[%s37090_s19 + $0x24e0] sm:$0x3]  ;;  %v235_v41 = vld [vmem:[%s37090_s19 + $0xf8] sm:$0xff]  ;;  %v3906_v44 = vrot.slane %v3892_v38, %v37096_v5  ;;  %v242_v38 = vld [vmem:[%s37090_s19 + $0x130] sm:$0xff] }
  0xaf   : > { %7056 = vmatprep.subr.mxu1 %v2241_v42  ;;  %21456 = vmatprep.subr.mxu0 %v3873_v43  ;;  %v619_v42 = vld [vmem:[%s37090_s19 + $0xcf8] sm:$0xff]  ;;  %v240_v24 = vld [vmem:[%s37090_s19 + $0x120] sm:$0xff] }
  0xb0   : > { %6976 = vmatmul.mubr.f32.gmra.mrb[2].mxu1 %v992_v46  ;;  %21376 = vmatmul.mubr.f32.gmra.mrb[2].mxu0 %v1376_v47  ;;  %v2275_v35 = vcombine.high %v2267_v29, %v2267_v29  ;;  %v618_v46 = vld [vmem:[%s37090_s19 + $0xcf0] sm:$0xff]  ;;  %v1003_v47 = vld [vmem:[%s37090_s19 + $0x18f8] sm:$0x3] }
  0xb1   : > { %7045 = vmatprep.mubr.f32.mxu1 %v227_v48  ;;  %21445 = vmatprep.mubr.f32.mxu0 %v611_v49  ;;  %v1387_v48 = vld [vmem:[%s37090_s19 + $0x24f8] sm:$0x3] }
  0xb4   : > { %7046 = vmatmul.mubr.f32.vlgmr.msra.gmra.mrb[0].mxu1 %v226_v52  ;;  %21446 = vmatmul.mubr.f32.vlgmr.msra.gmra.mrb[0].mxu0 %v610_v53  ;;  %v1845_v52 = vld [vmem:[%s37084_s27 + $0x348] sm:$0xff]  ;;  %v1002_v53 = vld [vmem:[%s37090_s19 + $0x18f0] sm:$0x3] }
  0xb5   : > { %7057 = vmatpush1.xpose.msra.mxu1 %v2233_v36  ;;  %21457 = vmatpush1.xpose.msra.mxu0 %v3865_v37  ;;  %v3907_v36 = vcombine.high %v3899_v30, %v3899_v30  ;;  %v2260_v37 = vcombine.high %v1748_v23, %v1748_v23  ;;  %v3916_v58 = vrot.slane %v1845_v52, %v37096_v5 }
  0xb6   : > { %7050 = vmatprep.mubr.f32.mxu1 %v995_v54  ;;  %21450 = vmatprep.mubr.f32.mxu0 %v1379_v55  ;;  %v1386_v54 = vld [vmem:[%s37090_s19 + $0x24f0] sm:$0x3]  ;;  %v237_v55 = vld [vmem:[%s37090_s19 + $0x108] sm:$0xff] }
  0xb7   : > { %7131 = vmatprep.subr.mxu1 %v2242_v56  ;;  %21531 = vmatprep.subr.mxu0 %v3874_v57  ;;  %v2274_v43 = vrot.slane %v2260_v37, %v37096_v5  ;;  %v621_v56 = vld [vmem:[%s37090_s19 + $0xd08] sm:$0xff] }
  0xb8   : > { %7051 = vmatmul.mubr.f32.gmra.mrb[2].mxu1 %v994_v60  ;;  %21451 = vmatmul.mubr.f32.gmra.mrb[2].mxu0 %v1378_v61  ;;  %v620_v60 = vld [vmem:[%s37090_s19 + $0xd00] sm:$0xff]  ;;  %v1005_v61 = vld [vmem:[%s37090_s19 + $0x1908] sm:$0x3] }
  0xb9   : > { %7120 = vmatprep.mubr.f32.mxu1 %v229_v62  ;;  %21520 = vmatprep.mubr.f32.mxu0 %v613_v63  ;;  %v2276_v49 = vcombine.high %v2274_v43, %v2274_v43  ;;  %v1389_v62 = vld [vmem:[%s37090_s19 + $0x2508] sm:$0x3] }
  0xbc   : > { %7121 = vmatmul.mubr.f32.vlgmr.msra.gmra.mrb[0].mxu1 %v228_v2  ;;  %21521 = vmatmul.mubr.f32.vlgmr.msra.gmra.mrb[0].mxu0 %v612_v3  ;;  %v3909_v2 = vcombine.high %v1845_v52, %v1845_v52  ;;  %v1004_v3 = vld [vmem:[%s37090_s19 + $0x1900] sm:$0x3] }
  0xbd   : > { %7132 = vmatpush1.xpose.msra.mxu1 %v2240_v50  ;;  %21532 = vmatpush1.xpose.msra.mxu0 %v3872_v51  ;;  %v3908_v50 = vcombine.high %v3906_v44, %v3906_v44  ;;  %v1749_v51 = vld [vmem:[%s37084_s27 + $0x48] sm:$0xff]  ;;  %v244_v52 = vld [vmem:[%s37090_s19 + $0x140] sm:$0xff] }
  0xbe   : > { %7125 = vmatprep.mubr.f32.mxu1 %v997_v4  ;;  %21525 = vmatprep.mubr.f32.mxu0 %v1381_v6  ;;  %v2284_v57 = vrot.slane %v1749_v51, %v37096_v5  ;;  %v1388_v4 = vld [vmem:[%s37090_s19 + $0x2500] sm:$0x3]  ;;  %v239_v6 = vld [vmem:[%s37090_s19 + $0x118] sm:$0xff]  ;;  %v3923_v9 = vrot.slane %v3909_v2, %v37096_v5  ;;  %v246_v2 = vld [vmem:[%s37090_s19 + $0x150] sm:$0xff] }
  0xbf   : > { %7206 = vmatprep.subr.mxu1 %v2258_v7  ;;  %21606 = vmatprep.subr.mxu0 %v3890_v8  ;;  %v623_v7 = vld [vmem:[%s37090_s19 + $0xd18] sm:$0xff] }
  0xc0   : > { %7126 = vmatmul.mubr.f32.gmra.mrb[2].mxu1 %v996_v11  ;;  %21526 = vmatmul.mubr.f32.gmra.mrb[2].mxu0 %v1380_v12  ;;  %v2292_v63 = vcombine.high %v2284_v57, %v2284_v57  ;;  %v622_v11 = vld [vmem:[%s37090_s19 + $0xd10] sm:$0xff]  ;;  %v1007_v12 = vld [vmem:[%s37090_s19 + $0x1918] sm:$0x3] }
  0xc1   : > { %7195 = vmatprep.mubr.f32.mxu1 %v231_v13  ;;  %21595 = vmatprep.mubr.f32.mxu0 %v615_v14  ;;  %v1391_v13 = vld [vmem:[%s37090_s19 + $0x2518] sm:$0x3] }
  0xc4   : > { %7196 = vmatmul.mubr.f32.vlgmr.msra.gmra.mrb[0].mxu1 %v230_v17  ;;  %21596 = vmatmul.mubr.f32.vlgmr.msra.gmra.mrb[0].mxu0 %v614_v18  ;;  %v1846_v17 = vld [vmem:[%s37084_s27 + $0x350] sm:$0xff] }
  0xc5   : > { %7207 = vmatpush1.xpose.msra.mxu1 %v2250_v0  ;;  %21607 = vmatpush1.xpose.msra.mxu0 %v3882_v1  ;;  %v3924_v0 = vcombine.high %v3916_v58, %v3916_v58  ;;  %v2277_v1 = vcombine.high %v1749_v51, %v1749_v51  ;;  %v1006_v18 = vld [vmem:[%s37090_s19 + $0x1910] sm:$0x3]  ;;  %v3933_v23 = vrot.slane %v1846_v17, %v37096_v5 }
  0xc6   : > { %7200 = vmatprep.mubr.f32.mxu1 %v999_v19  ;;  %21600 = vmatprep.mubr.f32.mxu0 %v1383_v20  ;;  %v1390_v19 = vld [vmem:[%s37090_s19 + $0x2510] sm:$0x3]  ;;  %v241_v20 = vld [vmem:[%s37090_s19 + $0x128] sm:$0xff] }
  0xc7   : > { %7281 = vmatprep.subr.mxu1 %v2259_v21  ;;  %21681 = vmatprep.subr.mxu0 %v3891_v22  ;;  %v2291_v8 = vrot.slane %v2277_v1, %v37096_v5  ;;  %v625_v21 = vld [vmem:[%s37090_s19 + $0xd28] sm:$0xff] }
  0xc8   : > { %7201 = vmatmul.mubr.f32.gmra.mrb[2].mxu1 %v998_v25  ;;  %21601 = vmatmul.mubr.f32.gmra.mrb[2].mxu0 %v1382_v26  ;;  %v624_v25 = vld [vmem:[%s37090_s19 + $0xd20] sm:$0xff]  ;;  %v1009_v26 = vld [vmem:[%s37090_s19 + $0x1928] sm:$0x3] }
  0xc9   : > { %7270 = vmatprep.mubr.f32.mxu1 %v233_v27  ;;  %21670 = vmatprep.mubr.f32.mxu0 %v617_v28  ;;  %v2293_v14 = vcombine.high %v2291_v8, %v2291_v8  ;;  %v1393_v27 = vld [vmem:[%s37090_s19 + $0x2528] sm:$0x3] }
  0xcc   : > { %7271 = vmatmul.mubr.f32.vlgmr.msra.gmra.mrb[0].mxu1 %v232_v31  ;;  %21671 = vmatmul.mubr.f32.vlgmr.msra.gmra.mrb[0].mxu0 %v616_v32  ;;  %v3926_v31 = vcombine.high %v1846_v17, %v1846_v17  ;;  %v1008_v32 = vld [vmem:[%s37090_s19 + $0x1920] sm:$0x3] }
  0xcd   : > { %7282 = vmatpush1.xpose.msra.mxu1 %v2257_v15  ;;  %21682 = vmatpush1.xpose.msra.mxu0 %v3889_v16  ;;  %v3925_v15 = vcombine.high %v3923_v9, %v3923_v9  ;;  %v1750_v16 = vld [vmem:[%s37084_s27 + $0x50] sm:$0xff]  ;;  %v248_v17 = vld [vmem:[%s37090_s19 + $0x160] sm:$0xff] }
  0xce   : > { %7275 = vmatprep.mubr.f32.mxu1 %v1001_v33  ;;  %21675 = vmatprep.mubr.f32.mxu0 %v1385_v34  ;;  %v2301_v22 = vrot.slane %v1750_v16, %v37096_v5  ;;  %v1392_v33 = vld [vmem:[%s37090_s19 + $0x2520] sm:$0x3]  ;;  %v243_v34 = vld [vmem:[%s37090_s19 + $0x138] sm:$0xff]  ;;  %v3940_v37 = vrot.slane %v3926_v31, %v37096_v5  ;;  %v250_v31 = vld [vmem:[%s37090_s19 + $0x170] sm:$0xff] }
  0xcf   : > { %7356 = vmatprep.subr.mxu1 %v2275_v35  ;;  %21756 = vmatprep.subr.mxu0 %v3907_v36  ;;  %v627_v35 = vld [vmem:[%s37090_s19 + $0xd38] sm:$0xff] }
  0xd0   : > { %7276 = vmatmul.mubr.f32.gmra.mrb[2].mxu1 %v1000_v39  ;;  %21676 = vmatmul.mubr.f32.gmra.mrb[2].mxu0 %v1384_v40  ;;  %v2309_v28 = vcombine.high %v2301_v22, %v2301_v22  ;;  %v626_v39 = vld [vmem:[%s37090_s19 + $0xd30] sm:$0xff]  ;;  %v1011_v40 = vld [vmem:[%s37090_s19 + $0x1938] sm:$0x3] }
  0xd1   : > { %7345 = vmatprep.mubr.f32.mxu1 %v235_v41  ;;  %21745 = vmatprep.mubr.f32.mxu0 %v619_v42  ;;  %v1395_v41 = vld [vmem:[%s37090_s19 + $0x2538] sm:$0x3] }
  0xd4   : > { %7346 = vmatmul.mubr.f32.vlgmr.msra.gmra.mrb[0].mxu1 %v234_v45  ;;  %21746 = vmatmul.mubr.f32.vlgmr.msra.gmra.mrb[0].mxu0 %v618_v46  ;;  %v1847_v45 = vld [vmem:[%s37084_s27 + $0x358] sm:$0xff]  ;;  %v1010_v46 = vld [vmem:[%s37090_s19 + $0x1930] sm:$0x3] }
  0xd5   : > { %7357 = vmatpush1.xpose.msra.mxu1 %v2267_v29  ;;  %21757 = vmatpush1.xpose.msra.mxu0 %v3899_v30  ;;  %v3941_v29 = vcombine.high %v3933_v23, %v3933_v23  ;;  %v2294_v30 = vcombine.high %v1750_v16, %v1750_v16  ;;  %v3950_v51 = vrot.slane %v1847_v45, %v37096_v5 }
  0xd6   : > { %7350 = vmatprep.mubr.f32.mxu1 %v1003_v47  ;;  %21750 = vmatprep.mubr.f32.mxu0 %v1387_v48  ;;  %v1394_v47 = vld [vmem:[%s37090_s19 + $0x2530] sm:$0x3]  ;;  %v245_v48 = vld [vmem:[%s37090_s19 + $0x148] sm:$0xff] }
  0xd7   : > { %7431 = vmatprep.subr.mxu1 %v2276_v49  ;;  %21831 = vmatprep.subr.mxu0 %v3908_v50  ;;  %v2308_v36 = vrot.slane %v2294_v30, %v37096_v5  ;;  %v629_v49 = vld [vmem:[%s37090_s19 + $0xd48] sm:$0xff] }
  0xd8   : > { %7351 = vmatmul.mubr.f32.gmra.mrb[2].mxu1 %v1002_v53  ;;  %21751 = vmatmul.mubr.f32.gmra.mrb[2].mxu0 %v1386_v54  ;;  %v628_v53 = vld [vmem:[%s37090_s19 + $0xd40] sm:$0xff]  ;;  %v1013_v54 = vld [vmem:[%s37090_s19 + $0x1948] sm:$0x3] }
  0xd9   : > { %7420 = vmatprep.mubr.f32.mxu1 %v237_v55  ;;  %21820 = vmatprep.mubr.f32.mxu0 %v621_v56  ;;  %v2310_v42 = vcombine.high %v2308_v36, %v2308_v36  ;;  %v1397_v55 = vld [vmem:[%s37090_s19 + $0x2548] sm:$0x3] }
  0xdc   : > { %7421 = vmatmul.mubr.f32.vlgmr.msra.gmra.mrb[0].mxu1 %v236_v59  ;;  %21821 = vmatmul.mubr.f32.vlgmr.msra.gmra.mrb[0].mxu0 %v620_v60  ;;  %v3943_v59 = vcombine.high %v1847_v45, %v1847_v45  ;;  %v1012_v60 = vld [vmem:[%s37090_s19 + $0x1940] sm:$0x3] }
  0xdd   : > { %7432 = vmatpush1.xpose.msra.mxu1 %v2274_v43  ;;  %21832 = vmatpush1.xpose.msra.mxu0 %v3906_v44  ;;  %v3942_v43 = vcombine.high %v3940_v37, %v3940_v37  ;;  %v1751_v44 = vld [vmem:[%s37084_s27 + $0x58] sm:$0xff]  ;;  %v252_v45 = vld [vmem:[%s37090_s19 + $0x180] sm:$0xff] }
  0xde   : > { %7425 = vmatprep.mubr.f32.mxu1 %v1005_v61  ;;  %21825 = vmatprep.mubr.f32.mxu0 %v1389_v62  ;;  %v2318_v50 = vrot.slane %v1751_v44, %v37096_v5  ;;  %v1396_v61 = vld [vmem:[%s37090_s19 + $0x2540] sm:$0x3]  ;;  %v247_v62 = vld [vmem:[%s37090_s19 + $0x158] sm:$0xff]  ;;  %v3957_v1 = vrot.slane %v3943_v59, %v37096_v5  ;;  %v254_v59 = vld [vmem:[%s37090_s19 + $0x190] sm:$0xff] }
  0xdf   : > { %7506 = vmatprep.subr.mxu1 %v2292_v63  ;;  %21906 = vmatprep.subr.mxu0 %v3924_v0  ;;  %v631_v63 = vld [vmem:[%s37090_s19 + $0xd58] sm:$0xff] }
  0xe0   : > { %7426 = vmatmul.mubr.f32.gmra.mrb[2].mxu1 %v1004_v3  ;;  %21826 = vmatmul.mubr.f32.gmra.mrb[2].mxu0 %v1388_v4  ;;  %v2326_v56 = vcombine.high %v2318_v50, %v2318_v50  ;;  %v630_v3 = vld [vmem:[%s37090_s19 + $0xd50] sm:$0xff]  ;;  %v1015_v4 = vld [vmem:[%s37090_s19 + $0x1958] sm:$0x3] }
  0xe1   : > { %7495 = vmatprep.mubr.f32.mxu1 %v239_v6  ;;  %21895 = vmatprep.mubr.f32.mxu0 %v623_v7  ;;  %v1399_v6 = vld [vmem:[%s37090_s19 + $0x2558] sm:$0x3] }
  0xe4   : > { %7496 = vmatmul.mubr.f32.vlgmr.msra.gmra.mrb[0].mxu1 %v238_v10  ;;  %21896 = vmatmul.mubr.f32.vlgmr.msra.gmra.mrb[0].mxu0 %v622_v11  ;;  %v1848_v10 = vld [vmem:[%s37084_s27 + $0x360] sm:$0xff]  ;;  %v1014_v11 = vld [vmem:[%s37090_s19 + $0x1950] sm:$0x3] }
  0xe5   : > { %7507 = vmatpush1.xpose.msra.mxu1 %v2284_v57  ;;  %21907 = vmatpush1.xpose.msra.mxu0 %v3916_v58  ;;  %v3958_v57 = vcombine.high %v3950_v51, %v3950_v51  ;;  %v2311_v58 = vcombine.high %v1751_v44, %v1751_v44  ;;  %v3967_v16 = vrot.slane %v1848_v10, %v37096_v5 }
  0xe6   : > { %7500 = vmatprep.mubr.f32.mxu1 %v1007_v12  ;;  %21900 = vmatprep.mubr.f32.mxu0 %v1391_v13  ;;  %v1398_v12 = vld [vmem:[%s37090_s19 + $0x2550] sm:$0x3]  ;;  %v249_v13 = vld [vmem:[%s37090_s19 + $0x168] sm:$0xff] }
  0xe7   : > { %7581 = vmatprep.subr.mxu1 %v2293_v14  ;;  %21981 = vmatprep.subr.mxu0 %v3925_v15  ;;  %v2325_v0 = vrot.slane %v2311_v58, %v37096_v5  ;;  %v633_v14 = vld [vmem:[%s37090_s19 + $0xd68] sm:$0xff] }
  0xe8   : > { %7501 = vmatmul.mubr.f32.gmra.mrb[2].mxu1 %v1006_v18  ;;  %21901 = vmatmul.mubr.f32.gmra.mrb[2].mxu0 %v1390_v19  ;;  %v632_v18 = vld [vmem:[%s37090_s19 + $0xd60] sm:$0xff]  ;;  %v1017_v19 = vld [vmem:[%s37090_s19 + $0x1968] sm:$0x3] }
  0xe9   : > { %7570 = vmatprep.mubr.f32.mxu1 %v241_v20  ;;  %21970 = vmatprep.mubr.f32.mxu0 %v625_v21  ;;  %v2327_v7 = vcombine.high %v2325_v0, %v2325_v0  ;;  %v1401_v20 = vld [vmem:[%s37090_s19 + $0x2568] sm:$0x3] }
  0xec   : > { %7571 = vmatmul.mubr.f32.vlgmr.msra.gmra.mrb[0].mxu1 %v240_v24  ;;  %21971 = vmatmul.mubr.f32.vlgmr.msra.gmra.mrb[0].mxu0 %v624_v25  ;;  %v3960_v24 = vcombine.high %v1848_v10, %v1848_v10  ;;  %v1016_v25 = vld [vmem:[%s37090_s19 + $0x1960] sm:$0x3] }
  0xed   : > { %7582 = vmatpush1.xpose.msra.mxu1 %v2291_v8  ;;  %21982 = vmatpush1.xpose.msra.mxu0 %v3923_v9  ;;  %v3959_v8 = vcombine.high %v3957_v1, %v3957_v1  ;;  %v1752_v9 = vld [vmem:[%s37084_s27 + $0x60] sm:$0xff] }
  0xee   : > { %7575 = vmatprep.mubr.f32.mxu1 %v1009_v26  ;;  %21975 = vmatprep.mubr.f32.mxu0 %v1393_v27  ;;  %v2335_v15 = vrot.slane %v1752_v9, %v37096_v5  ;;  %v1400_v26 = vld [vmem:[%s37090_s19 + $0x2560] sm:$0x3]  ;;  %v251_v27 = vld [vmem:[%s37090_s19 + $0x178] sm:$0xff]  ;;  %v3974_v30 = vrot.slane %v3960_v24, %v37096_v5  ;;  %v258_v24 = vld [vmem:[%s37090_s19 + $0x1b0] sm:$0xff] }
  0xef   : > { %7656 = vmatprep.subr.mxu1 %v2309_v28  ;;  %22056 = vmatprep.subr.mxu0 %v3941_v29  ;;  %v635_v28 = vld [vmem:[%s37090_s19 + $0xd78] sm:$0xff]  ;;  %v256_v10 = vld [vmem:[%s37090_s19 + $0x1a0] sm:$0xff] }
  0xf0   : > { %7576 = vmatmul.mubr.f32.gmra.mrb[2].mxu1 %v1008_v32  ;;  %21976 = vmatmul.mubr.f32.gmra.mrb[2].mxu0 %v1392_v33  ;;  %v2343_v21 = vcombine.high %v2335_v15, %v2335_v15  ;;  %v634_v32 = vld [vmem:[%s37090_s19 + $0xd70] sm:$0xff]  ;;  %v1019_v33 = vld [vmem:[%s37090_s19 + $0x1978] sm:$0x3] }
  0xf1   : > { %7645 = vmatprep.mubr.f32.mxu1 %v243_v34  ;;  %22045 = vmatprep.mubr.f32.mxu0 %v627_v35  ;;  %v1403_v34 = vld [vmem:[%s37090_s19 + $0x2578] sm:$0x3] }
  0xf4   : > { %7646 = vmatmul.mubr.f32.vlgmr.msra.gmra.mrb[0].mxu1 %v242_v38  ;;  %22046 = vmatmul.mubr.f32.vlgmr.msra.gmra.mrb[0].mxu0 %v626_v39  ;;  %v1849_v38 = vld [vmem:[%s37084_s27 + $0x368] sm:$0xff]  ;;  %v1018_v39 = vld [vmem:[%s37090_s19 + $0x1970] sm:$0x3] }
  0xf5   : > { %7657 = vmatpush1.xpose.msra.mxu1 %v2301_v22  ;;  %22057 = vmatpush1.xpose.msra.mxu0 %v3933_v23  ;;  %v3975_v22 = vcombine.high %v3967_v16, %v3967_v16  ;;  %v2328_v23 = vcombine.high %v1752_v9, %v1752_v9  ;;  %v3984_v44 = vrot.slane %v1849_v38, %v37096_v5 }
  0xf6   : > { %7650 = vmatprep.mubr.f32.mxu1 %v1011_v40  ;;  %22050 = vmatprep.mubr.f32.mxu0 %v1395_v41  ;;  %v1402_v40 = vld [vmem:[%s37090_s19 + $0x2570] sm:$0x3]  ;;  %v253_v41 = vld [vmem:[%s37090_s19 + $0x188] sm:$0xff] }
  0xf7   : > { %7731 = vmatprep.subr.mxu1 %v2310_v42  ;;  %22131 = vmatprep.subr.mxu0 %v3942_v43  ;;  %v2342_v29 = vrot.slane %v2328_v23, %v37096_v5  ;;  %v637_v42 = vld [vmem:[%s37090_s19 + $0xd88] sm:$0xff] }
  0xf8   : > { %7651 = vmatmul.mubr.f32.gmra.mrb[2].mxu1 %v1010_v46  ;;  %22051 = vmatmul.mubr.f32.gmra.mrb[2].mxu0 %v1394_v47  ;;  %v636_v46 = vld [vmem:[%s37090_s19 + $0xd80] sm:$0xff]  ;;  %v1021_v47 = vld [vmem:[%s37090_s19 + $0x1988] sm:$0x3] }
  0xf9   : > { %7720 = vmatprep.mubr.f32.mxu1 %v245_v48  ;;  %22120 = vmatprep.mubr.f32.mxu0 %v629_v49  ;;  %v2344_v35 = vcombine.high %v2342_v29, %v2342_v29  ;;  %v1405_v48 = vld [vmem:[%s37090_s19 + $0x2588] sm:$0x3] }
  0xfc   : > { %7721 = vmatmul.mubr.f32.vlgmr.msra.gmra.mrb[0].mxu1 %v244_v52  ;;  %22121 = vmatmul.mubr.f32.vlgmr.msra.gmra.mrb[0].mxu0 %v628_v53  ;;  %v3977_v52 = vcombine.high %v1849_v38, %v1849_v38  ;;  %v1020_v53 = vld [vmem:[%s37090_s19 + $0x1980] sm:$0x3] }
  0xfd   : > { %7732 = vmatpush1.xpose.msra.mxu1 %v2308_v36  ;;  %22132 = vmatpush1.xpose.msra.mxu0 %v3940_v37  ;;  %v3976_v36 = vcombine.high %v3974_v30, %v3974_v30  ;;  %v1753_v37 = vld [vmem:[%s37084_s27 + $0x68] sm:$0xff]  ;;  %v260_v38 = vld [vmem:[%s37090_s19 + $0x1c0] sm:$0xff] }
  0xfe   : > { %7725 = vmatprep.mubr.f32.mxu1 %v1013_v54  ;;  %22125 = vmatprep.mubr.f32.mxu0 %v1397_v55  ;;  %v2352_v43 = vrot.slane %v1753_v37, %v37096_v5  ;;  %v1404_v54 = vld [vmem:[%s37090_s19 + $0x2580] sm:$0x3]  ;;  %v255_v55 = vld [vmem:[%s37090_s19 + $0x198] sm:$0xff]  ;;  %v3991_v58 = vrot.slane %v3977_v52, %v37096_v5  ;;  %v262_v52 = vld [vmem:[%s37090_s19 + $0x1d0] sm:$0xff] }
  0xff   : > { %7806 = vmatprep.subr.mxu1 %v2326_v56  ;;  %22206 = vmatprep.subr.mxu0 %v3958_v57  ;;  %v639_v56 = vld [vmem:[%s37090_s19 + $0xd98] sm:$0xff] }
 0x100   : > { %7726 = vmatmul.mubr.f32.gmra.mrb[2].mxu1 %v1012_v60  ;;  %22126 = vmatmul.mubr.f32.gmra.mrb[2].mxu0 %v1396_v61  ;;  %v2360_v49 = vcombine.high %v2352_v43, %v2352_v43  ;;  %v638_v60 = vld [vmem:[%s37090_s19 + $0xd90] sm:$0xff]  ;;  %v1023_v61 = vld [vmem:[%s37090_s19 + $0x1998] sm:$0x3] }
 0x101   : > { %7795 = vmatprep.mubr.f32.mxu1 %v247_v62  ;;  %22195 = vmatprep.mubr.f32.mxu0 %v631_v63  ;;  %v1407_v62 = vld [vmem:[%s37090_s19 + $0x2598] sm:$0x3] }
 0x104   : > { %7796 = vmatmul.mubr.f32.vlgmr.msra.gmra.mrb[0].mxu1 %v246_v2  ;;  %22196 = vmatmul.mubr.f32.vlgmr.msra.gmra.mrb[0].mxu0 %v630_v3  ;;  %v1850_v2 = vld [vmem:[%s37084_s27 + $0x370] sm:$0xff] }
 0x105   : > { %7807 = vmatpush1.xpose.msra.mxu1 %v2318_v50  ;;  %22207 = vmatpush1.xpose.msra.mxu0 %v3950_v51  ;;  %v3992_v50 = vcombine.high %v3984_v44, %v3984_v44  ;;  %v2345_v51 = vcombine.high %v1753_v37, %v1753_v37  ;;  %v1022_v3 = vld [vmem:[%s37090_s19 + $0x1990] sm:$0x3]  ;;  %v4001_v9 = vrot.slane %v1850_v2, %v37096_v5 }
 0x106   : > { %7800 = vmatprep.mubr.f32.mxu1 %v1015_v4  ;;  %22200 = vmatprep.mubr.f32.mxu0 %v1399_v6  ;;  %v1406_v4 = vld [vmem:[%s37090_s19 + $0x2590] sm:$0x3]  ;;  %v257_v6 = vld [vmem:[%s37090_s19 + $0x1a8] sm:$0xff] }
 0x107   : > { %7881 = vmatprep.subr.mxu1 %v2327_v7  ;;  %22281 = vmatprep.subr.mxu0 %v3959_v8  ;;  %v2359_v57 = vrot.slane %v2345_v51, %v37096_v5  ;;  %v641_v7 = vld [vmem:[%s37090_s19 + $0xda8] sm:$0xff] }
 0x108   : > { %7801 = vmatmul.mubr.f32.gmra.mrb[2].mxu1 %v1014_v11  ;;  %22201 = vmatmul.mubr.f32.gmra.mrb[2].mxu0 %v1398_v12  ;;  %v640_v11 = vld [vmem:[%s37090_s19 + $0xda0] sm:$0xff]  ;;  %v1025_v12 = vld [vmem:[%s37090_s19 + $0x19a8] sm:$0x3] }
 0x109   : > { %7870 = vmatprep.mubr.f32.mxu1 %v249_v13  ;;  %22270 = vmatprep.mubr.f32.mxu0 %v633_v14  ;;  %v2361_v63 = vcombine.high %v2359_v57, %v2359_v57  ;;  %v1409_v13 = vld [vmem:[%s37090_s19 + $0x25a8] sm:$0x3] }
 0x10c   : > { %7871 = vmatmul.mubr.f32.vlgmr.msra.gmra.mrb[0].mxu1 %v248_v17  ;;  %22271 = vmatmul.mubr.f32.vlgmr.msra.gmra.mrb[0].mxu0 %v632_v18  ;;  %v3994_v17 = vcombine.high %v1850_v2, %v1850_v2  ;;  %v1024_v18 = vld [vmem:[%s37090_s19 + $0x19a0] sm:$0x3] }
 0x10d   : > { %7882 = vmatpush1.xpose.msra.mxu1 %v2325_v0  ;;  %22282 = vmatpush1.xpose.msra.mxu0 %v3957_v1  ;;  %v3993_v0 = vcombine.high %v3991_v58, %v3991_v58  ;;  %v1754_v1 = vld [vmem:[%s37084_s27 + $0x70] sm:$0xff]  ;;  %v264_v2 = vld [vmem:[%s37090_s19 + $0x1e0] sm:$0xff] }
 0x10e   : > { %7875 = vmatprep.mubr.f32.mxu1 %v1017_v19  ;;  %22275 = vmatprep.mubr.f32.mxu0 %v1401_v20  ;;  %v2369_v8 = vrot.slane %v1754_v1, %v37096_v5  ;;  %v1408_v19 = vld [vmem:[%s37090_s19 + $0x25a0] sm:$0x3]  ;;  %v259_v20 = vld [vmem:[%s37090_s19 + $0x1b8] sm:$0xff]  ;;  %v4008_v23 = vrot.slane %v3994_v17, %v37096_v5  ;;  %v266_v17 = vld [vmem:[%s37090_s19 + $0x1f0] sm:$0xff] }
 0x10f   : > { %7956 = vmatprep.subr.mxu1 %v2343_v21  ;;  %22356 = vmatprep.subr.mxu0 %v3975_v22  ;;  %v643_v21 = vld [vmem:[%s37090_s19 + $0xdb8] sm:$0xff] }
 0x110   : > { %7876 = vmatmul.mubr.f32.gmra.mrb[2].mxu1 %v1016_v25  ;;  %22276 = vmatmul.mubr.f32.gmra.mrb[2].mxu0 %v1400_v26  ;;  %v2377_v14 = vcombine.high %v2369_v8, %v2369_v8  ;;  %v642_v25 = vld [vmem:[%s37090_s19 + $0xdb0] sm:$0xff]  ;;  %v1027_v26 = vld [vmem:[%s37090_s19 + $0x19b8] sm:$0x3] }
 0x111   : > { %7945 = vmatprep.mubr.f32.mxu1 %v251_v27  ;;  %22345 = vmatprep.mubr.f32.mxu0 %v635_v28  ;;  %v1411_v27 = vld [vmem:[%s37090_s19 + $0x25b8] sm:$0x3] }
 0x114   : > { %7946 = vmatmul.mubr.f32.vlgmr.msra.gmra.mrb[0].mxu1 %v250_v31  ;;  %22346 = vmatmul.mubr.f32.vlgmr.msra.gmra.mrb[0].mxu0 %v634_v32  ;;  %v1851_v31 = vld [vmem:[%s37084_s27 + $0x378] sm:$0xff]  ;;  %v1026_v32 = vld [vmem:[%s37090_s19 + $0x19b0] sm:$0x3] }
 0x115   : > { %7957 = vmatpush1.xpose.msra.mxu1 %v2335_v15  ;;  %22357 = vmatpush1.xpose.msra.mxu0 %v3967_v16  ;;  %v4009_v15 = vcombine.high %v4001_v9, %v4001_v9  ;;  %v2362_v16 = vcombine.high %v1754_v1, %v1754_v1  ;;  %v4018_v37 = vrot.slane %v1851_v31, %v37096_v5 }
 0x116   : > { %7950 = vmatprep.mubr.f32.mxu1 %v1019_v33  ;;  %22350 = vmatprep.mubr.f32.mxu0 %v1403_v34  ;;  %v1410_v33 = vld [vmem:[%s37090_s19 + $0x25b0] sm:$0x3]  ;;  %v261_v34 = vld [vmem:[%s37090_s19 + $0x1c8] sm:$0xff] }
 0x117   : > { %8031 = vmatprep.subr.mxu1 %v2344_v35  ;;  %22431 = vmatprep.subr.mxu0 %v3976_v36  ;;  %v2376_v22 = vrot.slane %v2362_v16, %v37096_v5  ;;  %v645_v35 = vld [vmem:[%s37090_s19 + $0xdc8] sm:$0xff] }
 0x118   : > { %7951 = vmatmul.mubr.f32.gmra.mrb[2].mxu1 %v1018_v39  ;;  %22351 = vmatmul.mubr.f32.gmra.mrb[2].mxu0 %v1402_v40  ;;  %v644_v39 = vld [vmem:[%s37090_s19 + $0xdc0] sm:$0xff]  ;;  %v1029_v40 = vld [vmem:[%s37090_s19 + $0x19c8] sm:$0x3] }
 0x119   : > { %8020 = vmatprep.mubr.f32.mxu1 %v253_v41  ;;  %22420 = vmatprep.mubr.f32.mxu0 %v637_v42  ;;  %v2378_v28 = vcombine.high %v2376_v22, %v2376_v22  ;;  %v1413_v41 = vld [vmem:[%s37090_s19 + $0x25c8] sm:$0x3] }
 0x11c   : > { %8021 = vmatmul.mubr.f32.vlgmr.msra.gmra.mrb[0].mxu1 %v252_v45  ;;  %22421 = vmatmul.mubr.f32.vlgmr.msra.gmra.mrb[0].mxu0 %v636_v46  ;;  %v4011_v45 = vcombine.high %v1851_v31, %v1851_v31  ;;  %v1028_v46 = vld [vmem:[%s37090_s19 + $0x19c0] sm:$0x3] }
 0x11d   : > { %8032 = vmatpush1.xpose.msra.mxu1 %v2342_v29  ;;  %22432 = vmatpush1.xpose.msra.mxu0 %v3974_v30  ;;  %v4010_v29 = vcombine.high %v4008_v23, %v4008_v23  ;;  %v1755_v30 = vld [vmem:[%s37084_s27 + $0x78] sm:$0xff]  ;;  %v268_v31 = vld [vmem:[%s37090_s19 + $0x200] sm:$0xff] }
 0x11e   : > { %8025 = vmatprep.mubr.f32.mxu1 %v1021_v47  ;;  %22425 = vmatprep.mubr.f32.mxu0 %v1405_v48  ;;  %v2386_v36 = vrot.slane %v1755_v30, %v37096_v5  ;;  %v1412_v47 = vld [vmem:[%s37090_s19 + $0x25c0] sm:$0x3]  ;;  %v263_v48 = vld [vmem:[%s37090_s19 + $0x1d8] sm:$0xff]  ;;  %v4025_v51 = vrot.slane %v4011_v45, %v37096_v5  ;;  %v270_v45 = vld [vmem:[%s37090_s19 + $0x210] sm:$0xff] }
 0x11f   : > { %8106 = vmatprep.subr.mxu1 %v2360_v49  ;;  %22506 = vmatprep.subr.mxu0 %v3992_v50  ;;  %v647_v49 = vld [vmem:[%s37090_s19 + $0xdd8] sm:$0xff] }
 0x120   : > { %8026 = vmatmul.mubr.f32.gmra.mrb[2].mxu1 %v1020_v53  ;;  %22426 = vmatmul.mubr.f32.gmra.mrb[2].mxu0 %v1404_v54  ;;  %v2394_v42 = vcombine.high %v2386_v36, %v2386_v36  ;;  %v646_v53 = vld [vmem:[%s37090_s19 + $0xdd0] sm:$0xff]  ;;  %v1031_v54 = vld [vmem:[%s37090_s19 + $0x19d8] sm:$0x3] }
 0x121   : > { %8095 = vmatprep.mubr.f32.mxu1 %v255_v55  ;;  %22495 = vmatprep.mubr.f32.mxu0 %v639_v56  ;;  %v1415_v55 = vld [vmem:[%s37090_s19 + $0x25d8] sm:$0x3] }
 0x124   : > { %8096 = vmatmul.mubr.f32.vlgmr.msra.gmra.mrb[0].mxu1 %v254_v59  ;;  %22496 = vmatmul.mubr.f32.vlgmr.msra.gmra.mrb[0].mxu0 %v638_v60  ;;  %v1852_v59 = vld [vmem:[%s37084_s27 + $0x380] sm:$0xff]  ;;  %v1030_v60 = vld [vmem:[%s37090_s19 + $0x19d0] sm:$0x3] }
 0x125   : > { %8107 = vmatpush1.xpose.msra.mxu1 %v2352_v43  ;;  %22507 = vmatpush1.xpose.msra.mxu0 %v3984_v44  ;;  %v4026_v43 = vcombine.high %v4018_v37, %v4018_v37  ;;  %v2379_v44 = vcombine.high %v1755_v30, %v1755_v30  ;;  %v4035_v1 = vrot.slane %v1852_v59, %v37096_v5 }
 0x126   : > { %8100 = vmatprep.mubr.f32.mxu1 %v1023_v61  ;;  %22500 = vmatprep.mubr.f32.mxu0 %v1407_v62  ;;  %v1414_v61 = vld [vmem:[%s37090_s19 + $0x25d0] sm:$0x3]  ;;  %v265_v62 = vld [vmem:[%s37090_s19 + $0x1e8] sm:$0xff] }
 0x127   : > { %8181 = vmatprep.subr.mxu1 %v2361_v63  ;;  %22581 = vmatprep.subr.mxu0 %v3993_v0  ;;  %v2393_v50 = vrot.slane %v2379_v44, %v37096_v5  ;;  %v649_v63 = vld [vmem:[%s37090_s19 + $0xde8] sm:$0xff] }
 0x128   : > { %8101 = vmatmul.mubr.f32.gmra.mrb[2].mxu1 %v1022_v3  ;;  %22501 = vmatmul.mubr.f32.gmra.mrb[2].mxu0 %v1406_v4  ;;  %v648_v3 = vld [vmem:[%s37090_s19 + $0xde0] sm:$0xff]  ;;  %v1033_v4 = vld [vmem:[%s37090_s19 + $0x19e8] sm:$0x3] }
 0x129   : > { %8170 = vmatprep.mubr.f32.mxu1 %v257_v6  ;;  %22570 = vmatprep.mubr.f32.mxu0 %v641_v7  ;;  %v2395_v56 = vcombine.high %v2393_v50, %v2393_v50  ;;  %v1417_v6 = vld [vmem:[%s37090_s19 + $0x25e8] sm:$0x3] }
 0x12c   : > { %8171 = vmatmul.mubr.f32.vlgmr.msra.gmra.mrb[0].mxu1 %v256_v10  ;;  %22571 = vmatmul.mubr.f32.vlgmr.msra.gmra.mrb[0].mxu0 %v640_v11  ;;  %v4028_v10 = vcombine.high %v1852_v59, %v1852_v59  ;;  %v1032_v11 = vld [vmem:[%s37090_s19 + $0x19e0] sm:$0x3] }
 0x12d   : > { %8182 = vmatpush1.xpose.msra.mxu1 %v2359_v57  ;;  %22582 = vmatpush1.xpose.msra.mxu0 %v3991_v58  ;;  %v4027_v57 = vcombine.high %v4025_v51, %v4025_v51  ;;  %v1756_v58 = vld [vmem:[%s37084_s27 + $0x80] sm:$0xff] }
 0x12e   : > { %8175 = vmatprep.mubr.f32.mxu1 %v1025_v12  ;;  %22575 = vmatprep.mubr.f32.mxu0 %v1409_v13  ;;  %v2403_v0 = vrot.slane %v1756_v58, %v37096_v5  ;;  %v1416_v12 = vld [vmem:[%s37090_s19 + $0x25e0] sm:$0x3]  ;;  %v267_v13 = vld [vmem:[%s37090_s19 + $0x1f8] sm:$0xff]  ;;  %v4042_v16 = vrot.slane %v4028_v10, %v37096_v5  ;;  %v274_v10 = vld [vmem:[%s37090_s19 + $0x230] sm:$0xff] }
 0x12f   : > { %8256 = vmatprep.subr.mxu1 %v2377_v14  ;;  %22656 = vmatprep.subr.mxu0 %v4009_v15  ;;  %v651_v14 = vld [vmem:[%s37090_s19 + $0xdf8] sm:$0xff]  ;;  %v272_v59 = vld [vmem:[%s37090_s19 + $0x220] sm:$0xff] }
 0x130   : > { %8176 = vmatmul.mubr.f32.gmra.mrb[2].mxu1 %v1024_v18  ;;  %22576 = vmatmul.mubr.f32.gmra.mrb[2].mxu0 %v1408_v19  ;;  %v2411_v7 = vcombine.high %v2403_v0, %v2403_v0  ;;  %v650_v18 = vld [vmem:[%s37090_s19 + $0xdf0] sm:$0xff]  ;;  %v1035_v19 = vld [vmem:[%s37090_s19 + $0x19f8] sm:$0x3] }
 0x131   : > { %8245 = vmatprep.mubr.f32.mxu1 %v259_v20  ;;  %22645 = vmatprep.mubr.f32.mxu0 %v643_v21  ;;  %v1419_v20 = vld [vmem:[%s37090_s19 + $0x25f8] sm:$0x3] }
 0x134   : > { %8246 = vmatmul.mubr.f32.vlgmr.msra.gmra.mrb[0].mxu1 %v258_v24  ;;  %22646 = vmatmul.mubr.f32.vlgmr.msra.gmra.mrb[0].mxu0 %v642_v25  ;;  %v1853_v24 = vld [vmem:[%s37084_s27 + $0x388] sm:$0xff]  ;;  %v1034_v25 = vld [vmem:[%s37090_s19 + $0x19f0] sm:$0x3] }
 0x135   : > { %8257 = vmatpush1.xpose.msra.mxu1 %v2369_v8  ;;  %22657 = vmatpush1.xpose.msra.mxu0 %v4001_v9  ;;  %v4043_v8 = vcombine.high %v4035_v1, %v4035_v1  ;;  %v2396_v9 = vcombine.high %v1756_v58, %v1756_v58  ;;  %v4052_v30 = vrot.slane %v1853_v24, %v37096_v5 }
 0x136   : > { %8250 = vmatprep.mubr.f32.mxu1 %v1027_v26  ;;  %22650 = vmatprep.mubr.f32.mxu0 %v1411_v27  ;;  %v1418_v26 = vld [vmem:[%s37090_s19 + $0x25f0] sm:$0x3]  ;;  %v269_v27 = vld [vmem:[%s37090_s19 + $0x208] sm:$0xff] }
 0x137   : > { %8331 = vmatprep.subr.mxu1 %v2378_v28  ;;  %22731 = vmatprep.subr.mxu0 %v4010_v29  ;;  %v2410_v15 = vrot.slane %v2396_v9, %v37096_v5  ;;  %v653_v28 = vld [vmem:[%s37090_s19 + $0xe08] sm:$0xff] }
 0x138   : > { %8251 = vmatmul.mubr.f32.gmra.mrb[2].mxu1 %v1026_v32  ;;  %22651 = vmatmul.mubr.f32.gmra.mrb[2].mxu0 %v1410_v33  ;;  %v652_v32 = vld [vmem:[%s37090_s19 + $0xe00] sm:$0xff]  ;;  %v1037_v33 = vld [vmem:[%s37090_s19 + $0x1a08] sm:$0x3] }
 0x139   : > { %8320 = vmatprep.mubr.f32.mxu1 %v261_v34  ;;  %22720 = vmatprep.mubr.f32.mxu0 %v645_v35  ;;  %v2412_v21 = vcombine.high %v2410_v15, %v2410_v15  ;;  %v1421_v34 = vld [vmem:[%s37090_s19 + $0x2608] sm:$0x3] }
 0x13c   : > { %8321 = vmatmul.mubr.f32.vlgmr.msra.gmra.mrb[0].mxu1 %v260_v38  ;;  %22721 = vmatmul.mubr.f32.vlgmr.msra.gmra.mrb[0].mxu0 %v644_v39  ;;  %v4045_v38 = vcombine.high %v1853_v24, %v1853_v24  ;;  %v1036_v39 = vld [vmem:[%s37090_s19 + $0x1a00] sm:$0x3] }
 0x13d   : > { %8332 = vmatpush1.xpose.msra.mxu1 %v2376_v22  ;;  %22732 = vmatpush1.xpose.msra.mxu0 %v4008_v23  ;;  %v4044_v22 = vcombine.high %v4042_v16, %v4042_v16  ;;  %v1757_v23 = vld [vmem:[%s37084_s27 + $0x88] sm:$0xff]  ;;  %v276_v24 = vld [vmem:[%s37090_s19 + $0x240] sm:$0xff] }
 0x13e   : > { %8325 = vmatprep.mubr.f32.mxu1 %v1029_v40  ;;  %22725 = vmatprep.mubr.f32.mxu0 %v1413_v41  ;;  %v2420_v29 = vrot.slane %v1757_v23, %v37096_v5  ;;  %v1420_v40 = vld [vmem:[%s37090_s19 + $0x2600] sm:$0x3]  ;;  %v271_v41 = vld [vmem:[%s37090_s19 + $0x218] sm:$0xff]  ;;  %v4059_v44 = vrot.slane %v4045_v38, %v37096_v5  ;;  %v278_v38 = vld [vmem:[%s37090_s19 + $0x250] sm:$0xff] }
 0x13f   : > { %8406 = vmatprep.subr.mxu1 %v2394_v42  ;;  %22806 = vmatprep.subr.mxu0 %v4026_v43  ;;  %v655_v42 = vld [vmem:[%s37090_s19 + $0xe18] sm:$0xff] }
 0x140   : > { %8326 = vmatmul.mubr.f32.gmra.mrb[2].mxu1 %v1028_v46  ;;  %22726 = vmatmul.mubr.f32.gmra.mrb[2].mxu0 %v1412_v47  ;;  %v2428_v35 = vcombine.high %v2420_v29, %v2420_v29  ;;  %v654_v46 = vld [vmem:[%s37090_s19 + $0xe10] sm:$0xff]  ;;  %v1039_v47 = vld [vmem:[%s37090_s19 + $0x1a18] sm:$0x3] }
 0x141   : > { %8395 = vmatprep.mubr.f32.mxu1 %v263_v48  ;;  %22795 = vmatprep.mubr.f32.mxu0 %v647_v49  ;;  %v1423_v48 = vld [vmem:[%s37090_s19 + $0x2618] sm:$0x3] }
 0x144   : > { %8396 = vmatmul.mubr.f32.vlgmr.msra.gmra.mrb[0].mxu1 %v262_v52  ;;  %22796 = vmatmul.mubr.f32.vlgmr.msra.gmra.mrb[0].mxu0 %v646_v53  ;;  %v1854_v52 = vld [vmem:[%s37084_s27 + $0x390] sm:$0xff] }
 0x145   : > { %8407 = vmatpush1.xpose.msra.mxu1 %v2386_v36  ;;  %22807 = vmatpush1.xpose.msra.mxu0 %v4018_v37  ;;  %v4060_v36 = vcombine.high %v4052_v30, %v4052_v30  ;;  %v2413_v37 = vcombine.high %v1757_v23, %v1757_v23  ;;  %v1038_v53 = vld [vmem:[%s37090_s19 + $0x1a10] sm:$0x3]  ;;  %v4069_v58 = vrot.slane %v1854_v52, %v37096_v5 }
 0x146   : > { %8400 = vmatprep.mubr.f32.mxu1 %v1031_v54  ;;  %22800 = vmatprep.mubr.f32.mxu0 %v1415_v55  ;;  %v1422_v54 = vld [vmem:[%s37090_s19 + $0x2610] sm:$0x3]  ;;  %v273_v55 = vld [vmem:[%s37090_s19 + $0x228] sm:$0xff] }
 0x147   : > { %8481 = vmatprep.subr.mxu1 %v2395_v56  ;;  %22881 = vmatprep.subr.mxu0 %v4027_v57  ;;  %v2427_v43 = vrot.slane %v2413_v37, %v37096_v5  ;;  %v657_v56 = vld [vmem:[%s37090_s19 + $0xe28] sm:$0xff] }
 0x148   : > { %8401 = vmatmul.mubr.f32.gmra.mrb[2].mxu1 %v1030_v60  ;;  %22801 = vmatmul.mubr.f32.gmra.mrb[2].mxu0 %v1414_v61  ;;  %v656_v60 = vld [vmem:[%s37090_s19 + $0xe20] sm:$0xff]  ;;  %v1041_v61 = vld [vmem:[%s37090_s19 + $0x1a28] sm:$0x3] }
 0x149   : > { %8470 = vmatprep.mubr.f32.mxu1 %v265_v62  ;;  %22870 = vmatprep.mubr.f32.mxu0 %v649_v63  ;;  %v2429_v49 = vcombine.high %v2427_v43, %v2427_v43  ;;  %v1425_v62 = vld [vmem:[%s37090_s19 + $0x2628] sm:$0x3] }
 0x14c   : > { %8471 = vmatmul.mubr.f32.vlgmr.msra.gmra.mrb[0].mxu1 %v264_v2  ;;  %22871 = vmatmul.mubr.f32.vlgmr.msra.gmra.mrb[0].mxu0 %v648_v3  ;;  %v4062_v2 = vcombine.high %v1854_v52, %v1854_v52  ;;  %v1040_v3 = vld [vmem:[%s37090_s19 + $0x1a20] sm:$0x3] }
 0x14d   : > { %8482 = vmatpush1.xpose.msra.mxu1 %v2393_v50  ;;  %22882 = vmatpush1.xpose.msra.mxu0 %v4025_v51  ;;  %v4061_v50 = vcombine.high %v4059_v44, %v4059_v44  ;;  %v1758_v51 = vld [vmem:[%s37084_s27 + $0x90] sm:$0xff]  ;;  %v280_v52 = vld [vmem:[%s37090_s19 + $0x260] sm:$0xff] }
 0x14e   : > { %8475 = vmatprep.mubr.f32.mxu1 %v1033_v4  ;;  %22875 = vmatprep.mubr.f32.mxu0 %v1417_v6  ;;  %v2437_v57 = vrot.slane %v1758_v51, %v37096_v5  ;;  %v1424_v4 = vld [vmem:[%s37090_s19 + $0x2620] sm:$0x3]  ;;  %v275_v6 = vld [vmem:[%s37090_s19 + $0x238] sm:$0xff]  ;;  %v4076_v9 = vrot.slane %v4062_v2, %v37096_v5  ;;  %v282_v2 = vld [vmem:[%s37090_s19 + $0x270] sm:$0xff] }
 0x14f   : > { %8556 = vmatprep.subr.mxu1 %v2411_v7  ;;  %22956 = vmatprep.subr.mxu0 %v4043_v8  ;;  %v659_v7 = vld [vmem:[%s37090_s19 + $0xe38] sm:$0xff] }
 0x150   : > { %8476 = vmatmul.mubr.f32.gmra.mrb[2].mxu1 %v1032_v11  ;;  %22876 = vmatmul.mubr.f32.gmra.mrb[2].mxu0 %v1416_v12  ;;  %v2445_v63 = vcombine.high %v2437_v57, %v2437_v57  ;;  %v658_v11 = vld [vmem:[%s37090_s19 + $0xe30] sm:$0xff]  ;;  %v1043_v12 = vld [vmem:[%s37090_s19 + $0x1a38] sm:$0x3] }
 0x151   : > { %8545 = vmatprep.mubr.f32.mxu1 %v267_v13  ;;  %22945 = vmatprep.mubr.f32.mxu0 %v651_v14  ;;  %v1427_v13 = vld [vmem:[%s37090_s19 + $0x2638] sm:$0x3] }
 0x154   : > { %8546 = vmatmul.mubr.f32.vlgmr.msra.gmra.mrb[0].mxu1 %v266_v17  ;;  %22946 = vmatmul.mubr.f32.vlgmr.msra.gmra.mrb[0].mxu0 %v650_v18  ;;  %v1855_v17 = vld [vmem:[%s37084_s27 + $0x398] sm:$0xff]  ;;  %v1042_v18 = vld [vmem:[%s37090_s19 + $0x1a30] sm:$0x3] }
 0x155   : > { %8557 = vmatpush1.xpose.msra.mxu1 %v2403_v0  ;;  %22957 = vmatpush1.xpose.msra.mxu0 %v4035_v1  ;;  %v4077_v0 = vcombine.high %v4069_v58, %v4069_v58  ;;  %v2430_v1 = vcombine.high %v1758_v51, %v1758_v51  ;;  %v4086_v23 = vrot.slane %v1855_v17, %v37096_v5 }
 0x156   : > { %8550 = vmatprep.mubr.f32.mxu1 %v1035_v19  ;;  %22950 = vmatprep.mubr.f32.mxu0 %v1419_v20  ;;  %v1426_v19 = vld [vmem:[%s37090_s19 + $0x2630] sm:$0x3]  ;;  %v277_v20 = vld [vmem:[%s37090_s19 + $0x248] sm:$0xff] }
 0x157   : > { %8631 = vmatprep.subr.mxu1 %v2412_v21  ;;  %23031 = vmatprep.subr.mxu0 %v4044_v22  ;;  %v2444_v8 = vrot.slane %v2430_v1, %v37096_v5  ;;  %v661_v21 = vld [vmem:[%s37090_s19 + $0xe48] sm:$0xff] }
 0x158   : > { %8551 = vmatmul.mubr.f32.gmra.mrb[2].mxu1 %v1034_v25  ;;  %22951 = vmatmul.mubr.f32.gmra.mrb[2].mxu0 %v1418_v26  ;;  %v660_v25 = vld [vmem:[%s37090_s19 + $0xe40] sm:$0xff]  ;;  %v1045_v26 = vld [vmem:[%s37090_s19 + $0x1a48] sm:$0x3] }
 0x159   : > { %8620 = vmatprep.mubr.f32.mxu1 %v269_v27  ;;  %23020 = vmatprep.mubr.f32.mxu0 %v653_v28  ;;  %v2446_v14 = vcombine.high %v2444_v8, %v2444_v8  ;;  %v1429_v27 = vld [vmem:[%s37090_s19 + $0x2648] sm:$0x3] }
 0x15c   : > { %8621 = vmatmul.mubr.f32.vlgmr.msra.gmra.mrb[0].mxu1 %v268_v31  ;;  %23021 = vmatmul.mubr.f32.vlgmr.msra.gmra.mrb[0].mxu0 %v652_v32  ;;  %v4079_v31 = vcombine.high %v1855_v17, %v1855_v17  ;;  %v1044_v32 = vld [vmem:[%s37090_s19 + $0x1a40] sm:$0x3] }
 0x15d   : > { %8632 = vmatpush1.xpose.msra.mxu1 %v2410_v15  ;;  %23032 = vmatpush1.xpose.msra.mxu0 %v4042_v16  ;;  %v4078_v15 = vcombine.high %v4076_v9, %v4076_v9  ;;  %v1759_v16 = vld [vmem:[%s37084_s27 + $0x98] sm:$0xff]  ;;  %v284_v17 = vld [vmem:[%s37090_s19 + $0x280] sm:$0xff] }
 0x15e   : > { %8625 = vmatprep.mubr.f32.mxu1 %v1037_v33  ;;  %23025 = vmatprep.mubr.f32.mxu0 %v1421_v34  ;;  %v2454_v22 = vrot.slane %v1759_v16, %v37096_v5  ;;  %v1428_v33 = vld [vmem:[%s37090_s19 + $0x2640] sm:$0x3]  ;;  %v279_v34 = vld [vmem:[%s37090_s19 + $0x258] sm:$0xff]  ;;  %v4093_v37 = vrot.slane %v4079_v31, %v37096_v5  ;;  %v286_v31 = vld [vmem:[%s37090_s19 + $0x290] sm:$0xff] }
 0x15f   : > { %8706 = vmatprep.subr.mxu1 %v2428_v35  ;;  %23106 = vmatprep.subr.mxu0 %v4060_v36  ;;  %v663_v35 = vld [vmem:[%s37090_s19 + $0xe58] sm:$0xff] }
 0x160   : > { %8626 = vmatmul.mubr.f32.gmra.mrb[2].mxu1 %v1036_v39  ;;  %23026 = vmatmul.mubr.f32.gmra.mrb[2].mxu0 %v1420_v40  ;;  %v2462_v28 = vcombine.high %v2454_v22, %v2454_v22  ;;  %v662_v39 = vld [vmem:[%s37090_s19 + $0xe50] sm:$0xff]  ;;  %v1047_v40 = vld [vmem:[%s37090_s19 + $0x1a58] sm:$0x3] }
 0x161   : > { %8695 = vmatprep.mubr.f32.mxu1 %v271_v41  ;;  %23095 = vmatprep.mubr.f32.mxu0 %v655_v42  ;;  %v1431_v41 = vld [vmem:[%s37090_s19 + $0x2658] sm:$0x3] }
 0x164   : > { %8696 = vmatmul.mubr.f32.vlgmr.msra.gmra.mrb[0].mxu1 %v270_v45  ;;  %23096 = vmatmul.mubr.f32.vlgmr.msra.gmra.mrb[0].mxu0 %v654_v46  ;;  %v1856_v45 = vld [vmem:[%s37084_s27 + $0x3a0] sm:$0xff]  ;;  %v1046_v46 = vld [vmem:[%s37090_s19 + $0x1a50] sm:$0x3] }
 0x165   : > { %8707 = vmatpush1.xpose.msra.mxu1 %v2420_v29  ;;  %23107 = vmatpush1.xpose.msra.mxu0 %v4052_v30  ;;  %v4094_v29 = vcombine.high %v4086_v23, %v4086_v23  ;;  %v2447_v30 = vcombine.high %v1759_v16, %v1759_v16  ;;  %v4103_v51 = vrot.slane %v1856_v45, %v37096_v5 }
 0x166   : > { %8700 = vmatprep.mubr.f32.mxu1 %v1039_v47  ;;  %23100 = vmatprep.mubr.f32.mxu0 %v1423_v48  ;;  %v1430_v47 = vld [vmem:[%s37090_s19 + $0x2650] sm:$0x3]  ;;  %v281_v48 = vld [vmem:[%s37090_s19 + $0x268] sm:$0xff] }
 0x167   : > { %8781 = vmatprep.subr.mxu1 %v2429_v49  ;;  %23181 = vmatprep.subr.mxu0 %v4061_v50  ;;  %v2461_v36 = vrot.slane %v2447_v30, %v37096_v5  ;;  %v665_v49 = vld [vmem:[%s37090_s19 + $0xe68] sm:$0xff] }
 0x168   : > { %8701 = vmatmul.mubr.f32.gmra.mrb[2].mxu1 %v1038_v53  ;;  %23101 = vmatmul.mubr.f32.gmra.mrb[2].mxu0 %v1422_v54  ;;  %v664_v53 = vld [vmem:[%s37090_s19 + $0xe60] sm:$0xff]  ;;  %v1049_v54 = vld [vmem:[%s37090_s19 + $0x1a68] sm:$0x3] }
 0x169   : > { %8770 = vmatprep.mubr.f32.mxu1 %v273_v55  ;;  %23170 = vmatprep.mubr.f32.mxu0 %v657_v56  ;;  %v2463_v42 = vcombine.high %v2461_v36, %v2461_v36  ;;  %v1433_v55 = vld [vmem:[%s37090_s19 + $0x2668] sm:$0x3] }
 0x16c   : > { %8771 = vmatmul.mubr.f32.vlgmr.msra.gmra.mrb[0].mxu1 %v272_v59  ;;  %23171 = vmatmul.mubr.f32.vlgmr.msra.gmra.mrb[0].mxu0 %v656_v60  ;;  %v4096_v59 = vcombine.high %v1856_v45, %v1856_v45  ;;  %v1048_v60 = vld [vmem:[%s37090_s19 + $0x1a60] sm:$0x3] }
 0x16d   : > { %8782 = vmatpush1.xpose.msra.mxu1 %v2427_v43  ;;  %23182 = vmatpush1.xpose.msra.mxu0 %v4059_v44  ;;  %v4095_v43 = vcombine.high %v4093_v37, %v4093_v37  ;;  %v1760_v44 = vld [vmem:[%s37084_s27 + $0xa0] sm:$0xff] }
 0x16e   : > { %8775 = vmatprep.mubr.f32.mxu1 %v1041_v61  ;;  %23175 = vmatprep.mubr.f32.mxu0 %v1425_v62  ;;  %v2471_v50 = vrot.slane %v1760_v44, %v37096_v5  ;;  %v1432_v61 = vld [vmem:[%s37090_s19 + $0x2660] sm:$0x3]  ;;  %v283_v62 = vld [vmem:[%s37090_s19 + $0x278] sm:$0xff]  ;;  %v4110_v1 = vrot.slane %v4096_v59, %v37096_v5  ;;  %v290_v59 = vld [vmem:[%s37090_s19 + $0x2b0] sm:$0xff] }
 0x16f   : > { %8856 = vmatprep.subr.mxu1 %v2445_v63  ;;  %23256 = vmatprep.subr.mxu0 %v4077_v0  ;;  %v667_v63 = vld [vmem:[%s37090_s19 + $0xe78] sm:$0xff]  ;;  %v288_v45 = vld [vmem:[%s37090_s19 + $0x2a0] sm:$0xff] }
 0x170   : > { %8776 = vmatmul.mubr.f32.gmra.mrb[2].mxu1 %v1040_v3  ;;  %23176 = vmatmul.mubr.f32.gmra.mrb[2].mxu0 %v1424_v4  ;;  %v2479_v56 = vcombine.high %v2471_v50, %v2471_v50  ;;  %v666_v3 = vld [vmem:[%s37090_s19 + $0xe70] sm:$0xff]  ;;  %v1051_v4 = vld [vmem:[%s37090_s19 + $0x1a78] sm:$0x3] }
 0x171   : > { %8845 = vmatprep.mubr.f32.mxu1 %v275_v6  ;;  %23245 = vmatprep.mubr.f32.mxu0 %v659_v7  ;;  %v1435_v6 = vld [vmem:[%s37090_s19 + $0x2678] sm:$0x3] }
 0x174   : > { %8846 = vmatmul.mubr.f32.vlgmr.msra.gmra.mrb[0].mxu1 %v274_v10  ;;  %23246 = vmatmul.mubr.f32.vlgmr.msra.gmra.mrb[0].mxu0 %v658_v11  ;;  %v1857_v10 = vld [vmem:[%s37084_s27 + $0x3a8] sm:$0xff]  ;;  %v1050_v11 = vld [vmem:[%s37090_s19 + $0x1a70] sm:$0x3] }
 0x175   : > { %8857 = vmatpush1.xpose.msra.mxu1 %v2437_v57  ;;  %23257 = vmatpush1.xpose.msra.mxu0 %v4069_v58  ;;  %v4111_v57 = vcombine.high %v4103_v51, %v4103_v51  ;;  %v2464_v58 = vcombine.high %v1760_v44, %v1760_v44  ;;  %v4120_v16 = vrot.slane %v1857_v10, %v37096_v5 }
 0x176   : > { %8850 = vmatprep.mubr.f32.mxu1 %v1043_v12  ;;  %23250 = vmatprep.mubr.f32.mxu0 %v1427_v13  ;;  %v1434_v12 = vld [vmem:[%s37090_s19 + $0x2670] sm:$0x3]  ;;  %v285_v13 = vld [vmem:[%s37090_s19 + $0x288] sm:$0xff] }
 0x177   : > { %8931 = vmatprep.subr.mxu1 %v2446_v14  ;;  %23331 = vmatprep.subr.mxu0 %v4078_v15  ;;  %v2478_v0 = vrot.slane %v2464_v58, %v37096_v5  ;;  %v669_v14 = vld [vmem:[%s37090_s19 + $0xe88] sm:$0xff] }
 0x178   : > { %8851 = vmatmul.mubr.f32.gmra.mrb[2].mxu1 %v1042_v18  ;;  %23251 = vmatmul.mubr.f32.gmra.mrb[2].mxu0 %v1426_v19  ;;  %v668_v18 = vld [vmem:[%s37090_s19 + $0xe80] sm:$0xff]  ;;  %v1053_v19 = vld [vmem:[%s37090_s19 + $0x1a88] sm:$0x3] }
 0x179   : > { %8920 = vmatprep.mubr.f32.mxu1 %v277_v20  ;;  %23320 = vmatprep.mubr.f32.mxu0 %v661_v21  ;;  %v2480_v7 = vcombine.high %v2478_v0, %v2478_v0  ;;  %v1437_v20 = vld [vmem:[%s37090_s19 + $0x2688] sm:$0x3] }
 0x17c   : > { %8921 = vmatmul.mubr.f32.vlgmr.msra.gmra.mrb[0].mxu1 %v276_v24  ;;  %23321 = vmatmul.mubr.f32.vlgmr.msra.gmra.mrb[0].mxu0 %v660_v25  ;;  %v4113_v24 = vcombine.high %v1857_v10, %v1857_v10  ;;  %v1052_v25 = vld [vmem:[%s37090_s19 + $0x1a80] sm:$0x3] }
 0x17d   : > { %8932 = vmatpush1.xpose.msra.mxu1 %v2444_v8  ;;  %23332 = vmatpush1.xpose.msra.mxu0 %v4076_v9  ;;  %v4112_v8 = vcombine.high %v4110_v1, %v4110_v1  ;;  %v1761_v9 = vld [vmem:[%s37084_s27 + $0xa8] sm:$0xff]  ;;  %v292_v10 = vld [vmem:[%s37090_s19 + $0x2c0] sm:$0xff] }
 0x17e   : > { %8925 = vmatprep.mubr.f32.mxu1 %v1045_v26  ;;  %23325 = vmatprep.mubr.f32.mxu0 %v1429_v27  ;;  %v2488_v15 = vrot.slane %v1761_v9, %v37096_v5  ;;  %v1436_v26 = vld [vmem:[%s37090_s19 + $0x2680] sm:$0x3]  ;;  %v287_v27 = vld [vmem:[%s37090_s19 + $0x298] sm:$0xff]  ;;  %v4127_v30 = vrot.slane %v4113_v24, %v37096_v5  ;;  %v294_v24 = vld [vmem:[%s37090_s19 + $0x2d0] sm:$0xff] }
 0x17f   : > { %9006 = vmatprep.subr.mxu1 %v2462_v28  ;;  %23406 = vmatprep.subr.mxu0 %v4094_v29  ;;  %v671_v28 = vld [vmem:[%s37090_s19 + $0xe98] sm:$0xff] }
 0x180   : > { %8926 = vmatmul.mubr.f32.gmra.mrb[2].mxu1 %v1044_v32  ;;  %23326 = vmatmul.mubr.f32.gmra.mrb[2].mxu0 %v1428_v33  ;;  %v2496_v21 = vcombine.high %v2488_v15, %v2488_v15  ;;  %v670_v32 = vld [vmem:[%s37090_s19 + $0xe90] sm:$0xff]  ;;  %v1055_v33 = vld [vmem:[%s37090_s19 + $0x1a98] sm:$0x3] }
 0x181   : > { %8995 = vmatprep.mubr.f32.mxu1 %v279_v34  ;;  %23395 = vmatprep.mubr.f32.mxu0 %v663_v35  ;;  %v1439_v34 = vld [vmem:[%s37090_s19 + $0x2698] sm:$0x3] }
 0x184   : > { %8996 = vmatmul.mubr.f32.vlgmr.msra.gmra.mrb[0].mxu1 %v278_v38  ;;  %23396 = vmatmul.mubr.f32.vlgmr.msra.gmra.mrb[0].mxu0 %v662_v39  ;;  %v1858_v38 = vld [vmem:[%s37084_s27 + $0x3b0] sm:$0xff] }
 0x185   : > { %9007 = vmatpush1.xpose.msra.mxu1 %v2454_v22  ;;  %23407 = vmatpush1.xpose.msra.mxu0 %v4086_v23  ;;  %v4128_v22 = vcombine.high %v4120_v16, %v4120_v16  ;;  %v2481_v23 = vcombine.high %v1761_v9, %v1761_v9  ;;  %v1054_v39 = vld [vmem:[%s37090_s19 + $0x1a90] sm:$0x3]  ;;  %v4137_v44 = vrot.slane %v1858_v38, %v37096_v5 }
 0x186   : > { %9000 = vmatprep.mubr.f32.mxu1 %v1047_v40  ;;  %23400 = vmatprep.mubr.f32.mxu0 %v1431_v41  ;;  %v1438_v40 = vld [vmem:[%s37090_s19 + $0x2690] sm:$0x3]  ;;  %v289_v41 = vld [vmem:[%s37090_s19 + $0x2a8] sm:$0xff] }
 0x187   : > { %9081 = vmatprep.subr.mxu1 %v2463_v42  ;;  %23481 = vmatprep.subr.mxu0 %v4095_v43  ;;  %v2495_v29 = vrot.slane %v2481_v23, %v37096_v5  ;;  %v673_v42 = vld [vmem:[%s37090_s19 + $0xea8] sm:$0xff] }
 0x188   : > { %9001 = vmatmul.mubr.f32.gmra.mrb[2].mxu1 %v1046_v46  ;;  %23401 = vmatmul.mubr.f32.gmra.mrb[2].mxu0 %v1430_v47  ;;  %v672_v46 = vld [vmem:[%s37090_s19 + $0xea0] sm:$0xff]  ;;  %v1057_v47 = vld [vmem:[%s37090_s19 + $0x1aa8] sm:$0x3] }
 0x189   : > { %9070 = vmatprep.mubr.f32.mxu1 %v281_v48  ;;  %23470 = vmatprep.mubr.f32.mxu0 %v665_v49  ;;  %v2497_v35 = vcombine.high %v2495_v29, %v2495_v29  ;;  %v1441_v48 = vld [vmem:[%s37090_s19 + $0x26a8] sm:$0x3] }
 0x18c   : > { %9071 = vmatmul.mubr.f32.vlgmr.msra.gmra.mrb[0].mxu1 %v280_v52  ;;  %23471 = vmatmul.mubr.f32.vlgmr.msra.gmra.mrb[0].mxu0 %v664_v53  ;;  %v4130_v52 = vcombine.high %v1858_v38, %v1858_v38  ;;  %v1056_v53 = vld [vmem:[%s37090_s19 + $0x1aa0] sm:$0x3] }
 0x18d   : > { %9082 = vmatpush1.xpose.msra.mxu1 %v2461_v36  ;;  %23482 = vmatpush1.xpose.msra.mxu0 %v4093_v37  ;;  %v4129_v36 = vcombine.high %v4127_v30, %v4127_v30  ;;  %v1762_v37 = vld [vmem:[%s37084_s27 + $0xb0] sm:$0xff]  ;;  %v296_v38 = vld [vmem:[%s37090_s19 + $0x2e0] sm:$0xff] }
 0x18e   : > { %9075 = vmatprep.mubr.f32.mxu1 %v1049_v54  ;;  %23475 = vmatprep.mubr.f32.mxu0 %v1433_v55  ;;  %v2505_v43 = vrot.slane %v1762_v37, %v37096_v5  ;;  %v1440_v54 = vld [vmem:[%s37090_s19 + $0x26a0] sm:$0x3]  ;;  %v291_v55 = vld [vmem:[%s37090_s19 + $0x2b8] sm:$0xff]  ;;  %v4144_v58 = vrot.slane %v4130_v52, %v37096_v5  ;;  %v298_v52 = vld [vmem:[%s37090_s19 + $0x2f0] sm:$0xff] }
 0x18f   : > { %9156 = vmatprep.subr.mxu1 %v2479_v56  ;;  %23556 = vmatprep.subr.mxu0 %v4111_v57  ;;  %v675_v56 = vld [vmem:[%s37090_s19 + $0xeb8] sm:$0xff] }
 0x190   : > { %9076 = vmatmul.mubr.f32.gmra.mrb[2].mxu1 %v1048_v60  ;;  %23476 = vmatmul.mubr.f32.gmra.mrb[2].mxu0 %v1432_v61  ;;  %v2513_v49 = vcombine.high %v2505_v43, %v2505_v43  ;;  %v674_v60 = vld [vmem:[%s37090_s19 + $0xeb0] sm:$0xff]  ;;  %v1059_v61 = vld [vmem:[%s37090_s19 + $0x1ab8] sm:$0x3] }
 0x191   : > { %9145 = vmatprep.mubr.f32.mxu1 %v283_v62  ;;  %23545 = vmatprep.mubr.f32.mxu0 %v667_v63  ;;  %v1443_v62 = vld [vmem:[%s37090_s19 + $0x26b8] sm:$0x3] }
 0x194   : > { %9146 = vmatmul.mubr.f32.vlgmr.msra.gmra.mrb[0].mxu1 %v282_v2  ;;  %23546 = vmatmul.mubr.f32.vlgmr.msra.gmra.mrb[0].mxu0 %v666_v3  ;;  %v1859_v2 = vld [vmem:[%s37084_s27 + $0x3b8] sm:$0xff]  ;;  %v1058_v3 = vld [vmem:[%s37090_s19 + $0x1ab0] sm:$0x3] }
 0x195   : > { %9157 = vmatpush1.xpose.msra.mxu1 %v2471_v50  ;;  %23557 = vmatpush1.xpose.msra.mxu0 %v4103_v51  ;;  %v4145_v50 = vcombine.high %v4137_v44, %v4137_v44  ;;  %v2498_v51 = vcombine.high %v1762_v37, %v1762_v37  ;;  %v4154_v9 = vrot.slane %v1859_v2, %v37096_v5 }
 0x196   : > { %9150 = vmatprep.mubr.f32.mxu1 %v1051_v4  ;;  %23550 = vmatprep.mubr.f32.mxu0 %v1435_v6  ;;  %v1442_v4 = vld [vmem:[%s37090_s19 + $0x26b0] sm:$0x3]  ;;  %v293_v6 = vld [vmem:[%s37090_s19 + $0x2c8] sm:$0xff] }
 0x197   : > { %9231 = vmatprep.subr.mxu1 %v2480_v7  ;;  %23631 = vmatprep.subr.mxu0 %v4112_v8  ;;  %v2512_v57 = vrot.slane %v2498_v51, %v37096_v5  ;;  %v677_v7 = vld [vmem:[%s37090_s19 + $0xec8] sm:$0xff] }
 0x198   : > { %9151 = vmatmul.mubr.f32.gmra.mrb[2].mxu1 %v1050_v11  ;;  %23551 = vmatmul.mubr.f32.gmra.mrb[2].mxu0 %v1434_v12  ;;  %v676_v11 = vld [vmem:[%s37090_s19 + $0xec0] sm:$0xff]  ;;  %v1061_v12 = vld [vmem:[%s37090_s19 + $0x1ac8] sm:$0x3] }
 0x199   : > { %9220 = vmatprep.mubr.f32.mxu1 %v285_v13  ;;  %23620 = vmatprep.mubr.f32.mxu0 %v669_v14  ;;  %v2514_v63 = vcombine.high %v2512_v57, %v2512_v57  ;;  %v1445_v13 = vld [vmem:[%s37090_s19 + $0x26c8] sm:$0x3] }
 0x19c   : > { %9221 = vmatmul.mubr.f32.vlgmr.msra.gmra.mrb[0].mxu1 %v284_v17  ;;  %23621 = vmatmul.mubr.f32.vlgmr.msra.gmra.mrb[0].mxu0 %v668_v18  ;;  %v4147_v17 = vcombine.high %v1859_v2, %v1859_v2  ;;  %v1060_v18 = vld [vmem:[%s37090_s19 + $0x1ac0] sm:$0x3] }
 0x19d   : > { %9232 = vmatpush1.xpose.msra.mxu1 %v2478_v0  ;;  %23632 = vmatpush1.xpose.msra.mxu0 %v4110_v1  ;;  %v4146_v0 = vcombine.high %v4144_v58, %v4144_v58  ;;  %v1763_v1 = vld [vmem:[%s37084_s27 + $0xb8] sm:$0xff]  ;;  %v300_v2 = vld [vmem:[%s37090_s19 + $0x300] sm:$0xff] }
 0x19e   : > { %9225 = vmatprep.mubr.f32.mxu1 %v1053_v19  ;;  %23625 = vmatprep.mubr.f32.mxu0 %v1437_v20  ;;  %v2522_v8 = vrot.slane %v1763_v1, %v37096_v5  ;;  %v1444_v19 = vld [vmem:[%s37090_s19 + $0x26c0] sm:$0x3]  ;;  %v295_v20 = vld [vmem:[%s37090_s19 + $0x2d8] sm:$0xff]  ;;  %v4161_v23 = vrot.slane %v4147_v17, %v37096_v5  ;;  %v302_v17 = vld [vmem:[%s37090_s19 + $0x310] sm:$0xff] }
 0x19f   : > { %9306 = vmatprep.subr.mxu1 %v2496_v21  ;;  %23706 = vmatprep.subr.mxu0 %v4128_v22  ;;  %v679_v21 = vld [vmem:[%s37090_s19 + $0xed8] sm:$0xff] }
 0x1a0   : > { %9226 = vmatmul.mubr.f32.gmra.mrb[2].mxu1 %v1052_v25  ;;  %23626 = vmatmul.mubr.f32.gmra.mrb[2].mxu0 %v1436_v26  ;;  %v2530_v14 = vcombine.high %v2522_v8, %v2522_v8  ;;  %v678_v25 = vld [vmem:[%s37090_s19 + $0xed0] sm:$0xff]  ;;  %v1063_v26 = vld [vmem:[%s37090_s19 + $0x1ad8] sm:$0x3] }
 0x1a1   : > { %9295 = vmatprep.mubr.f32.mxu1 %v287_v27  ;;  %23695 = vmatprep.mubr.f32.mxu0 %v671_v28  ;;  %v1447_v27 = vld [vmem:[%s37090_s19 + $0x26d8] sm:$0x3] }
 0x1a4   : > { %9296 = vmatmul.mubr.f32.vlgmr.msra.gmra.mrb[0].mxu1 %v286_v31  ;;  %23696 = vmatmul.mubr.f32.vlgmr.msra.gmra.mrb[0].mxu0 %v670_v32  ;;  %v1860_v31 = vld [vmem:[%s37084_s27 + $0x3c0] sm:$0xff]  ;;  %v1062_v32 = vld [vmem:[%s37090_s19 + $0x1ad0] sm:$0x3] }
 0x1a5   : > { %9307 = vmatpush1.xpose.msra.mxu1 %v2488_v15  ;;  %23707 = vmatpush1.xpose.msra.mxu0 %v4120_v16  ;;  %v4162_v15 = vcombine.high %v4154_v9, %v4154_v9  ;;  %v2515_v16 = vcombine.high %v1763_v1, %v1763_v1  ;;  %v4171_v37 = vrot.slane %v1860_v31, %v37096_v5 }
 0x1a6   : > { %9300 = vmatprep.mubr.f32.mxu1 %v1055_v33  ;;  %23700 = vmatprep.mubr.f32.mxu0 %v1439_v34  ;;  %v1446_v33 = vld [vmem:[%s37090_s19 + $0x26d0] sm:$0x3]  ;;  %v297_v34 = vld [vmem:[%s37090_s19 + $0x2e8] sm:$0xff] }
 0x1a7   : > { %9381 = vmatprep.subr.mxu1 %v2497_v35  ;;  %23781 = vmatprep.subr.mxu0 %v4129_v36  ;;  %v2529_v22 = vrot.slane %v2515_v16, %v37096_v5  ;;  %v681_v35 = vld [vmem:[%s37090_s19 + $0xee8] sm:$0xff] }
 0x1a8   : > { %9301 = vmatmul.mubr.f32.gmra.mrb[2].mxu1 %v1054_v39  ;;  %23701 = vmatmul.mubr.f32.gmra.mrb[2].mxu0 %v1438_v40  ;;  %v680_v39 = vld [vmem:[%s37090_s19 + $0xee0] sm:$0xff]  ;;  %v1065_v40 = vld [vmem:[%s37090_s19 + $0x1ae8] sm:$0x3] }
 0x1a9   : > { %9370 = vmatprep.mubr.f32.mxu1 %v289_v41  ;;  %23770 = vmatprep.mubr.f32.mxu0 %v673_v42  ;;  %v2531_v28 = vcombine.high %v2529_v22, %v2529_v22  ;;  %v1449_v41 = vld [vmem:[%s37090_s19 + $0x26e8] sm:$0x3] }
 0x1ac   : > { %9371 = vmatmul.mubr.f32.vlgmr.msra.gmra.mrb[0].mxu1 %v288_v45  ;;  %23771 = vmatmul.mubr.f32.vlgmr.msra.gmra.mrb[0].mxu0 %v672_v46  ;;  %v4164_v45 = vcombine.high %v1860_v31, %v1860_v31  ;;  %v1064_v46 = vld [vmem:[%s37090_s19 + $0x1ae0] sm:$0x3] }
 0x1ad   : > { %9382 = vmatpush1.xpose.msra.mxu1 %v2495_v29  ;;  %23782 = vmatpush1.xpose.msra.mxu0 %v4127_v30  ;;  %v4163_v29 = vcombine.high %v4161_v23, %v4161_v23  ;;  %v1764_v30 = vld [vmem:[%s37084_s27 + $0xc0] sm:$0xff] }
 0x1ae   : > { %9375 = vmatprep.mubr.f32.mxu1 %v1057_v47  ;;  %23775 = vmatprep.mubr.f32.mxu0 %v1441_v48  ;;  %v2539_v36 = vrot.slane %v1764_v30, %v37096_v5  ;;  %v1448_v47 = vld [vmem:[%s37090_s19 + $0x26e0] sm:$0x3]  ;;  %v299_v48 = vld [vmem:[%s37090_s19 + $0x2f8] sm:$0xff]  ;;  %v4178_v51 = vrot.slane %v4164_v45, %v37096_v5  ;;  %v306_v45 = vld [vmem:[%s37090_s19 + $0x330] sm:$0xff] }
 0x1af   : > { %9456 = vmatprep.subr.mxu1 %v2513_v49  ;;  %23856 = vmatprep.subr.mxu0 %v4145_v50  ;;  %v683_v49 = vld [vmem:[%s37090_s19 + $0xef8] sm:$0xff]  ;;  %v304_v31 = vld [vmem:[%s37090_s19 + $0x320] sm:$0xff] }
 0x1b0   : > { %9376 = vmatmul.mubr.f32.gmra.mrb[2].mxu1 %v1056_v53  ;;  %23776 = vmatmul.mubr.f32.gmra.mrb[2].mxu0 %v1440_v54  ;;  %v2547_v42 = vcombine.high %v2539_v36, %v2539_v36  ;;  %v682_v53 = vld [vmem:[%s37090_s19 + $0xef0] sm:$0xff]  ;;  %v1067_v54 = vld [vmem:[%s37090_s19 + $0x1af8] sm:$0x3] }
 0x1b1   : > { %9445 = vmatprep.mubr.f32.mxu1 %v291_v55  ;;  %23845 = vmatprep.mubr.f32.mxu0 %v675_v56  ;;  %v1451_v55 = vld [vmem:[%s37090_s19 + $0x26f8] sm:$0x3] }
 0x1b4   : > { %9446 = vmatmul.mubr.f32.vlgmr.msra.gmra.mrb[0].mxu1 %v290_v59  ;;  %23846 = vmatmul.mubr.f32.vlgmr.msra.gmra.mrb[0].mxu0 %v674_v60  ;;  %v1861_v59 = vld [vmem:[%s37084_s27 + $0x3c8] sm:$0xff]  ;;  %v1066_v60 = vld [vmem:[%s37090_s19 + $0x1af0] sm:$0x3] }
 0x1b5   : > { %9457 = vmatpush1.xpose.msra.mxu1 %v2505_v43  ;;  %23857 = vmatpush1.xpose.msra.mxu0 %v4137_v44  ;;  %v4179_v43 = vcombine.high %v4171_v37, %v4171_v37  ;;  %v2532_v44 = vcombine.high %v1764_v30, %v1764_v30  ;;  %v4188_v1 = vrot.slane %v1861_v59, %v37096_v5 }
 0x1b6   : > { %9450 = vmatprep.mubr.f32.mxu1 %v1059_v61  ;;  %23850 = vmatprep.mubr.f32.mxu0 %v1443_v62  ;;  %v1450_v61 = vld [vmem:[%s37090_s19 + $0x26f0] sm:$0x3]  ;;  %v301_v62 = vld [vmem:[%s37090_s19 + $0x308] sm:$0xff] }
 0x1b7   : > { %9531 = vmatprep.subr.mxu1 %v2514_v63  ;;  %23931 = vmatprep.subr.mxu0 %v4146_v0  ;;  %v2546_v50 = vrot.slane %v2532_v44, %v37096_v5  ;;  %v685_v63 = vld [vmem:[%s37090_s19 + $0xf08] sm:$0xff] }
 0x1b8   : > { %9451 = vmatmul.mubr.f32.gmra.mrb[2].mxu1 %v1058_v3  ;;  %23851 = vmatmul.mubr.f32.gmra.mrb[2].mxu0 %v1442_v4  ;;  %v684_v3 = vld [vmem:[%s37090_s19 + $0xf00] sm:$0xff]  ;;  %v1069_v4 = vld [vmem:[%s37090_s19 + $0x1b08] sm:$0x3] }
 0x1b9   : > { %9520 = vmatprep.mubr.f32.mxu1 %v293_v6  ;;  %23920 = vmatprep.mubr.f32.mxu0 %v677_v7  ;;  %v2548_v56 = vcombine.high %v2546_v50, %v2546_v50  ;;  %v1453_v6 = vld [vmem:[%s37090_s19 + $0x2708] sm:$0x3] }
 0x1bc   : > { %9521 = vmatmul.mubr.f32.vlgmr.msra.gmra.mrb[0].mxu1 %v292_v10  ;;  %23921 = vmatmul.mubr.f32.vlgmr.msra.gmra.mrb[0].mxu0 %v676_v11  ;;  %v4181_v10 = vcombine.high %v1861_v59, %v1861_v59  ;;  %v1068_v11 = vld [vmem:[%s37090_s19 + $0x1b00] sm:$0x3] }
 0x1bd   : > { %9532 = vmatpush1.xpose.msra.mxu1 %v2512_v57  ;;  %23932 = vmatpush1.xpose.msra.mxu0 %v4144_v58  ;;  %v4180_v57 = vcombine.high %v4178_v51, %v4178_v51  ;;  %v1765_v58 = vld [vmem:[%s37084_s27 + $0xc8] sm:$0xff]  ;;  %v308_v59 = vld [vmem:[%s37090_s19 + $0x340] sm:$0xff] }
 0x1be   : > { %9525 = vmatprep.mubr.f32.mxu1 %v1061_v12  ;;  %23925 = vmatprep.mubr.f32.mxu0 %v1445_v13  ;;  %v2556_v0 = vrot.slane %v1765_v58, %v37096_v5  ;;  %v1452_v12 = vld [vmem:[%s37090_s19 + $0x2700] sm:$0x3]  ;;  %v303_v13 = vld [vmem:[%s37090_s19 + $0x318] sm:$0xff]  ;;  %v4195_v16 = vrot.slane %v4181_v10, %v37096_v5  ;;  %v310_v10 = vld [vmem:[%s37090_s19 + $0x350] sm:$0xff] }
 0x1bf   : > { %9606 = vmatprep.subr.mxu1 %v2530_v14  ;;  %24006 = vmatprep.subr.mxu0 %v4162_v15  ;;  %v687_v14 = vld [vmem:[%s37090_s19 + $0xf18] sm:$0xff] }
 0x1c0   : > { %9526 = vmatmul.mubr.f32.gmra.mrb[2].mxu1 %v1060_v18  ;;  %23926 = vmatmul.mubr.f32.gmra.mrb[2].mxu0 %v1444_v19  ;;  %v2564_v7 = vcombine.high %v2556_v0, %v2556_v0  ;;  %v686_v18 = vld [vmem:[%s37090_s19 + $0xf10] sm:$0xff]  ;;  %v1071_v19 = vld [vmem:[%s37090_s19 + $0x1b18] sm:$0x3] }
 0x1c1   : > { %9595 = vmatprep.mubr.f32.mxu1 %v295_v20  ;;  %23995 = vmatprep.mubr.f32.mxu0 %v679_v21  ;;  %v1455_v20 = vld [vmem:[%s37090_s19 + $0x2718] sm:$0x3] }
 0x1c4   : > { %9596 = vmatmul.mubr.f32.vlgmr.msra.gmra.mrb[0].mxu1 %v294_v24  ;;  %23996 = vmatmul.mubr.f32.vlgmr.msra.gmra.mrb[0].mxu0 %v678_v25  ;;  %v1862_v24 = vld [vmem:[%s37084_s27 + $0x3d0] sm:$0xff] }
 0x1c5   : > { %9607 = vmatpush1.xpose.msra.mxu1 %v2522_v8  ;;  %24007 = vmatpush1.xpose.msra.mxu0 %v4154_v9  ;;  %v4196_v8 = vcombine.high %v4188_v1, %v4188_v1  ;;  %v2549_v9 = vcombine.high %v1765_v58, %v1765_v58  ;;  %v1070_v25 = vld [vmem:[%s37090_s19 + $0x1b10] sm:$0x3]  ;;  %v4205_v30 = vrot.slane %v1862_v24, %v37096_v5 }
 0x1c6   : > { %9600 = vmatprep.mubr.f32.mxu1 %v1063_v26  ;;  %24000 = vmatprep.mubr.f32.mxu0 %v1447_v27  ;;  %v1454_v26 = vld [vmem:[%s37090_s19 + $0x2710] sm:$0x3]  ;;  %v305_v27 = vld [vmem:[%s37090_s19 + $0x328] sm:$0xff] }
 0x1c7   : > { %9681 = vmatprep.subr.mxu1 %v2531_v28  ;;  %24081 = vmatprep.subr.mxu0 %v4163_v29  ;;  %v2563_v15 = vrot.slane %v2549_v9, %v37096_v5  ;;  %v689_v28 = vld [vmem:[%s37090_s19 + $0xf28] sm:$0xff] }
 0x1c8   : > { %9601 = vmatmul.mubr.f32.gmra.mrb[2].mxu1 %v1062_v32  ;;  %24001 = vmatmul.mubr.f32.gmra.mrb[2].mxu0 %v1446_v33  ;;  %v688_v32 = vld [vmem:[%s37090_s19 + $0xf20] sm:$0xff]  ;;  %v1073_v33 = vld [vmem:[%s37090_s19 + $0x1b28] sm:$0x3] }
 0x1c9   : > { %9670 = vmatprep.mubr.f32.mxu1 %v297_v34  ;;  %24070 = vmatprep.mubr.f32.mxu0 %v681_v35  ;;  %v2565_v21 = vcombine.high %v2563_v15, %v2563_v15  ;;  %v1457_v34 = vld [vmem:[%s37090_s19 + $0x2728] sm:$0x3] }
 0x1cc   : > { %9671 = vmatmul.mubr.f32.vlgmr.msra.gmra.mrb[0].mxu1 %v296_v38  ;;  %24071 = vmatmul.mubr.f32.vlgmr.msra.gmra.mrb[0].mxu0 %v680_v39  ;;  %v4198_v38 = vcombine.high %v1862_v24, %v1862_v24  ;;  %v1072_v39 = vld [vmem:[%s37090_s19 + $0x1b20] sm:$0x3] }
 0x1cd   : > { %9682 = vmatpush1.xpose.msra.mxu1 %v2529_v22  ;;  %24082 = vmatpush1.xpose.msra.mxu0 %v4161_v23  ;;  %v4197_v22 = vcombine.high %v4195_v16, %v4195_v16  ;;  %v1766_v23 = vld [vmem:[%s37084_s27 + $0xd0] sm:$0xff]  ;;  %v312_v24 = vld [vmem:[%s37090_s19 + $0x360] sm:$0xff] }
 0x1ce   : > { %9675 = vmatprep.mubr.f32.mxu1 %v1065_v40  ;;  %24075 = vmatprep.mubr.f32.mxu0 %v1449_v41  ;;  %v2573_v29 = vrot.slane %v1766_v23, %v37096_v5  ;;  %v1456_v40 = vld [vmem:[%s37090_s19 + $0x2720] sm:$0x3]  ;;  %v307_v41 = vld [vmem:[%s37090_s19 + $0x338] sm:$0xff]  ;;  %v4212_v44 = vrot.slane %v4198_v38, %v37096_v5  ;;  %v314_v38 = vld [vmem:[%s37090_s19 + $0x370] sm:$0xff] }
 0x1cf   : > { %9756 = vmatprep.subr.mxu1 %v2547_v42  ;;  %24156 = vmatprep.subr.mxu0 %v4179_v43  ;;  %v691_v42 = vld [vmem:[%s37090_s19 + $0xf38] sm:$0xff] }
 0x1d0   : > { %9676 = vmatmul.mubr.f32.gmra.mrb[2].mxu1 %v1064_v46  ;;  %24076 = vmatmul.mubr.f32.gmra.mrb[2].mxu0 %v1448_v47  ;;  %v2581_v35 = vcombine.high %v2573_v29, %v2573_v29  ;;  %v690_v46 = vld [vmem:[%s37090_s19 + $0xf30] sm:$0xff]  ;;  %v1075_v47 = vld [vmem:[%s37090_s19 + $0x1b38] sm:$0x3] }
 0x1d1   : > { %9745 = vmatprep.mubr.f32.mxu1 %v299_v48  ;;  %24145 = vmatprep.mubr.f32.mxu0 %v683_v49  ;;  %v1459_v48 = vld [vmem:[%s37090_s19 + $0x2738] sm:$0x3] }
 0x1d4   : > { %9746 = vmatmul.mubr.f32.vlgmr.msra.gmra.mrb[0].mxu1 %v298_v52  ;;  %24146 = vmatmul.mubr.f32.vlgmr.msra.gmra.mrb[0].mxu0 %v682_v53  ;;  %v1863_v52 = vld [vmem:[%s37084_s27 + $0x3d8] sm:$0xff]  ;;  %v1074_v53 = vld [vmem:[%s37090_s19 + $0x1b30] sm:$0x3] }
 0x1d5   : > { %9757 = vmatpush1.xpose.msra.mxu1 %v2539_v36  ;;  %24157 = vmatpush1.xpose.msra.mxu0 %v4171_v37  ;;  %v4213_v36 = vcombine.high %v4205_v30, %v4205_v30  ;;  %v2566_v37 = vcombine.high %v1766_v23, %v1766_v23  ;;  %v4222_v58 = vrot.slane %v1863_v52, %v37096_v5 }
 0x1d6   : > { %9750 = vmatprep.mubr.f32.mxu1 %v1067_v54  ;;  %24150 = vmatprep.mubr.f32.mxu0 %v1451_v55  ;;  %v1458_v54 = vld [vmem:[%s37090_s19 + $0x2730] sm:$0x3]  ;;  %v309_v55 = vld [vmem:[%s37090_s19 + $0x348] sm:$0xff] }
 0x1d7   : > { %9831 = vmatprep.subr.mxu1 %v2548_v56  ;;  %24231 = vmatprep.subr.mxu0 %v4180_v57  ;;  %v2580_v43 = vrot.slane %v2566_v37, %v37096_v5  ;;  %v693_v56 = vld [vmem:[%s37090_s19 + $0xf48] sm:$0xff] }
 0x1d8   : > { %9751 = vmatmul.mubr.f32.gmra.mrb[2].mxu1 %v1066_v60  ;;  %24151 = vmatmul.mubr.f32.gmra.mrb[2].mxu0 %v1450_v61  ;;  %v692_v60 = vld [vmem:[%s37090_s19 + $0xf40] sm:$0xff]  ;;  %v1077_v61 = vld [vmem:[%s37090_s19 + $0x1b48] sm:$0x3] }
 0x1d9   : > { %9820 = vmatprep.mubr.f32.mxu1 %v301_v62  ;;  %24220 = vmatprep.mubr.f32.mxu0 %v685_v63  ;;  %v2582_v49 = vcombine.high %v2580_v43, %v2580_v43  ;;  %v1461_v62 = vld [vmem:[%s37090_s19 + $0x2748] sm:$0x3] }
 0x1dc   : > { %9821 = vmatmul.mubr.f32.vlgmr.msra.gmra.mrb[0].mxu1 %v300_v2  ;;  %24221 = vmatmul.mubr.f32.vlgmr.msra.gmra.mrb[0].mxu0 %v684_v3  ;;  %v4215_v2 = vcombine.high %v1863_v52, %v1863_v52  ;;  %v1076_v3 = vld [vmem:[%s37090_s19 + $0x1b40] sm:$0x3] }
 0x1dd   : > { %9832 = vmatpush1.xpose.msra.mxu1 %v2546_v50  ;;  %24232 = vmatpush1.xpose.msra.mxu0 %v4178_v51  ;;  %v4214_v50 = vcombine.high %v4212_v44, %v4212_v44  ;;  %v1767_v51 = vld [vmem:[%s37084_s27 + $0xd8] sm:$0xff]  ;;  %v316_v52 = vld [vmem:[%s37090_s19 + $0x380] sm:$0xff] }
 0x1de   : > { %9825 = vmatprep.mubr.f32.mxu1 %v1069_v4  ;;  %24225 = vmatprep.mubr.f32.mxu0 %v1453_v6  ;;  %v2590_v57 = vrot.slane %v1767_v51, %v37096_v5  ;;  %v1460_v4 = vld [vmem:[%s37090_s19 + $0x2740] sm:$0x3]  ;;  %v311_v6 = vld [vmem:[%s37090_s19 + $0x358] sm:$0xff]  ;;  %v4229_v9 = vrot.slane %v4215_v2, %v37096_v5  ;;  %v318_v2 = vld [vmem:[%s37090_s19 + $0x390] sm:$0xff] }
 0x1df   : > { %9906 = vmatprep.subr.mxu1 %v2564_v7  ;;  %24306 = vmatprep.subr.mxu0 %v4196_v8  ;;  %v695_v7 = vld [vmem:[%s37090_s19 + $0xf58] sm:$0xff] }
 0x1e0   : > { %9826 = vmatmul.mubr.f32.gmra.mrb[2].mxu1 %v1068_v11  ;;  %24226 = vmatmul.mubr.f32.gmra.mrb[2].mxu0 %v1452_v12  ;;  %v2598_v63 = vcombine.high %v2590_v57, %v2590_v57  ;;  %v694_v11 = vld [vmem:[%s37090_s19 + $0xf50] sm:$0xff]  ;;  %v1079_v12 = vld [vmem:[%s37090_s19 + $0x1b58] sm:$0x3] }
 0x1e1   : > { %9895 = vmatprep.mubr.f32.mxu1 %v303_v13  ;;  %24295 = vmatprep.mubr.f32.mxu0 %v687_v14  ;;  %v1463_v13 = vld [vmem:[%s37090_s19 + $0x2758] sm:$0x3] }
 0x1e4   : > { %9896 = vmatmul.mubr.f32.vlgmr.msra.gmra.mrb[0].mxu1 %v302_v17  ;;  %24296 = vmatmul.mubr.f32.vlgmr.msra.gmra.mrb[0].mxu0 %v686_v18  ;;  %v1864_v17 = vld [vmem:[%s37084_s27 + $0x3e0] sm:$0xff]  ;;  %v1078_v18 = vld [vmem:[%s37090_s19 + $0x1b50] sm:$0x3] }
 0x1e5   : > { %9907 = vmatpush1.xpose.msra.mxu1 %v2556_v0  ;;  %24307 = vmatpush1.xpose.msra.mxu0 %v4188_v1  ;;  %v4230_v0 = vcombine.high %v4222_v58, %v4222_v58  ;;  %v2583_v1 = vcombine.high %v1767_v51, %v1767_v51  ;;  %v4239_v23 = vrot.slane %v1864_v17, %v37096_v5 }
 0x1e6   : > { %9900 = vmatprep.mubr.f32.mxu1 %v1071_v19  ;;  %24300 = vmatprep.mubr.f32.mxu0 %v1455_v20  ;;  %v1462_v19 = vld [vmem:[%s37090_s19 + $0x2750] sm:$0x3]  ;;  %v313_v20 = vld [vmem:[%s37090_s19 + $0x368] sm:$0xff] }
 0x1e7   : > { %9981 = vmatprep.subr.mxu1 %v2565_v21  ;;  %24381 = vmatprep.subr.mxu0 %v4197_v22  ;;  %v2597_v8 = vrot.slane %v2583_v1, %v37096_v5  ;;  %v697_v21 = vld [vmem:[%s37090_s19 + $0xf68] sm:$0xff] }
 0x1e8   : > { %9901 = vmatmul.mubr.f32.gmra.mrb[2].mxu1 %v1070_v25  ;;  %24301 = vmatmul.mubr.f32.gmra.mrb[2].mxu0 %v1454_v26  ;;  %v696_v25 = vld [vmem:[%s37090_s19 + $0xf60] sm:$0xff]  ;;  %v1081_v26 = vld [vmem:[%s37090_s19 + $0x1b68] sm:$0x3] }
 0x1e9   : > { %9970 = vmatprep.mubr.f32.mxu1 %v305_v27  ;;  %24370 = vmatprep.mubr.f32.mxu0 %v689_v28  ;;  %v2599_v14 = vcombine.high %v2597_v8, %v2597_v8  ;;  %v1465_v27 = vld [vmem:[%s37090_s19 + $0x2768] sm:$0x3] }
 0x1ec   : > { %9971 = vmatmul.mubr.f32.vlgmr.msra.gmra.mrb[0].mxu1 %v304_v31  ;;  %24371 = vmatmul.mubr.f32.vlgmr.msra.gmra.mrb[0].mxu0 %v688_v32  ;;  %v4232_v31 = vcombine.high %v1864_v17, %v1864_v17  ;;  %v1080_v32 = vld [vmem:[%s37090_s19 + $0x1b60] sm:$0x3] }
 0x1ed   : > { %9982 = vmatpush1.xpose.msra.mxu1 %v2563_v15  ;;  %24382 = vmatpush1.xpose.msra.mxu0 %v4195_v16  ;;  %v4231_v15 = vcombine.high %v4229_v9, %v4229_v9  ;;  %v1768_v16 = vld [vmem:[%s37084_s27 + $0xe0] sm:$0xff] }
 0x1ee   : > { %9975 = vmatprep.mubr.f32.mxu1 %v1073_v33  ;;  %24375 = vmatprep.mubr.f32.mxu0 %v1457_v34  ;;  %v2607_v22 = vrot.slane %v1768_v16, %v37096_v5  ;;  %v1464_v33 = vld [vmem:[%s37090_s19 + $0x2760] sm:$0x3]  ;;  %v315_v34 = vld [vmem:[%s37090_s19 + $0x378] sm:$0xff]  ;;  %v4246_v37 = vrot.slane %v4232_v31, %v37096_v5  ;;  %v322_v31 = vld [vmem:[%s37090_s19 + $0x3b0] sm:$0xff] }
 0x1ef   : > { %10056 = vmatprep.subr.mxu1 %v2581_v35  ;;  %24456 = vmatprep.subr.mxu0 %v4213_v36  ;;  %v699_v35 = vld [vmem:[%s37090_s19 + $0xf78] sm:$0xff]  ;;  %v320_v17 = vld [vmem:[%s37090_s19 + $0x3a0] sm:$0xff] }
 0x1f0   : > { %9976 = vmatmul.mubr.f32.gmra.mrb[2].mxu1 %v1072_v39  ;;  %24376 = vmatmul.mubr.f32.gmra.mrb[2].mxu0 %v1456_v40  ;;  %v2615_v28 = vcombine.high %v2607_v22, %v2607_v22  ;;  %v698_v39 = vld [vmem:[%s37090_s19 + $0xf70] sm:$0xff]  ;;  %v1083_v40 = vld [vmem:[%s37090_s19 + $0x1b78] sm:$0x3] }
 0x1f1   : > { %10045 = vmatprep.mubr.f32.mxu1 %v307_v41  ;;  %24445 = vmatprep.mubr.f32.mxu0 %v691_v42  ;;  %v1467_v41 = vld [vmem:[%s37090_s19 + $0x2778] sm:$0x3] }
 0x1f4   : > { %10046 = vmatmul.mubr.f32.vlgmr.msra.gmra.mrb[0].mxu1 %v306_v45  ;;  %24446 = vmatmul.mubr.f32.vlgmr.msra.gmra.mrb[0].mxu0 %v690_v46  ;;  %v1865_v45 = vld [vmem:[%s37084_s27 + $0x3e8] sm:$0xff]  ;;  %v1082_v46 = vld [vmem:[%s37090_s19 + $0x1b70] sm:$0x3] }
 0x1f5   : > { %10057 = vmatpush1.xpose.msra.mxu1 %v2573_v29  ;;  %24457 = vmatpush1.xpose.msra.mxu0 %v4205_v30  ;;  %v4247_v29 = vcombine.high %v4239_v23, %v4239_v23  ;;  %v2600_v30 = vcombine.high %v1768_v16, %v1768_v16  ;;  %v4256_v51 = vrot.slane %v1865_v45, %v37096_v5 }
 0x1f6   : > { %10050 = vmatprep.mubr.f32.mxu1 %v1075_v47  ;;  %24450 = vmatprep.mubr.f32.mxu0 %v1459_v48  ;;  %v1466_v47 = vld [vmem:[%s37090_s19 + $0x2770] sm:$0x3]  ;;  %v317_v48 = vld [vmem:[%s37090_s19 + $0x388] sm:$0xff] }
 0x1f7   : > { %10131 = vmatprep.subr.mxu1 %v2582_v49  ;;  %24531 = vmatprep.subr.mxu0 %v4214_v50  ;;  %v2614_v36 = vrot.slane %v2600_v30, %v37096_v5  ;;  %v701_v49 = vld [vmem:[%s37090_s19 + $0xf88] sm:$0xff] }
 0x1f8   : > { %10051 = vmatmul.mubr.f32.gmra.mrb[2].mxu1 %v1074_v53  ;;  %24451 = vmatmul.mubr.f32.gmra.mrb[2].mxu0 %v1458_v54  ;;  %v700_v53 = vld [vmem:[%s37090_s19 + $0xf80] sm:$0xff]  ;;  %v1085_v54 = vld [vmem:[%s37090_s19 + $0x1b88] sm:$0x3] }
 0x1f9   : > { %10120 = vmatprep.mubr.f32.mxu1 %v309_v55  ;;  %24520 = vmatprep.mubr.f32.mxu0 %v693_v56  ;;  %v2616_v42 = vcombine.high %v2614_v36, %v2614_v36  ;;  %v1469_v55 = vld [vmem:[%s37090_s19 + $0x2788] sm:$0x3] }
 0x1fc   : > { %10121 = vmatmul.mubr.f32.vlgmr.msra.gmra.mrb[0].mxu1 %v308_v59  ;;  %24521 = vmatmul.mubr.f32.vlgmr.msra.gmra.mrb[0].mxu0 %v692_v60  ;;  %v4249_v59 = vcombine.high %v1865_v45, %v1865_v45  ;;  %v1084_v60 = vld [vmem:[%s37090_s19 + $0x1b80] sm:$0x3] }
 0x1fd   : > { %10132 = vmatpush1.xpose.msra.mxu1 %v2580_v43  ;;  %24532 = vmatpush1.xpose.msra.mxu0 %v4212_v44  ;;  %v4248_v43 = vcombine.high %v4246_v37, %v4246_v37  ;;  %v1769_v44 = vld [vmem:[%s37084_s27 + $0xe8] sm:$0xff]  ;;  %v324_v45 = vld [vmem:[%s37090_s19 + $0x3c0] sm:$0xff] }
 0x1fe   : > { %10125 = vmatprep.mubr.f32.mxu1 %v1077_v61  ;;  %24525 = vmatprep.mubr.f32.mxu0 %v1461_v62  ;;  %v2624_v50 = vrot.slane %v1769_v44, %v37096_v5  ;;  %v1468_v61 = vld [vmem:[%s37090_s19 + $0x2780] sm:$0x3]  ;;  %v319_v62 = vld [vmem:[%s37090_s19 + $0x398] sm:$0xff]  ;;  %v4263_v1 = vrot.slane %v4249_v59, %v37096_v5  ;;  %v326_v59 = vld [vmem:[%s37090_s19 + $0x3d0] sm:$0xff] }
 0x1ff   : > { %10206 = vmatprep.subr.mxu1 %v2598_v63  ;;  %24606 = vmatprep.subr.mxu0 %v4230_v0  ;;  %v703_v63 = vld [vmem:[%s37090_s19 + $0xf98] sm:$0xff] }
 0x200   : > { %10126 = vmatmul.mubr.f32.gmra.mrb[2].mxu1 %v1076_v3  ;;  %24526 = vmatmul.mubr.f32.gmra.mrb[2].mxu0 %v1460_v4  ;;  %v2632_v56 = vcombine.high %v2624_v50, %v2624_v50  ;;  %v702_v3 = vld [vmem:[%s37090_s19 + $0xf90] sm:$0xff]  ;;  %v1087_v4 = vld [vmem:[%s37090_s19 + $0x1b98] sm:$0x3] }
 0x201   : > { %10195 = vmatprep.mubr.f32.mxu1 %v311_v6  ;;  %24595 = vmatprep.mubr.f32.mxu0 %v695_v7  ;;  %v1471_v6 = vld [vmem:[%s37090_s19 + $0x2798] sm:$0x3] }
 0x204   : > { %10196 = vmatmul.mubr.f32.vlgmr.msra.gmra.mrb[0].mxu1 %v310_v10  ;;  %24596 = vmatmul.mubr.f32.vlgmr.msra.gmra.mrb[0].mxu0 %v694_v11  ;;  %v1866_v10 = vld [vmem:[%s37084_s27 + $0x3f0] sm:$0xff] }
 0x205   : > { %10207 = vmatpush1.xpose.msra.mxu1 %v2590_v57  ;;  %24607 = vmatpush1.xpose.msra.mxu0 %v4222_v58  ;;  %v4264_v57 = vcombine.high %v4256_v51, %v4256_v51  ;;  %v2617_v58 = vcombine.high %v1769_v44, %v1769_v44  ;;  %v1086_v11 = vld [vmem:[%s37090_s19 + $0x1b90] sm:$0x3]  ;;  %v4273_v16 = vrot.slane %v1866_v10, %v37096_v5 }
 0x206   : > { %10200 = vmatprep.mubr.f32.mxu1 %v1079_v12  ;;  %24600 = vmatprep.mubr.f32.mxu0 %v1463_v13  ;;  %v1470_v12 = vld [vmem:[%s37090_s19 + $0x2790] sm:$0x3]  ;;  %v321_v13 = vld [vmem:[%s37090_s19 + $0x3a8] sm:$0xff] }
 0x207   : > { %10281 = vmatprep.subr.mxu1 %v2599_v14  ;;  %24681 = vmatprep.subr.mxu0 %v4231_v15  ;;  %v2631_v0 = vrot.slane %v2617_v58, %v37096_v5  ;;  %v705_v14 = vld [vmem:[%s37090_s19 + $0xfa8] sm:$0xff] }
 0x208   : > { %10201 = vmatmul.mubr.f32.gmra.mrb[2].mxu1 %v1078_v18  ;;  %24601 = vmatmul.mubr.f32.gmra.mrb[2].mxu0 %v1462_v19  ;;  %v704_v18 = vld [vmem:[%s37090_s19 + $0xfa0] sm:$0xff]  ;;  %v1089_v19 = vld [vmem:[%s37090_s19 + $0x1ba8] sm:$0x3] }
 0x209   : > { %10270 = vmatprep.mubr.f32.mxu1 %v313_v20  ;;  %24670 = vmatprep.mubr.f32.mxu0 %v697_v21  ;;  %v2633_v7 = vcombine.high %v2631_v0, %v2631_v0  ;;  %v1473_v20 = vld [vmem:[%s37090_s19 + $0x27a8] sm:$0x3] }
 0x20c   : > { %10271 = vmatmul.mubr.f32.vlgmr.msra.gmra.mrb[0].mxu1 %v312_v24  ;;  %24671 = vmatmul.mubr.f32.vlgmr.msra.gmra.mrb[0].mxu0 %v696_v25  ;;  %v4266_v24 = vcombine.high %v1866_v10, %v1866_v10  ;;  %v1088_v25 = vld [vmem:[%s37090_s19 + $0x1ba0] sm:$0x3] }
 0x20d   : > { %10282 = vmatpush1.xpose.msra.mxu1 %v2597_v8  ;;  %24682 = vmatpush1.xpose.msra.mxu0 %v4229_v9  ;;  %v4265_v8 = vcombine.high %v4263_v1, %v4263_v1  ;;  %v1770_v9 = vld [vmem:[%s37084_s27 + $0xf0] sm:$0xff]  ;;  %v328_v10 = vld [vmem:[%s37090_s19 + $0x3e0] sm:$0xff] }
 0x20e   : > { %10275 = vmatprep.mubr.f32.mxu1 %v1081_v26  ;;  %24675 = vmatprep.mubr.f32.mxu0 %v1465_v27  ;;  %v2641_v15 = vrot.slane %v1770_v9, %v37096_v5  ;;  %v1472_v26 = vld [vmem:[%s37090_s19 + $0x27a0] sm:$0x3]  ;;  %v323_v27 = vld [vmem:[%s37090_s19 + $0x3b8] sm:$0xff]  ;;  %v4280_v30 = vrot.slane %v4266_v24, %v37096_v5  ;;  %v330_v24 = vld [vmem:[%s37090_s19 + $0x3f0] sm:$0xff] }
 0x20f   : > { %10356 = vmatprep.subr.mxu1 %v2615_v28  ;;  %24756 = vmatprep.subr.mxu0 %v4247_v29  ;;  %v707_v28 = vld [vmem:[%s37090_s19 + $0xfb8] sm:$0xff] }
 0x210   : > { %10276 = vmatmul.mubr.f32.gmra.mrb[2].mxu1 %v1080_v32  ;;  %24676 = vmatmul.mubr.f32.gmra.mrb[2].mxu0 %v1464_v33  ;;  %v2649_v21 = vcombine.high %v2641_v15, %v2641_v15  ;;  %v706_v32 = vld [vmem:[%s37090_s19 + $0xfb0] sm:$0xff]  ;;  %v1091_v33 = vld [vmem:[%s37090_s19 + $0x1bb8] sm:$0x3] }
 0x211   : > { %10345 = vmatprep.mubr.f32.mxu1 %v315_v34  ;;  %24745 = vmatprep.mubr.f32.mxu0 %v699_v35  ;;  %v1475_v34 = vld [vmem:[%s37090_s19 + $0x27b8] sm:$0x3] }
 0x214   : > { %10346 = vmatmul.mubr.f32.vlgmr.msra.gmra.mrb[0].mxu1 %v314_v38  ;;  %24746 = vmatmul.mubr.f32.vlgmr.msra.gmra.mrb[0].mxu0 %v698_v39  ;;  %v1867_v38 = vld [vmem:[%s37084_s27 + $0x3f8] sm:$0xff]  ;;  %v1090_v39 = vld [vmem:[%s37090_s19 + $0x1bb0] sm:$0x3] }
 0x215   : > { %10357 = vmatpush1.xpose.msra.mxu1 %v2607_v22  ;;  %24757 = vmatpush1.xpose.msra.mxu0 %v4239_v23  ;;  %v4281_v22 = vcombine.high %v4273_v16, %v4273_v16  ;;  %v2634_v23 = vcombine.high %v1770_v9, %v1770_v9  ;;  %v4290_v44 = vrot.slane %v1867_v38, %v37096_v5 }
 0x216   : > { %10350 = vmatprep.mubr.f32.mxu1 %v1083_v40  ;;  %24750 = vmatprep.mubr.f32.mxu0 %v1467_v41  ;;  %v1474_v40 = vld [vmem:[%s37090_s19 + $0x27b0] sm:$0x3]  ;;  %v325_v41 = vld [vmem:[%s37090_s19 + $0x3c8] sm:$0xff] }
 0x217   : > { %10431 = vmatprep.subr.mxu1 %v2616_v42  ;;  %24831 = vmatprep.subr.mxu0 %v4248_v43  ;;  %v2648_v29 = vrot.slane %v2634_v23, %v37096_v5  ;;  %v709_v42 = vld [vmem:[%s37090_s19 + $0xfc8] sm:$0xff] }
 0x218   : > { %10351 = vmatmul.mubr.f32.gmra.mrb[2].mxu1 %v1082_v46  ;;  %24751 = vmatmul.mubr.f32.gmra.mrb[2].mxu0 %v1466_v47  ;;  %v708_v46 = vld [vmem:[%s37090_s19 + $0xfc0] sm:$0xff]  ;;  %v1093_v47 = vld [vmem:[%s37090_s19 + $0x1bc8] sm:$0x3] }
 0x219   : > { %10420 = vmatprep.mubr.f32.mxu1 %v317_v48  ;;  %24820 = vmatprep.mubr.f32.mxu0 %v701_v49  ;;  %v2650_v35 = vcombine.high %v2648_v29, %v2648_v29  ;;  %v1477_v48 = vld [vmem:[%s37090_s19 + $0x27c8] sm:$0x3] }
 0x21c   : > { %10421 = vmatmul.mubr.f32.vlgmr.msra.gmra.mrb[0].mxu1 %v316_v52  ;;  %24821 = vmatmul.mubr.f32.vlgmr.msra.gmra.mrb[0].mxu0 %v700_v53  ;;  %v4283_v52 = vcombine.high %v1867_v38, %v1867_v38  ;;  %v1092_v53 = vld [vmem:[%s37090_s19 + $0x1bc0] sm:$0x3] }
 0x21d   : > { %10432 = vmatpush1.xpose.msra.mxu1 %v2614_v36  ;;  %24832 = vmatpush1.xpose.msra.mxu0 %v4246_v37  ;;  %v4282_v36 = vcombine.high %v4280_v30, %v4280_v30  ;;  %v1771_v37 = vld [vmem:[%s37084_s27 + $0xf8] sm:$0xff]  ;;  %v332_v38 = vld [vmem:[%s37090_s19 + $0x400] sm:$0xff] }
 0x21e   : > { %10425 = vmatprep.mubr.f32.mxu1 %v1085_v54  ;;  %24825 = vmatprep.mubr.f32.mxu0 %v1469_v55  ;;  %v2658_v43 = vrot.slane %v1771_v37, %v37096_v5  ;;  %v1476_v54 = vld [vmem:[%s37090_s19 + $0x27c0] sm:$0x3]  ;;  %v327_v55 = vld [vmem:[%s37090_s19 + $0x3d8] sm:$0xff]  ;;  %v4297_v58 = vrot.slane %v4283_v52, %v37096_v5  ;;  %v334_v52 = vld [vmem:[%s37090_s19 + $0x410] sm:$0xff] }
 0x21f   : > { %10506 = vmatprep.subr.mxu1 %v2632_v56  ;;  %24906 = vmatprep.subr.mxu0 %v4264_v57  ;;  %v711_v56 = vld [vmem:[%s37090_s19 + $0xfd8] sm:$0xff] }
 0x220   : > { %10426 = vmatmul.mubr.f32.gmra.mrb[2].mxu1 %v1084_v60  ;;  %24826 = vmatmul.mubr.f32.gmra.mrb[2].mxu0 %v1468_v61  ;;  %v2666_v49 = vcombine.high %v2658_v43, %v2658_v43  ;;  %v710_v60 = vld [vmem:[%s37090_s19 + $0xfd0] sm:$0xff]  ;;  %v1095_v61 = vld [vmem:[%s37090_s19 + $0x1bd8] sm:$0x3] }
 0x221   : > { %10495 = vmatprep.mubr.f32.mxu1 %v319_v62  ;;  %24895 = vmatprep.mubr.f32.mxu0 %v703_v63  ;;  %v1479_v62 = vld [vmem:[%s37090_s19 + $0x27d8] sm:$0x3] }
 0x224   : > { %10496 = vmatmul.mubr.f32.vlgmr.msra.gmra.mrb[0].mxu1 %v318_v2  ;;  %24896 = vmatmul.mubr.f32.vlgmr.msra.gmra.mrb[0].mxu0 %v702_v3  ;;  %v1868_v2 = vld [vmem:[%s37084_s27 + $0x400] sm:$0xff]  ;;  %v1094_v3 = vld [vmem:[%s37090_s19 + $0x1bd0] sm:$0x3] }
 0x225   : > { %10507 = vmatpush1.xpose.msra.mxu1 %v2624_v50  ;;  %24907 = vmatpush1.xpose.msra.mxu0 %v4256_v51  ;;  %v4298_v50 = vcombine.high %v4290_v44, %v4290_v44  ;;  %v2651_v51 = vcombine.high %v1771_v37, %v1771_v37  ;;  %v4307_v9 = vrot.slane %v1868_v2, %v37096_v5 }
 0x226   : > { %10500 = vmatprep.mubr.f32.mxu1 %v1087_v4  ;;  %24900 = vmatprep.mubr.f32.mxu0 %v1471_v6  ;;  %v1478_v4 = vld [vmem:[%s37090_s19 + $0x27d0] sm:$0x3]  ;;  %v329_v6 = vld [vmem:[%s37090_s19 + $0x3e8] sm:$0xff] }
 0x227   : > { %10581 = vmatprep.subr.mxu1 %v2633_v7  ;;  %24981 = vmatprep.subr.mxu0 %v4265_v8  ;;  %v2665_v57 = vrot.slane %v2651_v51, %v37096_v5  ;;  %v713_v7 = vld [vmem:[%s37090_s19 + $0xfe8] sm:$0xff] }
 0x228   : > { %10501 = vmatmul.mubr.f32.gmra.mrb[2].mxu1 %v1086_v11  ;;  %24901 = vmatmul.mubr.f32.gmra.mrb[2].mxu0 %v1470_v12  ;;  %v712_v11 = vld [vmem:[%s37090_s19 + $0xfe0] sm:$0xff]  ;;  %v1097_v12 = vld [vmem:[%s37090_s19 + $0x1be8] sm:$0x3] }
 0x229   : > { %10570 = vmatprep.mubr.f32.mxu1 %v321_v13  ;;  %24970 = vmatprep.mubr.f32.mxu0 %v705_v14  ;;  %v2667_v63 = vcombine.high %v2665_v57, %v2665_v57  ;;  %v1481_v13 = vld [vmem:[%s37090_s19 + $0x27e8] sm:$0x3] }
 0x22c   : > { %10571 = vmatmul.mubr.f32.vlgmr.msra.gmra.mrb[0].mxu1 %v320_v17  ;;  %24971 = vmatmul.mubr.f32.vlgmr.msra.gmra.mrb[0].mxu0 %v704_v18  ;;  %v4300_v17 = vcombine.high %v1868_v2, %v1868_v2  ;;  %v1096_v18 = vld [vmem:[%s37090_s19 + $0x1be0] sm:$0x3] }
 0x22d   : > { %10582 = vmatpush1.xpose.msra.mxu1 %v2631_v0  ;;  %24982 = vmatpush1.xpose.msra.mxu0 %v4263_v1  ;;  %v4299_v0 = vcombine.high %v4297_v58, %v4297_v58  ;;  %v1772_v1 = vld [vmem:[%s37084_s27 + $0x100] sm:$0xff] }
 0x22e   : > { %10575 = vmatprep.mubr.f32.mxu1 %v1089_v19  ;;  %24975 = vmatprep.mubr.f32.mxu0 %v1473_v20  ;;  %v2675_v8 = vrot.slane %v1772_v1, %v37096_v5  ;;  %v1480_v19 = vld [vmem:[%s37090_s19 + $0x27e0] sm:$0x3]  ;;  %v331_v20 = vld [vmem:[%s37090_s19 + $0x3f8] sm:$0xff]  ;;  %v4314_v23 = vrot.slane %v4300_v17, %v37096_v5  ;;  %v338_v17 = vld [vmem:[%s37090_s19 + $0x430] sm:$0xff] }
 0x22f   : > { %10656 = vmatprep.subr.mxu1 %v2649_v21  ;;  %25056 = vmatprep.subr.mxu0 %v4281_v22  ;;  %v715_v21 = vld [vmem:[%s37090_s19 + $0xff8] sm:$0xff]  ;;  %v336_v2 = vld [vmem:[%s37090_s19 + $0x420] sm:$0xff] }
 0x230   : > { %10576 = vmatmul.mubr.f32.gmra.mrb[2].mxu1 %v1088_v25  ;;  %24976 = vmatmul.mubr.f32.gmra.mrb[2].mxu0 %v1472_v26  ;;  %v2683_v14 = vcombine.high %v2675_v8, %v2675_v8  ;;  %v714_v25 = vld [vmem:[%s37090_s19 + $0xff0] sm:$0xff]  ;;  %v1099_v26 = vld [vmem:[%s37090_s19 + $0x1bf8] sm:$0x3] }
 0x231   : > { %10645 = vmatprep.mubr.f32.mxu1 %v323_v27  ;;  %25045 = vmatprep.mubr.f32.mxu0 %v707_v28  ;;  %v1483_v27 = vld [vmem:[%s37090_s19 + $0x27f8] sm:$0x3] }
 0x234   : > { %10646 = vmatmul.mubr.f32.vlgmr.msra.gmra.mrb[0].mxu1 %v322_v31  ;;  %25046 = vmatmul.mubr.f32.vlgmr.msra.gmra.mrb[0].mxu0 %v706_v32  ;;  %v1869_v31 = vld [vmem:[%s37084_s27 + $0x408] sm:$0xff]  ;;  %v1098_v32 = vld [vmem:[%s37090_s19 + $0x1bf0] sm:$0x3] }
 0x235   : > { %10657 = vmatpush1.xpose.msra.mxu1 %v2641_v15  ;;  %25057 = vmatpush1.xpose.msra.mxu0 %v4273_v16  ;;  %v4315_v15 = vcombine.high %v4307_v9, %v4307_v9  ;;  %v2668_v16 = vcombine.high %v1772_v1, %v1772_v1  ;;  %v4324_v37 = vrot.slane %v1869_v31, %v37096_v5 }
 0x236   : > { %10650 = vmatprep.mubr.f32.mxu1 %v1091_v33  ;;  %25050 = vmatprep.mubr.f32.mxu0 %v1475_v34  ;;  %v1482_v33 = vld [vmem:[%s37090_s19 + $0x27f0] sm:$0x3]  ;;  %v333_v34 = vld [vmem:[%s37090_s19 + $0x408] sm:$0xff] }
 0x237   : > { %10731 = vmatprep.subr.mxu1 %v2650_v35  ;;  %25131 = vmatprep.subr.mxu0 %v4282_v36  ;;  %v2682_v22 = vrot.slane %v2668_v16, %v37096_v5  ;;  %v717_v35 = vld [vmem:[%s37090_s19 + $0x1008] sm:$0xff] }
 0x238   : > { %10651 = vmatmul.mubr.f32.gmra.mrb[2].mxu1 %v1090_v39  ;;  %25051 = vmatmul.mubr.f32.gmra.mrb[2].mxu0 %v1474_v40  ;;  %v716_v39 = vld [vmem:[%s37090_s19 + $0x1000] sm:$0xff]  ;;  %v1101_v40 = vld [vmem:[%s37090_s19 + $0x1c08] sm:$0x3] }
 0x239   : > { %10720 = vmatprep.mubr.f32.mxu1 %v325_v41  ;;  %25120 = vmatprep.mubr.f32.mxu0 %v709_v42  ;;  %v2684_v28 = vcombine.high %v2682_v22, %v2682_v22  ;;  %v1485_v41 = vld [vmem:[%s37090_s19 + $0x2808] sm:$0x3] }
 0x23c   : > { %10721 = vmatmul.mubr.f32.vlgmr.msra.gmra.mrb[0].mxu1 %v324_v45  ;;  %25121 = vmatmul.mubr.f32.vlgmr.msra.gmra.mrb[0].mxu0 %v708_v46  ;;  %v4317_v45 = vcombine.high %v1869_v31, %v1869_v31  ;;  %v1100_v46 = vld [vmem:[%s37090_s19 + $0x1c00] sm:$0x3] }
 0x23d   : > { %10732 = vmatpush1.xpose.msra.mxu1 %v2648_v29  ;;  %25132 = vmatpush1.xpose.msra.mxu0 %v4280_v30  ;;  %v4316_v29 = vcombine.high %v4314_v23, %v4314_v23  ;;  %v1773_v30 = vld [vmem:[%s37084_s27 + $0x108] sm:$0xff]  ;;  %v340_v31 = vld [vmem:[%s37090_s19 + $0x440] sm:$0xff] }
 0x23e   : > { %10725 = vmatprep.mubr.f32.mxu1 %v1093_v47  ;;  %25125 = vmatprep.mubr.f32.mxu0 %v1477_v48  ;;  %v2692_v36 = vrot.slane %v1773_v30, %v37096_v5  ;;  %v1484_v47 = vld [vmem:[%s37090_s19 + $0x2800] sm:$0x3]  ;;  %v335_v48 = vld [vmem:[%s37090_s19 + $0x418] sm:$0xff]  ;;  %v4331_v51 = vrot.slane %v4317_v45, %v37096_v5  ;;  %v342_v45 = vld [vmem:[%s37090_s19 + $0x450] sm:$0xff] }
 0x23f   : > { %10806 = vmatprep.subr.mxu1 %v2666_v49  ;;  %25206 = vmatprep.subr.mxu0 %v4298_v50  ;;  %v719_v49 = vld [vmem:[%s37090_s19 + $0x1018] sm:$0xff] }
 0x240   : > { %10726 = vmatmul.mubr.f32.gmra.mrb[2].mxu1 %v1092_v53  ;;  %25126 = vmatmul.mubr.f32.gmra.mrb[2].mxu0 %v1476_v54  ;;  %v2700_v42 = vcombine.high %v2692_v36, %v2692_v36  ;;  %v718_v53 = vld [vmem:[%s37090_s19 + $0x1010] sm:$0xff]  ;;  %v1103_v54 = vld [vmem:[%s37090_s19 + $0x1c18] sm:$0x3] }
 0x241   : > { %10795 = vmatprep.mubr.f32.mxu1 %v327_v55  ;;  %25195 = vmatprep.mubr.f32.mxu0 %v711_v56  ;;  %v1487_v55 = vld [vmem:[%s37090_s19 + $0x2818] sm:$0x3] }
 0x244   : > { %10796 = vmatmul.mubr.f32.vlgmr.msra.gmra.mrb[0].mxu1 %v326_v59  ;;  %25196 = vmatmul.mubr.f32.vlgmr.msra.gmra.mrb[0].mxu0 %v710_v60  ;;  %v1870_v59 = vld [vmem:[%s37084_s27 + $0x410] sm:$0xff] }
 0x245   : > { %10807 = vmatpush1.xpose.msra.mxu1 %v2658_v43  ;;  %25207 = vmatpush1.xpose.msra.mxu0 %v4290_v44  ;;  %v4332_v43 = vcombine.high %v4324_v37, %v4324_v37  ;;  %v2685_v44 = vcombine.high %v1773_v30, %v1773_v30  ;;  %v1102_v60 = vld [vmem:[%s37090_s19 + $0x1c10] sm:$0x3]  ;;  %v4341_v1 = vrot.slane %v1870_v59, %v37096_v5 }
 0x246   : > { %10800 = vmatprep.mubr.f32.mxu1 %v1095_v61  ;;  %25200 = vmatprep.mubr.f32.mxu0 %v1479_v62  ;;  %v1486_v61 = vld [vmem:[%s37090_s19 + $0x2810] sm:$0x3]  ;;  %v337_v62 = vld [vmem:[%s37090_s19 + $0x428] sm:$0xff] }
 0x247   : > { %10881 = vmatprep.subr.mxu1 %v2667_v63  ;;  %25281 = vmatprep.subr.mxu0 %v4299_v0  ;;  %v2699_v50 = vrot.slane %v2685_v44, %v37096_v5  ;;  %v721_v63 = vld [vmem:[%s37090_s19 + $0x1028] sm:$0xff] }
 0x248   : > { %10801 = vmatmul.mubr.f32.gmra.mrb[2].mxu1 %v1094_v3  ;;  %25201 = vmatmul.mubr.f32.gmra.mrb[2].mxu0 %v1478_v4  ;;  %v720_v3 = vld [vmem:[%s37090_s19 + $0x1020] sm:$0xff]  ;;  %v1105_v4 = vld [vmem:[%s37090_s19 + $0x1c28] sm:$0x3] }
 0x249   : > { %10870 = vmatprep.mubr.f32.mxu1 %v329_v6  ;;  %25270 = vmatprep.mubr.f32.mxu0 %v713_v7  ;;  %v2701_v56 = vcombine.high %v2699_v50, %v2699_v50  ;;  %v1489_v6 = vld [vmem:[%s37090_s19 + $0x2828] sm:$0x3] }
 0x24c   : > { %10871 = vmatmul.mubr.f32.vlgmr.msra.gmra.mrb[0].mxu1 %v328_v10  ;;  %25271 = vmatmul.mubr.f32.vlgmr.msra.gmra.mrb[0].mxu0 %v712_v11  ;;  %v4334_v10 = vcombine.high %v1870_v59, %v1870_v59  ;;  %v1104_v11 = vld [vmem:[%s37090_s19 + $0x1c20] sm:$0x3] }
 0x24d   : > { %10882 = vmatpush1.xpose.msra.mxu1 %v2665_v57  ;;  %25282 = vmatpush1.xpose.msra.mxu0 %v4297_v58  ;;  %v4333_v57 = vcombine.high %v4331_v51, %v4331_v51  ;;  %v1774_v58 = vld [vmem:[%s37084_s27 + $0x110] sm:$0xff]  ;;  %v344_v59 = vld [vmem:[%s37090_s19 + $0x460] sm:$0xff] }
 0x24e   : > { %10875 = vmatprep.mubr.f32.mxu1 %v1097_v12  ;;  %25275 = vmatprep.mubr.f32.mxu0 %v1481_v13  ;;  %v2709_v0 = vrot.slane %v1774_v58, %v37096_v5  ;;  %v1488_v12 = vld [vmem:[%s37090_s19 + $0x2820] sm:$0x3]  ;;  %v339_v13 = vld [vmem:[%s37090_s19 + $0x438] sm:$0xff]  ;;  %v4348_v16 = vrot.slane %v4334_v10, %v37096_v5  ;;  %v346_v10 = vld [vmem:[%s37090_s19 + $0x470] sm:$0xff] }
 0x24f   : > { %10956 = vmatprep.subr.mxu1 %v2683_v14  ;;  %25356 = vmatprep.subr.mxu0 %v4315_v15  ;;  %v723_v14 = vld [vmem:[%s37090_s19 + $0x1038] sm:$0xff] }
 0x250   : > { %10876 = vmatmul.mubr.f32.gmra.mrb[2].mxu1 %v1096_v18  ;;  %25276 = vmatmul.mubr.f32.gmra.mrb[2].mxu0 %v1480_v19  ;;  %v2717_v7 = vcombine.high %v2709_v0, %v2709_v0  ;;  %v722_v18 = vld [vmem:[%s37090_s19 + $0x1030] sm:$0xff]  ;;  %v1107_v19 = vld [vmem:[%s37090_s19 + $0x1c38] sm:$0x3] }
 0x251   : > { %10945 = vmatprep.mubr.f32.mxu1 %v331_v20  ;;  %25345 = vmatprep.mubr.f32.mxu0 %v715_v21  ;;  %v1491_v20 = vld [vmem:[%s37090_s19 + $0x2838] sm:$0x3] }
 0x254   : > { %10946 = vmatmul.mubr.f32.vlgmr.msra.gmra.mrb[0].mxu1 %v330_v24  ;;  %25346 = vmatmul.mubr.f32.vlgmr.msra.gmra.mrb[0].mxu0 %v714_v25  ;;  %v1871_v24 = vld [vmem:[%s37084_s27 + $0x418] sm:$0xff]  ;;  %v1106_v25 = vld [vmem:[%s37090_s19 + $0x1c30] sm:$0x3] }
 0x255   : > { %10957 = vmatpush1.xpose.msra.mxu1 %v2675_v8  ;;  %25357 = vmatpush1.xpose.msra.mxu0 %v4307_v9  ;;  %v4349_v8 = vcombine.high %v4341_v1, %v4341_v1  ;;  %v2702_v9 = vcombine.high %v1774_v58, %v1774_v58  ;;  %v4358_v30 = vrot.slane %v1871_v24, %v37096_v5 }
 0x256   : > { %10950 = vmatprep.mubr.f32.mxu1 %v1099_v26  ;;  %25350 = vmatprep.mubr.f32.mxu0 %v1483_v27  ;;  %v1490_v26 = vld [vmem:[%s37090_s19 + $0x2830] sm:$0x3]  ;;  %v341_v27 = vld [vmem:[%s37090_s19 + $0x448] sm:$0xff] }
 0x257   : > { %11031 = vmatprep.subr.mxu1 %v2684_v28  ;;  %25431 = vmatprep.subr.mxu0 %v4316_v29  ;;  %v2716_v15 = vrot.slane %v2702_v9, %v37096_v5  ;;  %v725_v28 = vld [vmem:[%s37090_s19 + $0x1048] sm:$0xff] }
 0x258   : > { %10951 = vmatmul.mubr.f32.gmra.mrb[2].mxu1 %v1098_v32  ;;  %25351 = vmatmul.mubr.f32.gmra.mrb[2].mxu0 %v1482_v33  ;;  %v724_v32 = vld [vmem:[%s37090_s19 + $0x1040] sm:$0xff]  ;;  %v1109_v33 = vld [vmem:[%s37090_s19 + $0x1c48] sm:$0x3] }
 0x259   : > { %11020 = vmatprep.mubr.f32.mxu1 %v333_v34  ;;  %25420 = vmatprep.mubr.f32.mxu0 %v717_v35  ;;  %v2718_v21 = vcombine.high %v2716_v15, %v2716_v15  ;;  %v1493_v34 = vld [vmem:[%s37090_s19 + $0x2848] sm:$0x3] }
 0x25c   : > { %11021 = vmatmul.mubr.f32.vlgmr.msra.gmra.mrb[0].mxu1 %v332_v38  ;;  %25421 = vmatmul.mubr.f32.vlgmr.msra.gmra.mrb[0].mxu0 %v716_v39  ;;  %v4351_v38 = vcombine.high %v1871_v24, %v1871_v24  ;;  %v1108_v39 = vld [vmem:[%s37090_s19 + $0x1c40] sm:$0x3] }
 0x25d   : > { %11032 = vmatpush1.xpose.msra.mxu1 %v2682_v22  ;;  %25432 = vmatpush1.xpose.msra.mxu0 %v4314_v23  ;;  %v4350_v22 = vcombine.high %v4348_v16, %v4348_v16  ;;  %v1775_v23 = vld [vmem:[%s37084_s27 + $0x118] sm:$0xff]  ;;  %v348_v24 = vld [vmem:[%s37090_s19 + $0x480] sm:$0xff] }
 0x25e   : > { %11025 = vmatprep.mubr.f32.mxu1 %v1101_v40  ;;  %25425 = vmatprep.mubr.f32.mxu0 %v1485_v41  ;;  %v2726_v29 = vrot.slane %v1775_v23, %v37096_v5  ;;  %v1492_v40 = vld [vmem:[%s37090_s19 + $0x2840] sm:$0x3]  ;;  %v343_v41 = vld [vmem:[%s37090_s19 + $0x458] sm:$0xff]  ;;  %v4365_v44 = vrot.slane %v4351_v38, %v37096_v5  ;;  %v350_v38 = vld [vmem:[%s37090_s19 + $0x490] sm:$0xff] }
 0x25f   : > { %11106 = vmatprep.subr.mxu1 %v2700_v42  ;;  %25506 = vmatprep.subr.mxu0 %v4332_v43  ;;  %v727_v42 = vld [vmem:[%s37090_s19 + $0x1058] sm:$0xff] }
 0x260   : > { %11026 = vmatmul.mubr.f32.gmra.mrb[2].mxu1 %v1100_v46  ;;  %25426 = vmatmul.mubr.f32.gmra.mrb[2].mxu0 %v1484_v47  ;;  %v2734_v35 = vcombine.high %v2726_v29, %v2726_v29  ;;  %v726_v46 = vld [vmem:[%s37090_s19 + $0x1050] sm:$0xff]  ;;  %v1111_v47 = vld [vmem:[%s37090_s19 + $0x1c58] sm:$0x3] }
 0x261   : > { %11095 = vmatprep.mubr.f32.mxu1 %v335_v48  ;;  %25495 = vmatprep.mubr.f32.mxu0 %v719_v49  ;;  %v1495_v48 = vld [vmem:[%s37090_s19 + $0x2858] sm:$0x3] }
 0x264   : > { %11096 = vmatmul.mubr.f32.vlgmr.msra.gmra.mrb[0].mxu1 %v334_v52  ;;  %25496 = vmatmul.mubr.f32.vlgmr.msra.gmra.mrb[0].mxu0 %v718_v53  ;;  %v1872_v52 = vld [vmem:[%s37084_s27 + $0x420] sm:$0xff]  ;;  %v1110_v53 = vld [vmem:[%s37090_s19 + $0x1c50] sm:$0x3] }
 0x265   : > { %11107 = vmatpush1.xpose.msra.mxu1 %v2692_v36  ;;  %25507 = vmatpush1.xpose.msra.mxu0 %v4324_v37  ;;  %v4366_v36 = vcombine.high %v4358_v30, %v4358_v30  ;;  %v2719_v37 = vcombine.high %v1775_v23, %v1775_v23  ;;  %v4375_v58 = vrot.slane %v1872_v52, %v37096_v5 }
 0x266   : > { %11100 = vmatprep.mubr.f32.mxu1 %v1103_v54  ;;  %25500 = vmatprep.mubr.f32.mxu0 %v1487_v55  ;;  %v1494_v54 = vld [vmem:[%s37090_s19 + $0x2850] sm:$0x3]  ;;  %v345_v55 = vld [vmem:[%s37090_s19 + $0x468] sm:$0xff] }
 0x267   : > { %11181 = vmatprep.subr.mxu1 %v2701_v56  ;;  %25581 = vmatprep.subr.mxu0 %v4333_v57  ;;  %v2733_v43 = vrot.slane %v2719_v37, %v37096_v5  ;;  %v729_v56 = vld [vmem:[%s37090_s19 + $0x1068] sm:$0xff] }
 0x268   : > { %11101 = vmatmul.mubr.f32.gmra.mrb[2].mxu1 %v1102_v60  ;;  %25501 = vmatmul.mubr.f32.gmra.mrb[2].mxu0 %v1486_v61  ;;  %v728_v60 = vld [vmem:[%s37090_s19 + $0x1060] sm:$0xff]  ;;  %v1113_v61 = vld [vmem:[%s37090_s19 + $0x1c68] sm:$0x3] }
 0x269   : > { %11170 = vmatprep.mubr.f32.mxu1 %v337_v62  ;;  %25570 = vmatprep.mubr.f32.mxu0 %v721_v63  ;;  %v2735_v49 = vcombine.high %v2733_v43, %v2733_v43  ;;  %v1497_v62 = vld [vmem:[%s37090_s19 + $0x2868] sm:$0x3] }
 0x26c   : > { %11171 = vmatmul.mubr.f32.vlgmr.msra.gmra.mrb[0].mxu1 %v336_v2  ;;  %25571 = vmatmul.mubr.f32.vlgmr.msra.gmra.mrb[0].mxu0 %v720_v3  ;;  %v4368_v2 = vcombine.high %v1872_v52, %v1872_v52  ;;  %v1112_v3 = vld [vmem:[%s37090_s19 + $0x1c60] sm:$0x3] }
 0x26d   : > { %11182 = vmatpush1.xpose.msra.mxu1 %v2699_v50  ;;  %25582 = vmatpush1.xpose.msra.mxu0 %v4331_v51  ;;  %v4367_v50 = vcombine.high %v4365_v44, %v4365_v44  ;;  %v1776_v51 = vld [vmem:[%s37084_s27 + $0x120] sm:$0xff] }
 0x26e   : > { %11175 = vmatprep.mubr.f32.mxu1 %v1105_v4  ;;  %25575 = vmatprep.mubr.f32.mxu0 %v1489_v6  ;;  %v2743_v57 = vrot.slane %v1776_v51, %v37096_v5  ;;  %v1496_v4 = vld [vmem:[%s37090_s19 + $0x2860] sm:$0x3]  ;;  %v347_v6 = vld [vmem:[%s37090_s19 + $0x478] sm:$0xff]  ;;  %v4382_v9 = vrot.slane %v4368_v2, %v37096_v5  ;;  %v354_v2 = vld [vmem:[%s37090_s19 + $0x4b0] sm:$0xff] }
 0x26f   : > { %11256 = vmatprep.subr.mxu1 %v2717_v7  ;;  %25656 = vmatprep.subr.mxu0 %v4349_v8  ;;  %v731_v7 = vld [vmem:[%s37090_s19 + $0x1078] sm:$0xff]  ;;  %v352_v52 = vld [vmem:[%s37090_s19 + $0x4a0] sm:$0xff] }
 0x270   : > { %11176 = vmatmul.mubr.f32.gmra.mrb[2].mxu1 %v1104_v11  ;;  %25576 = vmatmul.mubr.f32.gmra.mrb[2].mxu0 %v1488_v12  ;;  %v2751_v63 = vcombine.high %v2743_v57, %v2743_v57  ;;  %v730_v11 = vld [vmem:[%s37090_s19 + $0x1070] sm:$0xff]  ;;  %v1115_v12 = vld [vmem:[%s37090_s19 + $0x1c78] sm:$0x3] }
 0x271   : > { %11245 = vmatprep.mubr.f32.mxu1 %v339_v13  ;;  %25645 = vmatprep.mubr.f32.mxu0 %v723_v14  ;;  %v1499_v13 = vld [vmem:[%s37090_s19 + $0x2878] sm:$0x3] }
 0x274   : > { %11246 = vmatmul.mubr.f32.vlgmr.msra.gmra.mrb[0].mxu1 %v338_v17  ;;  %25646 = vmatmul.mubr.f32.vlgmr.msra.gmra.mrb[0].mxu0 %v722_v18  ;;  %v1873_v17 = vld [vmem:[%s37084_s27 + $0x428] sm:$0xff]  ;;  %v1114_v18 = vld [vmem:[%s37090_s19 + $0x1c70] sm:$0x3] }
 0x275   : > { %11257 = vmatpush1.xpose.msra.mxu1 %v2709_v0  ;;  %25657 = vmatpush1.xpose.msra.mxu0 %v4341_v1  ;;  %v4383_v0 = vcombine.high %v4375_v58, %v4375_v58  ;;  %v2736_v1 = vcombine.high %v1776_v51, %v1776_v51  ;;  %v4392_v23 = vrot.slane %v1873_v17, %v37096_v5 }
 0x276   : > { %11250 = vmatprep.mubr.f32.mxu1 %v1107_v19  ;;  %25650 = vmatprep.mubr.f32.mxu0 %v1491_v20  ;;  %v1498_v19 = vld [vmem:[%s37090_s19 + $0x2870] sm:$0x3]  ;;  %v349_v20 = vld [vmem:[%s37090_s19 + $0x488] sm:$0xff] }
 0x277   : > { %11331 = vmatprep.subr.mxu1 %v2718_v21  ;;  %25731 = vmatprep.subr.mxu0 %v4350_v22  ;;  %v2750_v8 = vrot.slane %v2736_v1, %v37096_v5  ;;  %v733_v21 = vld [vmem:[%s37090_s19 + $0x1088] sm:$0xff] }
 0x278   : > { %11251 = vmatmul.mubr.f32.gmra.mrb[2].mxu1 %v1106_v25  ;;  %25651 = vmatmul.mubr.f32.gmra.mrb[2].mxu0 %v1490_v26  ;;  %v732_v25 = vld [vmem:[%s37090_s19 + $0x1080] sm:$0xff]  ;;  %v1117_v26 = vld [vmem:[%s37090_s19 + $0x1c88] sm:$0x3] }
 0x279   : > { %11320 = vmatprep.mubr.f32.mxu1 %v341_v27  ;;  %25720 = vmatprep.mubr.f32.mxu0 %v725_v28  ;;  %v2752_v14 = vcombine.high %v2750_v8, %v2750_v8  ;;  %v1501_v27 = vld [vmem:[%s37090_s19 + $0x2888] sm:$0x3] }
 0x27c   : > { %11321 = vmatmul.mubr.f32.vlgmr.msra.gmra.mrb[0].mxu1 %v340_v31  ;;  %25721 = vmatmul.mubr.f32.vlgmr.msra.gmra.mrb[0].mxu0 %v724_v32  ;;  %v4385_v31 = vcombine.high %v1873_v17, %v1873_v17  ;;  %v1116_v32 = vld [vmem:[%s37090_s19 + $0x1c80] sm:$0x3] }
 0x27d   : > { %11332 = vmatpush1.xpose.msra.mxu1 %v2716_v15  ;;  %25732 = vmatpush1.xpose.msra.mxu0 %v4348_v16  ;;  %v4384_v15 = vcombine.high %v4382_v9, %v4382_v9  ;;  %v1777_v16 = vld [vmem:[%s37084_s27 + $0x128] sm:$0xff]  ;;  %v356_v17 = vld [vmem:[%s37090_s19 + $0x4c0] sm:$0xff] }
 0x27e   : > { %11325 = vmatprep.mubr.f32.mxu1 %v1109_v33  ;;  %25725 = vmatprep.mubr.f32.mxu0 %v1493_v34  ;;  %v2760_v22 = vrot.slane %v1777_v16, %v37096_v5  ;;  %v1500_v33 = vld [vmem:[%s37090_s19 + $0x2880] sm:$0x3]  ;;  %v351_v34 = vld [vmem:[%s37090_s19 + $0x498] sm:$0xff]  ;;  %v4399_v37 = vrot.slane %v4385_v31, %v37096_v5  ;;  %v358_v31 = vld [vmem:[%s37090_s19 + $0x4d0] sm:$0xff] }
 0x27f   : > { %11406 = vmatprep.subr.mxu1 %v2734_v35  ;;  %25806 = vmatprep.subr.mxu0 %v4366_v36  ;;  %v735_v35 = vld [vmem:[%s37090_s19 + $0x1098] sm:$0xff] }
 0x280   : > { %11326 = vmatmul.mubr.f32.gmra.mrb[2].mxu1 %v1108_v39  ;;  %25726 = vmatmul.mubr.f32.gmra.mrb[2].mxu0 %v1492_v40  ;;  %v2768_v28 = vcombine.high %v2760_v22, %v2760_v22  ;;  %v734_v39 = vld [vmem:[%s37090_s19 + $0x1090] sm:$0xff]  ;;  %v1119_v40 = vld [vmem:[%s37090_s19 + $0x1c98] sm:$0x3] }
 0x281   : > { %11395 = vmatprep.mubr.f32.mxu1 %v343_v41  ;;  %25795 = vmatprep.mubr.f32.mxu0 %v727_v42  ;;  %v1503_v41 = vld [vmem:[%s37090_s19 + $0x2898] sm:$0x3] }
 0x284   : > { %11396 = vmatmul.mubr.f32.vlgmr.msra.gmra.mrb[0].mxu1 %v342_v45  ;;  %25796 = vmatmul.mubr.f32.vlgmr.msra.gmra.mrb[0].mxu0 %v726_v46  ;;  %v1874_v45 = vld [vmem:[%s37084_s27 + $0x430] sm:$0xff] }
 0x285   : > { %11407 = vmatpush1.xpose.msra.mxu1 %v2726_v29  ;;  %25807 = vmatpush1.xpose.msra.mxu0 %v4358_v30  ;;  %v4400_v29 = vcombine.high %v4392_v23, %v4392_v23  ;;  %v2753_v30 = vcombine.high %v1777_v16, %v1777_v16  ;;  %v1118_v46 = vld [vmem:[%s37090_s19 + $0x1c90] sm:$0x3]  ;;  %v4409_v51 = vrot.slane %v1874_v45, %v37096_v5 }
 0x286   : > { %11400 = vmatprep.mubr.f32.mxu1 %v1111_v47  ;;  %25800 = vmatprep.mubr.f32.mxu0 %v1495_v48  ;;  %v1502_v47 = vld [vmem:[%s37090_s19 + $0x2890] sm:$0x3]  ;;  %v353_v48 = vld [vmem:[%s37090_s19 + $0x4a8] sm:$0xff] }
 0x287   : > { %11481 = vmatprep.subr.mxu1 %v2735_v49  ;;  %25881 = vmatprep.subr.mxu0 %v4367_v50  ;;  %v2767_v36 = vrot.slane %v2753_v30, %v37096_v5  ;;  %v737_v49 = vld [vmem:[%s37090_s19 + $0x10a8] sm:$0xff] }
 0x288   : > { %11401 = vmatmul.mubr.f32.gmra.mrb[2].mxu1 %v1110_v53  ;;  %25801 = vmatmul.mubr.f32.gmra.mrb[2].mxu0 %v1494_v54  ;;  %v736_v53 = vld [vmem:[%s37090_s19 + $0x10a0] sm:$0xff]  ;;  %v1121_v54 = vld [vmem:[%s37090_s19 + $0x1ca8] sm:$0x3] }
 0x289   : > { %11470 = vmatprep.mubr.f32.mxu1 %v345_v55  ;;  %25870 = vmatprep.mubr.f32.mxu0 %v729_v56  ;;  %v2769_v42 = vcombine.high %v2767_v36, %v2767_v36  ;;  %v1505_v55 = vld [vmem:[%s37090_s19 + $0x28a8] sm:$0x3] }
 0x28c   : > { %11471 = vmatmul.mubr.f32.vlgmr.msra.gmra.mrb[0].mxu1 %v344_v59  ;;  %25871 = vmatmul.mubr.f32.vlgmr.msra.gmra.mrb[0].mxu0 %v728_v60  ;;  %v4402_v59 = vcombine.high %v1874_v45, %v1874_v45  ;;  %v1120_v60 = vld [vmem:[%s37090_s19 + $0x1ca0] sm:$0x3] }
 0x28d   : > { %11482 = vmatpush1.xpose.msra.mxu1 %v2733_v43  ;;  %25882 = vmatpush1.xpose.msra.mxu0 %v4365_v44  ;;  %v4401_v43 = vcombine.high %v4399_v37, %v4399_v37  ;;  %v1778_v44 = vld [vmem:[%s37084_s27 + $0x130] sm:$0xff]  ;;  %v360_v45 = vld [vmem:[%s37090_s19 + $0x4e0] sm:$0xff] }
 0x28e   : > { %11475 = vmatprep.mubr.f32.mxu1 %v1113_v61  ;;  %25875 = vmatprep.mubr.f32.mxu0 %v1497_v62  ;;  %v2777_v50 = vrot.slane %v1778_v44, %v37096_v5  ;;  %v1504_v61 = vld [vmem:[%s37090_s19 + $0x28a0] sm:$0x3]  ;;  %v355_v62 = vld [vmem:[%s37090_s19 + $0x4b8] sm:$0xff]  ;;  %v4416_v1 = vrot.slane %v4402_v59, %v37096_v5  ;;  %v362_v59 = vld [vmem:[%s37090_s19 + $0x4f0] sm:$0xff] }
 0x28f   : > { %11556 = vmatprep.subr.mxu1 %v2751_v63  ;;  %25956 = vmatprep.subr.mxu0 %v4383_v0  ;;  %v739_v63 = vld [vmem:[%s37090_s19 + $0x10b8] sm:$0xff] }
 0x290   : > { %11476 = vmatmul.mubr.f32.gmra.mrb[2].mxu1 %v1112_v3  ;;  %25876 = vmatmul.mubr.f32.gmra.mrb[2].mxu0 %v1496_v4  ;;  %v2785_v56 = vcombine.high %v2777_v50, %v2777_v50  ;;  %v738_v3 = vld [vmem:[%s37090_s19 + $0x10b0] sm:$0xff]  ;;  %v1123_v4 = vld [vmem:[%s37090_s19 + $0x1cb8] sm:$0x3] }
 0x291   : > { %11545 = vmatprep.mubr.f32.mxu1 %v347_v6  ;;  %25945 = vmatprep.mubr.f32.mxu0 %v731_v7  ;;  %v1507_v6 = vld [vmem:[%s37090_s19 + $0x28b8] sm:$0x3] }
 0x294   : > { %11546 = vmatmul.mubr.f32.vlgmr.msra.gmra.mrb[0].mxu1 %v346_v10  ;;  %25946 = vmatmul.mubr.f32.vlgmr.msra.gmra.mrb[0].mxu0 %v730_v11  ;;  %v1875_v10 = vld [vmem:[%s37084_s27 + $0x438] sm:$0xff]  ;;  %v1122_v11 = vld [vmem:[%s37090_s19 + $0x1cb0] sm:$0x3] }
 0x295   : > { %11557 = vmatpush1.xpose.msra.mxu1 %v2743_v57  ;;  %25957 = vmatpush1.xpose.msra.mxu0 %v4375_v58  ;;  %v4417_v57 = vcombine.high %v4409_v51, %v4409_v51  ;;  %v2770_v58 = vcombine.high %v1778_v44, %v1778_v44  ;;  %v4426_v16 = vrot.slane %v1875_v10, %v37096_v5 }
 0x296   : > { %11550 = vmatprep.mubr.f32.mxu1 %v1115_v12  ;;  %25950 = vmatprep.mubr.f32.mxu0 %v1499_v13  ;;  %v1506_v12 = vld [vmem:[%s37090_s19 + $0x28b0] sm:$0x3]  ;;  %v357_v13 = vld [vmem:[%s37090_s19 + $0x4c8] sm:$0xff] }
 0x297   : > { %11631 = vmatprep.subr.mxu1 %v2752_v14  ;;  %26031 = vmatprep.subr.mxu0 %v4384_v15  ;;  %v2784_v0 = vrot.slane %v2770_v58, %v37096_v5  ;;  %v741_v14 = vld [vmem:[%s37090_s19 + $0x10c8] sm:$0xff] }
 0x298   : > { %11551 = vmatmul.mubr.f32.gmra.mrb[2].mxu1 %v1114_v18  ;;  %25951 = vmatmul.mubr.f32.gmra.mrb[2].mxu0 %v1498_v19  ;;  %v740_v18 = vld [vmem:[%s37090_s19 + $0x10c0] sm:$0xff]  ;;  %v1125_v19 = vld [vmem:[%s37090_s19 + $0x1cc8] sm:$0x3] }
 0x299   : > { %11620 = vmatprep.mubr.f32.mxu1 %v349_v20  ;;  %26020 = vmatprep.mubr.f32.mxu0 %v733_v21  ;;  %v2786_v7 = vcombine.high %v2784_v0, %v2784_v0  ;;  %v1509_v20 = vld [vmem:[%s37090_s19 + $0x28c8] sm:$0x3] }
 0x29c   : > { %11621 = vmatmul.mubr.f32.vlgmr.msra.gmra.mrb[0].mxu1 %v348_v24  ;;  %26021 = vmatmul.mubr.f32.vlgmr.msra.gmra.mrb[0].mxu0 %v732_v25  ;;  %v4419_v24 = vcombine.high %v1875_v10, %v1875_v10  ;;  %v1124_v25 = vld [vmem:[%s37090_s19 + $0x1cc0] sm:$0x3] }
 0x29d   : > { %11632 = vmatpush1.xpose.msra.mxu1 %v2750_v8  ;;  %26032 = vmatpush1.xpose.msra.mxu0 %v4382_v9  ;;  %v4418_v8 = vcombine.high %v4416_v1, %v4416_v1  ;;  %v1779_v9 = vld [vmem:[%s37084_s27 + $0x138] sm:$0xff]  ;;  %v364_v10 = vld [vmem:[%s37090_s19 + $0x500] sm:$0xff] }
 0x29e   : > { %11625 = vmatprep.mubr.f32.mxu1 %v1117_v26  ;;  %26025 = vmatprep.mubr.f32.mxu0 %v1501_v27  ;;  %v2794_v15 = vrot.slane %v1779_v9, %v37096_v5  ;;  %v1508_v26 = vld [vmem:[%s37090_s19 + $0x28c0] sm:$0x3]  ;;  %v359_v27 = vld [vmem:[%s37090_s19 + $0x4d8] sm:$0xff]  ;;  %v4433_v30 = vrot.slane %v4419_v24, %v37096_v5  ;;  %v366_v24 = vld [vmem:[%s37090_s19 + $0x510] sm:$0xff] }
 0x29f   : > { %11706 = vmatprep.subr.mxu1 %v2768_v28  ;;  %26106 = vmatprep.subr.mxu0 %v4400_v29  ;;  %v743_v28 = vld [vmem:[%s37090_s19 + $0x10d8] sm:$0xff] }
 0x2a0   : > { %11626 = vmatmul.mubr.f32.gmra.mrb[2].mxu1 %v1116_v32  ;;  %26026 = vmatmul.mubr.f32.gmra.mrb[2].mxu0 %v1500_v33  ;;  %v2802_v21 = vcombine.high %v2794_v15, %v2794_v15  ;;  %v742_v32 = vld [vmem:[%s37090_s19 + $0x10d0] sm:$0xff]  ;;  %v1127_v33 = vld [vmem:[%s37090_s19 + $0x1cd8] sm:$0x3] }
 0x2a1   : > { %11695 = vmatprep.mubr.f32.mxu1 %v351_v34  ;;  %26095 = vmatprep.mubr.f32.mxu0 %v735_v35  ;;  %v1511_v34 = vld [vmem:[%s37090_s19 + $0x28d8] sm:$0x3] }
 0x2a4   : > { %11696 = vmatmul.mubr.f32.vlgmr.msra.gmra.mrb[0].mxu1 %v350_v38  ;;  %26096 = vmatmul.mubr.f32.vlgmr.msra.gmra.mrb[0].mxu0 %v734_v39  ;;  %v1876_v38 = vld [vmem:[%s37084_s27 + $0x440] sm:$0xff]  ;;  %v1126_v39 = vld [vmem:[%s37090_s19 + $0x1cd0] sm:$0x3] }
 0x2a5   : > { %11707 = vmatpush1.xpose.msra.mxu1 %v2760_v22  ;;  %26107 = vmatpush1.xpose.msra.mxu0 %v4392_v23  ;;  %v4434_v22 = vcombine.high %v4426_v16, %v4426_v16  ;;  %v2787_v23 = vcombine.high %v1779_v9, %v1779_v9  ;;  %v4443_v44 = vrot.slane %v1876_v38, %v37096_v5 }
 0x2a6   : > { %11700 = vmatprep.mubr.f32.mxu1 %v1119_v40  ;;  %26100 = vmatprep.mubr.f32.mxu0 %v1503_v41  ;;  %v1510_v40 = vld [vmem:[%s37090_s19 + $0x28d0] sm:$0x3]  ;;  %v361_v41 = vld [vmem:[%s37090_s19 + $0x4e8] sm:$0xff] }
 0x2a7   : > { %11781 = vmatprep.subr.mxu1 %v2769_v42  ;;  %26181 = vmatprep.subr.mxu0 %v4401_v43  ;;  %v2801_v29 = vrot.slane %v2787_v23, %v37096_v5  ;;  %v745_v42 = vld [vmem:[%s37090_s19 + $0x10e8] sm:$0xff] }
 0x2a8   : > { %11701 = vmatmul.mubr.f32.gmra.mrb[2].mxu1 %v1118_v46  ;;  %26101 = vmatmul.mubr.f32.gmra.mrb[2].mxu0 %v1502_v47  ;;  %v744_v46 = vld [vmem:[%s37090_s19 + $0x10e0] sm:$0xff]  ;;  %v1129_v47 = vld [vmem:[%s37090_s19 + $0x1ce8] sm:$0x3] }
 0x2a9   : > { %11770 = vmatprep.mubr.f32.mxu1 %v353_v48  ;;  %26170 = vmatprep.mubr.f32.mxu0 %v737_v49  ;;  %v2803_v35 = vcombine.high %v2801_v29, %v2801_v29  ;;  %v1513_v48 = vld [vmem:[%s37090_s19 + $0x28e8] sm:$0x3] }
 0x2ac   : > { %11771 = vmatmul.mubr.f32.vlgmr.msra.gmra.mrb[0].mxu1 %v352_v52  ;;  %26171 = vmatmul.mubr.f32.vlgmr.msra.gmra.mrb[0].mxu0 %v736_v53  ;;  %v4436_v52 = vcombine.high %v1876_v38, %v1876_v38  ;;  %v1128_v53 = vld [vmem:[%s37090_s19 + $0x1ce0] sm:$0x3] }
 0x2ad   : > { %11782 = vmatpush1.xpose.msra.mxu1 %v2767_v36  ;;  %26182 = vmatpush1.xpose.msra.mxu0 %v4399_v37  ;;  %v4435_v36 = vcombine.high %v4433_v30, %v4433_v30  ;;  %v1780_v37 = vld [vmem:[%s37084_s27 + $0x140] sm:$0xff] }
 0x2ae   : > { %11775 = vmatprep.mubr.f32.mxu1 %v1121_v54  ;;  %26175 = vmatprep.mubr.f32.mxu0 %v1505_v55  ;;  %v2811_v43 = vrot.slane %v1780_v37, %v37096_v5  ;;  %v1512_v54 = vld [vmem:[%s37090_s19 + $0x28e0] sm:$0x3]  ;;  %v363_v55 = vld [vmem:[%s37090_s19 + $0x4f8] sm:$0xff]  ;;  %v4450_v58 = vrot.slane %v4436_v52, %v37096_v5  ;;  %v370_v52 = vld [vmem:[%s37090_s19 + $0x530] sm:$0xff] }
 0x2af   : > { %11856 = vmatprep.subr.mxu1 %v2785_v56  ;;  %26256 = vmatprep.subr.mxu0 %v4417_v57  ;;  %v747_v56 = vld [vmem:[%s37090_s19 + $0x10f8] sm:$0xff]  ;;  %v368_v38 = vld [vmem:[%s37090_s19 + $0x520] sm:$0xff] }
 0x2b0   : > { %11776 = vmatmul.mubr.f32.gmra.mrb[2].mxu1 %v1120_v60  ;;  %26176 = vmatmul.mubr.f32.gmra.mrb[2].mxu0 %v1504_v61  ;;  %v2819_v49 = vcombine.high %v2811_v43, %v2811_v43  ;;  %v746_v60 = vld [vmem:[%s37090_s19 + $0x10f0] sm:$0xff]  ;;  %v1131_v61 = vld [vmem:[%s37090_s19 + $0x1cf8] sm:$0x3] }
 0x2b1   : > { %11845 = vmatprep.mubr.f32.mxu1 %v355_v62  ;;  %26245 = vmatprep.mubr.f32.mxu0 %v739_v63  ;;  %v1515_v62 = vld [vmem:[%s37090_s19 + $0x28f8] sm:$0x3] }
 0x2b4   : > { %11846 = vmatmul.mubr.f32.vlgmr.msra.gmra.mrb[0].mxu1 %v354_v2  ;;  %26246 = vmatmul.mubr.f32.vlgmr.msra.gmra.mrb[0].mxu0 %v738_v3  ;;  %v1877_v2 = vld [vmem:[%s37084_s27 + $0x448] sm:$0xff]  ;;  %v1130_v3 = vld [vmem:[%s37090_s19 + $0x1cf0] sm:$0x3] }
 0x2b5   : > { %11857 = vmatpush1.xpose.msra.mxu1 %v2777_v50  ;;  %26257 = vmatpush1.xpose.msra.mxu0 %v4409_v51  ;;  %v4451_v50 = vcombine.high %v4443_v44, %v4443_v44  ;;  %v2804_v51 = vcombine.high %v1780_v37, %v1780_v37  ;;  %v4460_v9 = vrot.slane %v1877_v2, %v37096_v5 }
 0x2b6   : > { %11850 = vmatprep.mubr.f32.mxu1 %v1123_v4  ;;  %26250 = vmatprep.mubr.f32.mxu0 %v1507_v6  ;;  %v1514_v4 = vld [vmem:[%s37090_s19 + $0x28f0] sm:$0x3]  ;;  %v365_v6 = vld [vmem:[%s37090_s19 + $0x508] sm:$0xff] }
 0x2b7   : > { %11931 = vmatprep.subr.mxu1 %v2786_v7  ;;  %26331 = vmatprep.subr.mxu0 %v4418_v8  ;;  %v2818_v57 = vrot.slane %v2804_v51, %v37096_v5  ;;  %v749_v7 = vld [vmem:[%s37090_s19 + $0x1108] sm:$0xff] }
 0x2b8   : > { %11851 = vmatmul.mubr.f32.gmra.mrb[2].mxu1 %v1122_v11  ;;  %26251 = vmatmul.mubr.f32.gmra.mrb[2].mxu0 %v1506_v12  ;;  %v748_v11 = vld [vmem:[%s37090_s19 + $0x1100] sm:$0xff]  ;;  %v1133_v12 = vld [vmem:[%s37090_s19 + $0x1d08] sm:$0x3] }
 0x2b9   : > { %11920 = vmatprep.mubr.f32.mxu1 %v357_v13  ;;  %26320 = vmatprep.mubr.f32.mxu0 %v741_v14  ;;  %v2820_v63 = vcombine.high %v2818_v57, %v2818_v57  ;;  %v1517_v13 = vld [vmem:[%s37090_s19 + $0x2908] sm:$0x3] }
 0x2bc   : > { %11921 = vmatmul.mubr.f32.vlgmr.msra.gmra.mrb[0].mxu1 %v356_v17  ;;  %26321 = vmatmul.mubr.f32.vlgmr.msra.gmra.mrb[0].mxu0 %v740_v18  ;;  %v4453_v17 = vcombine.high %v1877_v2, %v1877_v2  ;;  %v1132_v18 = vld [vmem:[%s37090_s19 + $0x1d00] sm:$0x3] }
 0x2bd   : > { %11932 = vmatpush1.xpose.msra.mxu1 %v2784_v0  ;;  %26332 = vmatpush1.xpose.msra.mxu0 %v4416_v1  ;;  %v4452_v0 = vcombine.high %v4450_v58, %v4450_v58  ;;  %v1781_v1 = vld [vmem:[%s37084_s27 + $0x148] sm:$0xff]  ;;  %v372_v2 = vld [vmem:[%s37090_s19 + $0x540] sm:$0xff] }
 0x2be   : > { %11925 = vmatprep.mubr.f32.mxu1 %v1125_v19  ;;  %26325 = vmatprep.mubr.f32.mxu0 %v1509_v20  ;;  %v2828_v8 = vrot.slane %v1781_v1, %v37096_v5  ;;  %v1516_v19 = vld [vmem:[%s37090_s19 + $0x2900] sm:$0x3]  ;;  %v367_v20 = vld [vmem:[%s37090_s19 + $0x518] sm:$0xff]  ;;  %v4467_v23 = vrot.slane %v4453_v17, %v37096_v5  ;;  %v374_v17 = vld [vmem:[%s37090_s19 + $0x550] sm:$0xff] }
 0x2bf   : > { %12006 = vmatprep.subr.mxu1 %v2802_v21  ;;  %26406 = vmatprep.subr.mxu0 %v4434_v22  ;;  %v751_v21 = vld [vmem:[%s37090_s19 + $0x1118] sm:$0xff] }
 0x2c0   : > { %11926 = vmatmul.mubr.f32.gmra.mrb[2].mxu1 %v1124_v25  ;;  %26326 = vmatmul.mubr.f32.gmra.mrb[2].mxu0 %v1508_v26  ;;  %v2836_v14 = vcombine.high %v2828_v8, %v2828_v8  ;;  %v750_v25 = vld [vmem:[%s37090_s19 + $0x1110] sm:$0xff]  ;;  %v1135_v26 = vld [vmem:[%s37090_s19 + $0x1d18] sm:$0x3] }
 0x2c1   : > { %11995 = vmatprep.mubr.f32.mxu1 %v359_v27  ;;  %26395 = vmatprep.mubr.f32.mxu0 %v743_v28  ;;  %v1519_v27 = vld [vmem:[%s37090_s19 + $0x2918] sm:$0x3] }
 0x2c4   : > { %11996 = vmatmul.mubr.f32.vlgmr.msra.gmra.mrb[0].mxu1 %v358_v31  ;;  %26396 = vmatmul.mubr.f32.vlgmr.msra.gmra.mrb[0].mxu0 %v742_v32  ;;  %v1878_v31 = vld [vmem:[%s37084_s27 + $0x450] sm:$0xff] }
 0x2c5   : > { %12007 = vmatpush1.xpose.msra.mxu1 %v2794_v15  ;;  %26407 = vmatpush1.xpose.msra.mxu0 %v4426_v16  ;;  %v4468_v15 = vcombine.high %v4460_v9, %v4460_v9  ;;  %v2821_v16 = vcombine.high %v1781_v1, %v1781_v1  ;;  %v1134_v32 = vld [vmem:[%s37090_s19 + $0x1d10] sm:$0x3]  ;;  %v4477_v37 = vrot.slane %v1878_v31, %v37096_v5 }
 0x2c6   : > { %12000 = vmatprep.mubr.f32.mxu1 %v1127_v33  ;;  %26400 = vmatprep.mubr.f32.mxu0 %v1511_v34  ;;  %v1518_v33 = vld [vmem:[%s37090_s19 + $0x2910] sm:$0x3]  ;;  %v369_v34 = vld [vmem:[%s37090_s19 + $0x528] sm:$0xff] }
 0x2c7   : > { %12081 = vmatprep.subr.mxu1 %v2803_v35  ;;  %26481 = vmatprep.subr.mxu0 %v4435_v36  ;;  %v2835_v22 = vrot.slane %v2821_v16, %v37096_v5  ;;  %v753_v35 = vld [vmem:[%s37090_s19 + $0x1128] sm:$0xff] }
 0x2c8   : > { %12001 = vmatmul.mubr.f32.gmra.mrb[2].mxu1 %v1126_v39  ;;  %26401 = vmatmul.mubr.f32.gmra.mrb[2].mxu0 %v1510_v40  ;;  %v752_v39 = vld [vmem:[%s37090_s19 + $0x1120] sm:$0xff]  ;;  %v1137_v40 = vld [vmem:[%s37090_s19 + $0x1d28] sm:$0x3] }
 0x2c9   : > { %12070 = vmatprep.mubr.f32.mxu1 %v361_v41  ;;  %26470 = vmatprep.mubr.f32.mxu0 %v745_v42  ;;  %v2837_v28 = vcombine.high %v2835_v22, %v2835_v22  ;;  %v1521_v41 = vld [vmem:[%s37090_s19 + $0x2928] sm:$0x3] }
 0x2cc   : > { %12071 = vmatmul.mubr.f32.vlgmr.msra.gmra.mrb[0].mxu1 %v360_v45  ;;  %26471 = vmatmul.mubr.f32.vlgmr.msra.gmra.mrb[0].mxu0 %v744_v46  ;;  %v4470_v45 = vcombine.high %v1878_v31, %v1878_v31  ;;  %v1136_v46 = vld [vmem:[%s37090_s19 + $0x1d20] sm:$0x3] }
 0x2cd   : > { %12082 = vmatpush1.xpose.msra.mxu1 %v2801_v29  ;;  %26482 = vmatpush1.xpose.msra.mxu0 %v4433_v30  ;;  %v4469_v29 = vcombine.high %v4467_v23, %v4467_v23  ;;  %v1782_v30 = vld [vmem:[%s37084_s27 + $0x150] sm:$0xff]  ;;  %v376_v31 = vld [vmem:[%s37090_s19 + $0x560] sm:$0xff] }
 0x2ce   : > { %12075 = vmatprep.mubr.f32.mxu1 %v1129_v47  ;;  %26475 = vmatprep.mubr.f32.mxu0 %v1513_v48  ;;  %v2845_v36 = vrot.slane %v1782_v30, %v37096_v5  ;;  %v1520_v47 = vld [vmem:[%s37090_s19 + $0x2920] sm:$0x3]  ;;  %v371_v48 = vld [vmem:[%s37090_s19 + $0x538] sm:$0xff]  ;;  %v4484_v51 = vrot.slane %v4470_v45, %v37096_v5  ;;  %v378_v45 = vld [vmem:[%s37090_s19 + $0x570] sm:$0xff] }
 0x2cf   : > { %12156 = vmatprep.subr.mxu1 %v2819_v49  ;;  %26556 = vmatprep.subr.mxu0 %v4451_v50  ;;  %v755_v49 = vld [vmem:[%s37090_s19 + $0x1138] sm:$0xff] }
 0x2d0   : > { %12076 = vmatmul.mubr.f32.gmra.mrb[2].mxu1 %v1128_v53  ;;  %26476 = vmatmul.mubr.f32.gmra.mrb[2].mxu0 %v1512_v54  ;;  %v2853_v42 = vcombine.high %v2845_v36, %v2845_v36  ;;  %v754_v53 = vld [vmem:[%s37090_s19 + $0x1130] sm:$0xff]  ;;  %v1139_v54 = vld [vmem:[%s37090_s19 + $0x1d38] sm:$0x3] }
 0x2d1   : > { %12145 = vmatprep.mubr.f32.mxu1 %v363_v55  ;;  %26545 = vmatprep.mubr.f32.mxu0 %v747_v56  ;;  %v1523_v55 = vld [vmem:[%s37090_s19 + $0x2938] sm:$0x3] }
 0x2d4   : > { %12146 = vmatmul.mubr.f32.vlgmr.msra.gmra.mrb[0].mxu1 %v362_v59  ;;  %26546 = vmatmul.mubr.f32.vlgmr.msra.gmra.mrb[0].mxu0 %v746_v60  ;;  %v1879_v59 = vld [vmem:[%s37084_s27 + $0x458] sm:$0xff]  ;;  %v1138_v60 = vld [vmem:[%s37090_s19 + $0x1d30] sm:$0x3] }
 0x2d5   : > { %12157 = vmatpush1.xpose.msra.mxu1 %v2811_v43  ;;  %26557 = vmatpush1.xpose.msra.mxu0 %v4443_v44  ;;  %v4485_v43 = vcombine.high %v4477_v37, %v4477_v37  ;;  %v2838_v44 = vcombine.high %v1782_v30, %v1782_v30  ;;  %v4494_v1 = vrot.slane %v1879_v59, %v37096_v5 }
 0x2d6   : > { %12150 = vmatprep.mubr.f32.mxu1 %v1131_v61  ;;  %26550 = vmatprep.mubr.f32.mxu0 %v1515_v62  ;;  %v1522_v61 = vld [vmem:[%s37090_s19 + $0x2930] sm:$0x3]  ;;  %v373_v62 = vld [vmem:[%s37090_s19 + $0x548] sm:$0xff] }
 0x2d7   : > { %12231 = vmatprep.subr.mxu1 %v2820_v63  ;;  %26631 = vmatprep.subr.mxu0 %v4452_v0  ;;  %v2852_v50 = vrot.slane %v2838_v44, %v37096_v5  ;;  %v757_v63 = vld [vmem:[%s37090_s19 + $0x1148] sm:$0xff] }
 0x2d8   : > { %12151 = vmatmul.mubr.f32.gmra.mrb[2].mxu1 %v1130_v3  ;;  %26551 = vmatmul.mubr.f32.gmra.mrb[2].mxu0 %v1514_v4  ;;  %v756_v3 = vld [vmem:[%s37090_s19 + $0x1140] sm:$0xff]  ;;  %v1141_v4 = vld [vmem:[%s37090_s19 + $0x1d48] sm:$0x3] }
 0x2d9   : > { %12220 = vmatprep.mubr.f32.mxu1 %v365_v6  ;;  %26620 = vmatprep.mubr.f32.mxu0 %v749_v7  ;;  %v2854_v56 = vcombine.high %v2852_v50, %v2852_v50  ;;  %v1525_v6 = vld [vmem:[%s37090_s19 + $0x2948] sm:$0x3] }
 0x2dc   : > { %12221 = vmatmul.mubr.f32.vlgmr.msra.gmra.mrb[0].mxu1 %v364_v10  ;;  %26621 = vmatmul.mubr.f32.vlgmr.msra.gmra.mrb[0].mxu0 %v748_v11  ;;  %v4487_v10 = vcombine.high %v1879_v59, %v1879_v59  ;;  %v1140_v11 = vld [vmem:[%s37090_s19 + $0x1d40] sm:$0x3] }
 0x2dd   : > { %12232 = vmatpush1.xpose.msra.mxu1 %v2818_v57  ;;  %26632 = vmatpush1.xpose.msra.mxu0 %v4450_v58  ;;  %v4486_v57 = vcombine.high %v4484_v51, %v4484_v51  ;;  %v1783_v58 = vld [vmem:[%s37084_s27 + $0x158] sm:$0xff]  ;;  %v380_v59 = vld [vmem:[%s37090_s19 + $0x580] sm:$0xff] }
 0x2de   : > { %12225 = vmatprep.mubr.f32.mxu1 %v1133_v12  ;;  %26625 = vmatprep.mubr.f32.mxu0 %v1517_v13  ;;  %v2862_v0 = vrot.slane %v1783_v58, %v37096_v5  ;;  %v1524_v12 = vld [vmem:[%s37090_s19 + $0x2940] sm:$0x3]  ;;  %v375_v13 = vld [vmem:[%s37090_s19 + $0x558] sm:$0xff]  ;;  %v4501_v16 = vrot.slane %v4487_v10, %v37096_v5  ;;  %v382_v10 = vld [vmem:[%s37090_s19 + $0x590] sm:$0xff] }
 0x2df   : > { %12306 = vmatprep.subr.mxu1 %v2836_v14  ;;  %26706 = vmatprep.subr.mxu0 %v4468_v15  ;;  %v759_v14 = vld [vmem:[%s37090_s19 + $0x1158] sm:$0xff] }
 0x2e0   : > { %12226 = vmatmul.mubr.f32.gmra.mrb[2].mxu1 %v1132_v18  ;;  %26626 = vmatmul.mubr.f32.gmra.mrb[2].mxu0 %v1516_v19  ;;  %v2870_v7 = vcombine.high %v2862_v0, %v2862_v0  ;;  %v758_v18 = vld [vmem:[%s37090_s19 + $0x1150] sm:$0xff]  ;;  %v1143_v19 = vld [vmem:[%s37090_s19 + $0x1d58] sm:$0x3] }
 0x2e1   : > { %12295 = vmatprep.mubr.f32.mxu1 %v367_v20  ;;  %26695 = vmatprep.mubr.f32.mxu0 %v751_v21  ;;  %v1527_v20 = vld [vmem:[%s37090_s19 + $0x2958] sm:$0x3] }
 0x2e4   : > { %12296 = vmatmul.mubr.f32.vlgmr.msra.gmra.mrb[0].mxu1 %v366_v24  ;;  %26696 = vmatmul.mubr.f32.vlgmr.msra.gmra.mrb[0].mxu0 %v750_v25  ;;  %v1880_v24 = vld [vmem:[%s37084_s27 + $0x460] sm:$0xff]  ;;  %v1142_v25 = vld [vmem:[%s37090_s19 + $0x1d50] sm:$0x3] }
 0x2e5   : > { %12307 = vmatpush1.xpose.msra.mxu1 %v2828_v8  ;;  %26707 = vmatpush1.xpose.msra.mxu0 %v4460_v9  ;;  %v4502_v8 = vcombine.high %v4494_v1, %v4494_v1  ;;  %v2855_v9 = vcombine.high %v1783_v58, %v1783_v58  ;;  %v4511_v30 = vrot.slane %v1880_v24, %v37096_v5 }
 0x2e6   : > { %12300 = vmatprep.mubr.f32.mxu1 %v1135_v26  ;;  %26700 = vmatprep.mubr.f32.mxu0 %v1519_v27  ;;  %v1526_v26 = vld [vmem:[%s37090_s19 + $0x2950] sm:$0x3]  ;;  %v377_v27 = vld [vmem:[%s37090_s19 + $0x568] sm:$0xff] }
 0x2e7   : > { %12381 = vmatprep.subr.mxu1 %v2837_v28  ;;  %26781 = vmatprep.subr.mxu0 %v4469_v29  ;;  %v2869_v15 = vrot.slane %v2855_v9, %v37096_v5  ;;  %v761_v28 = vld [vmem:[%s37090_s19 + $0x1168] sm:$0xff] }
 0x2e8   : > { %12301 = vmatmul.mubr.f32.gmra.mrb[2].mxu1 %v1134_v32  ;;  %26701 = vmatmul.mubr.f32.gmra.mrb[2].mxu0 %v1518_v33  ;;  %v760_v32 = vld [vmem:[%s37090_s19 + $0x1160] sm:$0xff]  ;;  %v1145_v33 = vld [vmem:[%s37090_s19 + $0x1d68] sm:$0x3] }
 0x2e9   : > { %12370 = vmatprep.mubr.f32.mxu1 %v369_v34  ;;  %26770 = vmatprep.mubr.f32.mxu0 %v753_v35  ;;  %v2871_v21 = vcombine.high %v2869_v15, %v2869_v15  ;;  %v1529_v34 = vld [vmem:[%s37090_s19 + $0x2968] sm:$0x3] }
 0x2ec   : > { %12371 = vmatmul.mubr.f32.vlgmr.msra.gmra.mrb[0].mxu1 %v368_v38  ;;  %26771 = vmatmul.mubr.f32.vlgmr.msra.gmra.mrb[0].mxu0 %v752_v39  ;;  %v4504_v38 = vcombine.high %v1880_v24, %v1880_v24  ;;  %v1144_v39 = vld [vmem:[%s37090_s19 + $0x1d60] sm:$0x3] }
 0x2ed   : > { %12382 = vmatpush1.xpose.msra.mxu1 %v2835_v22  ;;  %26782 = vmatpush1.xpose.msra.mxu0 %v4467_v23  ;;  %v4503_v22 = vcombine.high %v4501_v16, %v4501_v16  ;;  %v1784_v23 = vld [vmem:[%s37084_s27 + $0x160] sm:$0xff] }
 0x2ee   : > { %12375 = vmatprep.mubr.f32.mxu1 %v1137_v40  ;;  %26775 = vmatprep.mubr.f32.mxu0 %v1521_v41  ;;  %v2879_v29 = vrot.slane %v1784_v23, %v37096_v5  ;;  %v1528_v40 = vld [vmem:[%s37090_s19 + $0x2960] sm:$0x3]  ;;  %v379_v41 = vld [vmem:[%s37090_s19 + $0x578] sm:$0xff]  ;;  %v4518_v44 = vrot.slane %v4504_v38, %v37096_v5  ;;  %v386_v38 = vld [vmem:[%s37090_s19 + $0x5b0] sm:$0xff] }
 0x2ef   : > { %12456 = vmatprep.subr.mxu1 %v2853_v42  ;;  %26856 = vmatprep.subr.mxu0 %v4485_v43  ;;  %v763_v42 = vld [vmem:[%s37090_s19 + $0x1178] sm:$0xff]  ;;  %v384_v24 = vld [vmem:[%s37090_s19 + $0x5a0] sm:$0xff] }
 0x2f0   : > { %12376 = vmatmul.mubr.f32.gmra.mrb[2].mxu1 %v1136_v46  ;;  %26776 = vmatmul.mubr.f32.gmra.mrb[2].mxu0 %v1520_v47  ;;  %v2887_v35 = vcombine.high %v2879_v29, %v2879_v29  ;;  %v762_v46 = vld [vmem:[%s37090_s19 + $0x1170] sm:$0xff]  ;;  %v1147_v47 = vld [vmem:[%s37090_s19 + $0x1d78] sm:$0x3] }
 0x2f1   : > { %12445 = vmatprep.mubr.f32.mxu1 %v371_v48  ;;  %26845 = vmatprep.mubr.f32.mxu0 %v755_v49  ;;  %v1531_v48 = vld [vmem:[%s37090_s19 + $0x2978] sm:$0x3] }
 0x2f4   : > { %12446 = vmatmul.mubr.f32.vlgmr.msra.gmra.mrb[0].mxu1 %v370_v52  ;;  %26846 = vmatmul.mubr.f32.vlgmr.msra.gmra.mrb[0].mxu0 %v754_v53  ;;  %v1881_v52 = vld [vmem:[%s37084_s27 + $0x468] sm:$0xff]  ;;  %v1146_v53 = vld [vmem:[%s37090_s19 + $0x1d70] sm:$0x3] }
 0x2f5   : > { %12457 = vmatpush1.xpose.msra.mxu1 %v2845_v36  ;;  %26857 = vmatpush1.xpose.msra.mxu0 %v4477_v37  ;;  %v4519_v36 = vcombine.high %v4511_v30, %v4511_v30  ;;  %v2872_v37 = vcombine.high %v1784_v23, %v1784_v23  ;;  %v4528_v58 = vrot.slane %v1881_v52, %v37096_v5 }
 0x2f6   : > { %12450 = vmatprep.mubr.f32.mxu1 %v1139_v54  ;;  %26850 = vmatprep.mubr.f32.mxu0 %v1523_v55  ;;  %v1530_v54 = vld [vmem:[%s37090_s19 + $0x2970] sm:$0x3]  ;;  %v381_v55 = vld [vmem:[%s37090_s19 + $0x588] sm:$0xff] }
 0x2f7   : > { %12531 = vmatprep.subr.mxu1 %v2854_v56  ;;  %26931 = vmatprep.subr.mxu0 %v4486_v57  ;;  %v2886_v43 = vrot.slane %v2872_v37, %v37096_v5  ;;  %v765_v56 = vld [vmem:[%s37090_s19 + $0x1188] sm:$0xff] }
 0x2f8   : > { %12451 = vmatmul.mubr.f32.gmra.mrb[2].mxu1 %v1138_v60  ;;  %26851 = vmatmul.mubr.f32.gmra.mrb[2].mxu0 %v1522_v61  ;;  %v764_v60 = vld [vmem:[%s37090_s19 + $0x1180] sm:$0xff]  ;;  %v1149_v61 = vld [vmem:[%s37090_s19 + $0x1d88] sm:$0x3] }
 0x2f9   : > { %12520 = vmatprep.mubr.f32.mxu1 %v373_v62  ;;  %26920 = vmatprep.mubr.f32.mxu0 %v757_v63  ;;  %v2888_v49 = vcombine.high %v2886_v43, %v2886_v43  ;;  %v1533_v62 = vld [vmem:[%s37090_s19 + $0x2988] sm:$0x3] }
 0x2fc   : > { %12521 = vmatmul.mubr.f32.vlgmr.msra.gmra.mrb[0].mxu1 %v372_v2  ;;  %26921 = vmatmul.mubr.f32.vlgmr.msra.gmra.mrb[0].mxu0 %v756_v3  ;;  %v4521_v2 = vcombine.high %v1881_v52, %v1881_v52  ;;  %v1148_v3 = vld [vmem:[%s37090_s19 + $0x1d80] sm:$0x3] }
 0x2fd   : > { %12532 = vmatpush1.xpose.msra.mxu1 %v2852_v50  ;;  %26932 = vmatpush1.xpose.msra.mxu0 %v4484_v51  ;;  %v4520_v50 = vcombine.high %v4518_v44, %v4518_v44  ;;  %v1785_v51 = vld [vmem:[%s37084_s27 + $0x168] sm:$0xff]  ;;  %v388_v52 = vld [vmem:[%s37090_s19 + $0x5c0] sm:$0xff] }
 0x2fe   : > { %12525 = vmatprep.mubr.f32.mxu1 %v1141_v4  ;;  %26925 = vmatprep.mubr.f32.mxu0 %v1525_v6  ;;  %v2896_v57 = vrot.slane %v1785_v51, %v37096_v5  ;;  %v1532_v4 = vld [vmem:[%s37090_s19 + $0x2980] sm:$0x3]  ;;  %v383_v6 = vld [vmem:[%s37090_s19 + $0x598] sm:$0xff]  ;;  %v4535_v9 = vrot.slane %v4521_v2, %v37096_v5  ;;  %v390_v2 = vld [vmem:[%s37090_s19 + $0x5d0] sm:$0xff] }
 0x2ff   : > { %12606 = vmatprep.subr.mxu1 %v2870_v7  ;;  %27006 = vmatprep.subr.mxu0 %v4502_v8  ;;  %v767_v7 = vld [vmem:[%s37090_s19 + $0x1198] sm:$0xff] }
 0x300   : > { %12526 = vmatmul.mubr.f32.gmra.mrb[2].mxu1 %v1140_v11  ;;  %26926 = vmatmul.mubr.f32.gmra.mrb[2].mxu0 %v1524_v12  ;;  %v2904_v63 = vcombine.high %v2896_v57, %v2896_v57  ;;  %v766_v11 = vld [vmem:[%s37090_s19 + $0x1190] sm:$0xff]  ;;  %v1151_v12 = vld [vmem:[%s37090_s19 + $0x1d98] sm:$0x3] }
 0x301   : > { %12595 = vmatprep.mubr.f32.mxu1 %v375_v13  ;;  %26995 = vmatprep.mubr.f32.mxu0 %v759_v14  ;;  %v1535_v13 = vld [vmem:[%s37090_s19 + $0x2998] sm:$0x3] }
 0x304   : > { %12596 = vmatmul.mubr.f32.vlgmr.msra.gmra.mrb[0].mxu1 %v374_v17  ;;  %26996 = vmatmul.mubr.f32.vlgmr.msra.gmra.mrb[0].mxu0 %v758_v18  ;;  %v1882_v17 = vld [vmem:[%s37084_s27 + $0x470] sm:$0xff] }
 0x305   : > { %12607 = vmatpush1.xpose.msra.mxu1 %v2862_v0  ;;  %27007 = vmatpush1.xpose.msra.mxu0 %v4494_v1  ;;  %v4536_v0 = vcombine.high %v4528_v58, %v4528_v58  ;;  %v2889_v1 = vcombine.high %v1785_v51, %v1785_v51  ;;  %v1150_v18 = vld [vmem:[%s37090_s19 + $0x1d90] sm:$0x3]  ;;  %v4545_v23 = vrot.slane %v1882_v17, %v37096_v5 }
 0x306   : > { %12600 = vmatprep.mubr.f32.mxu1 %v1143_v19  ;;  %27000 = vmatprep.mubr.f32.mxu0 %v1527_v20  ;;  %v1534_v19 = vld [vmem:[%s37090_s19 + $0x2990] sm:$0x3]  ;;  %v385_v20 = vld [vmem:[%s37090_s19 + $0x5a8] sm:$0xff] }
 0x307   : > { %12681 = vmatprep.subr.mxu1 %v2871_v21  ;;  %27081 = vmatprep.subr.mxu0 %v4503_v22  ;;  %v2903_v8 = vrot.slane %v2889_v1, %v37096_v5  ;;  %v769_v21 = vld [vmem:[%s37090_s19 + $0x11a8] sm:$0xff] }
 0x308   : > { %12601 = vmatmul.mubr.f32.gmra.mrb[2].mxu1 %v1142_v25  ;;  %27001 = vmatmul.mubr.f32.gmra.mrb[2].mxu0 %v1526_v26  ;;  %v768_v25 = vld [vmem:[%s37090_s19 + $0x11a0] sm:$0xff]  ;;  %v1153_v26 = vld [vmem:[%s37090_s19 + $0x1da8] sm:$0x3] }
 0x309   : > { %12670 = vmatprep.mubr.f32.mxu1 %v377_v27  ;;  %27070 = vmatprep.mubr.f32.mxu0 %v761_v28  ;;  %v2905_v14 = vcombine.high %v2903_v8, %v2903_v8  ;;  %v1537_v27 = vld [vmem:[%s37090_s19 + $0x29a8] sm:$0x3] }
 0x30c   : > { %12671 = vmatmul.mubr.f32.vlgmr.msra.gmra.mrb[0].mxu1 %v376_v31  ;;  %27071 = vmatmul.mubr.f32.vlgmr.msra.gmra.mrb[0].mxu0 %v760_v32  ;;  %v4538_v31 = vcombine.high %v1882_v17, %v1882_v17  ;;  %v1152_v32 = vld [vmem:[%s37090_s19 + $0x1da0] sm:$0x3] }
 0x30d   : > { %12682 = vmatpush1.xpose.msra.mxu1 %v2869_v15  ;;  %27082 = vmatpush1.xpose.msra.mxu0 %v4501_v16  ;;  %v4537_v15 = vcombine.high %v4535_v9, %v4535_v9  ;;  %v1786_v16 = vld [vmem:[%s37084_s27 + $0x170] sm:$0xff]  ;;  %v392_v17 = vld [vmem:[%s37090_s19 + $0x5e0] sm:$0xff] }
 0x30e   : > { %12675 = vmatprep.mubr.f32.mxu1 %v1145_v33  ;;  %27075 = vmatprep.mubr.f32.mxu0 %v1529_v34  ;;  %v2913_v22 = vrot.slane %v1786_v16, %v37096_v5  ;;  %v1536_v33 = vld [vmem:[%s37090_s19 + $0x29a0] sm:$0x3]  ;;  %v387_v34 = vld [vmem:[%s37090_s19 + $0x5b8] sm:$0xff]  ;;  %v4552_v37 = vrot.slane %v4538_v31, %v37096_v5  ;;  %v394_v31 = vld [vmem:[%s37090_s19 + $0x5f0] sm:$0xff] }
 0x30f   : > { %12756 = vmatprep.subr.mxu1 %v2887_v35  ;;  %27156 = vmatprep.subr.mxu0 %v4519_v36  ;;  %v771_v35 = vld [vmem:[%s37090_s19 + $0x11b8] sm:$0xff] }
 0x310   : > { %12676 = vmatmul.mubr.f32.gmra.mrb[2].mxu1 %v1144_v39  ;;  %27076 = vmatmul.mubr.f32.gmra.mrb[2].mxu0 %v1528_v40  ;;  %v2921_v28 = vcombine.high %v2913_v22, %v2913_v22  ;;  %v770_v39 = vld [vmem:[%s37090_s19 + $0x11b0] sm:$0xff]  ;;  %v1155_v40 = vld [vmem:[%s37090_s19 + $0x1db8] sm:$0x3] }
 0x311   : > { %12745 = vmatprep.mubr.f32.mxu1 %v379_v41  ;;  %27145 = vmatprep.mubr.f32.mxu0 %v763_v42  ;;  %v1539_v41 = vld [vmem:[%s37090_s19 + $0x29b8] sm:$0x3] }
 0x314   : > { %12746 = vmatmul.mubr.f32.vlgmr.msra.gmra.mrb[0].mxu1 %v378_v45  ;;  %27146 = vmatmul.mubr.f32.vlgmr.msra.gmra.mrb[0].mxu0 %v762_v46  ;;  %v1883_v45 = vld [vmem:[%s37084_s27 + $0x478] sm:$0xff]  ;;  %v1154_v46 = vld [vmem:[%s37090_s19 + $0x1db0] sm:$0x3] }
 0x315   : > { %12757 = vmatpush1.xpose.msra.mxu1 %v2879_v29  ;;  %27157 = vmatpush1.xpose.msra.mxu0 %v4511_v30  ;;  %v4553_v29 = vcombine.high %v4545_v23, %v4545_v23  ;;  %v2906_v30 = vcombine.high %v1786_v16, %v1786_v16  ;;  %v4562_v51 = vrot.slane %v1883_v45, %v37096_v5 }
 0x316   : > { %12750 = vmatprep.mubr.f32.mxu1 %v1147_v47  ;;  %27150 = vmatprep.mubr.f32.mxu0 %v1531_v48  ;;  %v1538_v47 = vld [vmem:[%s37090_s19 + $0x29b0] sm:$0x3]  ;;  %v389_v48 = vld [vmem:[%s37090_s19 + $0x5c8] sm:$0xff] }
 0x317   : > { %12831 = vmatprep.subr.mxu1 %v2888_v49  ;;  %27231 = vmatprep.subr.mxu0 %v4520_v50  ;;  %v2920_v36 = vrot.slane %v2906_v30, %v37096_v5  ;;  %v773_v49 = vld [vmem:[%s37090_s19 + $0x11c8] sm:$0xff] }
 0x318   : > { %12751 = vmatmul.mubr.f32.gmra.mrb[2].mxu1 %v1146_v53  ;;  %27151 = vmatmul.mubr.f32.gmra.mrb[2].mxu0 %v1530_v54  ;;  %v772_v53 = vld [vmem:[%s37090_s19 + $0x11c0] sm:$0xff]  ;;  %v1157_v54 = vld [vmem:[%s37090_s19 + $0x1dc8] sm:$0x3] }
 0x319   : > { %12820 = vmatprep.mubr.f32.mxu1 %v381_v55  ;;  %27220 = vmatprep.mubr.f32.mxu0 %v765_v56  ;;  %v2922_v42 = vcombine.high %v2920_v36, %v2920_v36  ;;  %v1541_v55 = vld [vmem:[%s37090_s19 + $0x29c8] sm:$0x3] }
 0x31c   : > { %12821 = vmatmul.mubr.f32.vlgmr.msra.gmra.mrb[0].mxu1 %v380_v59  ;;  %27221 = vmatmul.mubr.f32.vlgmr.msra.gmra.mrb[0].mxu0 %v764_v60  ;;  %v4555_v59 = vcombine.high %v1883_v45, %v1883_v45  ;;  %v1156_v60 = vld [vmem:[%s37090_s19 + $0x1dc0] sm:$0x3] }
 0x31d   : > { %12832 = vmatpush1.xpose.msra.mxu1 %v2886_v43  ;;  %27232 = vmatpush1.xpose.msra.mxu0 %v4518_v44  ;;  %v4554_v43 = vcombine.high %v4552_v37, %v4552_v37  ;;  %v1787_v44 = vld [vmem:[%s37084_s27 + $0x178] sm:$0xff]  ;;  %v396_v45 = vld [vmem:[%s37090_s19 + $0x600] sm:$0xff] }
 0x31e   : > { %12825 = vmatprep.mubr.f32.mxu1 %v1149_v61  ;;  %27225 = vmatprep.mubr.f32.mxu0 %v1533_v62  ;;  %v2930_v50 = vrot.slane %v1787_v44, %v37096_v5  ;;  %v1540_v61 = vld [vmem:[%s37090_s19 + $0x29c0] sm:$0x3]  ;;  %v391_v62 = vld [vmem:[%s37090_s19 + $0x5d8] sm:$0xff]  ;;  %v4569_v1 = vrot.slane %v4555_v59, %v37096_v5  ;;  %v398_v59 = vld [vmem:[%s37090_s19 + $0x610] sm:$0xff] }
 0x31f   : > { %12906 = vmatprep.subr.mxu1 %v2904_v63  ;;  %27306 = vmatprep.subr.mxu0 %v4536_v0  ;;  %v775_v63 = vld [vmem:[%s37090_s19 + $0x11d8] sm:$0xff] }
 0x320   : > { %12826 = vmatmul.mubr.f32.gmra.mrb[2].mxu1 %v1148_v3  ;;  %27226 = vmatmul.mubr.f32.gmra.mrb[2].mxu0 %v1532_v4  ;;  %v2938_v56 = vcombine.high %v2930_v50, %v2930_v50  ;;  %v774_v3 = vld [vmem:[%s37090_s19 + $0x11d0] sm:$0xff]  ;;  %v1159_v4 = vld [vmem:[%s37090_s19 + $0x1dd8] sm:$0x3] }
 0x321   : > { %12895 = vmatprep.mubr.f32.mxu1 %v383_v6  ;;  %27295 = vmatprep.mubr.f32.mxu0 %v767_v7  ;;  %v1543_v6 = vld [vmem:[%s37090_s19 + $0x29d8] sm:$0x3] }
 0x324   : > { %12896 = vmatmul.mubr.f32.vlgmr.msra.gmra.mrb[0].mxu1 %v382_v10  ;;  %27296 = vmatmul.mubr.f32.vlgmr.msra.gmra.mrb[0].mxu0 %v766_v11  ;;  %v1884_v10 = vld [vmem:[%s37084_s27 + $0x480] sm:$0xff]  ;;  %v1158_v11 = vld [vmem:[%s37090_s19 + $0x1dd0] sm:$0x3] }
 0x325   : > { %12907 = vmatpush1.xpose.msra.mxu1 %v2896_v57  ;;  %27307 = vmatpush1.xpose.msra.mxu0 %v4528_v58  ;;  %v4570_v57 = vcombine.high %v4562_v51, %v4562_v51  ;;  %v2923_v58 = vcombine.high %v1787_v44, %v1787_v44  ;;  %v4579_v16 = vrot.slane %v1884_v10, %v37096_v5 }
 0x326   : > { %12900 = vmatprep.mubr.f32.mxu1 %v1151_v12  ;;  %27300 = vmatprep.mubr.f32.mxu0 %v1535_v13  ;;  %v1542_v12 = vld [vmem:[%s37090_s19 + $0x29d0] sm:$0x3]  ;;  %v393_v13 = vld [vmem:[%s37090_s19 + $0x5e8] sm:$0xff] }
 0x327   : > { %12981 = vmatprep.subr.mxu1 %v2905_v14  ;;  %27381 = vmatprep.subr.mxu0 %v4537_v15  ;;  %v2937_v0 = vrot.slane %v2923_v58, %v37096_v5  ;;  %v777_v14 = vld [vmem:[%s37090_s19 + $0x11e8] sm:$0xff] }
 0x328   : > { %12901 = vmatmul.mubr.f32.gmra.mrb[2].mxu1 %v1150_v18  ;;  %27301 = vmatmul.mubr.f32.gmra.mrb[2].mxu0 %v1534_v19  ;;  %v776_v18 = vld [vmem:[%s37090_s19 + $0x11e0] sm:$0xff]  ;;  %v1161_v19 = vld [vmem:[%s37090_s19 + $0x1de8] sm:$0x3] }
 0x329   : > { %12970 = vmatprep.mubr.f32.mxu1 %v385_v20  ;;  %27370 = vmatprep.mubr.f32.mxu0 %v769_v21  ;;  %v2939_v7 = vcombine.high %v2937_v0, %v2937_v0  ;;  %v1545_v20 = vld [vmem:[%s37090_s19 + $0x29e8] sm:$0x3] }
 0x32c   : > { %12971 = vmatmul.mubr.f32.vlgmr.msra.gmra.mrb[0].mxu1 %v384_v24  ;;  %27371 = vmatmul.mubr.f32.vlgmr.msra.gmra.mrb[0].mxu0 %v768_v25  ;;  %v4572_v24 = vcombine.high %v1884_v10, %v1884_v10  ;;  %v1160_v25 = vld [vmem:[%s37090_s19 + $0x1de0] sm:$0x3] }
 0x32d   : > { %12982 = vmatpush1.xpose.msra.mxu1 %v2903_v8  ;;  %27382 = vmatpush1.xpose.msra.mxu0 %v4535_v9  ;;  %v4571_v8 = vcombine.high %v4569_v1, %v4569_v1  ;;  %v1788_v9 = vld [vmem:[%s37084_s27 + $0x180] sm:$0xff] }
 0x32e   : > { %12975 = vmatprep.mubr.f32.mxu1 %v1153_v26  ;;  %27375 = vmatprep.mubr.f32.mxu0 %v1537_v27  ;;  %v2947_v15 = vrot.slane %v1788_v9, %v37096_v5  ;;  %v1544_v26 = vld [vmem:[%s37090_s19 + $0x29e0] sm:$0x3]  ;;  %v395_v27 = vld [vmem:[%s37090_s19 + $0x5f8] sm:$0xff]  ;;  %v4586_v30 = vrot.slane %v4572_v24, %v37096_v5  ;;  %v402_v24 = vld [vmem:[%s37090_s19 + $0x630] sm:$0xff] }
 0x32f   : > { %13056 = vmatprep.subr.mxu1 %v2921_v28  ;;  %27456 = vmatprep.subr.mxu0 %v4553_v29  ;;  %v779_v28 = vld [vmem:[%s37090_s19 + $0x11f8] sm:$0xff]  ;;  %v400_v10 = vld [vmem:[%s37090_s19 + $0x620] sm:$0xff] }
 0x330   : > { %12976 = vmatmul.mubr.f32.gmra.mrb[2].mxu1 %v1152_v32  ;;  %27376 = vmatmul.mubr.f32.gmra.mrb[2].mxu0 %v1536_v33  ;;  %v2955_v21 = vcombine.high %v2947_v15, %v2947_v15  ;;  %v778_v32 = vld [vmem:[%s37090_s19 + $0x11f0] sm:$0xff]  ;;  %v1163_v33 = vld [vmem:[%s37090_s19 + $0x1df8] sm:$0x3] }
 0x331   : > { %13045 = vmatprep.mubr.f32.mxu1 %v387_v34  ;;  %27445 = vmatprep.mubr.f32.mxu0 %v771_v35  ;;  %v1547_v34 = vld [vmem:[%s37090_s19 + $0x29f8] sm:$0x3] }
 0x334   : > { %13046 = vmatmul.mubr.f32.vlgmr.msra.gmra.mrb[0].mxu1 %v386_v38  ;;  %27446 = vmatmul.mubr.f32.vlgmr.msra.gmra.mrb[0].mxu0 %v770_v39  ;;  %v1885_v38 = vld [vmem:[%s37084_s27 + $0x488] sm:$0xff]  ;;  %v1162_v39 = vld [vmem:[%s37090_s19 + $0x1df0] sm:$0x3] }
 0x335   : > { %13057 = vmatpush1.xpose.msra.mxu1 %v2913_v22  ;;  %27457 = vmatpush1.xpose.msra.mxu0 %v4545_v23  ;;  %v4587_v22 = vcombine.high %v4579_v16, %v4579_v16  ;;  %v2940_v23 = vcombine.high %v1788_v9, %v1788_v9  ;;  %v4596_v44 = vrot.slane %v1885_v38, %v37096_v5 }
 0x336   : > { %13050 = vmatprep.mubr.f32.mxu1 %v1155_v40  ;;  %27450 = vmatprep.mubr.f32.mxu0 %v1539_v41  ;;  %v1546_v40 = vld [vmem:[%s37090_s19 + $0x29f0] sm:$0x3]  ;;  %v397_v41 = vld [vmem:[%s37090_s19 + $0x608] sm:$0xff] }
 0x337   : > { %13131 = vmatprep.subr.mxu1 %v2922_v42  ;;  %27531 = vmatprep.subr.mxu0 %v4554_v43  ;;  %v2954_v29 = vrot.slane %v2940_v23, %v37096_v5  ;;  %v781_v42 = vld [vmem:[%s37090_s19 + $0x1208] sm:$0xff] }
 0x338   : > { %13051 = vmatmul.mubr.f32.gmra.mrb[2].mxu1 %v1154_v46  ;;  %27451 = vmatmul.mubr.f32.gmra.mrb[2].mxu0 %v1538_v47  ;;  %v780_v46 = vld [vmem:[%s37090_s19 + $0x1200] sm:$0xff]  ;;  %v1165_v47 = vld [vmem:[%s37090_s19 + $0x1e08] sm:$0x3] }
 0x339   : > { %13120 = vmatprep.mubr.f32.mxu1 %v389_v48  ;;  %27520 = vmatprep.mubr.f32.mxu0 %v773_v49  ;;  %v2956_v35 = vcombine.high %v2954_v29, %v2954_v29  ;;  %v1549_v48 = vld [vmem:[%s37090_s19 + $0x2a08] sm:$0x3] }
 0x33c   : > { %13121 = vmatmul.mubr.f32.vlgmr.msra.gmra.mrb[0].mxu1 %v388_v52  ;;  %27521 = vmatmul.mubr.f32.vlgmr.msra.gmra.mrb[0].mxu0 %v772_v53  ;;  %v4589_v52 = vcombine.high %v1885_v38, %v1885_v38  ;;  %v1164_v53 = vld [vmem:[%s37090_s19 + $0x1e00] sm:$0x3] }
 0x33d   : > { %13132 = vmatpush1.xpose.msra.mxu1 %v2920_v36  ;;  %27532 = vmatpush1.xpose.msra.mxu0 %v4552_v37  ;;  %v4588_v36 = vcombine.high %v4586_v30, %v4586_v30  ;;  %v1789_v37 = vld [vmem:[%s37084_s27 + $0x188] sm:$0xff]  ;;  %v404_v38 = vld [vmem:[%s37090_s19 + $0x640] sm:$0xff] }
 0x33e   : > { %13125 = vmatprep.mubr.f32.mxu1 %v1157_v54  ;;  %27525 = vmatprep.mubr.f32.mxu0 %v1541_v55  ;;  %v2964_v43 = vrot.slane %v1789_v37, %v37096_v5  ;;  %v1548_v54 = vld [vmem:[%s37090_s19 + $0x2a00] sm:$0x3]  ;;  %v399_v55 = vld [vmem:[%s37090_s19 + $0x618] sm:$0xff]  ;;  %v4603_v58 = vrot.slane %v4589_v52, %v37096_v5  ;;  %v406_v52 = vld [vmem:[%s37090_s19 + $0x650] sm:$0xff] }
 0x33f   : > { %13206 = vmatprep.subr.mxu1 %v2938_v56  ;;  %27606 = vmatprep.subr.mxu0 %v4570_v57  ;;  %v783_v56 = vld [vmem:[%s37090_s19 + $0x1218] sm:$0xff] }
 0x340   : > { %13126 = vmatmul.mubr.f32.gmra.mrb[2].mxu1 %v1156_v60  ;;  %27526 = vmatmul.mubr.f32.gmra.mrb[2].mxu0 %v1540_v61  ;;  %v2972_v49 = vcombine.high %v2964_v43, %v2964_v43  ;;  %v782_v60 = vld [vmem:[%s37090_s19 + $0x1210] sm:$0xff]  ;;  %v1167_v61 = vld [vmem:[%s37090_s19 + $0x1e18] sm:$0x3] }
 0x341   : > { %13195 = vmatprep.mubr.f32.mxu1 %v391_v62  ;;  %27595 = vmatprep.mubr.f32.mxu0 %v775_v63  ;;  %v1551_v62 = vld [vmem:[%s37090_s19 + $0x2a18] sm:$0x3] }
 0x344   : > { %13196 = vmatmul.mubr.f32.vlgmr.msra.gmra.mrb[0].mxu1 %v390_v2  ;;  %27596 = vmatmul.mubr.f32.vlgmr.msra.gmra.mrb[0].mxu0 %v774_v3  ;;  %v1886_v2 = vld [vmem:[%s37084_s27 + $0x490] sm:$0xff] }
 0x345   : > { %13207 = vmatpush1.xpose.msra.mxu1 %v2930_v50  ;;  %27607 = vmatpush1.xpose.msra.mxu0 %v4562_v51  ;;  %v4604_v50 = vcombine.high %v4596_v44, %v4596_v44  ;;  %v2957_v51 = vcombine.high %v1789_v37, %v1789_v37  ;;  %v1166_v3 = vld [vmem:[%s37090_s19 + $0x1e10] sm:$0x3]  ;;  %v4613_v9 = vrot.slane %v1886_v2, %v37096_v5 }
 0x346   : > { %13200 = vmatprep.mubr.f32.mxu1 %v1159_v4  ;;  %27600 = vmatprep.mubr.f32.mxu0 %v1543_v6  ;;  %v1550_v4 = vld [vmem:[%s37090_s19 + $0x2a10] sm:$0x3]  ;;  %v401_v6 = vld [vmem:[%s37090_s19 + $0x628] sm:$0xff] }
 0x347   : > { %13281 = vmatprep.subr.mxu1 %v2939_v7  ;;  %27681 = vmatprep.subr.mxu0 %v4571_v8  ;;  %v2971_v57 = vrot.slane %v2957_v51, %v37096_v5  ;;  %v785_v7 = vld [vmem:[%s37090_s19 + $0x1228] sm:$0xff] }
 0x348   : > { %13201 = vmatmul.mubr.f32.gmra.mrb[2].mxu1 %v1158_v11  ;;  %27601 = vmatmul.mubr.f32.gmra.mrb[2].mxu0 %v1542_v12  ;;  %v784_v11 = vld [vmem:[%s37090_s19 + $0x1220] sm:$0xff]  ;;  %v1169_v12 = vld [vmem:[%s37090_s19 + $0x1e28] sm:$0x3] }
 0x349   : > { %13270 = vmatprep.mubr.f32.mxu1 %v393_v13  ;;  %27670 = vmatprep.mubr.f32.mxu0 %v777_v14  ;;  %v2973_v63 = vcombine.high %v2971_v57, %v2971_v57  ;;  %v1553_v13 = vld [vmem:[%s37090_s19 + $0x2a28] sm:$0x3] }
 0x34c   : > { %13271 = vmatmul.mubr.f32.vlgmr.msra.gmra.mrb[0].mxu1 %v392_v17  ;;  %27671 = vmatmul.mubr.f32.vlgmr.msra.gmra.mrb[0].mxu0 %v776_v18  ;;  %v4606_v17 = vcombine.high %v1886_v2, %v1886_v2  ;;  %v1168_v18 = vld [vmem:[%s37090_s19 + $0x1e20] sm:$0x3] }
 0x34d   : > { %13282 = vmatpush1.xpose.msra.mxu1 %v2937_v0  ;;  %27682 = vmatpush1.xpose.msra.mxu0 %v4569_v1  ;;  %v4605_v0 = vcombine.high %v4603_v58, %v4603_v58  ;;  %v1790_v1 = vld [vmem:[%s37084_s27 + $0x190] sm:$0xff]  ;;  %v408_v2 = vld [vmem:[%s37090_s19 + $0x660] sm:$0xff] }
 0x34e   : > { %13275 = vmatprep.mubr.f32.mxu1 %v1161_v19  ;;  %27675 = vmatprep.mubr.f32.mxu0 %v1545_v20  ;;  %v2981_v8 = vrot.slane %v1790_v1, %v37096_v5  ;;  %v1552_v19 = vld [vmem:[%s37090_s19 + $0x2a20] sm:$0x3]  ;;  %v403_v20 = vld [vmem:[%s37090_s19 + $0x638] sm:$0xff]  ;;  %v4620_v23 = vrot.slane %v4606_v17, %v37096_v5  ;;  %v410_v17 = vld [vmem:[%s37090_s19 + $0x670] sm:$0xff] }
 0x34f   : > { %13356 = vmatprep.subr.mxu1 %v2955_v21  ;;  %27756 = vmatprep.subr.mxu0 %v4587_v22  ;;  %v787_v21 = vld [vmem:[%s37090_s19 + $0x1238] sm:$0xff] }
 0x350   : > { %13276 = vmatmul.mubr.f32.gmra.mrb[2].mxu1 %v1160_v25  ;;  %27676 = vmatmul.mubr.f32.gmra.mrb[2].mxu0 %v1544_v26  ;;  %v2989_v14 = vcombine.high %v2981_v8, %v2981_v8  ;;  %v786_v25 = vld [vmem:[%s37090_s19 + $0x1230] sm:$0xff]  ;;  %v1171_v26 = vld [vmem:[%s37090_s19 + $0x1e38] sm:$0x3] }
 0x351   : > { %13345 = vmatprep.mubr.f32.mxu1 %v395_v27  ;;  %27745 = vmatprep.mubr.f32.mxu0 %v779_v28  ;;  %v1555_v27 = vld [vmem:[%s37090_s19 + $0x2a38] sm:$0x3] }
 0x354   : > { %13346 = vmatmul.mubr.f32.vlgmr.msra.gmra.mrb[0].mxu1 %v394_v31  ;;  %27746 = vmatmul.mubr.f32.vlgmr.msra.gmra.mrb[0].mxu0 %v778_v32  ;;  %v1887_v31 = vld [vmem:[%s37084_s27 + $0x498] sm:$0xff]  ;;  %v1170_v32 = vld [vmem:[%s37090_s19 + $0x1e30] sm:$0x3] }
 0x355   : > { %13357 = vmatpush1.xpose.msra.mxu1 %v2947_v15  ;;  %27757 = vmatpush1.xpose.msra.mxu0 %v4579_v16  ;;  %v4621_v15 = vcombine.high %v4613_v9, %v4613_v9  ;;  %v2974_v16 = vcombine.high %v1790_v1, %v1790_v1  ;;  %v4630_v37 = vrot.slane %v1887_v31, %v37096_v5 }
 0x356   : > { %13350 = vmatprep.mubr.f32.mxu1 %v1163_v33  ;;  %27750 = vmatprep.mubr.f32.mxu0 %v1547_v34  ;;  %v1554_v33 = vld [vmem:[%s37090_s19 + $0x2a30] sm:$0x3]  ;;  %v405_v34 = vld [vmem:[%s37090_s19 + $0x648] sm:$0xff] }
 0x357   : > { %13431 = vmatprep.subr.mxu1 %v2956_v35  ;;  %27831 = vmatprep.subr.mxu0 %v4588_v36  ;;  %v2988_v22 = vrot.slane %v2974_v16, %v37096_v5  ;;  %v789_v35 = vld [vmem:[%s37090_s19 + $0x1248] sm:$0xff] }
 0x358   : > { %13351 = vmatmul.mubr.f32.gmra.mrb[2].mxu1 %v1162_v39  ;;  %27751 = vmatmul.mubr.f32.gmra.mrb[2].mxu0 %v1546_v40  ;;  %v788_v39 = vld [vmem:[%s37090_s19 + $0x1240] sm:$0xff]  ;;  %v1173_v40 = vld [vmem:[%s37090_s19 + $0x1e48] sm:$0x3] }
 0x359   : > { %13420 = vmatprep.mubr.f32.mxu1 %v397_v41  ;;  %27820 = vmatprep.mubr.f32.mxu0 %v781_v42  ;;  %v2990_v28 = vcombine.high %v2988_v22, %v2988_v22  ;;  %v1557_v41 = vld [vmem:[%s37090_s19 + $0x2a48] sm:$0x3] }
 0x35c   : > { %13421 = vmatmul.mubr.f32.vlgmr.msra.gmra.mrb[0].mxu1 %v396_v45  ;;  %27821 = vmatmul.mubr.f32.vlgmr.msra.gmra.mrb[0].mxu0 %v780_v46  ;;  %v4623_v45 = vcombine.high %v1887_v31, %v1887_v31  ;;  %v1172_v46 = vld [vmem:[%s37090_s19 + $0x1e40] sm:$0x3] }
 0x35d   : > { %13432 = vmatpush1.xpose.msra.mxu1 %v2954_v29  ;;  %27832 = vmatpush1.xpose.msra.mxu0 %v4586_v30  ;;  %v4622_v29 = vcombine.high %v4620_v23, %v4620_v23  ;;  %v1791_v30 = vld [vmem:[%s37084_s27 + $0x198] sm:$0xff]  ;;  %v412_v31 = vld [vmem:[%s37090_s19 + $0x680] sm:$0xff] }
 0x35e   : > { %13425 = vmatprep.mubr.f32.mxu1 %v1165_v47  ;;  %27825 = vmatprep.mubr.f32.mxu0 %v1549_v48  ;;  %v2998_v36 = vrot.slane %v1791_v30, %v37096_v5  ;;  %v1556_v47 = vld [vmem:[%s37090_s19 + $0x2a40] sm:$0x3]  ;;  %v407_v48 = vld [vmem:[%s37090_s19 + $0x658] sm:$0xff]  ;;  %v4637_v51 = vrot.slane %v4623_v45, %v37096_v5  ;;  %v414_v45 = vld [vmem:[%s37090_s19 + $0x690] sm:$0xff] }
 0x35f   : > { %13506 = vmatprep.subr.mxu1 %v2972_v49  ;;  %27906 = vmatprep.subr.mxu0 %v4604_v50  ;;  %v791_v49 = vld [vmem:[%s37090_s19 + $0x1258] sm:$0xff] }
 0x360   : > { %13426 = vmatmul.mubr.f32.gmra.mrb[2].mxu1 %v1164_v53  ;;  %27826 = vmatmul.mubr.f32.gmra.mrb[2].mxu0 %v1548_v54  ;;  %v3006_v42 = vcombine.high %v2998_v36, %v2998_v36  ;;  %v790_v53 = vld [vmem:[%s37090_s19 + $0x1250] sm:$0xff]  ;;  %v1175_v54 = vld [vmem:[%s37090_s19 + $0x1e58] sm:$0x3] }
 0x361   : > { %13495 = vmatprep.mubr.f32.mxu1 %v399_v55  ;;  %27895 = vmatprep.mubr.f32.mxu0 %v783_v56  ;;  %v1559_v55 = vld [vmem:[%s37090_s19 + $0x2a58] sm:$0x3] }
 0x364   : > { %13496 = vmatmul.mubr.f32.vlgmr.msra.gmra.mrb[0].mxu1 %v398_v59  ;;  %27896 = vmatmul.mubr.f32.vlgmr.msra.gmra.mrb[0].mxu0 %v782_v60  ;;  %v1888_v59 = vld [vmem:[%s37084_s27 + $0x4a0] sm:$0xff]  ;;  %v1174_v60 = vld [vmem:[%s37090_s19 + $0x1e50] sm:$0x3] }
 0x365   : > { %13507 = vmatpush1.xpose.msra.mxu1 %v2964_v43  ;;  %27907 = vmatpush1.xpose.msra.mxu0 %v4596_v44  ;;  %v4638_v43 = vcombine.high %v4630_v37, %v4630_v37  ;;  %v2991_v44 = vcombine.high %v1791_v30, %v1791_v30  ;;  %v4647_v1 = vrot.slane %v1888_v59, %v37096_v5 }
 0x366   : > { %13500 = vmatprep.mubr.f32.mxu1 %v1167_v61  ;;  %27900 = vmatprep.mubr.f32.mxu0 %v1551_v62  ;;  %v1558_v61 = vld [vmem:[%s37090_s19 + $0x2a50] sm:$0x3]  ;;  %v409_v62 = vld [vmem:[%s37090_s19 + $0x668] sm:$0xff] }
 0x367   : > { %13581 = vmatprep.subr.mxu1 %v2973_v63  ;;  %27981 = vmatprep.subr.mxu0 %v4605_v0  ;;  %v3005_v50 = vrot.slane %v2991_v44, %v37096_v5  ;;  %v793_v63 = vld [vmem:[%s37090_s19 + $0x1268] sm:$0xff] }
 0x368   : > { %13501 = vmatmul.mubr.f32.gmra.mrb[2].mxu1 %v1166_v3  ;;  %27901 = vmatmul.mubr.f32.gmra.mrb[2].mxu0 %v1550_v4  ;;  %v792_v3 = vld [vmem:[%s37090_s19 + $0x1260] sm:$0xff]  ;;  %v1177_v4 = vld [vmem:[%s37090_s19 + $0x1e68] sm:$0x3] }
 0x369   : > { %13570 = vmatprep.mubr.f32.mxu1 %v401_v6  ;;  %27970 = vmatprep.mubr.f32.mxu0 %v785_v7  ;;  %v3007_v56 = vcombine.high %v3005_v50, %v3005_v50  ;;  %v1561_v6 = vld [vmem:[%s37090_s19 + $0x2a68] sm:$0x3] }
 0x36c   : > { %13571 = vmatmul.mubr.f32.vlgmr.msra.gmra.mrb[0].mxu1 %v400_v10  ;;  %27971 = vmatmul.mubr.f32.vlgmr.msra.gmra.mrb[0].mxu0 %v784_v11  ;;  %v4640_v10 = vcombine.high %v1888_v59, %v1888_v59  ;;  %v1176_v11 = vld [vmem:[%s37090_s19 + $0x1e60] sm:$0x3] }
 0x36d   : > { %13582 = vmatpush1.xpose.msra.mxu1 %v2971_v57  ;;  %27982 = vmatpush1.xpose.msra.mxu0 %v4603_v58  ;;  %v4639_v57 = vcombine.high %v4637_v51, %v4637_v51  ;;  %v1792_v58 = vld [vmem:[%s37084_s27 + $0x1a0] sm:$0xff] }
 0x36e   : > { %13575 = vmatprep.mubr.f32.mxu1 %v1169_v12  ;;  %27975 = vmatprep.mubr.f32.mxu0 %v1553_v13  ;;  %v3015_v0 = vrot.slane %v1792_v58, %v37096_v5  ;;  %v1560_v12 = vld [vmem:[%s37090_s19 + $0x2a60] sm:$0x3]  ;;  %v411_v13 = vld [vmem:[%s37090_s19 + $0x678] sm:$0xff]  ;;  %v4654_v16 = vrot.slane %v4640_v10, %v37096_v5  ;;  %v418_v10 = vld [vmem:[%s37090_s19 + $0x6b0] sm:$0xff] }
 0x36f   : > { %13656 = vmatprep.subr.mxu1 %v2989_v14  ;;  %28056 = vmatprep.subr.mxu0 %v4621_v15  ;;  %v795_v14 = vld [vmem:[%s37090_s19 + $0x1278] sm:$0xff]  ;;  %v416_v59 = vld [vmem:[%s37090_s19 + $0x6a0] sm:$0xff] }
 0x370   : > { %13576 = vmatmul.mubr.f32.gmra.mrb[2].mxu1 %v1168_v18  ;;  %27976 = vmatmul.mubr.f32.gmra.mrb[2].mxu0 %v1552_v19  ;;  %v3023_v7 = vcombine.high %v3015_v0, %v3015_v0  ;;  %v794_v18 = vld [vmem:[%s37090_s19 + $0x1270] sm:$0xff]  ;;  %v1179_v19 = vld [vmem:[%s37090_s19 + $0x1e78] sm:$0x3] }
 0x371   : > { %13645 = vmatprep.mubr.f32.mxu1 %v403_v20  ;;  %28045 = vmatprep.mubr.f32.mxu0 %v787_v21  ;;  %v1563_v20 = vld [vmem:[%s37090_s19 + $0x2a78] sm:$0x3] }
 0x374   : > { %13646 = vmatmul.mubr.f32.vlgmr.msra.gmra.mrb[0].mxu1 %v402_v24  ;;  %28046 = vmatmul.mubr.f32.vlgmr.msra.gmra.mrb[0].mxu0 %v786_v25  ;;  %v1889_v24 = vld [vmem:[%s37084_s27 + $0x4a8] sm:$0xff]  ;;  %v1178_v25 = vld [vmem:[%s37090_s19 + $0x1e70] sm:$0x3] }
 0x375   : > { %13657 = vmatpush1.xpose.msra.mxu1 %v2981_v8  ;;  %28057 = vmatpush1.xpose.msra.mxu0 %v4613_v9  ;;  %v4655_v8 = vcombine.high %v4647_v1, %v4647_v1  ;;  %v3008_v9 = vcombine.high %v1792_v58, %v1792_v58  ;;  %v4664_v30 = vrot.slane %v1889_v24, %v37096_v5 }
 0x376   : > { %13650 = vmatprep.mubr.f32.mxu1 %v1171_v26  ;;  %28050 = vmatprep.mubr.f32.mxu0 %v1555_v27  ;;  %v1562_v26 = vld [vmem:[%s37090_s19 + $0x2a70] sm:$0x3]  ;;  %v413_v27 = vld [vmem:[%s37090_s19 + $0x688] sm:$0xff] }
 0x377   : > { %13731 = vmatprep.subr.mxu1 %v2990_v28  ;;  %28131 = vmatprep.subr.mxu0 %v4622_v29  ;;  %v3022_v15 = vrot.slane %v3008_v9, %v37096_v5  ;;  %v797_v28 = vld [vmem:[%s37090_s19 + $0x1288] sm:$0xff] }
 0x378   : > { %13651 = vmatmul.mubr.f32.gmra.mrb[2].mxu1 %v1170_v32  ;;  %28051 = vmatmul.mubr.f32.gmra.mrb[2].mxu0 %v1554_v33  ;;  %v796_v32 = vld [vmem:[%s37090_s19 + $0x1280] sm:$0xff]  ;;  %v1181_v33 = vld [vmem:[%s37090_s19 + $0x1e88] sm:$0x3] }
 0x379   : > { %13720 = vmatprep.mubr.f32.mxu1 %v405_v34  ;;  %28120 = vmatprep.mubr.f32.mxu0 %v789_v35  ;;  %v3024_v21 = vcombine.high %v3022_v15, %v3022_v15  ;;  %v1565_v34 = vld [vmem:[%s37090_s19 + $0x2a88] sm:$0x3] }
 0x37c   : > { %13721 = vmatmul.mubr.f32.vlgmr.msra.gmra.mrb[0].mxu1 %v404_v38  ;;  %28121 = vmatmul.mubr.f32.vlgmr.msra.gmra.mrb[0].mxu0 %v788_v39  ;;  %v4657_v38 = vcombine.high %v1889_v24, %v1889_v24  ;;  %v1180_v39 = vld [vmem:[%s37090_s19 + $0x1e80] sm:$0x3] }
 0x37d   : > { %13732 = vmatpush1.xpose.msra.mxu1 %v2988_v22  ;;  %28132 = vmatpush1.xpose.msra.mxu0 %v4620_v23  ;;  %v4656_v22 = vcombine.high %v4654_v16, %v4654_v16  ;;  %v1793_v23 = vld [vmem:[%s37084_s27 + $0x1a8] sm:$0xff]  ;;  %v420_v24 = vld [vmem:[%s37090_s19 + $0x6c0] sm:$0xff] }
 0x37e   : > { %13725 = vmatprep.mubr.f32.mxu1 %v1173_v40  ;;  %28125 = vmatprep.mubr.f32.mxu0 %v1557_v41  ;;  %v3032_v29 = vrot.slane %v1793_v23, %v37096_v5  ;;  %v1564_v40 = vld [vmem:[%s37090_s19 + $0x2a80] sm:$0x3]  ;;  %v415_v41 = vld [vmem:[%s37090_s19 + $0x698] sm:$0xff]  ;;  %v4671_v44 = vrot.slane %v4657_v38, %v37096_v5  ;;  %v422_v38 = vld [vmem:[%s37090_s19 + $0x6d0] sm:$0xff] }
 0x37f   : > { %13806 = vmatprep.subr.mxu1 %v3006_v42  ;;  %28206 = vmatprep.subr.mxu0 %v4638_v43  ;;  %v799_v42 = vld [vmem:[%s37090_s19 + $0x1298] sm:$0xff] }
 0x380   : > { %13726 = vmatmul.mubr.f32.gmra.mrb[2].mxu1 %v1172_v46  ;;  %28126 = vmatmul.mubr.f32.gmra.mrb[2].mxu0 %v1556_v47  ;;  %v3040_v35 = vcombine.high %v3032_v29, %v3032_v29  ;;  %v798_v46 = vld [vmem:[%s37090_s19 + $0x1290] sm:$0xff]  ;;  %v1183_v47 = vld [vmem:[%s37090_s19 + $0x1e98] sm:$0x3] }
 0x381   : > { %13795 = vmatprep.mubr.f32.mxu1 %v407_v48  ;;  %28195 = vmatprep.mubr.f32.mxu0 %v791_v49  ;;  %v1567_v48 = vld [vmem:[%s37090_s19 + $0x2a98] sm:$0x3] }
 0x384   : > { %13796 = vmatmul.mubr.f32.vlgmr.msra.gmra.mrb[0].mxu1 %v406_v52  ;;  %28196 = vmatmul.mubr.f32.vlgmr.msra.gmra.mrb[0].mxu0 %v790_v53  ;;  %v1890_v52 = vld [vmem:[%s37084_s27 + $0x4b0] sm:$0xff] }
 0x385   : > { %13807 = vmatpush1.xpose.msra.mxu1 %v2998_v36  ;;  %28207 = vmatpush1.xpose.msra.mxu0 %v4630_v37  ;;  %v4672_v36 = vcombine.high %v4664_v30, %v4664_v30  ;;  %v3025_v37 = vcombine.high %v1793_v23, %v1793_v23  ;;  %v1182_v53 = vld [vmem:[%s37090_s19 + $0x1e90] sm:$0x3]  ;;  %v4681_v58 = vrot.slane %v1890_v52, %v37096_v5 }
 0x386   : > { %13800 = vmatprep.mubr.f32.mxu1 %v1175_v54  ;;  %28200 = vmatprep.mubr.f32.mxu0 %v1559_v55  ;;  %v1566_v54 = vld [vmem:[%s37090_s19 + $0x2a90] sm:$0x3]  ;;  %v417_v55 = vld [vmem:[%s37090_s19 + $0x6a8] sm:$0xff] }
 0x387   : > { %13881 = vmatprep.subr.mxu1 %v3007_v56  ;;  %28281 = vmatprep.subr.mxu0 %v4639_v57  ;;  %v3039_v43 = vrot.slane %v3025_v37, %v37096_v5  ;;  %v801_v56 = vld [vmem:[%s37090_s19 + $0x12a8] sm:$0xff] }
 0x388   : > { %13801 = vmatmul.mubr.f32.gmra.mrb[2].mxu1 %v1174_v60  ;;  %28201 = vmatmul.mubr.f32.gmra.mrb[2].mxu0 %v1558_v61  ;;  %v800_v60 = vld [vmem:[%s37090_s19 + $0x12a0] sm:$0xff]  ;;  %v1185_v61 = vld [vmem:[%s37090_s19 + $0x1ea8] sm:$0x3] }
 0x389   : > { %13870 = vmatprep.mubr.f32.mxu1 %v409_v62  ;;  %28270 = vmatprep.mubr.f32.mxu0 %v793_v63  ;;  %v3041_v49 = vcombine.high %v3039_v43, %v3039_v43  ;;  %v1569_v62 = vld [vmem:[%s37090_s19 + $0x2aa8] sm:$0x3] }
 0x38c   : > { %13871 = vmatmul.mubr.f32.vlgmr.msra.gmra.mrb[0].mxu1 %v408_v2  ;;  %28271 = vmatmul.mubr.f32.vlgmr.msra.gmra.mrb[0].mxu0 %v792_v3  ;;  %v4674_v2 = vcombine.high %v1890_v52, %v1890_v52  ;;  %v1184_v3 = vld [vmem:[%s37090_s19 + $0x1ea0] sm:$0x3] }
 0x38d   : > { %13882 = vmatpush1.xpose.msra.mxu1 %v3005_v50  ;;  %28282 = vmatpush1.xpose.msra.mxu0 %v4637_v51  ;;  %v4673_v50 = vcombine.high %v4671_v44, %v4671_v44  ;;  %v1794_v51 = vld [vmem:[%s37084_s27 + $0x1b0] sm:$0xff]  ;;  %v424_v52 = vld [vmem:[%s37090_s19 + $0x6e0] sm:$0xff] }
 0x38e   : > { %13875 = vmatprep.mubr.f32.mxu1 %v1177_v4  ;;  %28275 = vmatprep.mubr.f32.mxu0 %v1561_v6  ;;  %v3049_v57 = vrot.slane %v1794_v51, %v37096_v5  ;;  %v1568_v4 = vld [vmem:[%s37090_s19 + $0x2aa0] sm:$0x3]  ;;  %v419_v6 = vld [vmem:[%s37090_s19 + $0x6b8] sm:$0xff]  ;;  %v4688_v9 = vrot.slane %v4674_v2, %v37096_v5  ;;  %v426_v2 = vld [vmem:[%s37090_s19 + $0x6f0] sm:$0xff] }
 0x38f   : > { %13956 = vmatprep.subr.mxu1 %v3023_v7  ;;  %28356 = vmatprep.subr.mxu0 %v4655_v8  ;;  %v803_v7 = vld [vmem:[%s37090_s19 + $0x12b8] sm:$0xff] }
 0x390   : > { %13876 = vmatmul.mubr.f32.gmra.mrb[2].mxu1 %v1176_v11  ;;  %28276 = vmatmul.mubr.f32.gmra.mrb[2].mxu0 %v1560_v12  ;;  %v3057_v63 = vcombine.high %v3049_v57, %v3049_v57  ;;  %v802_v11 = vld [vmem:[%s37090_s19 + $0x12b0] sm:$0xff]  ;;  %v1187_v12 = vld [vmem:[%s37090_s19 + $0x1eb8] sm:$0x3] }
 0x391   : > { %13945 = vmatprep.mubr.f32.mxu1 %v411_v13  ;;  %28345 = vmatprep.mubr.f32.mxu0 %v795_v14  ;;  %v1571_v13 = vld [vmem:[%s37090_s19 + $0x2ab8] sm:$0x3] }
 0x394   : > { %13946 = vmatmul.mubr.f32.vlgmr.msra.gmra.mrb[0].mxu1 %v410_v17  ;;  %28346 = vmatmul.mubr.f32.vlgmr.msra.gmra.mrb[0].mxu0 %v794_v18  ;;  %v1891_v17 = vld [vmem:[%s37084_s27 + $0x4b8] sm:$0xff]  ;;  %v1186_v18 = vld [vmem:[%s37090_s19 + $0x1eb0] sm:$0x3] }
 0x395   : > { %13957 = vmatpush1.xpose.msra.mxu1 %v3015_v0  ;;  %28357 = vmatpush1.xpose.msra.mxu0 %v4647_v1  ;;  %v4689_v0 = vcombine.high %v4681_v58, %v4681_v58  ;;  %v3042_v1 = vcombine.high %v1794_v51, %v1794_v51  ;;  %v4698_v23 = vrot.slane %v1891_v17, %v37096_v5 }
 0x396   : > { %13950 = vmatprep.mubr.f32.mxu1 %v1179_v19  ;;  %28350 = vmatprep.mubr.f32.mxu0 %v1563_v20  ;;  %v1570_v19 = vld [vmem:[%s37090_s19 + $0x2ab0] sm:$0x3]  ;;  %v421_v20 = vld [vmem:[%s37090_s19 + $0x6c8] sm:$0xff] }
 0x397   : > { %14031 = vmatprep.subr.mxu1 %v3024_v21  ;;  %28431 = vmatprep.subr.mxu0 %v4656_v22  ;;  %v3056_v8 = vrot.slane %v3042_v1, %v37096_v5  ;;  %v805_v21 = vld [vmem:[%s37090_s19 + $0x12c8] sm:$0xff] }
 0x398   : > { %13951 = vmatmul.mubr.f32.gmra.mrb[2].mxu1 %v1178_v25  ;;  %28351 = vmatmul.mubr.f32.gmra.mrb[2].mxu0 %v1562_v26  ;;  %v804_v25 = vld [vmem:[%s37090_s19 + $0x12c0] sm:$0xff]  ;;  %v1189_v26 = vld [vmem:[%s37090_s19 + $0x1ec8] sm:$0x3] }
 0x399   : > { %14020 = vmatprep.mubr.f32.mxu1 %v413_v27  ;;  %28420 = vmatprep.mubr.f32.mxu0 %v797_v28  ;;  %v3058_v14 = vcombine.high %v3056_v8, %v3056_v8  ;;  %v1573_v27 = vld [vmem:[%s37090_s19 + $0x2ac8] sm:$0x3] }
 0x39c   : > { %14021 = vmatmul.mubr.f32.vlgmr.msra.gmra.mrb[0].mxu1 %v412_v31  ;;  %28421 = vmatmul.mubr.f32.vlgmr.msra.gmra.mrb[0].mxu0 %v796_v32  ;;  %v4691_v31 = vcombine.high %v1891_v17, %v1891_v17  ;;  %v1188_v32 = vld [vmem:[%s37090_s19 + $0x1ec0] sm:$0x3] }
 0x39d   : > { %14032 = vmatpush1.xpose.msra.mxu1 %v3022_v15  ;;  %28432 = vmatpush1.xpose.msra.mxu0 %v4654_v16  ;;  %v4690_v15 = vcombine.high %v4688_v9, %v4688_v9  ;;  %v1795_v16 = vld [vmem:[%s37084_s27 + $0x1b8] sm:$0xff]  ;;  %v428_v17 = vld [vmem:[%s37090_s19 + $0x700] sm:$0xff] }
 0x39e   : > { %14025 = vmatprep.mubr.f32.mxu1 %v1181_v33  ;;  %28425 = vmatprep.mubr.f32.mxu0 %v1565_v34  ;;  %v3066_v22 = vrot.slane %v1795_v16, %v37096_v5  ;;  %v1572_v33 = vld [vmem:[%s37090_s19 + $0x2ac0] sm:$0x3]  ;;  %v423_v34 = vld [vmem:[%s37090_s19 + $0x6d8] sm:$0xff]  ;;  %v4705_v37 = vrot.slane %v4691_v31, %v37096_v5  ;;  %v430_v31 = vld [vmem:[%s37090_s19 + $0x710] sm:$0xff] }
 0x39f   : > { %14106 = vmatprep.subr.mxu1 %v3040_v35  ;;  %28506 = vmatprep.subr.mxu0 %v4672_v36  ;;  %v807_v35 = vld [vmem:[%s37090_s19 + $0x12d8] sm:$0xff] }
 0x3a0   : > { %14026 = vmatmul.mubr.f32.gmra.mrb[2].mxu1 %v1180_v39  ;;  %28426 = vmatmul.mubr.f32.gmra.mrb[2].mxu0 %v1564_v40  ;;  %v3074_v28 = vcombine.high %v3066_v22, %v3066_v22  ;;  %v806_v39 = vld [vmem:[%s37090_s19 + $0x12d0] sm:$0xff]  ;;  %v1191_v40 = vld [vmem:[%s37090_s19 + $0x1ed8] sm:$0x3] }
 0x3a1   : > { %14095 = vmatprep.mubr.f32.mxu1 %v415_v41  ;;  %28495 = vmatprep.mubr.f32.mxu0 %v799_v42  ;;  %v1575_v41 = vld [vmem:[%s37090_s19 + $0x2ad8] sm:$0x3] }
 0x3a4   : > { %14096 = vmatmul.mubr.f32.vlgmr.msra.gmra.mrb[0].mxu1 %v414_v45  ;;  %28496 = vmatmul.mubr.f32.vlgmr.msra.gmra.mrb[0].mxu0 %v798_v46  ;;  %v1892_v45 = vld [vmem:[%s37084_s27 + $0x4c0] sm:$0xff]  ;;  %v1190_v46 = vld [vmem:[%s37090_s19 + $0x1ed0] sm:$0x3] }
 0x3a5   : > { %14107 = vmatpush1.xpose.msra.mxu1 %v3032_v29  ;;  %28507 = vmatpush1.xpose.msra.mxu0 %v4664_v30  ;;  %v4706_v29 = vcombine.high %v4698_v23, %v4698_v23  ;;  %v3059_v30 = vcombine.high %v1795_v16, %v1795_v16  ;;  %v4715_v51 = vrot.slane %v1892_v45, %v37096_v5 }
 0x3a6   : > { %14100 = vmatprep.mubr.f32.mxu1 %v1183_v47  ;;  %28500 = vmatprep.mubr.f32.mxu0 %v1567_v48  ;;  %v1574_v47 = vld [vmem:[%s37090_s19 + $0x2ad0] sm:$0x3]  ;;  %v425_v48 = vld [vmem:[%s37090_s19 + $0x6e8] sm:$0xff] }
 0x3a7   : > { %14181 = vmatprep.subr.mxu1 %v3041_v49  ;;  %28581 = vmatprep.subr.mxu0 %v4673_v50  ;;  %v3073_v36 = vrot.slane %v3059_v30, %v37096_v5  ;;  %v809_v49 = vld [vmem:[%s37090_s19 + $0x12e8] sm:$0xff] }
 0x3a8   : > { %14101 = vmatmul.mubr.f32.gmra.mrb[2].mxu1 %v1182_v53  ;;  %28501 = vmatmul.mubr.f32.gmra.mrb[2].mxu0 %v1566_v54  ;;  %v808_v53 = vld [vmem:[%s37090_s19 + $0x12e0] sm:$0xff]  ;;  %v1193_v54 = vld [vmem:[%s37090_s19 + $0x1ee8] sm:$0x3] }
 0x3a9   : > { %14170 = vmatprep.mubr.f32.mxu1 %v417_v55  ;;  %28570 = vmatprep.mubr.f32.mxu0 %v801_v56  ;;  %v3075_v42 = vcombine.high %v3073_v36, %v3073_v36  ;;  %v1577_v55 = vld [vmem:[%s37090_s19 + $0x2ae8] sm:$0x3] }
 0x3ac   : > { %14171 = vmatmul.mubr.f32.vlgmr.msra.gmra.mrb[0].mxu1 %v416_v59  ;;  %28571 = vmatmul.mubr.f32.vlgmr.msra.gmra.mrb[0].mxu0 %v800_v60  ;;  %v4708_v59 = vcombine.high %v1892_v45, %v1892_v45  ;;  %v1192_v60 = vld [vmem:[%s37090_s19 + $0x1ee0] sm:$0x3] }
 0x3ad   : > { %14182 = vmatpush1.xpose.msra.mxu1 %v3039_v43  ;;  %28582 = vmatpush1.xpose.msra.mxu0 %v4671_v44  ;;  %v4707_v43 = vcombine.high %v4705_v37, %v4705_v37  ;;  %v1796_v44 = vld [vmem:[%s37084_s27 + $0x1c0] sm:$0xff] }
 0x3ae   : > { %14175 = vmatprep.mubr.f32.mxu1 %v1185_v61  ;;  %28575 = vmatprep.mubr.f32.mxu0 %v1569_v62  ;;  %v3083_v50 = vrot.slane %v1796_v44, %v37096_v5  ;;  %v1576_v61 = vld [vmem:[%s37090_s19 + $0x2ae0] sm:$0x3]  ;;  %v427_v62 = vld [vmem:[%s37090_s19 + $0x6f8] sm:$0xff]  ;;  %v4722_v1 = vrot.slane %v4708_v59, %v37096_v5  ;;  %v434_v59 = vld [vmem:[%s37090_s19 + $0x730] sm:$0xff] }
 0x3af   : > { %14256 = vmatprep.subr.mxu1 %v3057_v63  ;;  %28656 = vmatprep.subr.mxu0 %v4689_v0  ;;  %v811_v63 = vld [vmem:[%s37090_s19 + $0x12f8] sm:$0xff]  ;;  %v432_v45 = vld [vmem:[%s37090_s19 + $0x720] sm:$0xff] }
 0x3b0   : > { %14176 = vmatmul.mubr.f32.gmra.mrb[2].mxu1 %v1184_v3  ;;  %28576 = vmatmul.mubr.f32.gmra.mrb[2].mxu0 %v1568_v4  ;;  %v3091_v56 = vcombine.high %v3083_v50, %v3083_v50  ;;  %v810_v3 = vld [vmem:[%s37090_s19 + $0x12f0] sm:$0xff]  ;;  %v1195_v4 = vld [vmem:[%s37090_s19 + $0x1ef8] sm:$0x3] }
 0x3b1   : > { %14245 = vmatprep.mubr.f32.mxu1 %v419_v6  ;;  %28645 = vmatprep.mubr.f32.mxu0 %v803_v7  ;;  %v1579_v6 = vld [vmem:[%s37090_s19 + $0x2af8] sm:$0x3] }
 0x3b4   : > { %14246 = vmatmul.mubr.f32.vlgmr.msra.gmra.mrb[0].mxu1 %v418_v10  ;;  %28646 = vmatmul.mubr.f32.vlgmr.msra.gmra.mrb[0].mxu0 %v802_v11  ;;  %v1893_v10 = vld [vmem:[%s37084_s27 + $0x4c8] sm:$0xff]  ;;  %v1194_v11 = vld [vmem:[%s37090_s19 + $0x1ef0] sm:$0x3] }
 0x3b5   : > { %14257 = vmatpush1.xpose.msra.mxu1 %v3049_v57  ;;  %28657 = vmatpush1.xpose.msra.mxu0 %v4681_v58  ;;  %v4723_v57 = vcombine.high %v4715_v51, %v4715_v51  ;;  %v3076_v58 = vcombine.high %v1796_v44, %v1796_v44  ;;  %v4732_v16 = vrot.slane %v1893_v10, %v37096_v5 }
 0x3b6   : > { %14250 = vmatprep.mubr.f32.mxu1 %v1187_v12  ;;  %28650 = vmatprep.mubr.f32.mxu0 %v1571_v13  ;;  %v1578_v12 = vld [vmem:[%s37090_s19 + $0x2af0] sm:$0x3]  ;;  %v429_v13 = vld [vmem:[%s37090_s19 + $0x708] sm:$0xff] }
 0x3b7   : > { %14331 = vmatprep.subr.mxu1 %v3058_v14  ;;  %28731 = vmatprep.subr.mxu0 %v4690_v15  ;;  %v3090_v0 = vrot.slane %v3076_v58, %v37096_v5  ;;  %v813_v14 = vld [vmem:[%s37090_s19 + $0x1308] sm:$0xff] }
 0x3b8   : > { %14251 = vmatmul.mubr.f32.gmra.mrb[2].mxu1 %v1186_v18  ;;  %28651 = vmatmul.mubr.f32.gmra.mrb[2].mxu0 %v1570_v19  ;;  %v812_v18 = vld [vmem:[%s37090_s19 + $0x1300] sm:$0xff]  ;;  %v1197_v19 = vld [vmem:[%s37090_s19 + $0x1f08] sm:$0x3] }
 0x3b9   : > { %14320 = vmatprep.mubr.f32.mxu1 %v421_v20  ;;  %28720 = vmatprep.mubr.f32.mxu0 %v805_v21  ;;  %v3092_v7 = vcombine.high %v3090_v0, %v3090_v0  ;;  %v1581_v20 = vld [vmem:[%s37090_s19 + $0x2b08] sm:$0x3] }
 0x3bc   : > { %14321 = vmatmul.mubr.f32.vlgmr.msra.gmra.mrb[0].mxu1 %v420_v24  ;;  %28721 = vmatmul.mubr.f32.vlgmr.msra.gmra.mrb[0].mxu0 %v804_v25  ;;  %v4725_v24 = vcombine.high %v1893_v10, %v1893_v10  ;;  %v1196_v25 = vld [vmem:[%s37090_s19 + $0x1f00] sm:$0x3] }
 0x3bd   : > { %14332 = vmatpush1.xpose.msra.mxu1 %v3056_v8  ;;  %28732 = vmatpush1.xpose.msra.mxu0 %v4688_v9  ;;  %v4724_v8 = vcombine.high %v4722_v1, %v4722_v1  ;;  %v1797_v9 = vld [vmem:[%s37084_s27 + $0x1c8] sm:$0xff]  ;;  %v436_v10 = vld [vmem:[%s37090_s19 + $0x740] sm:$0xff] }
 0x3be   : > { %14325 = vmatprep.mubr.f32.mxu1 %v1189_v26  ;;  %28725 = vmatprep.mubr.f32.mxu0 %v1573_v27  ;;  %v3100_v15 = vrot.slane %v1797_v9, %v37096_v5  ;;  %v1580_v26 = vld [vmem:[%s37090_s19 + $0x2b00] sm:$0x3]  ;;  %v431_v27 = vld [vmem:[%s37090_s19 + $0x718] sm:$0xff]  ;;  %v4739_v30 = vrot.slane %v4725_v24, %v37096_v5  ;;  %v438_v24 = vld [vmem:[%s37090_s19 + $0x750] sm:$0xff] }
 0x3bf   : > { %14406 = vmatprep.subr.mxu1 %v3074_v28  ;;  %28806 = vmatprep.subr.mxu0 %v4706_v29  ;;  %v815_v28 = vld [vmem:[%s37090_s19 + $0x1318] sm:$0xff] }
 0x3c0   : > { %14326 = vmatmul.mubr.f32.gmra.mrb[2].mxu1 %v1188_v32  ;;  %28726 = vmatmul.mubr.f32.gmra.mrb[2].mxu0 %v1572_v33  ;;  %v3108_v21 = vcombine.high %v3100_v15, %v3100_v15  ;;  %v814_v32 = vld [vmem:[%s37090_s19 + $0x1310] sm:$0xff]  ;;  %v1199_v33 = vld [vmem:[%s37090_s19 + $0x1f18] sm:$0x3] }
 0x3c1   : > { %14395 = vmatprep.mubr.f32.mxu1 %v423_v34  ;;  %28795 = vmatprep.mubr.f32.mxu0 %v807_v35  ;;  %v1583_v34 = vld [vmem:[%s37090_s19 + $0x2b18] sm:$0x3] }
 0x3c4   : > { %14396 = vmatmul.mubr.f32.vlgmr.msra.gmra.mrb[0].mxu1 %v422_v38  ;;  %28796 = vmatmul.mubr.f32.vlgmr.msra.gmra.mrb[0].mxu0 %v806_v39  ;;  %v1894_v38 = vld [vmem:[%s37084_s27 + $0x4d0] sm:$0xff] }
 0x3c5   : > { %14407 = vmatpush1.xpose.msra.mxu1 %v3066_v22  ;;  %28807 = vmatpush1.xpose.msra.mxu0 %v4698_v23  ;;  %v4740_v22 = vcombine.high %v4732_v16, %v4732_v16  ;;  %v3093_v23 = vcombine.high %v1797_v9, %v1797_v9  ;;  %v1198_v39 = vld [vmem:[%s37090_s19 + $0x1f10] sm:$0x3]  ;;  %v4749_v44 = vrot.slane %v1894_v38, %v37096_v5 }
 0x3c6   : > { %14400 = vmatprep.mubr.f32.mxu1 %v1191_v40  ;;  %28800 = vmatprep.mubr.f32.mxu0 %v1575_v41  ;;  %v1582_v40 = vld [vmem:[%s37090_s19 + $0x2b10] sm:$0x3]  ;;  %v433_v41 = vld [vmem:[%s37090_s19 + $0x728] sm:$0xff] }
 0x3c7   : > { %14481 = vmatprep.subr.mxu1 %v3075_v42  ;;  %28881 = vmatprep.subr.mxu0 %v4707_v43  ;;  %v3107_v29 = vrot.slane %v3093_v23, %v37096_v5  ;;  %v817_v42 = vld [vmem:[%s37090_s19 + $0x1328] sm:$0xff] }
 0x3c8   : > { %14401 = vmatmul.mubr.f32.gmra.mrb[2].mxu1 %v1190_v46  ;;  %28801 = vmatmul.mubr.f32.gmra.mrb[2].mxu0 %v1574_v47  ;;  %v816_v46 = vld [vmem:[%s37090_s19 + $0x1320] sm:$0xff]  ;;  %v1201_v47 = vld [vmem:[%s37090_s19 + $0x1f28] sm:$0x3] }
 0x3c9   : > { %14470 = vmatprep.mubr.f32.mxu1 %v425_v48  ;;  %28870 = vmatprep.mubr.f32.mxu0 %v809_v49  ;;  %v3109_v35 = vcombine.high %v3107_v29, %v3107_v29  ;;  %v1585_v48 = vld [vmem:[%s37090_s19 + $0x2b28] sm:$0x3] }
 0x3cc   : > { %14471 = vmatmul.mubr.f32.vlgmr.msra.gmra.mrb[0].mxu1 %v424_v52  ;;  %28871 = vmatmul.mubr.f32.vlgmr.msra.gmra.mrb[0].mxu0 %v808_v53  ;;  %v4742_v52 = vcombine.high %v1894_v38, %v1894_v38  ;;  %v1200_v53 = vld [vmem:[%s37090_s19 + $0x1f20] sm:$0x3] }
 0x3cd   : > { %14482 = vmatpush1.xpose.msra.mxu1 %v3073_v36  ;;  %28882 = vmatpush1.xpose.msra.mxu0 %v4705_v37  ;;  %v4741_v36 = vcombine.high %v4739_v30, %v4739_v30  ;;  %v1798_v37 = vld [vmem:[%s37084_s27 + $0x1d0] sm:$0xff]  ;;  %v440_v38 = vld [vmem:[%s37090_s19 + $0x760] sm:$0xff] }
 0x3ce   : > { %14475 = vmatprep.mubr.f32.mxu1 %v1193_v54  ;;  %28875 = vmatprep.mubr.f32.mxu0 %v1577_v55  ;;  %v3117_v43 = vrot.slane %v1798_v37, %v37096_v5  ;;  %v1584_v54 = vld [vmem:[%s37090_s19 + $0x2b20] sm:$0x3]  ;;  %v435_v55 = vld [vmem:[%s37090_s19 + $0x738] sm:$0xff]  ;;  %v4756_v58 = vrot.slane %v4742_v52, %v37096_v5  ;;  %v442_v52 = vld [vmem:[%s37090_s19 + $0x770] sm:$0xff] }
 0x3cf   : > { %14556 = vmatprep.subr.mxu1 %v3091_v56  ;;  %28956 = vmatprep.subr.mxu0 %v4723_v57  ;;  %v819_v56 = vld [vmem:[%s37090_s19 + $0x1338] sm:$0xff] }
 0x3d0   : > { %14476 = vmatmul.mubr.f32.gmra.mrb[2].mxu1 %v1192_v60  ;;  %28876 = vmatmul.mubr.f32.gmra.mrb[2].mxu0 %v1576_v61  ;;  %v3125_v49 = vcombine.high %v3117_v43, %v3117_v43  ;;  %v818_v60 = vld [vmem:[%s37090_s19 + $0x1330] sm:$0xff]  ;;  %v1203_v61 = vld [vmem:[%s37090_s19 + $0x1f38] sm:$0x3] }
 0x3d1   : > { %14545 = vmatprep.mubr.f32.mxu1 %v427_v62  ;;  %28945 = vmatprep.mubr.f32.mxu0 %v811_v63  ;;  %v1587_v62 = vld [vmem:[%s37090_s19 + $0x2b38] sm:$0x3] }
 0x3d4   : > { %14546 = vmatmul.mubr.f32.vlgmr.msra.gmra.mrb[0].mxu1 %v426_v2  ;;  %28946 = vmatmul.mubr.f32.vlgmr.msra.gmra.mrb[0].mxu0 %v810_v3  ;;  %v1895_v2 = vld [vmem:[%s37084_s27 + $0x4d8] sm:$0xff]  ;;  %v1202_v3 = vld [vmem:[%s37090_s19 + $0x1f30] sm:$0x3] }
 0x3d5   : > { %14557 = vmatpush1.xpose.msra.mxu1 %v3083_v50  ;;  %28957 = vmatpush1.xpose.msra.mxu0 %v4715_v51  ;;  %v4757_v50 = vcombine.high %v4749_v44, %v4749_v44  ;;  %v3110_v51 = vcombine.high %v1798_v37, %v1798_v37  ;;  %v4766_v9 = vrot.slane %v1895_v2, %v37096_v5 }
 0x3d6   : > { %14550 = vmatprep.mubr.f32.mxu1 %v1195_v4  ;;  %28950 = vmatprep.mubr.f32.mxu0 %v1579_v6  ;;  %v1586_v4 = vld [vmem:[%s37090_s19 + $0x2b30] sm:$0x3]  ;;  %v437_v6 = vld [vmem:[%s37090_s19 + $0x748] sm:$0xff] }
 0x3d7   : > { %14631 = vmatprep.subr.mxu1 %v3092_v7  ;;  %29031 = vmatprep.subr.mxu0 %v4724_v8  ;;  %v3124_v57 = vrot.slane %v3110_v51, %v37096_v5  ;;  %v821_v7 = vld [vmem:[%s37090_s19 + $0x1348] sm:$0xff] }
 0x3d8   : > { %14551 = vmatmul.mubr.f32.gmra.mrb[2].mxu1 %v1194_v11  ;;  %28951 = vmatmul.mubr.f32.gmra.mrb[2].mxu0 %v1578_v12  ;;  %v820_v11 = vld [vmem:[%s37090_s19 + $0x1340] sm:$0xff]  ;;  %v1205_v12 = vld [vmem:[%s37090_s19 + $0x1f48] sm:$0x3] }
 0x3d9   : > { %14620 = vmatprep.mubr.f32.mxu1 %v429_v13  ;;  %29020 = vmatprep.mubr.f32.mxu0 %v813_v14  ;;  %v3126_v63 = vcombine.high %v3124_v57, %v3124_v57  ;;  %v1589_v13 = vld [vmem:[%s37090_s19 + $0x2b48] sm:$0x3] }
 0x3dc   : > { %14621 = vmatmul.mubr.f32.vlgmr.msra.gmra.mrb[0].mxu1 %v428_v17  ;;  %29021 = vmatmul.mubr.f32.vlgmr.msra.gmra.mrb[0].mxu0 %v812_v18  ;;  %v4759_v17 = vcombine.high %v1895_v2, %v1895_v2  ;;  %v1204_v18 = vld [vmem:[%s37090_s19 + $0x1f40] sm:$0x3] }
 0x3dd   : > { %14632 = vmatpush1.xpose.msra.mxu1 %v3090_v0  ;;  %29032 = vmatpush1.xpose.msra.mxu0 %v4722_v1  ;;  %v4758_v0 = vcombine.high %v4756_v58, %v4756_v58  ;;  %v1799_v1 = vld [vmem:[%s37084_s27 + $0x1d8] sm:$0xff]  ;;  %v444_v2 = vld [vmem:[%s37090_s19 + $0x780] sm:$0xff] }
 0x3de   : > { %14625 = vmatprep.mubr.f32.mxu1 %v1197_v19  ;;  %29025 = vmatprep.mubr.f32.mxu0 %v1581_v20  ;;  %v3134_v8 = vrot.slane %v1799_v1, %v37096_v5  ;;  %v1588_v19 = vld [vmem:[%s37090_s19 + $0x2b40] sm:$0x3]  ;;  %v439_v20 = vld [vmem:[%s37090_s19 + $0x758] sm:$0xff]  ;;  %v4773_v23 = vrot.slane %v4759_v17, %v37096_v5  ;;  %v446_v17 = vld [vmem:[%s37090_s19 + $0x790] sm:$0xff] }
 0x3df   : > { %14706 = vmatprep.subr.mxu1 %v3108_v21  ;;  %29106 = vmatprep.subr.mxu0 %v4740_v22  ;;  %v823_v21 = vld [vmem:[%s37090_s19 + $0x1358] sm:$0xff] }
 0x3e0   : > { %14626 = vmatmul.mubr.f32.gmra.mrb[2].mxu1 %v1196_v25  ;;  %29026 = vmatmul.mubr.f32.gmra.mrb[2].mxu0 %v1580_v26  ;;  %v3142_v14 = vcombine.high %v3134_v8, %v3134_v8  ;;  %v822_v25 = vld [vmem:[%s37090_s19 + $0x1350] sm:$0xff]  ;;  %v1207_v26 = vld [vmem:[%s37090_s19 + $0x1f58] sm:$0x3] }
 0x3e1   : > { %14695 = vmatprep.mubr.f32.mxu1 %v431_v27  ;;  %29095 = vmatprep.mubr.f32.mxu0 %v815_v28  ;;  %v1591_v27 = vld [vmem:[%s37090_s19 + $0x2b58] sm:$0x3] }
 0x3e4   : > { %14696 = vmatmul.mubr.f32.vlgmr.msra.gmra.mrb[0].mxu1 %v430_v31  ;;  %29096 = vmatmul.mubr.f32.vlgmr.msra.gmra.mrb[0].mxu0 %v814_v32  ;;  %v1896_v31 = vld [vmem:[%s37084_s27 + $0x4e0] sm:$0xff]  ;;  %v1206_v32 = vld [vmem:[%s37090_s19 + $0x1f50] sm:$0x3] }
 0x3e5   : > { %14707 = vmatpush1.xpose.msra.mxu1 %v3100_v15  ;;  %29107 = vmatpush1.xpose.msra.mxu0 %v4732_v16  ;;  %v4774_v15 = vcombine.high %v4766_v9, %v4766_v9  ;;  %v3127_v16 = vcombine.high %v1799_v1, %v1799_v1  ;;  %v4783_v37 = vrot.slane %v1896_v31, %v37096_v5 }
 0x3e6   : > { %14700 = vmatprep.mubr.f32.mxu1 %v1199_v33  ;;  %29100 = vmatprep.mubr.f32.mxu0 %v1583_v34  ;;  %v1590_v33 = vld [vmem:[%s37090_s19 + $0x2b50] sm:$0x3]  ;;  %v441_v34 = vld [vmem:[%s37090_s19 + $0x768] sm:$0xff] }
 0x3e7   : > { %14781 = vmatprep.subr.mxu1 %v3109_v35  ;;  %29181 = vmatprep.subr.mxu0 %v4741_v36  ;;  %v3141_v22 = vrot.slane %v3127_v16, %v37096_v5  ;;  %v825_v35 = vld [vmem:[%s37090_s19 + $0x1368] sm:$0xff] }
 0x3e8   : > { %14701 = vmatmul.mubr.f32.gmra.mrb[2].mxu1 %v1198_v39  ;;  %29101 = vmatmul.mubr.f32.gmra.mrb[2].mxu0 %v1582_v40  ;;  %v824_v39 = vld [vmem:[%s37090_s19 + $0x1360] sm:$0xff]  ;;  %v1209_v40 = vld [vmem:[%s37090_s19 + $0x1f68] sm:$0x3] }
 0x3e9   : > { %14770 = vmatprep.mubr.f32.mxu1 %v433_v41  ;;  %29170 = vmatprep.mubr.f32.mxu0 %v817_v42  ;;  %v3143_v28 = vcombine.high %v3141_v22, %v3141_v22  ;;  %v1593_v41 = vld [vmem:[%s37090_s19 + $0x2b68] sm:$0x3] }
 0x3ec   : > { %14771 = vmatmul.mubr.f32.vlgmr.msra.gmra.mrb[0].mxu1 %v432_v45  ;;  %29171 = vmatmul.mubr.f32.vlgmr.msra.gmra.mrb[0].mxu0 %v816_v46  ;;  %v4776_v45 = vcombine.high %v1896_v31, %v1896_v31  ;;  %v1208_v46 = vld [vmem:[%s37090_s19 + $0x1f60] sm:$0x3] }
 0x3ed   : > { %14782 = vmatpush1.xpose.msra.mxu1 %v3107_v29  ;;  %29182 = vmatpush1.xpose.msra.mxu0 %v4739_v30  ;;  %v4775_v29 = vcombine.high %v4773_v23, %v4773_v23  ;;  %v1800_v30 = vld [vmem:[%s37084_s27 + $0x1e0] sm:$0xff] }
 0x3ee   : > { %14775 = vmatprep.mubr.f32.mxu1 %v1201_v47  ;;  %29175 = vmatprep.mubr.f32.mxu0 %v1585_v48  ;;  %v3151_v36 = vrot.slane %v1800_v30, %v37096_v5  ;;  %v1592_v47 = vld [vmem:[%s37090_s19 + $0x2b60] sm:$0x3]  ;;  %v443_v48 = vld [vmem:[%s37090_s19 + $0x778] sm:$0xff]  ;;  %v4790_v51 = vrot.slane %v4776_v45, %v37096_v5  ;;  %v450_v45 = vld [vmem:[%s37090_s19 + $0x7b0] sm:$0xff] }
 0x3ef   : > { %14856 = vmatprep.subr.mxu1 %v3125_v49  ;;  %29256 = vmatprep.subr.mxu0 %v4757_v50  ;;  %v827_v49 = vld [vmem:[%s37090_s19 + $0x1378] sm:$0xff]  ;;  %v448_v31 = vld [vmem:[%s37090_s19 + $0x7a0] sm:$0xff] }
 0x3f0   : > { %14776 = vmatmul.mubr.f32.gmra.mrb[2].mxu1 %v1200_v53  ;;  %29176 = vmatmul.mubr.f32.gmra.mrb[2].mxu0 %v1584_v54  ;;  %v3159_v42 = vcombine.high %v3151_v36, %v3151_v36  ;;  %v826_v53 = vld [vmem:[%s37090_s19 + $0x1370] sm:$0xff]  ;;  %v1211_v54 = vld [vmem:[%s37090_s19 + $0x1f78] sm:$0x3] }
 0x3f1   : > { %14845 = vmatprep.mubr.f32.mxu1 %v435_v55  ;;  %29245 = vmatprep.mubr.f32.mxu0 %v819_v56  ;;  %v1595_v55 = vld [vmem:[%s37090_s19 + $0x2b78] sm:$0x3] }
 0x3f4   : > { %14846 = vmatmul.mubr.f32.vlgmr.msra.gmra.mrb[0].mxu1 %v434_v59  ;;  %29246 = vmatmul.mubr.f32.vlgmr.msra.gmra.mrb[0].mxu0 %v818_v60  ;;  %v1897_v59 = vld [vmem:[%s37084_s27 + $0x4e8] sm:$0xff]  ;;  %v1210_v60 = vld [vmem:[%s37090_s19 + $0x1f70] sm:$0x3] }
 0x3f5   : > { %14857 = vmatpush1.xpose.msra.mxu1 %v3117_v43  ;;  %29257 = vmatpush1.xpose.msra.mxu0 %v4749_v44  ;;  %v4791_v43 = vcombine.high %v4783_v37, %v4783_v37  ;;  %v3144_v44 = vcombine.high %v1800_v30, %v1800_v30  ;;  %v4800_v1 = vrot.slane %v1897_v59, %v37096_v5 }
 0x3f6   : > { %14850 = vmatprep.mubr.f32.mxu1 %v1203_v61  ;;  %29250 = vmatprep.mubr.f32.mxu0 %v1587_v62  ;;  %v1594_v61 = vld [vmem:[%s37090_s19 + $0x2b70] sm:$0x3]  ;;  %v445_v62 = vld [vmem:[%s37090_s19 + $0x788] sm:$0xff] }
 0x3f7   : > { %14931 = vmatprep.subr.mxu1 %v3126_v63  ;;  %29331 = vmatprep.subr.mxu0 %v4758_v0  ;;  %v3158_v50 = vrot.slane %v3144_v44, %v37096_v5  ;;  %v829_v63 = vld [vmem:[%s37090_s19 + $0x1388] sm:$0xff] }
 0x3f8   : > { %14851 = vmatmul.mubr.f32.gmra.mrb[2].mxu1 %v1202_v3  ;;  %29251 = vmatmul.mubr.f32.gmra.mrb[2].mxu0 %v1586_v4  ;;  %v828_v3 = vld [vmem:[%s37090_s19 + $0x1380] sm:$0xff]  ;;  %v1213_v4 = vld [vmem:[%s37090_s19 + $0x1f88] sm:$0x3] }
 0x3f9   : > { %14920 = vmatprep.mubr.f32.mxu1 %v437_v6  ;;  %29320 = vmatprep.mubr.f32.mxu0 %v821_v7  ;;  %v3160_v56 = vcombine.high %v3158_v50, %v3158_v50  ;;  %v1597_v6 = vld [vmem:[%s37090_s19 + $0x2b88] sm:$0x3] }
 0x3fc   : > { %14921 = vmatmul.mubr.f32.vlgmr.msra.gmra.mrb[0].mxu1 %v436_v10  ;;  %29321 = vmatmul.mubr.f32.vlgmr.msra.gmra.mrb[0].mxu0 %v820_v11  ;;  %v4793_v10 = vcombine.high %v1897_v59, %v1897_v59  ;;  %v1212_v11 = vld [vmem:[%s37090_s19 + $0x1f80] sm:$0x3] }
 0x3fd   : > { %14932 = vmatpush1.xpose.msra.mxu1 %v3124_v57  ;;  %29332 = vmatpush1.xpose.msra.mxu0 %v4756_v58  ;;  %v4792_v57 = vcombine.high %v4790_v51, %v4790_v51  ;;  %v1801_v58 = vld [vmem:[%s37084_s27 + $0x1e8] sm:$0xff]  ;;  %v452_v59 = vld [vmem:[%s37090_s19 + $0x7c0] sm:$0xff] }
 0x3fe   : > { %14925 = vmatprep.mubr.f32.mxu1 %v1205_v12  ;;  %29325 = vmatprep.mubr.f32.mxu0 %v1589_v13  ;;  %v3168_v0 = vrot.slane %v1801_v58, %v37096_v5  ;;  %v1596_v12 = vld [vmem:[%s37090_s19 + $0x2b80] sm:$0x3]  ;;  %v447_v13 = vld [vmem:[%s37090_s19 + $0x798] sm:$0xff]  ;;  %v4807_v16 = vrot.slane %v4793_v10, %v37096_v5  ;;  %v454_v10 = vld [vmem:[%s37090_s19 + $0x7d0] sm:$0xff] }
 0x3ff   : > { %15006 = vmatprep.subr.mxu1 %v3142_v14  ;;  %29406 = vmatprep.subr.mxu0 %v4774_v15  ;;  %v831_v14 = vld [vmem:[%s37090_s19 + $0x1398] sm:$0xff] }
 0x400   : > { %14926 = vmatmul.mubr.f32.gmra.mrb[2].mxu1 %v1204_v18  ;;  %29326 = vmatmul.mubr.f32.gmra.mrb[2].mxu0 %v1588_v19  ;;  %v3176_v7 = vcombine.high %v3168_v0, %v3168_v0  ;;  %v830_v18 = vld [vmem:[%s37090_s19 + $0x1390] sm:$0xff]  ;;  %v1215_v19 = vld [vmem:[%s37090_s19 + $0x1f98] sm:$0x3] }
 0x401   : > { %14995 = vmatprep.mubr.f32.mxu1 %v439_v20  ;;  %29395 = vmatprep.mubr.f32.mxu0 %v823_v21  ;;  %v1599_v20 = vld [vmem:[%s37090_s19 + $0x2b98] sm:$0x3] }
 0x404   : > { %14996 = vmatmul.mubr.f32.vlgmr.msra.gmra.mrb[0].mxu1 %v438_v24  ;;  %29396 = vmatmul.mubr.f32.vlgmr.msra.gmra.mrb[0].mxu0 %v822_v25  ;;  %v1898_v24 = vld [vmem:[%s37084_s27 + $0x4f0] sm:$0xff] }
 0x405   : > { %15007 = vmatpush1.xpose.msra.mxu1 %v3134_v8  ;;  %29407 = vmatpush1.xpose.msra.mxu0 %v4766_v9  ;;  %v4808_v8 = vcombine.high %v4800_v1, %v4800_v1  ;;  %v3161_v9 = vcombine.high %v1801_v58, %v1801_v58  ;;  %v1214_v25 = vld [vmem:[%s37090_s19 + $0x1f90] sm:$0x3]  ;;  %v4817_v30 = vrot.slane %v1898_v24, %v37096_v5 }
 0x406   : > { %15000 = vmatprep.mubr.f32.mxu1 %v1207_v26  ;;  %29400 = vmatprep.mubr.f32.mxu0 %v1591_v27  ;;  %v1598_v26 = vld [vmem:[%s37090_s19 + $0x2b90] sm:$0x3]  ;;  %v449_v27 = vld [vmem:[%s37090_s19 + $0x7a8] sm:$0xff] }
 0x407   : > { %15081 = vmatprep.subr.mxu1 %v3143_v28  ;;  %29481 = vmatprep.subr.mxu0 %v4775_v29  ;;  %v3175_v15 = vrot.slane %v3161_v9, %v37096_v5  ;;  %v833_v28 = vld [vmem:[%s37090_s19 + $0x13a8] sm:$0xff] }
 0x408   : > { %15001 = vmatmul.mubr.f32.gmra.mrb[2].mxu1 %v1206_v32  ;;  %29401 = vmatmul.mubr.f32.gmra.mrb[2].mxu0 %v1590_v33  ;;  %v832_v32 = vld [vmem:[%s37090_s19 + $0x13a0] sm:$0xff]  ;;  %v1217_v33 = vld [vmem:[%s37090_s19 + $0x1fa8] sm:$0x3] }
 0x409   : > { %15070 = vmatprep.mubr.f32.mxu1 %v441_v34  ;;  %29470 = vmatprep.mubr.f32.mxu0 %v825_v35  ;;  %v3177_v21 = vcombine.high %v3175_v15, %v3175_v15  ;;  %v1601_v34 = vld [vmem:[%s37090_s19 + $0x2ba8] sm:$0x3] }
 0x40c   : > { %15071 = vmatmul.mubr.f32.vlgmr.msra.gmra.mrb[0].mxu1 %v440_v38  ;;  %29471 = vmatmul.mubr.f32.vlgmr.msra.gmra.mrb[0].mxu0 %v824_v39  ;;  %v4810_v38 = vcombine.high %v1898_v24, %v1898_v24  ;;  %v1216_v39 = vld [vmem:[%s37090_s19 + $0x1fa0] sm:$0x3] }
 0x40d   : > { %15082 = vmatpush1.xpose.msra.mxu1 %v3141_v22  ;;  %29482 = vmatpush1.xpose.msra.mxu0 %v4773_v23  ;;  %v4809_v22 = vcombine.high %v4807_v16, %v4807_v16  ;;  %v1802_v23 = vld [vmem:[%s37084_s27 + $0x1f0] sm:$0xff]  ;;  %v456_v24 = vld [vmem:[%s37090_s19 + $0x7e0] sm:$0xff] }
 0x40e   : > { %15075 = vmatprep.mubr.f32.mxu1 %v1209_v40  ;;  %29475 = vmatprep.mubr.f32.mxu0 %v1593_v41  ;;  %v3185_v29 = vrot.slane %v1802_v23, %v37096_v5  ;;  %v1600_v40 = vld [vmem:[%s37090_s19 + $0x2ba0] sm:$0x3]  ;;  %v451_v41 = vld [vmem:[%s37090_s19 + $0x7b8] sm:$0xff]  ;;  %v4824_v44 = vrot.slane %v4810_v38, %v37096_v5  ;;  %v458_v38 = vld [vmem:[%s37090_s19 + $0x7f0] sm:$0xff] }
 0x40f   : > { %15156 = vmatprep.subr.mxu1 %v3159_v42  ;;  %29556 = vmatprep.subr.mxu0 %v4791_v43  ;;  %v835_v42 = vld [vmem:[%s37090_s19 + $0x13b8] sm:$0xff] }
 0x410   : > { %15076 = vmatmul.mubr.f32.gmra.mrb[2].mxu1 %v1208_v46  ;;  %29476 = vmatmul.mubr.f32.gmra.mrb[2].mxu0 %v1592_v47  ;;  %v3193_v35 = vcombine.high %v3185_v29, %v3185_v29  ;;  %v834_v46 = vld [vmem:[%s37090_s19 + $0x13b0] sm:$0xff]  ;;  %v1219_v47 = vld [vmem:[%s37090_s19 + $0x1fb8] sm:$0x3] }
 0x411   : > { %15145 = vmatprep.mubr.f32.mxu1 %v443_v48  ;;  %29545 = vmatprep.mubr.f32.mxu0 %v827_v49  ;;  %v1603_v48 = vld [vmem:[%s37090_s19 + $0x2bb8] sm:$0x3] }
 0x414   : > { %15146 = vmatmul.mubr.f32.vlgmr.msra.gmra.mrb[0].mxu1 %v442_v52  ;;  %29546 = vmatmul.mubr.f32.vlgmr.msra.gmra.mrb[0].mxu0 %v826_v53  ;;  %v1899_v52 = vld [vmem:[%s37084_s27 + $0x4f8] sm:$0xff]  ;;  %v1218_v53 = vld [vmem:[%s37090_s19 + $0x1fb0] sm:$0x3] }
 0x415   : > { %15157 = vmatpush1.xpose.msra.mxu1 %v3151_v36  ;;  %29557 = vmatpush1.xpose.msra.mxu0 %v4783_v37  ;;  %v4825_v36 = vcombine.high %v4817_v30, %v4817_v30  ;;  %v3178_v37 = vcombine.high %v1802_v23, %v1802_v23  ;;  %v4834_v58 = vrot.slane %v1899_v52, %v37096_v5 }
 0x416   : > { %15150 = vmatprep.mubr.f32.mxu1 %v1211_v54  ;;  %29550 = vmatprep.mubr.f32.mxu0 %v1595_v55  ;;  %v1602_v54 = vld [vmem:[%s37090_s19 + $0x2bb0] sm:$0x3]  ;;  %v453_v55 = vld [vmem:[%s37090_s19 + $0x7c8] sm:$0xff] }
 0x417   : > { %15231 = vmatprep.subr.mxu1 %v3160_v56  ;;  %29631 = vmatprep.subr.mxu0 %v4792_v57  ;;  %v3192_v43 = vrot.slane %v3178_v37, %v37096_v5  ;;  %v837_v56 = vld [vmem:[%s37090_s19 + $0x13c8] sm:$0xff] }
 0x418   : > { %15151 = vmatmul.mubr.f32.gmra.mrb[2].mxu1 %v1210_v60  ;;  %29551 = vmatmul.mubr.f32.gmra.mrb[2].mxu0 %v1594_v61  ;;  %v836_v60 = vld [vmem:[%s37090_s19 + $0x13c0] sm:$0xff]  ;;  %v1221_v61 = vld [vmem:[%s37090_s19 + $0x1fc8] sm:$0x3] }
 0x419   : > { %15220 = vmatprep.mubr.f32.mxu1 %v445_v62  ;;  %29620 = vmatprep.mubr.f32.mxu0 %v829_v63  ;;  %v3194_v49 = vcombine.high %v3192_v43, %v3192_v43  ;;  %v1605_v62 = vld [vmem:[%s37090_s19 + $0x2bc8] sm:$0x3] }
 0x41c   : > { %15221 = vmatmul.mubr.f32.vlgmr.msra.gmra.mrb[0].mxu1 %v444_v2  ;;  %29621 = vmatmul.mubr.f32.vlgmr.msra.gmra.mrb[0].mxu0 %v828_v3  ;;  %v4827_v2 = vcombine.high %v1899_v52, %v1899_v52  ;;  %v1220_v3 = vld [vmem:[%s37090_s19 + $0x1fc0] sm:$0x3] }
 0x41d   : > { %15232 = vmatpush1.xpose.msra.mxu1 %v3158_v50  ;;  %29632 = vmatpush1.xpose.msra.mxu0 %v4790_v51  ;;  %v4826_v50 = vcombine.high %v4824_v44, %v4824_v44  ;;  %v1803_v51 = vld [vmem:[%s37084_s27 + $0x1f8] sm:$0xff]  ;;  %v460_v52 = vld [vmem:[%s37090_s19 + $0x800] sm:$0xff] }
 0x41e   : > { %15225 = vmatprep.mubr.f32.mxu1 %v1213_v4  ;;  %29625 = vmatprep.mubr.f32.mxu0 %v1597_v6  ;;  %v3202_v57 = vrot.slane %v1803_v51, %v37096_v5  ;;  %v1604_v4 = vld [vmem:[%s37090_s19 + $0x2bc0] sm:$0x3]  ;;  %v455_v6 = vld [vmem:[%s37090_s19 + $0x7d8] sm:$0xff]  ;;  %v4841_v9 = vrot.slane %v4827_v2, %v37096_v5  ;;  %v462_v2 = vld [vmem:[%s37090_s19 + $0x810] sm:$0xff] }
 0x41f   : > { %15306 = vmatprep.subr.mxu1 %v3176_v7  ;;  %29706 = vmatprep.subr.mxu0 %v4808_v8  ;;  %v839_v7 = vld [vmem:[%s37090_s19 + $0x13d8] sm:$0xff] }
 0x420   : > { %15226 = vmatmul.mubr.f32.gmra.mrb[2].mxu1 %v1212_v11  ;;  %29626 = vmatmul.mubr.f32.gmra.mrb[2].mxu0 %v1596_v12  ;;  %v3210_v63 = vcombine.high %v3202_v57, %v3202_v57  ;;  %v838_v11 = vld [vmem:[%s37090_s19 + $0x13d0] sm:$0xff]  ;;  %v1223_v12 = vld [vmem:[%s37090_s19 + $0x1fd8] sm:$0x3] }
 0x421   : > { %15295 = vmatprep.mubr.f32.mxu1 %v447_v13  ;;  %29695 = vmatprep.mubr.f32.mxu0 %v831_v14  ;;  %v1607_v13 = vld [vmem:[%s37090_s19 + $0x2bd8] sm:$0x3] }
 0x424   : > { %15296 = vmatmul.mubr.f32.vlgmr.msra.gmra.mrb[0].mxu1 %v446_v17  ;;  %29696 = vmatmul.mubr.f32.vlgmr.msra.gmra.mrb[0].mxu0 %v830_v18  ;;  %v1900_v17 = vld [vmem:[%s37084_s27 + $0x500] sm:$0xff]  ;;  %v1222_v18 = vld [vmem:[%s37090_s19 + $0x1fd0] sm:$0x3] }
 0x425   : > { %15307 = vmatpush1.xpose.msra.mxu1 %v3168_v0  ;;  %29707 = vmatpush1.xpose.msra.mxu0 %v4800_v1  ;;  %v4842_v0 = vcombine.high %v4834_v58, %v4834_v58  ;;  %v3195_v1 = vcombine.high %v1803_v51, %v1803_v51  ;;  %v4851_v23 = vrot.slane %v1900_v17, %v37096_v5 }
 0x426   : > { %15300 = vmatprep.mubr.f32.mxu1 %v1215_v19  ;;  %29700 = vmatprep.mubr.f32.mxu0 %v1599_v20  ;;  %v1606_v19 = vld [vmem:[%s37090_s19 + $0x2bd0] sm:$0x3]  ;;  %v457_v20 = vld [vmem:[%s37090_s19 + $0x7e8] sm:$0xff] }
 0x427   : > { %15381 = vmatprep.subr.mxu1 %v3177_v21  ;;  %29781 = vmatprep.subr.mxu0 %v4809_v22  ;;  %v3209_v8 = vrot.slane %v3195_v1, %v37096_v5  ;;  %v841_v21 = vld [vmem:[%s37090_s19 + $0x13e8] sm:$0xff] }
 0x428   : > { %15301 = vmatmul.mubr.f32.gmra.mrb[2].mxu1 %v1214_v25  ;;  %29701 = vmatmul.mubr.f32.gmra.mrb[2].mxu0 %v1598_v26  ;;  %v840_v25 = vld [vmem:[%s37090_s19 + $0x13e0] sm:$0xff]  ;;  %v1225_v26 = vld [vmem:[%s37090_s19 + $0x1fe8] sm:$0x3] }
 0x429   : > { %15370 = vmatprep.mubr.f32.mxu1 %v449_v27  ;;  %29770 = vmatprep.mubr.f32.mxu0 %v833_v28  ;;  %v3211_v14 = vcombine.high %v3209_v8, %v3209_v8  ;;  %v1609_v27 = vld [vmem:[%s37090_s19 + $0x2be8] sm:$0x3] }
 0x42c   : > { %15371 = vmatmul.mubr.f32.vlgmr.msra.gmra.mrb[0].mxu1 %v448_v31  ;;  %29771 = vmatmul.mubr.f32.vlgmr.msra.gmra.mrb[0].mxu0 %v832_v32  ;;  %v4844_v31 = vcombine.high %v1900_v17, %v1900_v17  ;;  %v1224_v32 = vld [vmem:[%s37090_s19 + $0x1fe0] sm:$0x3] }
 0x42d   : > { %15382 = vmatpush1.xpose.msra.mxu1 %v3175_v15  ;;  %29782 = vmatpush1.xpose.msra.mxu0 %v4807_v16  ;;  %v4843_v15 = vcombine.high %v4841_v9, %v4841_v9  ;;  %v1804_v16 = vld [vmem:[%s37084_s27 + $0x200] sm:$0xff] }
 0x42e   : > { %15375 = vmatprep.mubr.f32.mxu1 %v1217_v33  ;;  %29775 = vmatprep.mubr.f32.mxu0 %v1601_v34  ;;  %v3219_v22 = vrot.slane %v1804_v16, %v37096_v5  ;;  %v1608_v33 = vld [vmem:[%s37090_s19 + $0x2be0] sm:$0x3]  ;;  %v459_v34 = vld [vmem:[%s37090_s19 + $0x7f8] sm:$0xff]  ;;  %v4858_v37 = vrot.slane %v4844_v31, %v37096_v5  ;;  %v466_v31 = vld [vmem:[%s37090_s19 + $0x830] sm:$0xff] }
 0x42f   : > { %15456 = vmatprep.subr.mxu1 %v3193_v35  ;;  %29856 = vmatprep.subr.mxu0 %v4825_v36  ;;  %v843_v35 = vld [vmem:[%s37090_s19 + $0x13f8] sm:$0xff]  ;;  %v464_v17 = vld [vmem:[%s37090_s19 + $0x820] sm:$0xff] }
 0x430   : > { %15376 = vmatmul.mubr.f32.gmra.mrb[2].mxu1 %v1216_v39  ;;  %29776 = vmatmul.mubr.f32.gmra.mrb[2].mxu0 %v1600_v40  ;;  %v3227_v28 = vcombine.high %v3219_v22, %v3219_v22  ;;  %v842_v39 = vld [vmem:[%s37090_s19 + $0x13f0] sm:$0xff]  ;;  %v1227_v40 = vld [vmem:[%s37090_s19 + $0x1ff8] sm:$0x3] }
 0x431   : > { %15445 = vmatprep.mubr.f32.mxu1 %v451_v41  ;;  %29845 = vmatprep.mubr.f32.mxu0 %v835_v42  ;;  %v1611_v41 = vld [vmem:[%s37090_s19 + $0x2bf8] sm:$0x3] }
 0x434   : > { %15446 = vmatmul.mubr.f32.vlgmr.msra.gmra.mrb[0].mxu1 %v450_v45  ;;  %29846 = vmatmul.mubr.f32.vlgmr.msra.gmra.mrb[0].mxu0 %v834_v46  ;;  %v1901_v45 = vld [vmem:[%s37084_s27 + $0x508] sm:$0xff]  ;;  %v1226_v46 = vld [vmem:[%s37090_s19 + $0x1ff0] sm:$0x3] }
 0x435   : > { %15457 = vmatpush1.xpose.msra.mxu1 %v3185_v29  ;;  %29857 = vmatpush1.xpose.msra.mxu0 %v4817_v30  ;;  %v4859_v29 = vcombine.high %v4851_v23, %v4851_v23  ;;  %v3212_v30 = vcombine.high %v1804_v16, %v1804_v16  ;;  %v4868_v51 = vrot.slane %v1901_v45, %v37096_v5 }
 0x436   : > { %15450 = vmatprep.mubr.f32.mxu1 %v1219_v47  ;;  %29850 = vmatprep.mubr.f32.mxu0 %v1603_v48  ;;  %v1610_v47 = vld [vmem:[%s37090_s19 + $0x2bf0] sm:$0x3]  ;;  %v461_v48 = vld [vmem:[%s37090_s19 + $0x808] sm:$0xff] }
 0x437   : > { %15531 = vmatprep.subr.mxu1 %v3194_v49  ;;  %29931 = vmatprep.subr.mxu0 %v4826_v50  ;;  %v3226_v36 = vrot.slane %v3212_v30, %v37096_v5  ;;  %v845_v49 = vld [vmem:[%s37090_s19 + $0x1408] sm:$0xff] }
 0x438   : > { %15451 = vmatmul.mubr.f32.gmra.mrb[2].mxu1 %v1218_v53  ;;  %29851 = vmatmul.mubr.f32.gmra.mrb[2].mxu0 %v1602_v54  ;;  %v844_v53 = vld [vmem:[%s37090_s19 + $0x1400] sm:$0xff]  ;;  %v1229_v54 = vld [vmem:[%s37090_s19 + $0x2008] sm:$0x3] }
 0x439   : > { %15520 = vmatprep.mubr.f32.mxu1 %v453_v55  ;;  %29920 = vmatprep.mubr.f32.mxu0 %v837_v56  ;;  %v3228_v42 = vcombine.high %v3226_v36, %v3226_v36  ;;  %v1613_v55 = vld [vmem:[%s37090_s19 + $0x2c08] sm:$0x3] }
 0x43c   : > { %15521 = vmatmul.mubr.f32.vlgmr.msra.gmra.mrb[0].mxu1 %v452_v59  ;;  %29921 = vmatmul.mubr.f32.vlgmr.msra.gmra.mrb[0].mxu0 %v836_v60  ;;  %v4861_v59 = vcombine.high %v1901_v45, %v1901_v45  ;;  %v1228_v60 = vld [vmem:[%s37090_s19 + $0x2000] sm:$0x3] }
 0x43d   : > { %15532 = vmatpush1.xpose.msra.mxu1 %v3192_v43  ;;  %29932 = vmatpush1.xpose.msra.mxu0 %v4824_v44  ;;  %v4860_v43 = vcombine.high %v4858_v37, %v4858_v37  ;;  %v1805_v44 = vld [vmem:[%s37084_s27 + $0x208] sm:$0xff]  ;;  %v468_v45 = vld [vmem:[%s37090_s19 + $0x840] sm:$0xff] }
 0x43e   : > { %15525 = vmatprep.mubr.f32.mxu1 %v1221_v61  ;;  %29925 = vmatprep.mubr.f32.mxu0 %v1605_v62  ;;  %v3236_v50 = vrot.slane %v1805_v44, %v37096_v5  ;;  %v1612_v61 = vld [vmem:[%s37090_s19 + $0x2c00] sm:$0x3]  ;;  %v463_v62 = vld [vmem:[%s37090_s19 + $0x818] sm:$0xff]  ;;  %v4875_v1 = vrot.slane %v4861_v59, %v37096_v5  ;;  %v470_v59 = vld [vmem:[%s37090_s19 + $0x850] sm:$0xff] }
 0x43f   : > { %15606 = vmatprep.subr.mxu1 %v3210_v63  ;;  %30006 = vmatprep.subr.mxu0 %v4842_v0  ;;  %v847_v63 = vld [vmem:[%s37090_s19 + $0x1418] sm:$0xff] }
 0x440   : > { %15526 = vmatmul.mubr.f32.gmra.mrb[2].mxu1 %v1220_v3  ;;  %29926 = vmatmul.mubr.f32.gmra.mrb[2].mxu0 %v1604_v4  ;;  %v3244_v56 = vcombine.high %v3236_v50, %v3236_v50  ;;  %v846_v3 = vld [vmem:[%s37090_s19 + $0x1410] sm:$0xff]  ;;  %v1231_v4 = vld [vmem:[%s37090_s19 + $0x2018] sm:$0x3] }
 0x441   : > { %15595 = vmatprep.mubr.f32.mxu1 %v455_v6  ;;  %29995 = vmatprep.mubr.f32.mxu0 %v839_v7  ;;  %v1615_v6 = vld [vmem:[%s37090_s19 + $0x2c18] sm:$0x3] }
 0x444   : > { %15596 = vmatmul.mubr.f32.vlgmr.msra.gmra.mrb[0].mxu1 %v454_v10  ;;  %29996 = vmatmul.mubr.f32.vlgmr.msra.gmra.mrb[0].mxu0 %v838_v11  ;;  %v1902_v10 = vld [vmem:[%s37084_s27 + $0x510] sm:$0xff] }
 0x445   : > { %15607 = vmatpush1.xpose.msra.mxu1 %v3202_v57  ;;  %30007 = vmatpush1.xpose.msra.mxu0 %v4834_v58  ;;  %v4876_v57 = vcombine.high %v4868_v51, %v4868_v51  ;;  %v3229_v58 = vcombine.high %v1805_v44, %v1805_v44  ;;  %v1230_v11 = vld [vmem:[%s37090_s19 + $0x2010] sm:$0x3]  ;;  %v4885_v16 = vrot.slane %v1902_v10, %v37096_v5 }
 0x446   : > { %15600 = vmatprep.mubr.f32.mxu1 %v1223_v12  ;;  %30000 = vmatprep.mubr.f32.mxu0 %v1607_v13  ;;  %v1614_v12 = vld [vmem:[%s37090_s19 + $0x2c10] sm:$0x3]  ;;  %v465_v13 = vld [vmem:[%s37090_s19 + $0x828] sm:$0xff] }
 0x447   : > { %15681 = vmatprep.subr.mxu1 %v3211_v14  ;;  %30081 = vmatprep.subr.mxu0 %v4843_v15  ;;  %v3243_v0 = vrot.slane %v3229_v58, %v37096_v5  ;;  %v849_v14 = vld [vmem:[%s37090_s19 + $0x1428] sm:$0xff] }
 0x448   : > { %15601 = vmatmul.mubr.f32.gmra.mrb[2].mxu1 %v1222_v18  ;;  %30001 = vmatmul.mubr.f32.gmra.mrb[2].mxu0 %v1606_v19  ;;  %v848_v18 = vld [vmem:[%s37090_s19 + $0x1420] sm:$0xff]  ;;  %v1233_v19 = vld [vmem:[%s37090_s19 + $0x2028] sm:$0x3] }
 0x449   : > { %15670 = vmatprep.mubr.f32.mxu1 %v457_v20  ;;  %30070 = vmatprep.mubr.f32.mxu0 %v841_v21  ;;  %v3245_v7 = vcombine.high %v3243_v0, %v3243_v0  ;;  %v1617_v20 = vld [vmem:[%s37090_s19 + $0x2c28] sm:$0x3] }
 0x44c   : > { %15671 = vmatmul.mubr.f32.vlgmr.msra.gmra.mrb[0].mxu1 %v456_v24  ;;  %30071 = vmatmul.mubr.f32.vlgmr.msra.gmra.mrb[0].mxu0 %v840_v25  ;;  %v4878_v24 = vcombine.high %v1902_v10, %v1902_v10  ;;  %v1232_v25 = vld [vmem:[%s37090_s19 + $0x2020] sm:$0x3] }
 0x44d   : > { %15682 = vmatpush1.xpose.msra.mxu1 %v3209_v8  ;;  %30082 = vmatpush1.xpose.msra.mxu0 %v4841_v9  ;;  %v4877_v8 = vcombine.high %v4875_v1, %v4875_v1  ;;  %v1806_v9 = vld [vmem:[%s37084_s27 + $0x210] sm:$0xff]  ;;  %v472_v10 = vld [vmem:[%s37090_s19 + $0x860] sm:$0xff] }
 0x44e   : > { %15675 = vmatprep.mubr.f32.mxu1 %v1225_v26  ;;  %30075 = vmatprep.mubr.f32.mxu0 %v1609_v27  ;;  %v3253_v15 = vrot.slane %v1806_v9, %v37096_v5  ;;  %v1616_v26 = vld [vmem:[%s37090_s19 + $0x2c20] sm:$0x3]  ;;  %v467_v27 = vld [vmem:[%s37090_s19 + $0x838] sm:$0xff]  ;;  %v4892_v30 = vrot.slane %v4878_v24, %v37096_v5  ;;  %v474_v24 = vld [vmem:[%s37090_s19 + $0x870] sm:$0xff] }
 0x44f   : > { %15756 = vmatprep.subr.mxu1 %v3227_v28  ;;  %30156 = vmatprep.subr.mxu0 %v4859_v29  ;;  %v851_v28 = vld [vmem:[%s37090_s19 + $0x1438] sm:$0xff] }
 0x450   : > { %15676 = vmatmul.mubr.f32.gmra.mrb[2].mxu1 %v1224_v32  ;;  %30076 = vmatmul.mubr.f32.gmra.mrb[2].mxu0 %v1608_v33  ;;  %v3261_v21 = vcombine.high %v3253_v15, %v3253_v15  ;;  %v850_v32 = vld [vmem:[%s37090_s19 + $0x1430] sm:$0xff]  ;;  %v1235_v33 = vld [vmem:[%s37090_s19 + $0x2038] sm:$0x3] }
 0x451   : > { %15745 = vmatprep.mubr.f32.mxu1 %v459_v34  ;;  %30145 = vmatprep.mubr.f32.mxu0 %v843_v35  ;;  %v1619_v34 = vld [vmem:[%s37090_s19 + $0x2c38] sm:$0x3] }
 0x454   : > { %15746 = vmatmul.mubr.f32.vlgmr.msra.gmra.mrb[0].mxu1 %v458_v38  ;;  %30146 = vmatmul.mubr.f32.vlgmr.msra.gmra.mrb[0].mxu0 %v842_v39  ;;  %v1903_v38 = vld [vmem:[%s37084_s27 + $0x518] sm:$0xff]  ;;  %v1234_v39 = vld [vmem:[%s37090_s19 + $0x2030] sm:$0x3] }
 0x455   : > { %15757 = vmatpush1.xpose.msra.mxu1 %v3219_v22  ;;  %30157 = vmatpush1.xpose.msra.mxu0 %v4851_v23  ;;  %v4893_v22 = vcombine.high %v4885_v16, %v4885_v16  ;;  %v3246_v23 = vcombine.high %v1806_v9, %v1806_v9  ;;  %v4902_v44 = vrot.slane %v1903_v38, %v37096_v5 }
 0x456   : > { %15750 = vmatprep.mubr.f32.mxu1 %v1227_v40  ;;  %30150 = vmatprep.mubr.f32.mxu0 %v1611_v41  ;;  %v1618_v40 = vld [vmem:[%s37090_s19 + $0x2c30] sm:$0x3]  ;;  %v469_v41 = vld [vmem:[%s37090_s19 + $0x848] sm:$0xff] }
 0x457   : > { %15831 = vmatprep.subr.mxu1 %v3228_v42  ;;  %30231 = vmatprep.subr.mxu0 %v4860_v43  ;;  %v3260_v29 = vrot.slane %v3246_v23, %v37096_v5  ;;  %v853_v42 = vld [vmem:[%s37090_s19 + $0x1448] sm:$0xff] }
 0x458   : > { %15751 = vmatmul.mubr.f32.gmra.mrb[2].mxu1 %v1226_v46  ;;  %30151 = vmatmul.mubr.f32.gmra.mrb[2].mxu0 %v1610_v47  ;;  %v852_v46 = vld [vmem:[%s37090_s19 + $0x1440] sm:$0xff]  ;;  %v1237_v47 = vld [vmem:[%s37090_s19 + $0x2048] sm:$0x3] }
 0x459   : > { %15820 = vmatprep.mubr.f32.mxu1 %v461_v48  ;;  %30220 = vmatprep.mubr.f32.mxu0 %v845_v49  ;;  %v3262_v35 = vcombine.high %v3260_v29, %v3260_v29  ;;  %v1621_v48 = vld [vmem:[%s37090_s19 + $0x2c48] sm:$0x3] }
 0x45c   : > { %15821 = vmatmul.mubr.f32.vlgmr.msra.gmra.mrb[0].mxu1 %v460_v52  ;;  %30221 = vmatmul.mubr.f32.vlgmr.msra.gmra.mrb[0].mxu0 %v844_v53  ;;  %v4895_v52 = vcombine.high %v1903_v38, %v1903_v38  ;;  %v1236_v53 = vld [vmem:[%s37090_s19 + $0x2040] sm:$0x3] }
 0x45d   : > { %15832 = vmatpush1.xpose.msra.mxu1 %v3226_v36  ;;  %30232 = vmatpush1.xpose.msra.mxu0 %v4858_v37  ;;  %v4894_v36 = vcombine.high %v4892_v30, %v4892_v30  ;;  %v1807_v37 = vld [vmem:[%s37084_s27 + $0x218] sm:$0xff]  ;;  %v476_v38 = vld [vmem:[%s37090_s19 + $0x880] sm:$0xff] }
 0x45e   : > { %15825 = vmatprep.mubr.f32.mxu1 %v1229_v54  ;;  %30225 = vmatprep.mubr.f32.mxu0 %v1613_v55  ;;  %v3270_v43 = vrot.slane %v1807_v37, %v37096_v5  ;;  %v1620_v54 = vld [vmem:[%s37090_s19 + $0x2c40] sm:$0x3]  ;;  %v471_v55 = vld [vmem:[%s37090_s19 + $0x858] sm:$0xff]  ;;  %v4909_v58 = vrot.slane %v4895_v52, %v37096_v5  ;;  %v478_v52 = vld [vmem:[%s37090_s19 + $0x890] sm:$0xff] }
 0x45f   : > { %15906 = vmatprep.subr.mxu1 %v3244_v56  ;;  %30306 = vmatprep.subr.mxu0 %v4876_v57  ;;  %v855_v56 = vld [vmem:[%s37090_s19 + $0x1458] sm:$0xff] }
 0x460   : > { %15826 = vmatmul.mubr.f32.gmra.mrb[2].mxu1 %v1228_v60  ;;  %30226 = vmatmul.mubr.f32.gmra.mrb[2].mxu0 %v1612_v61  ;;  %v3278_v49 = vcombine.high %v3270_v43, %v3270_v43  ;;  %v854_v60 = vld [vmem:[%s37090_s19 + $0x1450] sm:$0xff]  ;;  %v1239_v61 = vld [vmem:[%s37090_s19 + $0x2058] sm:$0x3] }
 0x461   : > { %15895 = vmatprep.mubr.f32.mxu1 %v463_v62  ;;  %30295 = vmatprep.mubr.f32.mxu0 %v847_v63  ;;  %v1623_v62 = vld [vmem:[%s37090_s19 + $0x2c58] sm:$0x3] }
 0x464   : > { %15896 = vmatmul.mubr.f32.vlgmr.msra.gmra.mrb[0].mxu1 %v462_v2  ;;  %30296 = vmatmul.mubr.f32.vlgmr.msra.gmra.mrb[0].mxu0 %v846_v3  ;;  %v1904_v2 = vld [vmem:[%s37084_s27 + $0x520] sm:$0xff]  ;;  %v1238_v3 = vld [vmem:[%s37090_s19 + $0x2050] sm:$0x3] }
 0x465   : > { %15907 = vmatpush1.xpose.msra.mxu1 %v3236_v50  ;;  %30307 = vmatpush1.xpose.msra.mxu0 %v4868_v51  ;;  %v4910_v50 = vcombine.high %v4902_v44, %v4902_v44  ;;  %v3263_v51 = vcombine.high %v1807_v37, %v1807_v37  ;;  %v4919_v9 = vrot.slane %v1904_v2, %v37096_v5 }
 0x466   : > { %15900 = vmatprep.mubr.f32.mxu1 %v1231_v4  ;;  %30300 = vmatprep.mubr.f32.mxu0 %v1615_v6  ;;  %v1622_v4 = vld [vmem:[%s37090_s19 + $0x2c50] sm:$0x3]  ;;  %v473_v6 = vld [vmem:[%s37090_s19 + $0x868] sm:$0xff] }
 0x467   : > { %15981 = vmatprep.subr.mxu1 %v3245_v7  ;;  %30381 = vmatprep.subr.mxu0 %v4877_v8  ;;  %v3277_v57 = vrot.slane %v3263_v51, %v37096_v5  ;;  %v857_v7 = vld [vmem:[%s37090_s19 + $0x1468] sm:$0xff] }
 0x468   : > { %15901 = vmatmul.mubr.f32.gmra.mrb[2].mxu1 %v1230_v11  ;;  %30301 = vmatmul.mubr.f32.gmra.mrb[2].mxu0 %v1614_v12  ;;  %v856_v11 = vld [vmem:[%s37090_s19 + $0x1460] sm:$0xff]  ;;  %v1241_v12 = vld [vmem:[%s37090_s19 + $0x2068] sm:$0x3] }
 0x469   : > { %15970 = vmatprep.mubr.f32.mxu1 %v465_v13  ;;  %30370 = vmatprep.mubr.f32.mxu0 %v849_v14  ;;  %v3279_v63 = vcombine.high %v3277_v57, %v3277_v57  ;;  %v1625_v13 = vld [vmem:[%s37090_s19 + $0x2c68] sm:$0x3] }
 0x46c   : > { %15971 = vmatmul.mubr.f32.vlgmr.msra.gmra.mrb[0].mxu1 %v464_v17  ;;  %30371 = vmatmul.mubr.f32.vlgmr.msra.gmra.mrb[0].mxu0 %v848_v18  ;;  %v4912_v17 = vcombine.high %v1904_v2, %v1904_v2  ;;  %v1240_v18 = vld [vmem:[%s37090_s19 + $0x2060] sm:$0x3] }
 0x46d   : > { %15982 = vmatpush1.xpose.msra.mxu1 %v3243_v0  ;;  %30382 = vmatpush1.xpose.msra.mxu0 %v4875_v1  ;;  %v4911_v0 = vcombine.high %v4909_v58, %v4909_v58  ;;  %v1808_v1 = vld [vmem:[%s37084_s27 + $0x220] sm:$0xff] }
 0x46e   : > { %15975 = vmatprep.mubr.f32.mxu1 %v1233_v19  ;;  %30375 = vmatprep.mubr.f32.mxu0 %v1617_v20  ;;  %v3287_v8 = vrot.slane %v1808_v1, %v37096_v5  ;;  %v1624_v19 = vld [vmem:[%s37090_s19 + $0x2c60] sm:$0x3]  ;;  %v475_v20 = vld [vmem:[%s37090_s19 + $0x878] sm:$0xff]  ;;  %v4926_v23 = vrot.slane %v4912_v17, %v37096_v5  ;;  %v482_v17 = vld [vmem:[%s37090_s19 + $0x8b0] sm:$0xff] }
 0x46f   : > { %16056 = vmatprep.subr.mxu1 %v3261_v21  ;;  %30456 = vmatprep.subr.mxu0 %v4893_v22  ;;  %v859_v21 = vld [vmem:[%s37090_s19 + $0x1478] sm:$0xff]  ;;  %v480_v2 = vld [vmem:[%s37090_s19 + $0x8a0] sm:$0xff] }
 0x470   : > { %15976 = vmatmul.mubr.f32.gmra.mrb[2].mxu1 %v1232_v25  ;;  %30376 = vmatmul.mubr.f32.gmra.mrb[2].mxu0 %v1616_v26  ;;  %v3295_v14 = vcombine.high %v3287_v8, %v3287_v8  ;;  %v858_v25 = vld [vmem:[%s37090_s19 + $0x1470] sm:$0xff]  ;;  %v1243_v26 = vld [vmem:[%s37090_s19 + $0x2078] sm:$0x3] }
 0x471   : > { %16045 = vmatprep.mubr.f32.mxu1 %v467_v27  ;;  %30445 = vmatprep.mubr.f32.mxu0 %v851_v28  ;;  %v1627_v27 = vld [vmem:[%s37090_s19 + $0x2c78] sm:$0x3] }
 0x474   : > { %16046 = vmatmul.mubr.f32.vlgmr.msra.gmra.mrb[0].mxu1 %v466_v31  ;;  %30446 = vmatmul.mubr.f32.vlgmr.msra.gmra.mrb[0].mxu0 %v850_v32  ;;  %v1905_v31 = vld [vmem:[%s37084_s27 + $0x528] sm:$0xff]  ;;  %v1242_v32 = vld [vmem:[%s37090_s19 + $0x2070] sm:$0x3] }
 0x475   : > { %16057 = vmatpush1.xpose.msra.mxu1 %v3253_v15  ;;  %30457 = vmatpush1.xpose.msra.mxu0 %v4885_v16  ;;  %v4927_v15 = vcombine.high %v4919_v9, %v4919_v9  ;;  %v3280_v16 = vcombine.high %v1808_v1, %v1808_v1  ;;  %v4936_v37 = vrot.slane %v1905_v31, %v37096_v5 }
 0x476   : > { %16050 = vmatprep.mubr.f32.mxu1 %v1235_v33  ;;  %30450 = vmatprep.mubr.f32.mxu0 %v1619_v34  ;;  %v1626_v33 = vld [vmem:[%s37090_s19 + $0x2c70] sm:$0x3]  ;;  %v477_v34 = vld [vmem:[%s37090_s19 + $0x888] sm:$0xff] }
 0x477   : > { %16131 = vmatprep.subr.mxu1 %v3262_v35  ;;  %30531 = vmatprep.subr.mxu0 %v4894_v36  ;;  %v3294_v22 = vrot.slane %v3280_v16, %v37096_v5  ;;  %v861_v35 = vld [vmem:[%s37090_s19 + $0x1488] sm:$0xff] }
 0x478   : > { %16051 = vmatmul.mubr.f32.gmra.mrb[2].mxu1 %v1234_v39  ;;  %30451 = vmatmul.mubr.f32.gmra.mrb[2].mxu0 %v1618_v40  ;;  %v860_v39 = vld [vmem:[%s37090_s19 + $0x1480] sm:$0xff]  ;;  %v1245_v40 = vld [vmem:[%s37090_s19 + $0x2088] sm:$0x3] }
 0x479   : > { %16120 = vmatprep.mubr.f32.mxu1 %v469_v41  ;;  %30520 = vmatprep.mubr.f32.mxu0 %v853_v42  ;;  %v3296_v28 = vcombine.high %v3294_v22, %v3294_v22  ;;  %v1629_v41 = vld [vmem:[%s37090_s19 + $0x2c88] sm:$0x3] }
 0x47c   : > { %16121 = vmatmul.mubr.f32.vlgmr.msra.gmra.mrb[0].mxu1 %v468_v45  ;;  %30521 = vmatmul.mubr.f32.vlgmr.msra.gmra.mrb[0].mxu0 %v852_v46  ;;  %v4929_v45 = vcombine.high %v1905_v31, %v1905_v31  ;;  %v1244_v46 = vld [vmem:[%s37090_s19 + $0x2080] sm:$0x3] }
 0x47d   : > { %16132 = vmatpush1.xpose.msra.mxu1 %v3260_v29  ;;  %30532 = vmatpush1.xpose.msra.mxu0 %v4892_v30  ;;  %v4928_v29 = vcombine.high %v4926_v23, %v4926_v23  ;;  %v1809_v30 = vld [vmem:[%s37084_s27 + $0x228] sm:$0xff]  ;;  %v484_v31 = vld [vmem:[%s37090_s19 + $0x8c0] sm:$0xff] }
 0x47e   : > { %16125 = vmatprep.mubr.f32.mxu1 %v1237_v47  ;;  %30525 = vmatprep.mubr.f32.mxu0 %v1621_v48  ;;  %v3304_v36 = vrot.slane %v1809_v30, %v37096_v5  ;;  %v1628_v47 = vld [vmem:[%s37090_s19 + $0x2c80] sm:$0x3]  ;;  %v479_v48 = vld [vmem:[%s37090_s19 + $0x898] sm:$0xff]  ;;  %v4943_v51 = vrot.slane %v4929_v45, %v37096_v5  ;;  %v486_v45 = vld [vmem:[%s37090_s19 + $0x8d0] sm:$0xff] }
 0x47f   : > { %16206 = vmatprep.subr.mxu1 %v3278_v49  ;;  %30606 = vmatprep.subr.mxu0 %v4910_v50  ;;  %v863_v49 = vld [vmem:[%s37090_s19 + $0x1498] sm:$0xff] }
 0x480   : > { %16126 = vmatmul.mubr.f32.gmra.mrb[2].mxu1 %v1236_v53  ;;  %30526 = vmatmul.mubr.f32.gmra.mrb[2].mxu0 %v1620_v54  ;;  %v3312_v42 = vcombine.high %v3304_v36, %v3304_v36  ;;  %v862_v53 = vld [vmem:[%s37090_s19 + $0x1490] sm:$0xff]  ;;  %v1247_v54 = vld [vmem:[%s37090_s19 + $0x2098] sm:$0x3] }
 0x481   : > { %16195 = vmatprep.mubr.f32.mxu1 %v471_v55  ;;  %30595 = vmatprep.mubr.f32.mxu0 %v855_v56  ;;  %v1631_v55 = vld [vmem:[%s37090_s19 + $0x2c98] sm:$0x3] }
 0x484   : > { %16196 = vmatmul.mubr.f32.vlgmr.msra.gmra.mrb[0].mxu1 %v470_v59  ;;  %30596 = vmatmul.mubr.f32.vlgmr.msra.gmra.mrb[0].mxu0 %v854_v60  ;;  %v1906_v59 = vld [vmem:[%s37084_s27 + $0x530] sm:$0xff] }
 0x485   : > { %16207 = vmatpush1.xpose.msra.mxu1 %v3270_v43  ;;  %30607 = vmatpush1.xpose.msra.mxu0 %v4902_v44  ;;  %v4944_v43 = vcombine.high %v4936_v37, %v4936_v37  ;;  %v3297_v44 = vcombine.high %v1809_v30, %v1809_v30  ;;  %v1246_v60 = vld [vmem:[%s37090_s19 + $0x2090] sm:$0x3]  ;;  %v4953_v1 = vrot.slane %v1906_v59, %v37096_v5 }
 0x486   : > { %16200 = vmatprep.mubr.f32.mxu1 %v1239_v61  ;;  %30600 = vmatprep.mubr.f32.mxu0 %v1623_v62  ;;  %v1630_v61 = vld [vmem:[%s37090_s19 + $0x2c90] sm:$0x3]  ;;  %v481_v62 = vld [vmem:[%s37090_s19 + $0x8a8] sm:$0xff] }
 0x487   : > { %16281 = vmatprep.subr.mxu1 %v3279_v63  ;;  %30681 = vmatprep.subr.mxu0 %v4911_v0  ;;  %v3311_v50 = vrot.slane %v3297_v44, %v37096_v5  ;;  %v865_v63 = vld [vmem:[%s37090_s19 + $0x14a8] sm:$0xff] }
 0x488   : > { %16201 = vmatmul.mubr.f32.gmra.mrb[2].mxu1 %v1238_v3  ;;  %30601 = vmatmul.mubr.f32.gmra.mrb[2].mxu0 %v1622_v4  ;;  %v864_v3 = vld [vmem:[%s37090_s19 + $0x14a0] sm:$0xff]  ;;  %v1249_v4 = vld [vmem:[%s37090_s19 + $0x20a8] sm:$0x3] }
 0x489   : > { %16270 = vmatprep.mubr.f32.mxu1 %v473_v6  ;;  %30670 = vmatprep.mubr.f32.mxu0 %v857_v7  ;;  %v3313_v56 = vcombine.high %v3311_v50, %v3311_v50  ;;  %v1633_v6 = vld [vmem:[%s37090_s19 + $0x2ca8] sm:$0x3] }
 0x48c   : > { %16271 = vmatmul.mubr.f32.vlgmr.msra.gmra.mrb[0].mxu1 %v472_v10  ;;  %30671 = vmatmul.mubr.f32.vlgmr.msra.gmra.mrb[0].mxu0 %v856_v11  ;;  %v4946_v10 = vcombine.high %v1906_v59, %v1906_v59  ;;  %v1248_v11 = vld [vmem:[%s37090_s19 + $0x20a0] sm:$0x3] }
 0x48d   : > { %16282 = vmatpush1.xpose.msra.mxu1 %v3277_v57  ;;  %30682 = vmatpush1.xpose.msra.mxu0 %v4909_v58  ;;  %v4945_v57 = vcombine.high %v4943_v51, %v4943_v51  ;;  %v1810_v58 = vld [vmem:[%s37084_s27 + $0x230] sm:$0xff]  ;;  %v488_v59 = vld [vmem:[%s37090_s19 + $0x8e0] sm:$0xff] }
 0x48e   : > { %16275 = vmatprep.mubr.f32.mxu1 %v1241_v12  ;;  %30675 = vmatprep.mubr.f32.mxu0 %v1625_v13  ;;  %v3321_v0 = vrot.slane %v1810_v58, %v37096_v5  ;;  %v1632_v12 = vld [vmem:[%s37090_s19 + $0x2ca0] sm:$0x3]  ;;  %v483_v13 = vld [vmem:[%s37090_s19 + $0x8b8] sm:$0xff]  ;;  %v4960_v16 = vrot.slane %v4946_v10, %v37096_v5  ;;  %v490_v10 = vld [vmem:[%s37090_s19 + $0x8f0] sm:$0xff] }
 0x48f   : > { %16356 = vmatprep.subr.mxu1 %v3295_v14  ;;  %30756 = vmatprep.subr.mxu0 %v4927_v15  ;;  %v867_v14 = vld [vmem:[%s37090_s19 + $0x14b8] sm:$0xff] }
 0x490   : > { %16276 = vmatmul.mubr.f32.gmra.mrb[2].mxu1 %v1240_v18  ;;  %30676 = vmatmul.mubr.f32.gmra.mrb[2].mxu0 %v1624_v19  ;;  %v3329_v7 = vcombine.high %v3321_v0, %v3321_v0  ;;  %v866_v18 = vld [vmem:[%s37090_s19 + $0x14b0] sm:$0xff]  ;;  %v1251_v19 = vld [vmem:[%s37090_s19 + $0x20b8] sm:$0x3] }
 0x491   : > { %16345 = vmatprep.mubr.f32.mxu1 %v475_v20  ;;  %30745 = vmatprep.mubr.f32.mxu0 %v859_v21  ;;  %v1635_v20 = vld [vmem:[%s37090_s19 + $0x2cb8] sm:$0x3] }
 0x494   : > { %16346 = vmatmul.mubr.f32.vlgmr.msra.gmra.mrb[0].mxu1 %v474_v24  ;;  %30746 = vmatmul.mubr.f32.vlgmr.msra.gmra.mrb[0].mxu0 %v858_v25  ;;  %v1907_v24 = vld [vmem:[%s37084_s27 + $0x538] sm:$0xff]  ;;  %v1250_v25 = vld [vmem:[%s37090_s19 + $0x20b0] sm:$0x3] }
 0x495   : > { %16357 = vmatpush1.xpose.msra.mxu1 %v3287_v8  ;;  %30757 = vmatpush1.xpose.msra.mxu0 %v4919_v9  ;;  %v4961_v8 = vcombine.high %v4953_v1, %v4953_v1  ;;  %v3314_v9 = vcombine.high %v1810_v58, %v1810_v58  ;;  %v4970_v30 = vrot.slane %v1907_v24, %v37096_v5 }
 0x496   : > { %16350 = vmatprep.mubr.f32.mxu1 %v1243_v26  ;;  %30750 = vmatprep.mubr.f32.mxu0 %v1627_v27  ;;  %v1634_v26 = vld [vmem:[%s37090_s19 + $0x2cb0] sm:$0x3]  ;;  %v485_v27 = vld [vmem:[%s37090_s19 + $0x8c8] sm:$0xff] }
 0x497   : > { %16431 = vmatprep.subr.mxu1 %v3296_v28  ;;  %30831 = vmatprep.subr.mxu0 %v4928_v29  ;;  %v3328_v15 = vrot.slane %v3314_v9, %v37096_v5  ;;  %v869_v28 = vld [vmem:[%s37090_s19 + $0x14c8] sm:$0xff] }
 0x498   : > { %16351 = vmatmul.mubr.f32.gmra.mrb[2].mxu1 %v1242_v32  ;;  %30751 = vmatmul.mubr.f32.gmra.mrb[2].mxu0 %v1626_v33  ;;  %v868_v32 = vld [vmem:[%s37090_s19 + $0x14c0] sm:$0xff]  ;;  %v1253_v33 = vld [vmem:[%s37090_s19 + $0x20c8] sm:$0x3] }
 0x499   : > { %16420 = vmatprep.mubr.f32.mxu1 %v477_v34  ;;  %30820 = vmatprep.mubr.f32.mxu0 %v861_v35  ;;  %v3330_v21 = vcombine.high %v3328_v15, %v3328_v15  ;;  %v1637_v34 = vld [vmem:[%s37090_s19 + $0x2cc8] sm:$0x3] }
 0x49c   : > { %16421 = vmatmul.mubr.f32.vlgmr.msra.gmra.mrb[0].mxu1 %v476_v38  ;;  %30821 = vmatmul.mubr.f32.vlgmr.msra.gmra.mrb[0].mxu0 %v860_v39  ;;  %v4963_v38 = vcombine.high %v1907_v24, %v1907_v24  ;;  %v1252_v39 = vld [vmem:[%s37090_s19 + $0x20c0] sm:$0x3] }
 0x49d   : > { %16432 = vmatpush1.xpose.msra.mxu1 %v3294_v22  ;;  %30832 = vmatpush1.xpose.msra.mxu0 %v4926_v23  ;;  %v4962_v22 = vcombine.high %v4960_v16, %v4960_v16  ;;  %v1811_v23 = vld [vmem:[%s37084_s27 + $0x238] sm:$0xff]  ;;  %v492_v24 = vld [vmem:[%s37090_s19 + $0x900] sm:$0xff] }
 0x49e   : > { %16425 = vmatprep.mubr.f32.mxu1 %v1245_v40  ;;  %30825 = vmatprep.mubr.f32.mxu0 %v1629_v41  ;;  %v3338_v29 = vrot.slane %v1811_v23, %v37096_v5  ;;  %v1636_v40 = vld [vmem:[%s37090_s19 + $0x2cc0] sm:$0x3]  ;;  %v487_v41 = vld [vmem:[%s37090_s19 + $0x8d8] sm:$0xff]  ;;  %v4977_v44 = vrot.slane %v4963_v38, %v37096_v5  ;;  %v494_v38 = vld [vmem:[%s37090_s19 + $0x910] sm:$0xff] }
 0x49f   : > { %16506 = vmatprep.subr.mxu1 %v3312_v42  ;;  %30906 = vmatprep.subr.mxu0 %v4944_v43  ;;  %v871_v42 = vld [vmem:[%s37090_s19 + $0x14d8] sm:$0xff] }
 0x4a0   : > { %16426 = vmatmul.mubr.f32.gmra.mrb[2].mxu1 %v1244_v46  ;;  %30826 = vmatmul.mubr.f32.gmra.mrb[2].mxu0 %v1628_v47  ;;  %v3346_v35 = vcombine.high %v3338_v29, %v3338_v29  ;;  %v870_v46 = vld [vmem:[%s37090_s19 + $0x14d0] sm:$0xff]  ;;  %v1255_v47 = vld [vmem:[%s37090_s19 + $0x20d8] sm:$0x3] }
 0x4a1   : > { %16495 = vmatprep.mubr.f32.mxu1 %v479_v48  ;;  %30895 = vmatprep.mubr.f32.mxu0 %v863_v49  ;;  %v1639_v48 = vld [vmem:[%s37090_s19 + $0x2cd8] sm:$0x3] }
 0x4a4   : > { %16496 = vmatmul.mubr.f32.vlgmr.msra.gmra.mrb[0].mxu1 %v478_v52  ;;  %30896 = vmatmul.mubr.f32.vlgmr.msra.gmra.mrb[0].mxu0 %v862_v53  ;;  %v1908_v52 = vld [vmem:[%s37084_s27 + $0x540] sm:$0xff]  ;;  %v1254_v53 = vld [vmem:[%s37090_s19 + $0x20d0] sm:$0x3] }
 0x4a5   : > { %16507 = vmatpush1.xpose.msra.mxu1 %v3304_v36  ;;  %30907 = vmatpush1.xpose.msra.mxu0 %v4936_v37  ;;  %v4978_v36 = vcombine.high %v4970_v30, %v4970_v30  ;;  %v3331_v37 = vcombine.high %v1811_v23, %v1811_v23  ;;  %v4987_v58 = vrot.slane %v1908_v52, %v37096_v5 }
 0x4a6   : > { %16500 = vmatprep.mubr.f32.mxu1 %v1247_v54  ;;  %30900 = vmatprep.mubr.f32.mxu0 %v1631_v55  ;;  %v1638_v54 = vld [vmem:[%s37090_s19 + $0x2cd0] sm:$0x3]  ;;  %v489_v55 = vld [vmem:[%s37090_s19 + $0x8e8] sm:$0xff] }
 0x4a7   : > { %16581 = vmatprep.subr.mxu1 %v3313_v56  ;;  %30981 = vmatprep.subr.mxu0 %v4945_v57  ;;  %v3345_v43 = vrot.slane %v3331_v37, %v37096_v5  ;;  %v873_v56 = vld [vmem:[%s37090_s19 + $0x14e8] sm:$0xff] }
 0x4a8   : > { %16501 = vmatmul.mubr.f32.gmra.mrb[2].mxu1 %v1246_v60  ;;  %30901 = vmatmul.mubr.f32.gmra.mrb[2].mxu0 %v1630_v61  ;;  %v872_v60 = vld [vmem:[%s37090_s19 + $0x14e0] sm:$0xff]  ;;  %v1257_v61 = vld [vmem:[%s37090_s19 + $0x20e8] sm:$0x3] }
 0x4a9   : > { %16570 = vmatprep.mubr.f32.mxu1 %v481_v62  ;;  %30970 = vmatprep.mubr.f32.mxu0 %v865_v63  ;;  %v3347_v49 = vcombine.high %v3345_v43, %v3345_v43  ;;  %v1641_v62 = vld [vmem:[%s37090_s19 + $0x2ce8] sm:$0x3] }
 0x4ac   : > { %16571 = vmatmul.mubr.f32.vlgmr.msra.gmra.mrb[0].mxu1 %v480_v2  ;;  %30971 = vmatmul.mubr.f32.vlgmr.msra.gmra.mrb[0].mxu0 %v864_v3  ;;  %v4980_v2 = vcombine.high %v1908_v52, %v1908_v52  ;;  %v1256_v3 = vld [vmem:[%s37090_s19 + $0x20e0] sm:$0x3] }
 0x4ad   : > { %16582 = vmatpush1.xpose.msra.mxu1 %v3311_v50  ;;  %30982 = vmatpush1.xpose.msra.mxu0 %v4943_v51  ;;  %v4979_v50 = vcombine.high %v4977_v44, %v4977_v44  ;;  %v1812_v51 = vld [vmem:[%s37084_s27 + $0x240] sm:$0xff] }
 0x4ae   : > { %16575 = vmatprep.mubr.f32.mxu1 %v1249_v4  ;;  %30975 = vmatprep.mubr.f32.mxu0 %v1633_v6  ;;  %v3355_v57 = vrot.slane %v1812_v51, %v37096_v5  ;;  %v1640_v4 = vld [vmem:[%s37090_s19 + $0x2ce0] sm:$0x3]  ;;  %v491_v6 = vld [vmem:[%s37090_s19 + $0x8f8] sm:$0xff]  ;;  %v4994_v9 = vrot.slane %v4980_v2, %v37096_v5  ;;  %v498_v2 = vld [vmem:[%s37090_s19 + $0x930] sm:$0xff] }
 0x4af   : > { %16656 = vmatprep.subr.mxu1 %v3329_v7  ;;  %31056 = vmatprep.subr.mxu0 %v4961_v8  ;;  %v875_v7 = vld [vmem:[%s37090_s19 + $0x14f8] sm:$0xff]  ;;  %v496_v52 = vld [vmem:[%s37090_s19 + $0x920] sm:$0xff] }
 0x4b0   : > { %16576 = vmatmul.mubr.f32.gmra.mrb[2].mxu1 %v1248_v11  ;;  %30976 = vmatmul.mubr.f32.gmra.mrb[2].mxu0 %v1632_v12  ;;  %v3363_v63 = vcombine.high %v3355_v57, %v3355_v57  ;;  %v874_v11 = vld [vmem:[%s37090_s19 + $0x14f0] sm:$0xff]  ;;  %v1259_v12 = vld [vmem:[%s37090_s19 + $0x20f8] sm:$0x3] }
 0x4b1   : > { %16645 = vmatprep.mubr.f32.mxu1 %v483_v13  ;;  %31045 = vmatprep.mubr.f32.mxu0 %v867_v14  ;;  %v1643_v13 = vld [vmem:[%s37090_s19 + $0x2cf8] sm:$0x3] }
 0x4b4   : > { %16646 = vmatmul.mubr.f32.vlgmr.msra.gmra.mrb[0].mxu1 %v482_v17  ;;  %31046 = vmatmul.mubr.f32.vlgmr.msra.gmra.mrb[0].mxu0 %v866_v18  ;;  %v1909_v17 = vld [vmem:[%s37084_s27 + $0x548] sm:$0xff]  ;;  %v1258_v18 = vld [vmem:[%s37090_s19 + $0x20f0] sm:$0x3] }
 0x4b5   : > { %16657 = vmatpush1.xpose.msra.mxu1 %v3321_v0  ;;  %31057 = vmatpush1.xpose.msra.mxu0 %v4953_v1  ;;  %v4995_v0 = vcombine.high %v4987_v58, %v4987_v58  ;;  %v3348_v1 = vcombine.high %v1812_v51, %v1812_v51  ;;  %v5004_v23 = vrot.slane %v1909_v17, %v37096_v5 }
 0x4b6   : > { %16650 = vmatprep.mubr.f32.mxu1 %v1251_v19  ;;  %31050 = vmatprep.mubr.f32.mxu0 %v1635_v20  ;;  %v1642_v19 = vld [vmem:[%s37090_s19 + $0x2cf0] sm:$0x3]  ;;  %v493_v20 = vld [vmem:[%s37090_s19 + $0x908] sm:$0xff] }
 0x4b7   : > { %16731 = vmatprep.subr.mxu1 %v3330_v21  ;;  %31131 = vmatprep.subr.mxu0 %v4962_v22  ;;  %v3362_v8 = vrot.slane %v3348_v1, %v37096_v5  ;;  %v877_v21 = vld [vmem:[%s37090_s19 + $0x1508] sm:$0xff] }
 0x4b8   : > { %16651 = vmatmul.mubr.f32.gmra.mrb[2].mxu1 %v1250_v25  ;;  %31051 = vmatmul.mubr.f32.gmra.mrb[2].mxu0 %v1634_v26  ;;  %v876_v25 = vld [vmem:[%s37090_s19 + $0x1500] sm:$0xff]  ;;  %v1261_v26 = vld [vmem:[%s37090_s19 + $0x2108] sm:$0x3] }
 0x4b9   : > { %16720 = vmatprep.mubr.f32.mxu1 %v485_v27  ;;  %31120 = vmatprep.mubr.f32.mxu0 %v869_v28  ;;  %v3364_v14 = vcombine.high %v3362_v8, %v3362_v8  ;;  %v1645_v27 = vld [vmem:[%s37090_s19 + $0x2d08] sm:$0x3] }
 0x4bc   : > { %16721 = vmatmul.mubr.f32.vlgmr.msra.gmra.mrb[0].mxu1 %v484_v31  ;;  %31121 = vmatmul.mubr.f32.vlgmr.msra.gmra.mrb[0].mxu0 %v868_v32  ;;  %v4997_v31 = vcombine.high %v1909_v17, %v1909_v17  ;;  %v1260_v32 = vld [vmem:[%s37090_s19 + $0x2100] sm:$0x3] }
 0x4bd   : > { %16732 = vmatpush1.xpose.msra.mxu1 %v3328_v15  ;;  %31132 = vmatpush1.xpose.msra.mxu0 %v4960_v16  ;;  %v4996_v15 = vcombine.high %v4994_v9, %v4994_v9  ;;  %v1813_v16 = vld [vmem:[%s37084_s27 + $0x248] sm:$0xff]  ;;  %v500_v17 = vld [vmem:[%s37090_s19 + $0x940] sm:$0xff] }
 0x4be   : > { %16725 = vmatprep.mubr.f32.mxu1 %v1253_v33  ;;  %31125 = vmatprep.mubr.f32.mxu0 %v1637_v34  ;;  %v3372_v22 = vrot.slane %v1813_v16, %v37096_v5  ;;  %v1644_v33 = vld [vmem:[%s37090_s19 + $0x2d00] sm:$0x3]  ;;  %v495_v34 = vld [vmem:[%s37090_s19 + $0x918] sm:$0xff]  ;;  %v5011_v37 = vrot.slane %v4997_v31, %v37096_v5  ;;  %v502_v31 = vld [vmem:[%s37090_s19 + $0x950] sm:$0xff] }
 0x4bf   : > { %16806 = vmatprep.subr.mxu1 %v3346_v35  ;;  %31206 = vmatprep.subr.mxu0 %v4978_v36  ;;  %v879_v35 = vld [vmem:[%s37090_s19 + $0x1518] sm:$0xff] }
 0x4c0   : > { %16726 = vmatmul.mubr.f32.gmra.mrb[2].mxu1 %v1252_v39  ;;  %31126 = vmatmul.mubr.f32.gmra.mrb[2].mxu0 %v1636_v40  ;;  %v3380_v28 = vcombine.high %v3372_v22, %v3372_v22  ;;  %v878_v39 = vld [vmem:[%s37090_s19 + $0x1510] sm:$0xff]  ;;  %v1263_v40 = vld [vmem:[%s37090_s19 + $0x2118] sm:$0x3] }
 0x4c1   : > { %16795 = vmatprep.mubr.f32.mxu1 %v487_v41  ;;  %31195 = vmatprep.mubr.f32.mxu0 %v871_v42  ;;  %v1647_v41 = vld [vmem:[%s37090_s19 + $0x2d18] sm:$0x3] }
 0x4c4   : > { %16796 = vmatmul.mubr.f32.vlgmr.msra.gmra.mrb[0].mxu1 %v486_v45  ;;  %31196 = vmatmul.mubr.f32.vlgmr.msra.gmra.mrb[0].mxu0 %v870_v46  ;;  %v1910_v45 = vld [vmem:[%s37084_s27 + $0x550] sm:$0xff] }
 0x4c5   : > { %16807 = vmatpush1.xpose.msra.mxu1 %v3338_v29  ;;  %31207 = vmatpush1.xpose.msra.mxu0 %v4970_v30  ;;  %v5012_v29 = vcombine.high %v5004_v23, %v5004_v23  ;;  %v3365_v30 = vcombine.high %v1813_v16, %v1813_v16  ;;  %v1262_v46 = vld [vmem:[%s37090_s19 + $0x2110] sm:$0x3]  ;;  %v5021_v51 = vrot.slane %v1910_v45, %v37096_v5 }
 0x4c6   : > { %16800 = vmatprep.mubr.f32.mxu1 %v1255_v47  ;;  %31200 = vmatprep.mubr.f32.mxu0 %v1639_v48  ;;  %v1646_v47 = vld [vmem:[%s37090_s19 + $0x2d10] sm:$0x3]  ;;  %v497_v48 = vld [vmem:[%s37090_s19 + $0x928] sm:$0xff] }
 0x4c7   : > { %16881 = vmatprep.subr.mxu1 %v3347_v49  ;;  %31281 = vmatprep.subr.mxu0 %v4979_v50  ;;  %v3379_v36 = vrot.slane %v3365_v30, %v37096_v5  ;;  %v881_v49 = vld [vmem:[%s37090_s19 + $0x1528] sm:$0xff] }
 0x4c8   : > { %16801 = vmatmul.mubr.f32.gmra.mrb[2].mxu1 %v1254_v53  ;;  %31201 = vmatmul.mubr.f32.gmra.mrb[2].mxu0 %v1638_v54  ;;  %v880_v53 = vld [vmem:[%s37090_s19 + $0x1520] sm:$0xff]  ;;  %v1265_v54 = vld [vmem:[%s37090_s19 + $0x2128] sm:$0x3] }
 0x4c9   : > { %16870 = vmatprep.mubr.f32.mxu1 %v489_v55  ;;  %31270 = vmatprep.mubr.f32.mxu0 %v873_v56  ;;  %v3381_v42 = vcombine.high %v3379_v36, %v3379_v36  ;;  %v1649_v55 = vld [vmem:[%s37090_s19 + $0x2d28] sm:$0x3] }
 0x4cc   : > { %16871 = vmatmul.mubr.f32.vlgmr.msra.gmra.mrb[0].mxu1 %v488_v59  ;;  %31271 = vmatmul.mubr.f32.vlgmr.msra.gmra.mrb[0].mxu0 %v872_v60  ;;  %v5014_v59 = vcombine.high %v1910_v45, %v1910_v45  ;;  %v1264_v60 = vld [vmem:[%s37090_s19 + $0x2120] sm:$0x3] }
 0x4cd   : > { %16882 = vmatpush1.xpose.msra.mxu1 %v3345_v43  ;;  %31282 = vmatpush1.xpose.msra.mxu0 %v4977_v44  ;;  %v5013_v43 = vcombine.high %v5011_v37, %v5011_v37  ;;  %v1814_v44 = vld [vmem:[%s37084_s27 + $0x250] sm:$0xff]  ;;  %v504_v45 = vld [vmem:[%s37090_s19 + $0x960] sm:$0xff] }
 0x4ce   : > { %16875 = vmatprep.mubr.f32.mxu1 %v1257_v61  ;;  %31275 = vmatprep.mubr.f32.mxu0 %v1641_v62  ;;  %v3389_v50 = vrot.slane %v1814_v44, %v37096_v5  ;;  %v1648_v61 = vld [vmem:[%s37090_s19 + $0x2d20] sm:$0x3]  ;;  %v499_v62 = vld [vmem:[%s37090_s19 + $0x938] sm:$0xff]  ;;  %v5028_v1 = vrot.slane %v5014_v59, %v37096_v5  ;;  %v506_v59 = vld [vmem:[%s37090_s19 + $0x970] sm:$0xff] }
 0x4cf   : > { %16956 = vmatprep.subr.mxu1 %v3363_v63  ;;  %31356 = vmatprep.subr.mxu0 %v4995_v0  ;;  %v883_v63 = vld [vmem:[%s37090_s19 + $0x1538] sm:$0xff] }
 0x4d0   : > { %16876 = vmatmul.mubr.f32.gmra.mrb[2].mxu1 %v1256_v3  ;;  %31276 = vmatmul.mubr.f32.gmra.mrb[2].mxu0 %v1640_v4  ;;  %v3397_v56 = vcombine.high %v3389_v50, %v3389_v50  ;;  %v882_v3 = vld [vmem:[%s37090_s19 + $0x1530] sm:$0xff]  ;;  %v1267_v4 = vld [vmem:[%s37090_s19 + $0x2138] sm:$0x3] }
 0x4d1   : > { %16945 = vmatprep.mubr.f32.mxu1 %v491_v6  ;;  %31345 = vmatprep.mubr.f32.mxu0 %v875_v7  ;;  %v1651_v6 = vld [vmem:[%s37090_s19 + $0x2d38] sm:$0x3] }
 0x4d4   : > { %16946 = vmatmul.mubr.f32.vlgmr.msra.gmra.mrb[0].mxu1 %v490_v10  ;;  %31346 = vmatmul.mubr.f32.vlgmr.msra.gmra.mrb[0].mxu0 %v874_v11  ;;  %v1911_v10 = vld [vmem:[%s37084_s27 + $0x558] sm:$0xff]  ;;  %v1266_v11 = vld [vmem:[%s37090_s19 + $0x2130] sm:$0x3] }
 0x4d5   : > { %16957 = vmatpush1.xpose.msra.mxu1 %v3355_v57  ;;  %31357 = vmatpush1.xpose.msra.mxu0 %v4987_v58  ;;  %v5029_v57 = vcombine.high %v5021_v51, %v5021_v51  ;;  %v3382_v58 = vcombine.high %v1814_v44, %v1814_v44  ;;  %v5038_v16 = vrot.slane %v1911_v10, %v37096_v5 }
 0x4d6   : > { %16950 = vmatprep.mubr.f32.mxu1 %v1259_v12  ;;  %31350 = vmatprep.mubr.f32.mxu0 %v1643_v13  ;;  %v1650_v12 = vld [vmem:[%s37090_s19 + $0x2d30] sm:$0x3]  ;;  %v501_v13 = vld [vmem:[%s37090_s19 + $0x948] sm:$0xff] }
 0x4d7   : > { %17031 = vmatprep.subr.mxu1 %v3364_v14  ;;  %31431 = vmatprep.subr.mxu0 %v4996_v15  ;;  %v3396_v0 = vrot.slane %v3382_v58, %v37096_v5  ;;  %v885_v14 = vld [vmem:[%s37090_s19 + $0x1548] sm:$0xff] }
 0x4d8   : > { %16951 = vmatmul.mubr.f32.gmra.mrb[2].mxu1 %v1258_v18  ;;  %31351 = vmatmul.mubr.f32.gmra.mrb[2].mxu0 %v1642_v19  ;;  %v884_v18 = vld [vmem:[%s37090_s19 + $0x1540] sm:$0xff]  ;;  %v1269_v19 = vld [vmem:[%s37090_s19 + $0x2148] sm:$0x3] }
 0x4d9   : > { %17020 = vmatprep.mubr.f32.mxu1 %v493_v20  ;;  %31420 = vmatprep.mubr.f32.mxu0 %v877_v21  ;;  %v3398_v7 = vcombine.high %v3396_v0, %v3396_v0  ;;  %v1653_v20 = vld [vmem:[%s37090_s19 + $0x2d48] sm:$0x3] }
 0x4dc   : > { %17021 = vmatmul.mubr.f32.vlgmr.msra.gmra.mrb[0].mxu1 %v492_v24  ;;  %31421 = vmatmul.mubr.f32.vlgmr.msra.gmra.mrb[0].mxu0 %v876_v25  ;;  %v5031_v24 = vcombine.high %v1911_v10, %v1911_v10  ;;  %v1268_v25 = vld [vmem:[%s37090_s19 + $0x2140] sm:$0x3] }
 0x4dd   : > { %17032 = vmatpush1.xpose.msra.mxu1 %v3362_v8  ;;  %31432 = vmatpush1.xpose.msra.mxu0 %v4994_v9  ;;  %v5030_v8 = vcombine.high %v5028_v1, %v5028_v1  ;;  %v1815_v9 = vld [vmem:[%s37084_s27 + $0x258] sm:$0xff]  ;;  %v508_v10 = vld [vmem:[%s37090_s19 + $0x980] sm:$0xff] }
 0x4de   : > { %17025 = vmatprep.mubr.f32.mxu1 %v1261_v26  ;;  %31425 = vmatprep.mubr.f32.mxu0 %v1645_v27  ;;  %v3406_v15 = vrot.slane %v1815_v9, %v37096_v5  ;;  %v1652_v26 = vld [vmem:[%s37090_s19 + $0x2d40] sm:$0x3]  ;;  %v503_v27 = vld [vmem:[%s37090_s19 + $0x958] sm:$0xff]  ;;  %v5045_v30 = vrot.slane %v5031_v24, %v37096_v5  ;;  %v510_v24 = vld [vmem:[%s37090_s19 + $0x990] sm:$0xff] }
 0x4df   : > { %17106 = vmatprep.subr.mxu1 %v3380_v28  ;;  %31506 = vmatprep.subr.mxu0 %v5012_v29  ;;  %v887_v28 = vld [vmem:[%s37090_s19 + $0x1558] sm:$0xff] }
 0x4e0   : > { %17026 = vmatmul.mubr.f32.gmra.mrb[2].mxu1 %v1260_v32  ;;  %31426 = vmatmul.mubr.f32.gmra.mrb[2].mxu0 %v1644_v33  ;;  %v3414_v21 = vcombine.high %v3406_v15, %v3406_v15  ;;  %v886_v32 = vld [vmem:[%s37090_s19 + $0x1550] sm:$0xff]  ;;  %v1271_v33 = vld [vmem:[%s37090_s19 + $0x2158] sm:$0x3] }
 0x4e1   : > { %17095 = vmatprep.mubr.f32.mxu1 %v495_v34  ;;  %31495 = vmatprep.mubr.f32.mxu0 %v879_v35  ;;  %v1655_v34 = vld [vmem:[%s37090_s19 + $0x2d58] sm:$0x3] }
 0x4e4   : > { %17096 = vmatmul.mubr.f32.vlgmr.msra.gmra.mrb[0].mxu1 %v494_v38  ;;  %31496 = vmatmul.mubr.f32.vlgmr.msra.gmra.mrb[0].mxu0 %v878_v39  ;;  %v1912_v38 = vld [vmem:[%s37084_s27 + $0x560] sm:$0xff]  ;;  %v1270_v39 = vld [vmem:[%s37090_s19 + $0x2150] sm:$0x3] }
 0x4e5   : > { %17107 = vmatpush1.xpose.msra.mxu1 %v3372_v22  ;;  %31507 = vmatpush1.xpose.msra.mxu0 %v5004_v23  ;;  %v5046_v22 = vcombine.high %v5038_v16, %v5038_v16  ;;  %v3399_v23 = vcombine.high %v1815_v9, %v1815_v9  ;;  %v5055_v44 = vrot.slane %v1912_v38, %v37096_v5 }
 0x4e6   : > { %17100 = vmatprep.mubr.f32.mxu1 %v1263_v40  ;;  %31500 = vmatprep.mubr.f32.mxu0 %v1647_v41  ;;  %v1654_v40 = vld [vmem:[%s37090_s19 + $0x2d50] sm:$0x3]  ;;  %v505_v41 = vld [vmem:[%s37090_s19 + $0x968] sm:$0xff] }
 0x4e7   : > { %17181 = vmatprep.subr.mxu1 %v3381_v42  ;;  %31581 = vmatprep.subr.mxu0 %v5013_v43  ;;  %v3413_v29 = vrot.slane %v3399_v23, %v37096_v5  ;;  %v889_v42 = vld [vmem:[%s37090_s19 + $0x1568] sm:$0xff] }
 0x4e8   : > { %17101 = vmatmul.mubr.f32.gmra.mrb[2].mxu1 %v1262_v46  ;;  %31501 = vmatmul.mubr.f32.gmra.mrb[2].mxu0 %v1646_v47  ;;  %v888_v46 = vld [vmem:[%s37090_s19 + $0x1560] sm:$0xff]  ;;  %v1273_v47 = vld [vmem:[%s37090_s19 + $0x2168] sm:$0x3] }
 0x4e9   : > { %17170 = vmatprep.mubr.f32.mxu1 %v497_v48  ;;  %31570 = vmatprep.mubr.f32.mxu0 %v881_v49  ;;  %v3415_v35 = vcombine.high %v3413_v29, %v3413_v29  ;;  %v1657_v48 = vld [vmem:[%s37090_s19 + $0x2d68] sm:$0x3] }
 0x4ec   : > { %17171 = vmatmul.mubr.f32.vlgmr.msra.gmra.mrb[0].mxu1 %v496_v52  ;;  %31571 = vmatmul.mubr.f32.vlgmr.msra.gmra.mrb[0].mxu0 %v880_v53  ;;  %v5048_v52 = vcombine.high %v1912_v38, %v1912_v38  ;;  %v1272_v53 = vld [vmem:[%s37090_s19 + $0x2160] sm:$0x3] }
 0x4ed   : > { %17182 = vmatpush1.xpose.msra.mxu1 %v3379_v36  ;;  %31582 = vmatpush1.xpose.msra.mxu0 %v5011_v37  ;;  %v5047_v36 = vcombine.high %v5045_v30, %v5045_v30  ;;  %v1816_v37 = vld [vmem:[%s37084_s27 + $0x260] sm:$0xff] }
 0x4ee   : > { %17175 = vmatprep.mubr.f32.mxu1 %v1265_v54  ;;  %31575 = vmatprep.mubr.f32.mxu0 %v1649_v55  ;;  %v3423_v43 = vrot.slane %v1816_v37, %v37096_v5  ;;  %v1656_v54 = vld [vmem:[%s37090_s19 + $0x2d60] sm:$0x3]  ;;  %v507_v55 = vld [vmem:[%s37090_s19 + $0x978] sm:$0xff]  ;;  %v5062_v58 = vrot.slane %v5048_v52, %v37096_v5  ;;  %v514_v52 = vld [vmem:[%s37090_s19 + $0x9b0] sm:$0xff] }
 0x4ef   : > { %17256 = vmatprep.subr.mxu1 %v3397_v56  ;;  %31656 = vmatprep.subr.mxu0 %v5029_v57  ;;  %v891_v56 = vld [vmem:[%s37090_s19 + $0x1578] sm:$0xff]  ;;  %v512_v38 = vld [vmem:[%s37090_s19 + $0x9a0] sm:$0xff] }
 0x4f0   : > { %17176 = vmatmul.mubr.f32.gmra.mrb[2].mxu1 %v1264_v60  ;;  %31576 = vmatmul.mubr.f32.gmra.mrb[2].mxu0 %v1648_v61  ;;  %v3431_v49 = vcombine.high %v3423_v43, %v3423_v43  ;;  %v890_v60 = vld [vmem:[%s37090_s19 + $0x1570] sm:$0xff]  ;;  %v1275_v61 = vld [vmem:[%s37090_s19 + $0x2178] sm:$0x3] }
 0x4f1   : > { %17245 = vmatprep.mubr.f32.mxu1 %v499_v62  ;;  %31645 = vmatprep.mubr.f32.mxu0 %v883_v63  ;;  %v1659_v62 = vld [vmem:[%s37090_s19 + $0x2d78] sm:$0x3] }
 0x4f4   : > { %17246 = vmatmul.mubr.f32.vlgmr.msra.gmra.mrb[0].mxu1 %v498_v2  ;;  %31646 = vmatmul.mubr.f32.vlgmr.msra.gmra.mrb[0].mxu0 %v882_v3  ;;  %v1913_v2 = vld [vmem:[%s37084_s27 + $0x568] sm:$0xff]  ;;  %v1274_v3 = vld [vmem:[%s37090_s19 + $0x2170] sm:$0x3] }
 0x4f5   : > { %17257 = vmatpush1.xpose.msra.mxu1 %v3389_v50  ;;  %31657 = vmatpush1.xpose.msra.mxu0 %v5021_v51  ;;  %v5063_v50 = vcombine.high %v5055_v44, %v5055_v44  ;;  %v3416_v51 = vcombine.high %v1816_v37, %v1816_v37  ;;  %v5072_v9 = vrot.slane %v1913_v2, %v37096_v5 }
 0x4f6   : > { %17250 = vmatprep.mubr.f32.mxu1 %v1267_v4  ;;  %31650 = vmatprep.mubr.f32.mxu0 %v1651_v6  ;;  %v1658_v4 = vld [vmem:[%s37090_s19 + $0x2d70] sm:$0x3]  ;;  %v509_v6 = vld [vmem:[%s37090_s19 + $0x988] sm:$0xff] }
 0x4f7   : > { %17331 = vmatprep.subr.mxu1 %v3398_v7  ;;  %31731 = vmatprep.subr.mxu0 %v5030_v8  ;;  %v3430_v57 = vrot.slane %v3416_v51, %v37096_v5  ;;  %v893_v7 = vld [vmem:[%s37090_s19 + $0x1588] sm:$0xff] }
 0x4f8   : > { %17251 = vmatmul.mubr.f32.gmra.mrb[2].mxu1 %v1266_v11  ;;  %31651 = vmatmul.mubr.f32.gmra.mrb[2].mxu0 %v1650_v12  ;;  %v892_v11 = vld [vmem:[%s37090_s19 + $0x1580] sm:$0xff]  ;;  %v1277_v12 = vld [vmem:[%s37090_s19 + $0x2188] sm:$0x3] }
 0x4f9   : > { %17320 = vmatprep.mubr.f32.mxu1 %v501_v13  ;;  %31720 = vmatprep.mubr.f32.mxu0 %v885_v14  ;;  %v3432_v63 = vcombine.high %v3430_v57, %v3430_v57  ;;  %v1661_v13 = vld [vmem:[%s37090_s19 + $0x2d88] sm:$0x3] }
 0x4fc   : > { %17321 = vmatmul.mubr.f32.vlgmr.msra.gmra.mrb[0].mxu1 %v500_v17  ;;  %31721 = vmatmul.mubr.f32.vlgmr.msra.gmra.mrb[0].mxu0 %v884_v18  ;;  %v5065_v17 = vcombine.high %v1913_v2, %v1913_v2  ;;  %v1276_v18 = vld [vmem:[%s37090_s19 + $0x2180] sm:$0x3] }
 0x4fd   : > { %17332 = vmatpush1.xpose.msra.mxu1 %v3396_v0  ;;  %31732 = vmatpush1.xpose.msra.mxu0 %v5028_v1  ;;  %v5064_v0 = vcombine.high %v5062_v58, %v5062_v58  ;;  %v1817_v1 = vld [vmem:[%s37084_s27 + $0x268] sm:$0xff]  ;;  %v516_v2 = vld [vmem:[%s37090_s19 + $0x9c0] sm:$0xff] }
 0x4fe   : > { %17325 = vmatprep.mubr.f32.mxu1 %v1269_v19  ;;  %31725 = vmatprep.mubr.f32.mxu0 %v1653_v20  ;;  %v3440_v8 = vrot.slane %v1817_v1, %v37096_v5  ;;  %v1660_v19 = vld [vmem:[%s37090_s19 + $0x2d80] sm:$0x3]  ;;  %v511_v20 = vld [vmem:[%s37090_s19 + $0x998] sm:$0xff]  ;;  %v5079_v23 = vrot.slane %v5065_v17, %v37096_v5  ;;  %v518_v17 = vld [vmem:[%s37090_s19 + $0x9d0] sm:$0xff] }
 0x4ff   : > { %17406 = vmatprep.subr.mxu1 %v3414_v21  ;;  %31806 = vmatprep.subr.mxu0 %v5046_v22  ;;  %v895_v21 = vld [vmem:[%s37090_s19 + $0x1598] sm:$0xff] }
 0x500   : > { %17326 = vmatmul.mubr.f32.gmra.mrb[2].mxu1 %v1268_v25  ;;  %31726 = vmatmul.mubr.f32.gmra.mrb[2].mxu0 %v1652_v26  ;;  %v3448_v14 = vcombine.high %v3440_v8, %v3440_v8  ;;  %v894_v25 = vld [vmem:[%s37090_s19 + $0x1590] sm:$0xff]  ;;  %v1279_v26 = vld [vmem:[%s37090_s19 + $0x2198] sm:$0x3] }
 0x501   : > { %17395 = vmatprep.mubr.f32.mxu1 %v503_v27  ;;  %31795 = vmatprep.mubr.f32.mxu0 %v887_v28  ;;  %v1663_v27 = vld [vmem:[%s37090_s19 + $0x2d98] sm:$0x3] }
 0x504   : > { %17396 = vmatmul.mubr.f32.vlgmr.msra.gmra.mrb[0].mxu1 %v502_v31  ;;  %31796 = vmatmul.mubr.f32.vlgmr.msra.gmra.mrb[0].mxu0 %v886_v32  ;;  %v1914_v31 = vld [vmem:[%s37084_s27 + $0x570] sm:$0xff] }
 0x505   : > { %17407 = vmatpush1.xpose.msra.mxu1 %v3406_v15  ;;  %31807 = vmatpush1.xpose.msra.mxu0 %v5038_v16  ;;  %v5080_v15 = vcombine.high %v5072_v9, %v5072_v9  ;;  %v3433_v16 = vcombine.high %v1817_v1, %v1817_v1  ;;  %v1278_v32 = vld [vmem:[%s37090_s19 + $0x2190] sm:$0x3]  ;;  %v5089_v37 = vrot.slane %v1914_v31, %v37096_v5 }
 0x506   : > { %17400 = vmatprep.mubr.f32.mxu1 %v1271_v33  ;;  %31800 = vmatprep.mubr.f32.mxu0 %v1655_v34  ;;  %v1662_v33 = vld [vmem:[%s37090_s19 + $0x2d90] sm:$0x3]  ;;  %v513_v34 = vld [vmem:[%s37090_s19 + $0x9a8] sm:$0xff] }
 0x507   : > { %17481 = vmatprep.subr.mxu1 %v3415_v35  ;;  %31881 = vmatprep.subr.mxu0 %v5047_v36  ;;  %v3447_v22 = vrot.slane %v3433_v16, %v37096_v5  ;;  %v897_v35 = vld [vmem:[%s37090_s19 + $0x15a8] sm:$0xff] }
 0x508   : > { %17401 = vmatmul.mubr.f32.gmra.mrb[2].mxu1 %v1270_v39  ;;  %31801 = vmatmul.mubr.f32.gmra.mrb[2].mxu0 %v1654_v40  ;;  %v896_v39 = vld [vmem:[%s37090_s19 + $0x15a0] sm:$0xff]  ;;  %v1281_v40 = vld [vmem:[%s37090_s19 + $0x21a8] sm:$0x3] }
 0x509   : > { %17470 = vmatprep.mubr.f32.mxu1 %v505_v41  ;;  %31870 = vmatprep.mubr.f32.mxu0 %v889_v42  ;;  %v3449_v28 = vcombine.high %v3447_v22, %v3447_v22  ;;  %v1665_v41 = vld [vmem:[%s37090_s19 + $0x2da8] sm:$0x3] }
 0x50c   : > { %17471 = vmatmul.mubr.f32.vlgmr.msra.gmra.mrb[0].mxu1 %v504_v45  ;;  %31871 = vmatmul.mubr.f32.vlgmr.msra.gmra.mrb[0].mxu0 %v888_v46  ;;  %v5082_v45 = vcombine.high %v1914_v31, %v1914_v31  ;;  %v1280_v46 = vld [vmem:[%s37090_s19 + $0x21a0] sm:$0x3] }
 0x50d   : > { %17482 = vmatpush1.xpose.msra.mxu1 %v3413_v29  ;;  %31882 = vmatpush1.xpose.msra.mxu0 %v5045_v30  ;;  %v5081_v29 = vcombine.high %v5079_v23, %v5079_v23  ;;  %v1818_v30 = vld [vmem:[%s37084_s27 + $0x270] sm:$0xff]  ;;  %v520_v31 = vld [vmem:[%s37090_s19 + $0x9e0] sm:$0xff] }
 0x50e   : > { %17475 = vmatprep.mubr.f32.mxu1 %v1273_v47  ;;  %31875 = vmatprep.mubr.f32.mxu0 %v1657_v48  ;;  %v3457_v36 = vrot.slane %v1818_v30, %v37096_v5  ;;  %v1664_v47 = vld [vmem:[%s37090_s19 + $0x2da0] sm:$0x3]  ;;  %v515_v48 = vld [vmem:[%s37090_s19 + $0x9b8] sm:$0xff]  ;;  %v5096_v51 = vrot.slane %v5082_v45, %v37096_v5  ;;  %v522_v45 = vld [vmem:[%s37090_s19 + $0x9f0] sm:$0xff] }
 0x50f   : > { %17556 = vmatprep.subr.mxu1 %v3431_v49  ;;  %31956 = vmatprep.subr.mxu0 %v5063_v50  ;;  %v899_v49 = vld [vmem:[%s37090_s19 + $0x15b8] sm:$0xff] }
 0x510   : > { %17476 = vmatmul.mubr.f32.gmra.mrb[2].mxu1 %v1272_v53  ;;  %31876 = vmatmul.mubr.f32.gmra.mrb[2].mxu0 %v1656_v54  ;;  %v3465_v42 = vcombine.high %v3457_v36, %v3457_v36  ;;  %v898_v53 = vld [vmem:[%s37090_s19 + $0x15b0] sm:$0xff]  ;;  %v1283_v54 = vld [vmem:[%s37090_s19 + $0x21b8] sm:$0x3] }
 0x511   : > { %17545 = vmatprep.mubr.f32.mxu1 %v507_v55  ;;  %31945 = vmatprep.mubr.f32.mxu0 %v891_v56  ;;  %v1667_v55 = vld [vmem:[%s37090_s19 + $0x2db8] sm:$0x3] }
 0x514   : > { %17546 = vmatmul.mubr.f32.vlgmr.msra.gmra.mrb[0].mxu1 %v506_v59  ;;  %31946 = vmatmul.mubr.f32.vlgmr.msra.gmra.mrb[0].mxu0 %v890_v60  ;;  %v1915_v59 = vld [vmem:[%s37084_s27 + $0x578] sm:$0xff]  ;;  %v1282_v60 = vld [vmem:[%s37090_s19 + $0x21b0] sm:$0x3] }
 0x515   : > { %17557 = vmatpush1.xpose.msra.mxu1 %v3423_v43  ;;  %31957 = vmatpush1.xpose.msra.mxu0 %v5055_v44  ;;  %v5097_v43 = vcombine.high %v5089_v37, %v5089_v37  ;;  %v3450_v44 = vcombine.high %v1818_v30, %v1818_v30  ;;  %v5106_v1 = vrot.slane %v1915_v59, %v37096_v5 }
 0x516   : > { %17550 = vmatprep.mubr.f32.mxu1 %v1275_v61  ;;  %31950 = vmatprep.mubr.f32.mxu0 %v1659_v62  ;;  %v1666_v61 = vld [vmem:[%s37090_s19 + $0x2db0] sm:$0x3]  ;;  %v517_v62 = vld [vmem:[%s37090_s19 + $0x9c8] sm:$0xff] }
 0x517   : > { %17631 = vmatprep.subr.mxu1 %v3432_v63  ;;  %32031 = vmatprep.subr.mxu0 %v5064_v0  ;;  %v3464_v50 = vrot.slane %v3450_v44, %v37096_v5  ;;  %v901_v63 = vld [vmem:[%s37090_s19 + $0x15c8] sm:$0xff] }
 0x518   : > { %17551 = vmatmul.mubr.f32.gmra.mrb[2].mxu1 %v1274_v3  ;;  %31951 = vmatmul.mubr.f32.gmra.mrb[2].mxu0 %v1658_v4  ;;  %v900_v3 = vld [vmem:[%s37090_s19 + $0x15c0] sm:$0xff]  ;;  %v1285_v4 = vld [vmem:[%s37090_s19 + $0x21c8] sm:$0x3] }
 0x519   : > { %17620 = vmatprep.mubr.f32.mxu1 %v509_v6  ;;  %32020 = vmatprep.mubr.f32.mxu0 %v893_v7  ;;  %v3466_v56 = vcombine.high %v3464_v50, %v3464_v50  ;;  %v1669_v6 = vld [vmem:[%s37090_s19 + $0x2dc8] sm:$0x3] }
 0x51c   : > { %17621 = vmatmul.mubr.f32.vlgmr.msra.gmra.mrb[0].mxu1 %v508_v10  ;;  %32021 = vmatmul.mubr.f32.vlgmr.msra.gmra.mrb[0].mxu0 %v892_v11  ;;  %v5099_v10 = vcombine.high %v1915_v59, %v1915_v59  ;;  %v1284_v11 = vld [vmem:[%s37090_s19 + $0x21c0] sm:$0x3] }
 0x51d   : > { %17632 = vmatpush1.xpose.msra.mxu1 %v3430_v57  ;;  %32032 = vmatpush1.xpose.msra.mxu0 %v5062_v58  ;;  %v5098_v57 = vcombine.high %v5096_v51, %v5096_v51  ;;  %v1819_v58 = vld [vmem:[%s37084_s27 + $0x278] sm:$0xff]  ;;  %v524_v59 = vld [vmem:[%s37090_s19 + $0xa00] sm:$0xff] }
 0x51e   : > { %17625 = vmatprep.mubr.f32.mxu1 %v1277_v12  ;;  %32025 = vmatprep.mubr.f32.mxu0 %v1661_v13  ;;  %v3474_v0 = vrot.slane %v1819_v58, %v37096_v5  ;;  %v1668_v12 = vld [vmem:[%s37090_s19 + $0x2dc0] sm:$0x3]  ;;  %v519_v13 = vld [vmem:[%s37090_s19 + $0x9d8] sm:$0xff]  ;;  %v5113_v16 = vrot.slane %v5099_v10, %v37096_v5  ;;  %v526_v10 = vld [vmem:[%s37090_s19 + $0xa10] sm:$0xff] }
 0x51f   : > { %17706 = vmatprep.subr.mxu1 %v3448_v14  ;;  %32106 = vmatprep.subr.mxu0 %v5080_v15  ;;  %v903_v14 = vld [vmem:[%s37090_s19 + $0x15d8] sm:$0xff] }
 0x520   : > { %17626 = vmatmul.mubr.f32.gmra.mrb[2].mxu1 %v1276_v18  ;;  %32026 = vmatmul.mubr.f32.gmra.mrb[2].mxu0 %v1660_v19  ;;  %v3482_v7 = vcombine.high %v3474_v0, %v3474_v0  ;;  %v902_v18 = vld [vmem:[%s37090_s19 + $0x15d0] sm:$0xff]  ;;  %v1287_v19 = vld [vmem:[%s37090_s19 + $0x21d8] sm:$0x3] }
 0x521   : > { %17695 = vmatprep.mubr.f32.mxu1 %v511_v20  ;;  %32095 = vmatprep.mubr.f32.mxu0 %v895_v21  ;;  %v1671_v20 = vld [vmem:[%s37090_s19 + $0x2dd8] sm:$0x3] }
 0x524   : > { %17696 = vmatmul.mubr.f32.vlgmr.msra.gmra.mrb[0].mxu1 %v510_v24  ;;  %32096 = vmatmul.mubr.f32.vlgmr.msra.gmra.mrb[0].mxu0 %v894_v25  ;;  %v1916_v24 = vld [vmem:[%s37084_s27 + $0x580] sm:$0xff]  ;;  %v1286_v25 = vld [vmem:[%s37090_s19 + $0x21d0] sm:$0x3] }
 0x525   : > { %17707 = vmatpush1.xpose.msra.mxu1 %v3440_v8  ;;  %32107 = vmatpush1.xpose.msra.mxu0 %v5072_v9  ;;  %v5114_v8 = vcombine.high %v5106_v1, %v5106_v1  ;;  %v3467_v9 = vcombine.high %v1819_v58, %v1819_v58  ;;  %v5123_v30 = vrot.slane %v1916_v24, %v37096_v5 }
 0x526   : > { %17700 = vmatprep.mubr.f32.mxu1 %v1279_v26  ;;  %32100 = vmatprep.mubr.f32.mxu0 %v1663_v27  ;;  %v1670_v26 = vld [vmem:[%s37090_s19 + $0x2dd0] sm:$0x3]  ;;  %v521_v27 = vld [vmem:[%s37090_s19 + $0x9e8] sm:$0xff] }
 0x527   : > { %17781 = vmatprep.subr.mxu1 %v3449_v28  ;;  %32181 = vmatprep.subr.mxu0 %v5081_v29  ;;  %v3481_v15 = vrot.slane %v3467_v9, %v37096_v5  ;;  %v905_v28 = vld [vmem:[%s37090_s19 + $0x15e8] sm:$0xff] }
 0x528   : > { %17701 = vmatmul.mubr.f32.gmra.mrb[2].mxu1 %v1278_v32  ;;  %32101 = vmatmul.mubr.f32.gmra.mrb[2].mxu0 %v1662_v33  ;;  %v904_v32 = vld [vmem:[%s37090_s19 + $0x15e0] sm:$0xff]  ;;  %v1289_v33 = vld [vmem:[%s37090_s19 + $0x21e8] sm:$0x3] }
 0x529   : > { %17770 = vmatprep.mubr.f32.mxu1 %v513_v34  ;;  %32170 = vmatprep.mubr.f32.mxu0 %v897_v35  ;;  %v3483_v21 = vcombine.high %v3481_v15, %v3481_v15  ;;  %v1673_v34 = vld [vmem:[%s37090_s19 + $0x2de8] sm:$0x3] }
 0x52c   : > { %17771 = vmatmul.mubr.f32.vlgmr.msra.gmra.mrb[0].mxu1 %v512_v38  ;;  %32171 = vmatmul.mubr.f32.vlgmr.msra.gmra.mrb[0].mxu0 %v896_v39  ;;  %v5116_v38 = vcombine.high %v1916_v24, %v1916_v24  ;;  %v1288_v39 = vld [vmem:[%s37090_s19 + $0x21e0] sm:$0x3] }
 0x52d   : > { %17782 = vmatpush1.xpose.msra.mxu1 %v3447_v22  ;;  %32182 = vmatpush1.xpose.msra.mxu0 %v5079_v23  ;;  %v5115_v22 = vcombine.high %v5113_v16, %v5113_v16  ;;  %v1820_v23 = vld [vmem:[%s37084_s27 + $0x280] sm:$0xff] }
 0x52e   : > { %17775 = vmatprep.mubr.f32.mxu1 %v1281_v40  ;;  %32175 = vmatprep.mubr.f32.mxu0 %v1665_v41  ;;  %v3491_v29 = vrot.slane %v1820_v23, %v37096_v5  ;;  %v1672_v40 = vld [vmem:[%s37090_s19 + $0x2de0] sm:$0x3]  ;;  %v523_v41 = vld [vmem:[%s37090_s19 + $0x9f8] sm:$0xff]  ;;  %v5130_v44 = vrot.slane %v5116_v38, %v37096_v5  ;;  %v530_v38 = vld [vmem:[%s37090_s19 + $0xa30] sm:$0xff] }
 0x52f   : > { %17856 = vmatprep.subr.mxu1 %v3465_v42  ;;  %32256 = vmatprep.subr.mxu0 %v5097_v43  ;;  %v907_v42 = vld [vmem:[%s37090_s19 + $0x15f8] sm:$0xff]  ;;  %v528_v24 = vld [vmem:[%s37090_s19 + $0xa20] sm:$0xff] }
 0x530   : > { %17776 = vmatmul.mubr.f32.gmra.mrb[2].mxu1 %v1280_v46  ;;  %32176 = vmatmul.mubr.f32.gmra.mrb[2].mxu0 %v1664_v47  ;;  %v3499_v35 = vcombine.high %v3491_v29, %v3491_v29  ;;  %v906_v46 = vld [vmem:[%s37090_s19 + $0x15f0] sm:$0xff]  ;;  %v1291_v47 = vld [vmem:[%s37090_s19 + $0x21f8] sm:$0x3] }
 0x531   : > { %17845 = vmatprep.mubr.f32.mxu1 %v515_v48  ;;  %32245 = vmatprep.mubr.f32.mxu0 %v899_v49  ;;  %v1675_v48 = vld [vmem:[%s37090_s19 + $0x2df8] sm:$0x3] }
 0x534   : > { %17846 = vmatmul.mubr.f32.vlgmr.msra.gmra.mrb[0].mxu1 %v514_v52  ;;  %32246 = vmatmul.mubr.f32.vlgmr.msra.gmra.mrb[0].mxu0 %v898_v53  ;;  %v1917_v52 = vld [vmem:[%s37084_s27 + $0x588] sm:$0xff]  ;;  %v1290_v53 = vld [vmem:[%s37090_s19 + $0x21f0] sm:$0x3] }
 0x535   : > { %17857 = vmatpush1.xpose.msra.mxu1 %v3457_v36  ;;  %32257 = vmatpush1.xpose.msra.mxu0 %v5089_v37  ;;  %v5131_v36 = vcombine.high %v5123_v30, %v5123_v30  ;;  %v3484_v37 = vcombine.high %v1820_v23, %v1820_v23  ;;  %v5140_v58 = vrot.slane %v1917_v52, %v37096_v5 }
 0x536   : > { %17850 = vmatprep.mubr.f32.mxu1 %v1283_v54  ;;  %32250 = vmatprep.mubr.f32.mxu0 %v1667_v55  ;;  %v1674_v54 = vld [vmem:[%s37090_s19 + $0x2df0] sm:$0x3]  ;;  %v525_v55 = vld [vmem:[%s37090_s19 + $0xa08] sm:$0xff] }
 0x537   : > { %17931 = vmatprep.subr.mxu1 %v3466_v56  ;;  %32331 = vmatprep.subr.mxu0 %v5098_v57  ;;  %v3498_v43 = vrot.slane %v3484_v37, %v37096_v5  ;;  %v909_v56 = vld [vmem:[%s37090_s19 + $0x1608] sm:$0xff] }
 0x538   : > { %17851 = vmatmul.mubr.f32.gmra.mrb[2].mxu1 %v1282_v60  ;;  %32251 = vmatmul.mubr.f32.gmra.mrb[2].mxu0 %v1666_v61  ;;  %v908_v60 = vld [vmem:[%s37090_s19 + $0x1600] sm:$0xff]  ;;  %v1293_v61 = vld [vmem:[%s37090_s19 + $0x2208] sm:$0x3] }
 0x539   : > { %17920 = vmatprep.mubr.f32.mxu1 %v517_v62  ;;  %32320 = vmatprep.mubr.f32.mxu0 %v901_v63  ;;  %v3500_v49 = vcombine.high %v3498_v43, %v3498_v43  ;;  %v1677_v62 = vld [vmem:[%s37090_s19 + $0x2e08] sm:$0x3] }
 0x53c   : > { %17921 = vmatmul.mubr.f32.vlgmr.msra.gmra.mrb[0].mxu1 %v516_v2  ;;  %32321 = vmatmul.mubr.f32.vlgmr.msra.gmra.mrb[0].mxu0 %v900_v3  ;;  %v5133_v2 = vcombine.high %v1917_v52, %v1917_v52  ;;  %v1292_v3 = vld [vmem:[%s37090_s19 + $0x2200] sm:$0x3] }
 0x53d   : > { %17932 = vmatpush1.xpose.msra.mxu1 %v3464_v50  ;;  %32332 = vmatpush1.xpose.msra.mxu0 %v5096_v51  ;;  %v5132_v50 = vcombine.high %v5130_v44, %v5130_v44  ;;  %v1821_v51 = vld [vmem:[%s37084_s27 + $0x288] sm:$0xff]  ;;  %v532_v52 = vld [vmem:[%s37090_s19 + $0xa40] sm:$0xff] }
 0x53e   : > { %17925 = vmatprep.mubr.f32.mxu1 %v1285_v4  ;;  %32325 = vmatprep.mubr.f32.mxu0 %v1669_v6  ;;  %v3508_v57 = vrot.slane %v1821_v51, %v37096_v5  ;;  %v1676_v4 = vld [vmem:[%s37090_s19 + $0x2e00] sm:$0x3]  ;;  %v527_v6 = vld [vmem:[%s37090_s19 + $0xa18] sm:$0xff]  ;;  %v5147_v9 = vrot.slane %v5133_v2, %v37096_v5  ;;  %v534_v2 = vld [vmem:[%s37090_s19 + $0xa50] sm:$0xff] }
 0x53f   : > { %18006 = vmatprep.subr.mxu1 %v3482_v7  ;;  %32406 = vmatprep.subr.mxu0 %v5114_v8  ;;  %v911_v7 = vld [vmem:[%s37090_s19 + $0x1618] sm:$0xff] }
 0x540   : > { %17926 = vmatmul.mubr.f32.gmra.mrb[2].mxu1 %v1284_v11  ;;  %32326 = vmatmul.mubr.f32.gmra.mrb[2].mxu0 %v1668_v12  ;;  %v3516_v63 = vcombine.high %v3508_v57, %v3508_v57  ;;  %v910_v11 = vld [vmem:[%s37090_s19 + $0x1610] sm:$0xff]  ;;  %v1295_v12 = vld [vmem:[%s37090_s19 + $0x2218] sm:$0x3] }
 0x541   : > { %17995 = vmatprep.mubr.f32.mxu1 %v519_v13  ;;  %32395 = vmatprep.mubr.f32.mxu0 %v903_v14  ;;  %v1679_v13 = vld [vmem:[%s37090_s19 + $0x2e18] sm:$0x3] }
 0x544   : > { %17996 = vmatmul.mubr.f32.vlgmr.msra.gmra.mrb[0].mxu1 %v518_v17  ;;  %32396 = vmatmul.mubr.f32.vlgmr.msra.gmra.mrb[0].mxu0 %v902_v18  ;;  %v1918_v17 = vld [vmem:[%s37084_s27 + $0x590] sm:$0xff] }
 0x545   : > { %18007 = vmatpush1.xpose.msra.mxu1 %v3474_v0  ;;  %32407 = vmatpush1.xpose.msra.mxu0 %v5106_v1  ;;  %v5148_v0 = vcombine.high %v5140_v58, %v5140_v58  ;;  %v3501_v1 = vcombine.high %v1821_v51, %v1821_v51  ;;  %v1294_v18 = vld [vmem:[%s37090_s19 + $0x2210] sm:$0x3]  ;;  %v5157_v23 = vrot.slane %v1918_v17, %v37096_v5 }
 0x546   : > { %18000 = vmatprep.mubr.f32.mxu1 %v1287_v19  ;;  %32400 = vmatprep.mubr.f32.mxu0 %v1671_v20  ;;  %v1678_v19 = vld [vmem:[%s37090_s19 + $0x2e10] sm:$0x3]  ;;  %v529_v20 = vld [vmem:[%s37090_s19 + $0xa28] sm:$0xff] }
 0x547   : > { %18081 = vmatprep.subr.mxu1 %v3483_v21  ;;  %32481 = vmatprep.subr.mxu0 %v5115_v22  ;;  %v3515_v8 = vrot.slane %v3501_v1, %v37096_v5  ;;  %v913_v21 = vld [vmem:[%s37090_s19 + $0x1628] sm:$0xff] }
 0x548   : > { %18001 = vmatmul.mubr.f32.gmra.mrb[2].mxu1 %v1286_v25  ;;  %32401 = vmatmul.mubr.f32.gmra.mrb[2].mxu0 %v1670_v26  ;;  %v912_v25 = vld [vmem:[%s37090_s19 + $0x1620] sm:$0xff]  ;;  %v1297_v26 = vld [vmem:[%s37090_s19 + $0x2228] sm:$0x3] }
 0x549   : > { %18070 = vmatprep.mubr.f32.mxu1 %v521_v27  ;;  %32470 = vmatprep.mubr.f32.mxu0 %v905_v28  ;;  %v3517_v14 = vcombine.high %v3515_v8, %v3515_v8  ;;  %v1681_v27 = vld [vmem:[%s37090_s19 + $0x2e28] sm:$0x3] }
 0x54c   : > { %18071 = vmatmul.mubr.f32.vlgmr.msra.gmra.mrb[0].mxu1 %v520_v31  ;;  %32471 = vmatmul.mubr.f32.vlgmr.msra.gmra.mrb[0].mxu0 %v904_v32  ;;  %v5150_v31 = vcombine.high %v1918_v17, %v1918_v17  ;;  %v1296_v32 = vld [vmem:[%s37090_s19 + $0x2220] sm:$0x3] }
 0x54d   : > { %18082 = vmatpush1.xpose.msra.mxu1 %v3481_v15  ;;  %32482 = vmatpush1.xpose.msra.mxu0 %v5113_v16  ;;  %v5149_v15 = vcombine.high %v5147_v9, %v5147_v9  ;;  %v1822_v16 = vld [vmem:[%s37084_s27 + $0x290] sm:$0xff]  ;;  %v536_v17 = vld [vmem:[%s37090_s19 + $0xa60] sm:$0xff] }
 0x54e   : > { %18075 = vmatprep.mubr.f32.mxu1 %v1289_v33  ;;  %32475 = vmatprep.mubr.f32.mxu0 %v1673_v34  ;;  %v3525_v22 = vrot.slane %v1822_v16, %v37096_v5  ;;  %v1680_v33 = vld [vmem:[%s37090_s19 + $0x2e20] sm:$0x3]  ;;  %v531_v34 = vld [vmem:[%s37090_s19 + $0xa38] sm:$0xff]  ;;  %v5164_v37 = vrot.slane %v5150_v31, %v37096_v5  ;;  %v538_v31 = vld [vmem:[%s37090_s19 + $0xa70] sm:$0xff] }
 0x54f   : > { %18156 = vmatprep.subr.mxu1 %v3499_v35  ;;  %32556 = vmatprep.subr.mxu0 %v5131_v36  ;;  %v915_v35 = vld [vmem:[%s37090_s19 + $0x1638] sm:$0xff] }
 0x550   : > { %18076 = vmatmul.mubr.f32.gmra.mrb[2].mxu1 %v1288_v39  ;;  %32476 = vmatmul.mubr.f32.gmra.mrb[2].mxu0 %v1672_v40  ;;  %v3533_v28 = vcombine.high %v3525_v22, %v3525_v22  ;;  %v914_v39 = vld [vmem:[%s37090_s19 + $0x1630] sm:$0xff]  ;;  %v1299_v40 = vld [vmem:[%s37090_s19 + $0x2238] sm:$0x3] }
 0x551   : > { %18145 = vmatprep.mubr.f32.mxu1 %v523_v41  ;;  %32545 = vmatprep.mubr.f32.mxu0 %v907_v42  ;;  %v1683_v41 = vld [vmem:[%s37090_s19 + $0x2e38] sm:$0x3] }
 0x554   : > { %18146 = vmatmul.mubr.f32.vlgmr.msra.gmra.mrb[0].mxu1 %v522_v45  ;;  %32546 = vmatmul.mubr.f32.vlgmr.msra.gmra.mrb[0].mxu0 %v906_v46  ;;  %v1919_v45 = vld [vmem:[%s37084_s27 + $0x598] sm:$0xff]  ;;  %v1298_v46 = vld [vmem:[%s37090_s19 + $0x2230] sm:$0x3] }
 0x555   : > { %18157 = vmatpush1.xpose.msra.mxu1 %v3491_v29  ;;  %32557 = vmatpush1.xpose.msra.mxu0 %v5123_v30  ;;  %v5165_v29 = vcombine.high %v5157_v23, %v5157_v23  ;;  %v3518_v30 = vcombine.high %v1822_v16, %v1822_v16  ;;  %v5174_v51 = vrot.slane %v1919_v45, %v37096_v5 }
 0x556   : > { %18150 = vmatprep.mubr.f32.mxu1 %v1291_v47  ;;  %32550 = vmatprep.mubr.f32.mxu0 %v1675_v48  ;;  %v1682_v47 = vld [vmem:[%s37090_s19 + $0x2e30] sm:$0x3]  ;;  %v533_v48 = vld [vmem:[%s37090_s19 + $0xa48] sm:$0xff] }
 0x557   : > { %18231 = vmatprep.subr.mxu1 %v3500_v49  ;;  %32631 = vmatprep.subr.mxu0 %v5132_v50  ;;  %v3532_v36 = vrot.slane %v3518_v30, %v37096_v5  ;;  %v917_v49 = vld [vmem:[%s37090_s19 + $0x1648] sm:$0xff] }
 0x558   : > { %18151 = vmatmul.mubr.f32.gmra.mrb[2].mxu1 %v1290_v53  ;;  %32551 = vmatmul.mubr.f32.gmra.mrb[2].mxu0 %v1674_v54  ;;  %v916_v53 = vld [vmem:[%s37090_s19 + $0x1640] sm:$0xff]  ;;  %v1301_v54 = vld [vmem:[%s37090_s19 + $0x2248] sm:$0x3] }
 0x559   : > { %18220 = vmatprep.mubr.f32.mxu1 %v525_v55  ;;  %32620 = vmatprep.mubr.f32.mxu0 %v909_v56  ;;  %v3534_v42 = vcombine.high %v3532_v36, %v3532_v36  ;;  %v1685_v55 = vld [vmem:[%s37090_s19 + $0x2e48] sm:$0x3] }
 0x55c   : > { %18221 = vmatmul.mubr.f32.vlgmr.msra.gmra.mrb[0].mxu1 %v524_v59  ;;  %32621 = vmatmul.mubr.f32.vlgmr.msra.gmra.mrb[0].mxu0 %v908_v60  ;;  %v5167_v59 = vcombine.high %v1919_v45, %v1919_v45  ;;  %v1300_v60 = vld [vmem:[%s37090_s19 + $0x2240] sm:$0x3] }
 0x55d   : > { %18232 = vmatpush1.xpose.msra.mxu1 %v3498_v43  ;;  %32632 = vmatpush1.xpose.msra.mxu0 %v5130_v44  ;;  %v5166_v43 = vcombine.high %v5164_v37, %v5164_v37  ;;  %v1823_v44 = vld [vmem:[%s37084_s27 + $0x298] sm:$0xff]  ;;  %v540_v45 = vld [vmem:[%s37090_s19 + $0xa80] sm:$0xff] }
 0x55e   : > { %18225 = vmatprep.mubr.f32.mxu1 %v1293_v61  ;;  %32625 = vmatprep.mubr.f32.mxu0 %v1677_v62  ;;  %v3542_v50 = vrot.slane %v1823_v44, %v37096_v5  ;;  %v1684_v61 = vld [vmem:[%s37090_s19 + $0x2e40] sm:$0x3]  ;;  %v535_v62 = vld [vmem:[%s37090_s19 + $0xa58] sm:$0xff]  ;;  %v5181_v1 = vrot.slane %v5167_v59, %v37096_v5  ;;  %v542_v59 = vld [vmem:[%s37090_s19 + $0xa90] sm:$0xff] }
 0x55f   : > { %18306 = vmatprep.subr.mxu1 %v3516_v63  ;;  %32706 = vmatprep.subr.mxu0 %v5148_v0  ;;  %v919_v63 = vld [vmem:[%s37090_s19 + $0x1658] sm:$0xff] }
 0x560   : > { %18226 = vmatmul.mubr.f32.gmra.mrb[2].mxu1 %v1292_v3  ;;  %32626 = vmatmul.mubr.f32.gmra.mrb[2].mxu0 %v1676_v4  ;;  %v3550_v56 = vcombine.high %v3542_v50, %v3542_v50  ;;  %v918_v3 = vld [vmem:[%s37090_s19 + $0x1650] sm:$0xff]  ;;  %v1303_v4 = vld [vmem:[%s37090_s19 + $0x2258] sm:$0x3] }
 0x561   : > { %18295 = vmatprep.mubr.f32.mxu1 %v527_v6  ;;  %32695 = vmatprep.mubr.f32.mxu0 %v911_v7  ;;  %v1687_v6 = vld [vmem:[%s37090_s19 + $0x2e58] sm:$0x3] }
 0x564   : > { %18296 = vmatmul.mubr.f32.vlgmr.msra.gmra.mrb[0].mxu1 %v526_v10  ;;  %32696 = vmatmul.mubr.f32.vlgmr.msra.gmra.mrb[0].mxu0 %v910_v11  ;;  %v1920_v10 = vld [vmem:[%s37084_s27 + $0x5a0] sm:$0xff]  ;;  %v1302_v11 = vld [vmem:[%s37090_s19 + $0x2250] sm:$0x3] }
 0x565   : > { %18307 = vmatpush1.xpose.msra.mxu1 %v3508_v57  ;;  %32707 = vmatpush1.xpose.msra.mxu0 %v5140_v58  ;;  %v5182_v57 = vcombine.high %v5174_v51, %v5174_v51  ;;  %v3535_v58 = vcombine.high %v1823_v44, %v1823_v44  ;;  %v5191_v16 = vrot.slane %v1920_v10, %v37096_v5 }
 0x566   : > { %18300 = vmatprep.mubr.f32.mxu1 %v1295_v12  ;;  %32700 = vmatprep.mubr.f32.mxu0 %v1679_v13  ;;  %v1686_v12 = vld [vmem:[%s37090_s19 + $0x2e50] sm:$0x3]  ;;  %v537_v13 = vld [vmem:[%s37090_s19 + $0xa68] sm:$0xff] }
 0x567   : > { %18381 = vmatprep.subr.mxu1 %v3517_v14  ;;  %32781 = vmatprep.subr.mxu0 %v5149_v15  ;;  %v3549_v0 = vrot.slane %v3535_v58, %v37096_v5  ;;  %v921_v14 = vld [vmem:[%s37090_s19 + $0x1668] sm:$0xff] }
 0x568   : > { %18301 = vmatmul.mubr.f32.gmra.mrb[2].mxu1 %v1294_v18  ;;  %32701 = vmatmul.mubr.f32.gmra.mrb[2].mxu0 %v1678_v19  ;;  %v920_v18 = vld [vmem:[%s37090_s19 + $0x1660] sm:$0xff]  ;;  %v1305_v19 = vld [vmem:[%s37090_s19 + $0x2268] sm:$0x3] }
 0x569   : > { %18370 = vmatprep.mubr.f32.mxu1 %v529_v20  ;;  %32770 = vmatprep.mubr.f32.mxu0 %v913_v21  ;;  %v3551_v7 = vcombine.high %v3549_v0, %v3549_v0  ;;  %v1689_v20 = vld [vmem:[%s37090_s19 + $0x2e68] sm:$0x3] }
 0x56c   : > { %18371 = vmatmul.mubr.f32.vlgmr.msra.gmra.mrb[0].mxu1 %v528_v24  ;;  %32771 = vmatmul.mubr.f32.vlgmr.msra.gmra.mrb[0].mxu0 %v912_v25  ;;  %v5184_v24 = vcombine.high %v1920_v10, %v1920_v10  ;;  %v1304_v25 = vld [vmem:[%s37090_s19 + $0x2260] sm:$0x3] }
 0x56d   : > { %18382 = vmatpush1.xpose.msra.mxu1 %v3515_v8  ;;  %32782 = vmatpush1.xpose.msra.mxu0 %v5147_v9  ;;  %v5183_v8 = vcombine.high %v5181_v1, %v5181_v1  ;;  %v1824_v9 = vld [vmem:[%s37084_s27 + $0x2a0] sm:$0xff] }
 0x56e   : > { %18375 = vmatprep.mubr.f32.mxu1 %v1297_v26  ;;  %32775 = vmatprep.mubr.f32.mxu0 %v1681_v27  ;;  %v3559_v15 = vrot.slane %v1824_v9, %v37096_v5  ;;  %v1688_v26 = vld [vmem:[%s37090_s19 + $0x2e60] sm:$0x3]  ;;  %v539_v27 = vld [vmem:[%s37090_s19 + $0xa78] sm:$0xff]  ;;  %v5198_v30 = vrot.slane %v5184_v24, %v37096_v5  ;;  %v546_v24 = vld [vmem:[%s37090_s19 + $0xab0] sm:$0xff] }
 0x56f   : > { %18456 = vmatprep.subr.mxu1 %v3533_v28  ;;  %32856 = vmatprep.subr.mxu0 %v5165_v29  ;;  %v923_v28 = vld [vmem:[%s37090_s19 + $0x1678] sm:$0xff]  ;;  %v544_v10 = vld [vmem:[%s37090_s19 + $0xaa0] sm:$0xff] }
 0x570   : > { %18376 = vmatmul.mubr.f32.gmra.mrb[2].mxu1 %v1296_v32  ;;  %32776 = vmatmul.mubr.f32.gmra.mrb[2].mxu0 %v1680_v33  ;;  %v3567_v21 = vcombine.high %v3559_v15, %v3559_v15  ;;  %v922_v32 = vld [vmem:[%s37090_s19 + $0x1670] sm:$0xff]  ;;  %v1307_v33 = vld [vmem:[%s37090_s19 + $0x2278] sm:$0x3] }
 0x571   : > { %18445 = vmatprep.mubr.f32.mxu1 %v531_v34  ;;  %32845 = vmatprep.mubr.f32.mxu0 %v915_v35  ;;  %v1691_v34 = vld [vmem:[%s37090_s19 + $0x2e78] sm:$0x3] }
 0x574   : > { %18446 = vmatmul.mubr.f32.vlgmr.msra.gmra.mrb[0].mxu1 %v530_v38  ;;  %32846 = vmatmul.mubr.f32.vlgmr.msra.gmra.mrb[0].mxu0 %v914_v39  ;;  %v1921_v38 = vld [vmem:[%s37084_s27 + $0x5a8] sm:$0xff]  ;;  %v1306_v39 = vld [vmem:[%s37090_s19 + $0x2270] sm:$0x3] }
 0x575   : > { %18457 = vmatpush1.xpose.msra.mxu1 %v3525_v22  ;;  %32857 = vmatpush1.xpose.msra.mxu0 %v5157_v23  ;;  %v5199_v22 = vcombine.high %v5191_v16, %v5191_v16  ;;  %v3552_v23 = vcombine.high %v1824_v9, %v1824_v9  ;;  %v5208_v44 = vrot.slane %v1921_v38, %v37096_v5 }
 0x576   : > { %18450 = vmatprep.mubr.f32.mxu1 %v1299_v40  ;;  %32850 = vmatprep.mubr.f32.mxu0 %v1683_v41  ;;  %v1690_v40 = vld [vmem:[%s37090_s19 + $0x2e70] sm:$0x3]  ;;  %v541_v41 = vld [vmem:[%s37090_s19 + $0xa88] sm:$0xff] }
 0x577   : > { %18531 = vmatprep.subr.mxu1 %v3534_v42  ;;  %32931 = vmatprep.subr.mxu0 %v5166_v43  ;;  %v3566_v29 = vrot.slane %v3552_v23, %v37096_v5  ;;  %v925_v42 = vld [vmem:[%s37090_s19 + $0x1688] sm:$0xff] }
 0x578   : > { %18451 = vmatmul.mubr.f32.gmra.mrb[2].mxu1 %v1298_v46  ;;  %32851 = vmatmul.mubr.f32.gmra.mrb[2].mxu0 %v1682_v47  ;;  %v924_v46 = vld [vmem:[%s37090_s19 + $0x1680] sm:$0xff]  ;;  %v1309_v47 = vld [vmem:[%s37090_s19 + $0x2288] sm:$0x3] }
 0x579   : > { %18520 = vmatprep.mubr.f32.mxu1 %v533_v48  ;;  %32920 = vmatprep.mubr.f32.mxu0 %v917_v49  ;;  %v3568_v35 = vcombine.high %v3566_v29, %v3566_v29  ;;  %v1693_v48 = vld [vmem:[%s37090_s19 + $0x2e88] sm:$0x3] }
 0x57c   : > { %18521 = vmatmul.mubr.f32.vlgmr.msra.gmra.mrb[0].mxu1 %v532_v52  ;;  %32921 = vmatmul.mubr.f32.vlgmr.msra.gmra.mrb[0].mxu0 %v916_v53  ;;  %v5201_v52 = vcombine.high %v1921_v38, %v1921_v38  ;;  %v1308_v53 = vld [vmem:[%s37090_s19 + $0x2280] sm:$0x3] }
 0x57d   : > { %18532 = vmatpush1.xpose.msra.mxu1 %v3532_v36  ;;  %32932 = vmatpush1.xpose.msra.mxu0 %v5164_v37  ;;  %v5200_v36 = vcombine.high %v5198_v30, %v5198_v30  ;;  %v1825_v37 = vld [vmem:[%s37084_s27 + $0x2a8] sm:$0xff]  ;;  %v548_v38 = vld [vmem:[%s37090_s19 + $0xac0] sm:$0xff] }
 0x57e   : > { %18525 = vmatprep.mubr.f32.mxu1 %v1301_v54  ;;  %32925 = vmatprep.mubr.f32.mxu0 %v1685_v55  ;;  %v3576_v43 = vrot.slane %v1825_v37, %v37096_v5  ;;  %v1692_v54 = vld [vmem:[%s37090_s19 + $0x2e80] sm:$0x3]  ;;  %v543_v55 = vld [vmem:[%s37090_s19 + $0xa98] sm:$0xff]  ;;  %v5215_v58 = vrot.slane %v5201_v52, %v37096_v5  ;;  %v550_v52 = vld [vmem:[%s37090_s19 + $0xad0] sm:$0xff] }
 0x57f   : > { %18606 = vmatprep.subr.mxu1 %v3550_v56  ;;  %33006 = vmatprep.subr.mxu0 %v5182_v57  ;;  %v927_v56 = vld [vmem:[%s37090_s19 + $0x1698] sm:$0xff] }
 0x580   : > { %18526 = vmatmul.mubr.f32.gmra.mrb[2].mxu1 %v1300_v60  ;;  %32926 = vmatmul.mubr.f32.gmra.mrb[2].mxu0 %v1684_v61  ;;  %v3584_v49 = vcombine.high %v3576_v43, %v3576_v43  ;;  %v926_v60 = vld [vmem:[%s37090_s19 + $0x1690] sm:$0xff]  ;;  %v1311_v61 = vld [vmem:[%s37090_s19 + $0x2298] sm:$0x3] }
 0x581   : > { %18595 = vmatprep.mubr.f32.mxu1 %v535_v62  ;;  %32995 = vmatprep.mubr.f32.mxu0 %v919_v63  ;;  %v1695_v62 = vld [vmem:[%s37090_s19 + $0x2e98] sm:$0x3] }
 0x584   : > { %18596 = vmatmul.mubr.f32.vlgmr.msra.gmra.mrb[0].mxu1 %v534_v2  ;;  %32996 = vmatmul.mubr.f32.vlgmr.msra.gmra.mrb[0].mxu0 %v918_v3  ;;  %v1922_v2 = vld [vmem:[%s37084_s27 + $0x5b0] sm:$0xff] }
 0x585   : > { %18607 = vmatpush1.xpose.msra.mxu1 %v3542_v50  ;;  %33007 = vmatpush1.xpose.msra.mxu0 %v5174_v51  ;;  %v5216_v50 = vcombine.high %v5208_v44, %v5208_v44  ;;  %v3569_v51 = vcombine.high %v1825_v37, %v1825_v37  ;;  %v1310_v3 = vld [vmem:[%s37090_s19 + $0x2290] sm:$0x3]  ;;  %v5225_v9 = vrot.slane %v1922_v2, %v37096_v5 }
 0x586   : > { %18600 = vmatprep.mubr.f32.mxu1 %v1303_v4  ;;  %33000 = vmatprep.mubr.f32.mxu0 %v1687_v6  ;;  %v1694_v4 = vld [vmem:[%s37090_s19 + $0x2e90] sm:$0x3]  ;;  %v545_v6 = vld [vmem:[%s37090_s19 + $0xaa8] sm:$0xff] }
 0x587   : > { %18681 = vmatprep.subr.mxu1 %v3551_v7  ;;  %33081 = vmatprep.subr.mxu0 %v5183_v8  ;;  %v3583_v57 = vrot.slane %v3569_v51, %v37096_v5  ;;  %v929_v7 = vld [vmem:[%s37090_s19 + $0x16a8] sm:$0xff] }
 0x588   : > { %18601 = vmatmul.mubr.f32.gmra.mrb[2].mxu1 %v1302_v11  ;;  %33001 = vmatmul.mubr.f32.gmra.mrb[2].mxu0 %v1686_v12  ;;  %v928_v11 = vld [vmem:[%s37090_s19 + $0x16a0] sm:$0xff]  ;;  %v1313_v12 = vld [vmem:[%s37090_s19 + $0x22a8] sm:$0x3] }
 0x589   : > { %18670 = vmatprep.mubr.f32.mxu1 %v537_v13  ;;  %33070 = vmatprep.mubr.f32.mxu0 %v921_v14  ;;  %v3585_v63 = vcombine.high %v3583_v57, %v3583_v57  ;;  %v1697_v13 = vld [vmem:[%s37090_s19 + $0x2ea8] sm:$0x3] }
 0x58c   : > { %18671 = vmatmul.mubr.f32.vlgmr.msra.gmra.mrb[0].mxu1 %v536_v17  ;;  %33071 = vmatmul.mubr.f32.vlgmr.msra.gmra.mrb[0].mxu0 %v920_v18  ;;  %v5218_v17 = vcombine.high %v1922_v2, %v1922_v2  ;;  %v1312_v18 = vld [vmem:[%s37090_s19 + $0x22a0] sm:$0x3] }
 0x58d   : > { %18682 = vmatpush1.xpose.msra.mxu1 %v3549_v0  ;;  %33082 = vmatpush1.xpose.msra.mxu0 %v5181_v1  ;;  %v5217_v0 = vcombine.high %v5215_v58, %v5215_v58  ;;  %v1826_v1 = vld [vmem:[%s37084_s27 + $0x2b0] sm:$0xff]  ;;  %v552_v2 = vld [vmem:[%s37090_s19 + $0xae0] sm:$0xff] }
 0x58e   : > { %18675 = vmatprep.mubr.f32.mxu1 %v1305_v19  ;;  %33075 = vmatprep.mubr.f32.mxu0 %v1689_v20  ;;  %v3593_v8 = vrot.slane %v1826_v1, %v37096_v5  ;;  %v1696_v19 = vld [vmem:[%s37090_s19 + $0x2ea0] sm:$0x3]  ;;  %v547_v20 = vld [vmem:[%s37090_s19 + $0xab8] sm:$0xff]  ;;  %v5232_v23 = vrot.slane %v5218_v17, %v37096_v5  ;;  %v554_v17 = vld [vmem:[%s37090_s19 + $0xaf0] sm:$0xff] }
 0x58f   : > { %18756 = vmatprep.subr.mxu1 %v3567_v21  ;;  %33156 = vmatprep.subr.mxu0 %v5199_v22  ;;  %v931_v21 = vld [vmem:[%s37090_s19 + $0x16b8] sm:$0xff] }
 0x590   : > { %18676 = vmatmul.mubr.f32.gmra.mrb[2].mxu1 %v1304_v25  ;;  %33076 = vmatmul.mubr.f32.gmra.mrb[2].mxu0 %v1688_v26  ;;  %v3601_v14 = vcombine.high %v3593_v8, %v3593_v8  ;;  %v930_v25 = vld [vmem:[%s37090_s19 + $0x16b0] sm:$0xff]  ;;  %v1315_v26 = vld [vmem:[%s37090_s19 + $0x22b8] sm:$0x3] }
 0x591   : > { %18745 = vmatprep.mubr.f32.mxu1 %v539_v27  ;;  %33145 = vmatprep.mubr.f32.mxu0 %v923_v28  ;;  %v1699_v27 = vld [vmem:[%s37090_s19 + $0x2eb8] sm:$0x3] }
 0x594   : > { %18746 = vmatmul.mubr.f32.vlgmr.msra.gmra.mrb[0].mxu1 %v538_v31  ;;  %33146 = vmatmul.mubr.f32.vlgmr.msra.gmra.mrb[0].mxu0 %v922_v32  ;;  %v1923_v31 = vld [vmem:[%s37084_s27 + $0x5b8] sm:$0xff]  ;;  %v1314_v32 = vld [vmem:[%s37090_s19 + $0x22b0] sm:$0x3] }
 0x595   : > { %18757 = vmatpush1.xpose.msra.mxu1 %v3559_v15  ;;  %33157 = vmatpush1.xpose.msra.mxu0 %v5191_v16  ;;  %v5233_v15 = vcombine.high %v5225_v9, %v5225_v9  ;;  %v3586_v16 = vcombine.high %v1826_v1, %v1826_v1  ;;  %v5242_v37 = vrot.slane %v1923_v31, %v37096_v5 }
 0x596   : > { %18750 = vmatprep.mubr.f32.mxu1 %v1307_v33  ;;  %33150 = vmatprep.mubr.f32.mxu0 %v1691_v34  ;;  %v1698_v33 = vld [vmem:[%s37090_s19 + $0x2eb0] sm:$0x3]  ;;  %v549_v34 = vld [vmem:[%s37090_s19 + $0xac8] sm:$0xff] }
 0x597   : > { %18831 = vmatprep.subr.mxu1 %v3568_v35  ;;  %33231 = vmatprep.subr.mxu0 %v5200_v36  ;;  %v3600_v22 = vrot.slane %v3586_v16, %v37096_v5  ;;  %v933_v35 = vld [vmem:[%s37090_s19 + $0x16c8] sm:$0xff] }
 0x598   : > { %18751 = vmatmul.mubr.f32.gmra.mrb[2].mxu1 %v1306_v39  ;;  %33151 = vmatmul.mubr.f32.gmra.mrb[2].mxu0 %v1690_v40  ;;  %v932_v39 = vld [vmem:[%s37090_s19 + $0x16c0] sm:$0xff]  ;;  %v1317_v40 = vld [vmem:[%s37090_s19 + $0x22c8] sm:$0x3] }
 0x599   : > { %18820 = vmatprep.mubr.f32.mxu1 %v541_v41  ;;  %33220 = vmatprep.mubr.f32.mxu0 %v925_v42  ;;  %v3602_v28 = vcombine.high %v3600_v22, %v3600_v22  ;;  %v1701_v41 = vld [vmem:[%s37090_s19 + $0x2ec8] sm:$0x3] }
 0x59c   : > { %18821 = vmatmul.mubr.f32.vlgmr.msra.gmra.mrb[0].mxu1 %v540_v45  ;;  %33221 = vmatmul.mubr.f32.vlgmr.msra.gmra.mrb[0].mxu0 %v924_v46  ;;  %v5235_v45 = vcombine.high %v1923_v31, %v1923_v31  ;;  %v1316_v46 = vld [vmem:[%s37090_s19 + $0x22c0] sm:$0x3] }
 0x59d   : > { %18832 = vmatpush1.xpose.msra.mxu1 %v3566_v29  ;;  %33232 = vmatpush1.xpose.msra.mxu0 %v5198_v30  ;;  %v5234_v29 = vcombine.high %v5232_v23, %v5232_v23  ;;  %v1827_v30 = vld [vmem:[%s37084_s27 + $0x2b8] sm:$0xff]  ;;  %v556_v31 = vld [vmem:[%s37090_s19 + $0xb00] sm:$0xff] }
 0x59e   : > { %18825 = vmatprep.mubr.f32.mxu1 %v1309_v47  ;;  %33225 = vmatprep.mubr.f32.mxu0 %v1693_v48  ;;  %v3610_v36 = vrot.slane %v1827_v30, %v37096_v5  ;;  %v1700_v47 = vld [vmem:[%s37090_s19 + $0x2ec0] sm:$0x3]  ;;  %v551_v48 = vld [vmem:[%s37090_s19 + $0xad8] sm:$0xff]  ;;  %v5249_v51 = vrot.slane %v5235_v45, %v37096_v5  ;;  %v558_v45 = vld [vmem:[%s37090_s19 + $0xb10] sm:$0xff] }
 0x59f   : > { %18906 = vmatprep.subr.mxu1 %v3584_v49  ;;  %33306 = vmatprep.subr.mxu0 %v5216_v50  ;;  %v935_v49 = vld [vmem:[%s37090_s19 + $0x16d8] sm:$0xff] }
 0x5a0   : > { %18826 = vmatmul.mubr.f32.gmra.mrb[2].mxu1 %v1308_v53  ;;  %33226 = vmatmul.mubr.f32.gmra.mrb[2].mxu0 %v1692_v54  ;;  %v3618_v42 = vcombine.high %v3610_v36, %v3610_v36  ;;  %v934_v53 = vld [vmem:[%s37090_s19 + $0x16d0] sm:$0xff]  ;;  %v1319_v54 = vld [vmem:[%s37090_s19 + $0x22d8] sm:$0x3] }
 0x5a1   : > { %18895 = vmatprep.mubr.f32.mxu1 %v543_v55  ;;  %33295 = vmatprep.mubr.f32.mxu0 %v927_v56  ;;  %v1703_v55 = vld [vmem:[%s37090_s19 + $0x2ed8] sm:$0x3] }
 0x5a4   : > { %18896 = vmatmul.mubr.f32.vlgmr.msra.gmra.mrb[0].mxu1 %v542_v59  ;;  %33296 = vmatmul.mubr.f32.vlgmr.msra.gmra.mrb[0].mxu0 %v926_v60  ;;  %v1924_v59 = vld [vmem:[%s37084_s27 + $0x5c0] sm:$0xff]  ;;  %v1318_v60 = vld [vmem:[%s37090_s19 + $0x22d0] sm:$0x3] }
 0x5a5   : > { %18907 = vmatpush1.xpose.msra.mxu1 %v3576_v43  ;;  %33307 = vmatpush1.xpose.msra.mxu0 %v5208_v44  ;;  %v5250_v43 = vcombine.high %v5242_v37, %v5242_v37  ;;  %v3603_v44 = vcombine.high %v1827_v30, %v1827_v30  ;;  %v5259_v1 = vrot.slane %v1924_v59, %v37096_v5 }
 0x5a6   : > { %18900 = vmatprep.mubr.f32.mxu1 %v1311_v61  ;;  %33300 = vmatprep.mubr.f32.mxu0 %v1695_v62  ;;  %v1702_v61 = vld [vmem:[%s37090_s19 + $0x2ed0] sm:$0x3]  ;;  %v553_v62 = vld [vmem:[%s37090_s19 + $0xae8] sm:$0xff] }
 0x5a7   : > { %18981 = vmatprep.subr.mxu1 %v3585_v63  ;;  %33381 = vmatprep.subr.mxu0 %v5217_v0  ;;  %v3617_v50 = vrot.slane %v3603_v44, %v37096_v5  ;;  %v937_v63 = vld [vmem:[%s37090_s19 + $0x16e8] sm:$0xff] }
 0x5a8   : > { %18901 = vmatmul.mubr.f32.gmra.mrb[2].mxu1 %v1310_v3  ;;  %33301 = vmatmul.mubr.f32.gmra.mrb[2].mxu0 %v1694_v4  ;;  %v936_v3 = vld [vmem:[%s37090_s19 + $0x16e0] sm:$0xff]  ;;  %v1321_v4 = vld [vmem:[%s37090_s19 + $0x22e8] sm:$0x3] }
 0x5a9   : > { %18970 = vmatprep.mubr.f32.mxu1 %v545_v6  ;;  %33370 = vmatprep.mubr.f32.mxu0 %v929_v7  ;;  %v3619_v56 = vcombine.high %v3617_v50, %v3617_v50  ;;  %v1705_v6 = vld [vmem:[%s37090_s19 + $0x2ee8] sm:$0x3] }
 0x5ac   : > { %18971 = vmatmul.mubr.f32.vlgmr.msra.gmra.mrb[0].mxu1 %v544_v10  ;;  %33371 = vmatmul.mubr.f32.vlgmr.msra.gmra.mrb[0].mxu0 %v928_v11  ;;  %v5252_v10 = vcombine.high %v1924_v59, %v1924_v59  ;;  %v1320_v11 = vld [vmem:[%s37090_s19 + $0x22e0] sm:$0x3] }
 0x5ad   : > { %18982 = vmatpush1.xpose.msra.mxu1 %v3583_v57  ;;  %33382 = vmatpush1.xpose.msra.mxu0 %v5215_v58  ;;  %v5251_v57 = vcombine.high %v5249_v51, %v5249_v51  ;;  %v1828_v58 = vld [vmem:[%s37084_s27 + $0x2c0] sm:$0xff] }
 0x5ae   : > { %18975 = vmatprep.mubr.f32.mxu1 %v1313_v12  ;;  %33375 = vmatprep.mubr.f32.mxu0 %v1697_v13  ;;  %v3627_v0 = vrot.slane %v1828_v58, %v37096_v5  ;;  %v1704_v12 = vld [vmem:[%s37090_s19 + $0x2ee0] sm:$0x3]  ;;  %v555_v13 = vld [vmem:[%s37090_s19 + $0xaf8] sm:$0xff]  ;;  %v5266_v16 = vrot.slane %v5252_v10, %v37096_v5  ;;  %v562_v10 = vld [vmem:[%s37090_s19 + $0xb30] sm:$0xff] }
 0x5af   : > { %19056 = vmatprep.subr.mxu1 %v3601_v14  ;;  %33456 = vmatprep.subr.mxu0 %v5233_v15  ;;  %v939_v14 = vld [vmem:[%s37090_s19 + $0x16f8] sm:$0xff]  ;;  %v560_v59 = vld [vmem:[%s37090_s19 + $0xb20] sm:$0xff] }
 0x5b0   : > { %18976 = vmatmul.mubr.f32.gmra.mrb[2].mxu1 %v1312_v18  ;;  %33376 = vmatmul.mubr.f32.gmra.mrb[2].mxu0 %v1696_v19  ;;  %v3635_v7 = vcombine.high %v3627_v0, %v3627_v0  ;;  %v938_v18 = vld [vmem:[%s37090_s19 + $0x16f0] sm:$0xff]  ;;  %v1323_v19 = vld [vmem:[%s37090_s19 + $0x22f8] sm:$0x3] }
 0x5b1   : > { %19045 = vmatprep.mubr.f32.mxu1 %v547_v20  ;;  %33445 = vmatprep.mubr.f32.mxu0 %v931_v21  ;;  %v1707_v20 = vld [vmem:[%s37090_s19 + $0x2ef8] sm:$0x3] }
 0x5b4   : > { %19046 = vmatmul.mubr.f32.vlgmr.msra.gmra.mrb[0].mxu1 %v546_v24  ;;  %33446 = vmatmul.mubr.f32.vlgmr.msra.gmra.mrb[0].mxu0 %v930_v25  ;;  %v1925_v24 = vld [vmem:[%s37084_s27 + $0x5c8] sm:$0xff]  ;;  %v1322_v25 = vld [vmem:[%s37090_s19 + $0x22f0] sm:$0x3] }
 0x5b5   : > { %19057 = vmatpush1.xpose.msra.mxu1 %v3593_v8  ;;  %33457 = vmatpush1.xpose.msra.mxu0 %v5225_v9  ;;  %v5267_v8 = vcombine.high %v5259_v1, %v5259_v1  ;;  %v3620_v9 = vcombine.high %v1828_v58, %v1828_v58  ;;  %v5276_v30 = vrot.slane %v1925_v24, %v37096_v5 }
 0x5b6   : > { %19050 = vmatprep.mubr.f32.mxu1 %v1315_v26  ;;  %33450 = vmatprep.mubr.f32.mxu0 %v1699_v27  ;;  %v1706_v26 = vld [vmem:[%s37090_s19 + $0x2ef0] sm:$0x3]  ;;  %v557_v27 = vld [vmem:[%s37090_s19 + $0xb08] sm:$0xff] }
 0x5b7   : > { %19131 = vmatprep.subr.mxu1 %v3602_v28  ;;  %33531 = vmatprep.subr.mxu0 %v5234_v29  ;;  %v3634_v15 = vrot.slane %v3620_v9, %v37096_v5  ;;  %v941_v28 = vld [vmem:[%s37090_s19 + $0x1708] sm:$0xff] }
 0x5b8   : > { %19051 = vmatmul.mubr.f32.gmra.mrb[2].mxu1 %v1314_v32  ;;  %33451 = vmatmul.mubr.f32.gmra.mrb[2].mxu0 %v1698_v33  ;;  %v940_v32 = vld [vmem:[%s37090_s19 + $0x1700] sm:$0xff]  ;;  %v1325_v33 = vld [vmem:[%s37090_s19 + $0x2308] sm:$0x3] }
 0x5b9   : > { %19120 = vmatprep.mubr.f32.mxu1 %v549_v34  ;;  %33520 = vmatprep.mubr.f32.mxu0 %v933_v35  ;;  %v3636_v21 = vcombine.high %v3634_v15, %v3634_v15  ;;  %v1709_v34 = vld [vmem:[%s37090_s19 + $0x2f08] sm:$0x3] }
 0x5bc   : > { %19121 = vmatmul.mubr.f32.vlgmr.msra.gmra.mrb[0].mxu1 %v548_v38  ;;  %33521 = vmatmul.mubr.f32.vlgmr.msra.gmra.mrb[0].mxu0 %v932_v39  ;;  %v5269_v38 = vcombine.high %v1925_v24, %v1925_v24  ;;  %v1324_v39 = vld [vmem:[%s37090_s19 + $0x2300] sm:$0x3] }
 0x5bd   : > { %19132 = vmatpush1.xpose.msra.mxu1 %v3600_v22  ;;  %33532 = vmatpush1.xpose.msra.mxu0 %v5232_v23  ;;  %v5268_v22 = vcombine.high %v5266_v16, %v5266_v16  ;;  %v1829_v23 = vld [vmem:[%s37084_s27 + $0x2c8] sm:$0xff]  ;;  %v564_v24 = vld [vmem:[%s37090_s19 + $0xb40] sm:$0xff] }
 0x5be   : > { %19125 = vmatprep.mubr.f32.mxu1 %v1317_v40  ;;  %33525 = vmatprep.mubr.f32.mxu0 %v1701_v41  ;;  %v3644_v29 = vrot.slane %v1829_v23, %v37096_v5  ;;  %v1708_v40 = vld [vmem:[%s37090_s19 + $0x2f00] sm:$0x3]  ;;  %v559_v41 = vld [vmem:[%s37090_s19 + $0xb18] sm:$0xff]  ;;  %v5283_v44 = vrot.slane %v5269_v38, %v37096_v5  ;;  %v566_v38 = vld [vmem:[%s37090_s19 + $0xb50] sm:$0xff] }
 0x5bf   : > { %19206 = vmatprep.subr.mxu1 %v3618_v42  ;;  %33606 = vmatprep.subr.mxu0 %v5250_v43  ;;  %v943_v42 = vld [vmem:[%s37090_s19 + $0x1718] sm:$0xff] }
 0x5c0   : > { %19126 = vmatmul.mubr.f32.gmra.mrb[2].mxu1 %v1316_v46  ;;  %33526 = vmatmul.mubr.f32.gmra.mrb[2].mxu0 %v1700_v47  ;;  %v3652_v35 = vcombine.high %v3644_v29, %v3644_v29  ;;  %v942_v46 = vld [vmem:[%s37090_s19 + $0x1710] sm:$0xff]  ;;  %v1327_v47 = vld [vmem:[%s37090_s19 + $0x2318] sm:$0x3] }
 0x5c1   : > { %19195 = vmatprep.mubr.f32.mxu1 %v551_v48  ;;  %33595 = vmatprep.mubr.f32.mxu0 %v935_v49  ;;  %v1711_v48 = vld [vmem:[%s37090_s19 + $0x2f18] sm:$0x3] }
 0x5c4   : > { %19196 = vmatmul.mubr.f32.vlgmr.msra.gmra.mrb[0].mxu1 %v550_v52  ;;  %33596 = vmatmul.mubr.f32.vlgmr.msra.gmra.mrb[0].mxu0 %v934_v53  ;;  %v1926_v52 = vld [vmem:[%s37084_s27 + $0x5d0] sm:$0xff] }
 0x5c5   : > { %19207 = vmatpush1.xpose.msra.mxu1 %v3610_v36  ;;  %33607 = vmatpush1.xpose.msra.mxu0 %v5242_v37  ;;  %v5284_v36 = vcombine.high %v5276_v30, %v5276_v30  ;;  %v3637_v37 = vcombine.high %v1829_v23, %v1829_v23  ;;  %v1326_v53 = vld [vmem:[%s37090_s19 + $0x2310] sm:$0x3]  ;;  %v5293_v58 = vrot.slane %v1926_v52, %v37096_v5 }
 0x5c6   : > { %19200 = vmatprep.mubr.f32.mxu1 %v1319_v54  ;;  %33600 = vmatprep.mubr.f32.mxu0 %v1703_v55  ;;  %v1710_v54 = vld [vmem:[%s37090_s19 + $0x2f10] sm:$0x3]  ;;  %v561_v55 = vld [vmem:[%s37090_s19 + $0xb28] sm:$0xff] }
 0x5c7   : > { %19281 = vmatprep.subr.mxu1 %v3619_v56  ;;  %33681 = vmatprep.subr.mxu0 %v5251_v57  ;;  %v3651_v43 = vrot.slane %v3637_v37, %v37096_v5  ;;  %v945_v56 = vld [vmem:[%s37090_s19 + $0x1728] sm:$0xff] }
 0x5c8   : > { %19201 = vmatmul.mubr.f32.gmra.mrb[2].mxu1 %v1318_v60  ;;  %33601 = vmatmul.mubr.f32.gmra.mrb[2].mxu0 %v1702_v61  ;;  %v944_v60 = vld [vmem:[%s37090_s19 + $0x1720] sm:$0xff]  ;;  %v1329_v61 = vld [vmem:[%s37090_s19 + $0x2328] sm:$0x3] }
 0x5c9   : > { %19270 = vmatprep.mubr.f32.mxu1 %v553_v62  ;;  %33670 = vmatprep.mubr.f32.mxu0 %v937_v63  ;;  %v3653_v49 = vcombine.high %v3651_v43, %v3651_v43  ;;  %v1713_v62 = vld [vmem:[%s37090_s19 + $0x2f28] sm:$0x3] }
 0x5cc   : > { %19271 = vmatmul.mubr.f32.vlgmr.msra.gmra.mrb[0].mxu1 %v552_v2  ;;  %33671 = vmatmul.mubr.f32.vlgmr.msra.gmra.mrb[0].mxu0 %v936_v3  ;;  %v5286_v2 = vcombine.high %v1926_v52, %v1926_v52  ;;  %v1328_v3 = vld [vmem:[%s37090_s19 + $0x2320] sm:$0x3] }
 0x5cd   : > { %19282 = vmatpush1.xpose.msra.mxu1 %v3617_v50  ;;  %33682 = vmatpush1.xpose.msra.mxu0 %v5249_v51  ;;  %v5285_v50 = vcombine.high %v5283_v44, %v5283_v44  ;;  %v1830_v51 = vld [vmem:[%s37084_s27 + $0x2d0] sm:$0xff]  ;;  %v568_v52 = vld [vmem:[%s37090_s19 + $0xb60] sm:$0xff] }
 0x5ce   : > { %19275 = vmatprep.mubr.f32.mxu1 %v1321_v4  ;;  %33675 = vmatprep.mubr.f32.mxu0 %v1705_v6  ;;  %v3661_v57 = vrot.slane %v1830_v51, %v37096_v5  ;;  %v1712_v4 = vld [vmem:[%s37090_s19 + $0x2f20] sm:$0x3]  ;;  %v563_v6 = vld [vmem:[%s37090_s19 + $0xb38] sm:$0xff]  ;;  %v5300_v9 = vrot.slane %v5286_v2, %v37096_v5  ;;  %v570_v2 = vld [vmem:[%s37090_s19 + $0xb70] sm:$0xff] }
 0x5cf   : > { %19356 = vmatprep.subr.mxu1 %v3635_v7  ;;  %33756 = vmatprep.subr.mxu0 %v5267_v8  ;;  %v947_v7 = vld [vmem:[%s37090_s19 + $0x1738] sm:$0xff] }
 0x5d0   : > { %19276 = vmatmul.mubr.f32.gmra.mrb[2].mxu1 %v1320_v11  ;;  %33676 = vmatmul.mubr.f32.gmra.mrb[2].mxu0 %v1704_v12  ;;  %v3669_v63 = vcombine.high %v3661_v57, %v3661_v57  ;;  %v946_v11 = vld [vmem:[%s37090_s19 + $0x1730] sm:$0xff]  ;;  %v1331_v12 = vld [vmem:[%s37090_s19 + $0x2338] sm:$0x3] }
 0x5d1   : > { %19345 = vmatprep.mubr.f32.mxu1 %v555_v13  ;;  %33745 = vmatprep.mubr.f32.mxu0 %v939_v14  ;;  %v1715_v13 = vld [vmem:[%s37090_s19 + $0x2f38] sm:$0x3] }
 0x5d4   : > { %19346 = vmatmul.mubr.f32.vlgmr.msra.gmra.mrb[0].mxu1 %v554_v17  ;;  %33746 = vmatmul.mubr.f32.vlgmr.msra.gmra.mrb[0].mxu0 %v938_v18  ;;  %v1927_v17 = vld [vmem:[%s37084_s27 + $0x5d8] sm:$0xff]  ;;  %v1330_v18 = vld [vmem:[%s37090_s19 + $0x2330] sm:$0x3] }
 0x5d5   : > { %19357 = vmatpush1.xpose.msra.mxu1 %v3627_v0  ;;  %33757 = vmatpush1.xpose.msra.mxu0 %v5259_v1  ;;  %v5301_v0 = vcombine.high %v5293_v58, %v5293_v58  ;;  %v3654_v1 = vcombine.high %v1830_v51, %v1830_v51  ;;  %v5310_v23 = vrot.slane %v1927_v17, %v37096_v5 }
 0x5d6   : > { %19350 = vmatprep.mubr.f32.mxu1 %v1323_v19  ;;  %33750 = vmatprep.mubr.f32.mxu0 %v1707_v20  ;;  %v1714_v19 = vld [vmem:[%s37090_s19 + $0x2f30] sm:$0x3]  ;;  %v565_v20 = vld [vmem:[%s37090_s19 + $0xb48] sm:$0xff] }
 0x5d7   : > { %19431 = vmatprep.subr.mxu1 %v3636_v21  ;;  %33831 = vmatprep.subr.mxu0 %v5268_v22  ;;  %v3668_v8 = vrot.slane %v3654_v1, %v37096_v5  ;;  %v949_v21 = vld [vmem:[%s37090_s19 + $0x1748] sm:$0xff] }
 0x5d8   : > { %19351 = vmatmul.mubr.f32.gmra.mrb[2].mxu1 %v1322_v25  ;;  %33751 = vmatmul.mubr.f32.gmra.mrb[2].mxu0 %v1706_v26  ;;  %v948_v25 = vld [vmem:[%s37090_s19 + $0x1740] sm:$0xff]  ;;  %v1333_v26 = vld [vmem:[%s37090_s19 + $0x2348] sm:$0x3] }
 0x5d9   : > { %19420 = vmatprep.mubr.f32.mxu1 %v557_v27  ;;  %33820 = vmatprep.mubr.f32.mxu0 %v941_v28  ;;  %v3670_v14 = vcombine.high %v3668_v8, %v3668_v8  ;;  %v1717_v27 = vld [vmem:[%s37090_s19 + $0x2f48] sm:$0x3] }
 0x5dc   : > { %19421 = vmatmul.mubr.f32.vlgmr.msra.gmra.mrb[0].mxu1 %v556_v31  ;;  %33821 = vmatmul.mubr.f32.vlgmr.msra.gmra.mrb[0].mxu0 %v940_v32  ;;  %v5303_v31 = vcombine.high %v1927_v17, %v1927_v17  ;;  %v1332_v32 = vld [vmem:[%s37090_s19 + $0x2340] sm:$0x3] }
 0x5dd   : > { %19432 = vmatpush1.xpose.msra.mxu1 %v3634_v15  ;;  %33832 = vmatpush1.xpose.msra.mxu0 %v5266_v16  ;;  %v5302_v15 = vcombine.high %v5300_v9, %v5300_v9  ;;  %v1831_v16 = vld [vmem:[%s37084_s27 + $0x2d8] sm:$0xff]  ;;  %v572_v17 = vld [vmem:[%s37090_s19 + $0xb80] sm:$0xff] }
 0x5de   : > { %19425 = vmatprep.mubr.f32.mxu1 %v1325_v33  ;;  %33825 = vmatprep.mubr.f32.mxu0 %v1709_v34  ;;  %v3678_v22 = vrot.slane %v1831_v16, %v37096_v5  ;;  %v1716_v33 = vld [vmem:[%s37090_s19 + $0x2f40] sm:$0x3]  ;;  %v567_v34 = vld [vmem:[%s37090_s19 + $0xb58] sm:$0xff]  ;;  %v5317_v37 = vrot.slane %v5303_v31, %v37096_v5  ;;  %v574_v31 = vld [vmem:[%s37090_s19 + $0xb90] sm:$0xff] }
 0x5df   : > { %19506 = vmatprep.subr.mxu1 %v3652_v35  ;;  %33906 = vmatprep.subr.mxu0 %v5284_v36  ;;  %v951_v35 = vld [vmem:[%s37090_s19 + $0x1758] sm:$0xff] }
 0x5e0   : > { %19426 = vmatmul.mubr.f32.gmra.mrb[2].mxu1 %v1324_v39  ;;  %33826 = vmatmul.mubr.f32.gmra.mrb[2].mxu0 %v1708_v40  ;;  %v3686_v28 = vcombine.high %v3678_v22, %v3678_v22  ;;  %v950_v39 = vld [vmem:[%s37090_s19 + $0x1750] sm:$0xff]  ;;  %v1335_v40 = vld [vmem:[%s37090_s19 + $0x2358] sm:$0x3] }
 0x5e1   : > { %19495 = vmatprep.mubr.f32.mxu1 %v559_v41  ;;  %33895 = vmatprep.mubr.f32.mxu0 %v943_v42  ;;  %v1719_v41 = vld [vmem:[%s37090_s19 + $0x2f58] sm:$0x3] }
 0x5e4   : > { %19496 = vmatmul.mubr.f32.vlgmr.msra.gmra.mrb[0].mxu1 %v558_v45  ;;  %33896 = vmatmul.mubr.f32.vlgmr.msra.gmra.mrb[0].mxu0 %v942_v46  ;;  %v1928_v45 = vld [vmem:[%s37084_s27 + $0x5e0] sm:$0xff]  ;;  %v1334_v46 = vld [vmem:[%s37090_s19 + $0x2350] sm:$0x3] }
 0x5e5   : > { %19507 = vmatpush1.xpose.msra.mxu1 %v3644_v29  ;;  %33907 = vmatpush1.xpose.msra.mxu0 %v5276_v30  ;;  %v5318_v29 = vcombine.high %v5310_v23, %v5310_v23  ;;  %v3671_v30 = vcombine.high %v1831_v16, %v1831_v16  ;;  %v5327_v51 = vrot.slane %v1928_v45, %v37096_v5 }
 0x5e6   : > { %19500 = vmatprep.mubr.f32.mxu1 %v1327_v47  ;;  %33900 = vmatprep.mubr.f32.mxu0 %v1711_v48  ;;  %v1718_v47 = vld [vmem:[%s37090_s19 + $0x2f50] sm:$0x3]  ;;  %v569_v48 = vld [vmem:[%s37090_s19 + $0xb68] sm:$0xff] }
 0x5e7   : > { %19581 = vmatprep.subr.mxu1 %v3653_v49  ;;  %33981 = vmatprep.subr.mxu0 %v5285_v50  ;;  %v3685_v36 = vrot.slane %v3671_v30, %v37096_v5  ;;  %v953_v49 = vld [vmem:[%s37090_s19 + $0x1768] sm:$0xff] }
 0x5e8   : > { %19501 = vmatmul.mubr.f32.gmra.mrb[2].mxu1 %v1326_v53  ;;  %33901 = vmatmul.mubr.f32.gmra.mrb[2].mxu0 %v1710_v54  ;;  %v952_v53 = vld [vmem:[%s37090_s19 + $0x1760] sm:$0xff]  ;;  %v1337_v54 = vld [vmem:[%s37090_s19 + $0x2368] sm:$0x3] }
 0x5e9   : > { %19570 = vmatprep.mubr.f32.mxu1 %v561_v55  ;;  %33970 = vmatprep.mubr.f32.mxu0 %v945_v56  ;;  %v3687_v42 = vcombine.high %v3685_v36, %v3685_v36  ;;  %v1721_v55 = vld [vmem:[%s37090_s19 + $0x2f68] sm:$0x3] }
 0x5ec   : > { %19571 = vmatmul.mubr.f32.vlgmr.msra.gmra.mrb[0].mxu1 %v560_v59  ;;  %33971 = vmatmul.mubr.f32.vlgmr.msra.gmra.mrb[0].mxu0 %v944_v60  ;;  %v5320_v59 = vcombine.high %v1928_v45, %v1928_v45  ;;  %v1336_v60 = vld [vmem:[%s37090_s19 + $0x2360] sm:$0x3] }
 0x5ed   : > { %19582 = vmatpush1.xpose.msra.mxu1 %v3651_v43  ;;  %33982 = vmatpush1.xpose.msra.mxu0 %v5283_v44  ;;  %v5319_v43 = vcombine.high %v5317_v37, %v5317_v37  ;;  %v1832_v44 = vld [vmem:[%s37084_s27 + $0x2e0] sm:$0xff] }
 0x5ee   : > { %19575 = vmatprep.mubr.f32.mxu1 %v1329_v61  ;;  %33975 = vmatprep.mubr.f32.mxu0 %v1713_v62  ;;  %v3695_v50 = vrot.slane %v1832_v44, %v37096_v5  ;;  %v1720_v61 = vld [vmem:[%s37090_s19 + $0x2f60] sm:$0x3]  ;;  %v571_v62 = vld [vmem:[%s37090_s19 + $0xb78] sm:$0xff]  ;;  %v5334_v1 = vrot.slane %v5320_v59, %v37096_v5  ;;  %v578_v59 = vld [vmem:[%s37090_s19 + $0xbb0] sm:$0xff] }
 0x5ef   : > { %19656 = vmatprep.subr.mxu1 %v3669_v63  ;;  %34056 = vmatprep.subr.mxu0 %v5301_v0  ;;  %v955_v63 = vld [vmem:[%s37090_s19 + $0x1778] sm:$0xff]  ;;  %v576_v45 = vld [vmem:[%s37090_s19 + $0xba0] sm:$0xff] }
 0x5f0   : > { %19576 = vmatmul.mubr.f32.gmra.mrb[2].mxu1 %v1328_v3  ;;  %33976 = vmatmul.mubr.f32.gmra.mrb[2].mxu0 %v1712_v4  ;;  %v3703_v56 = vcombine.high %v3695_v50, %v3695_v50  ;;  %v954_v3 = vld [vmem:[%s37090_s19 + $0x1770] sm:$0xff]  ;;  %v1339_v4 = vld [vmem:[%s37090_s19 + $0x2378] sm:$0x3] }
 0x5f1   : > { %19645 = vmatprep.mubr.f32.mxu1 %v563_v6  ;;  %34045 = vmatprep.mubr.f32.mxu0 %v947_v7  ;;  %v1723_v6 = vld [vmem:[%s37090_s19 + $0x2f78] sm:$0x3] }
 0x5f4   : > { %19646 = vmatmul.mubr.f32.vlgmr.msra.gmra.mrb[0].mxu1 %v562_v10  ;;  %34046 = vmatmul.mubr.f32.vlgmr.msra.gmra.mrb[0].mxu0 %v946_v11  ;;  %v1929_v10 = vld [vmem:[%s37084_s27 + $0x5e8] sm:$0xff]  ;;  %v1338_v11 = vld [vmem:[%s37090_s19 + $0x2370] sm:$0x3] }
 0x5f5   : > { %19657 = vmatpush1.xpose.msra.mxu1 %v3661_v57  ;;  %34057 = vmatpush1.xpose.msra.mxu0 %v5293_v58  ;;  %v5335_v57 = vcombine.high %v5327_v51, %v5327_v51  ;;  %v3688_v58 = vcombine.high %v1832_v44, %v1832_v44  ;;  %v5344_v16 = vrot.slane %v1929_v10, %v37096_v5 }
 0x5f6   : > { %19650 = vmatprep.mubr.f32.mxu1 %v1331_v12  ;;  %34050 = vmatprep.mubr.f32.mxu0 %v1715_v13  ;;  %v1722_v12 = vld [vmem:[%s37090_s19 + $0x2f70] sm:$0x3]  ;;  %v573_v13 = vld [vmem:[%s37090_s19 + $0xb88] sm:$0xff] }
 0x5f7   : > { %19731 = vmatprep.subr.mxu1 %v3670_v14  ;;  %34131 = vmatprep.subr.mxu0 %v5302_v15  ;;  %v3702_v0 = vrot.slane %v3688_v58, %v37096_v5  ;;  %v957_v14 = vld [vmem:[%s37090_s19 + $0x1788] sm:$0xff] }
 0x5f8   : > { %19651 = vmatmul.mubr.f32.gmra.mrb[2].mxu1 %v1330_v18  ;;  %34051 = vmatmul.mubr.f32.gmra.mrb[2].mxu0 %v1714_v19  ;;  %v956_v18 = vld [vmem:[%s37090_s19 + $0x1780] sm:$0xff]  ;;  %v1341_v19 = vld [vmem:[%s37090_s19 + $0x2388] sm:$0x3] }
 0x5f9   : > { %19720 = vmatprep.mubr.f32.mxu1 %v565_v20  ;;  %34120 = vmatprep.mubr.f32.mxu0 %v949_v21  ;;  %v3704_v7 = vcombine.high %v3702_v0, %v3702_v0  ;;  %v1725_v20 = vld [vmem:[%s37090_s19 + $0x2f88] sm:$0x3] }
 0x5fc   : > { %19721 = vmatmul.mubr.f32.vlgmr.msra.gmra.mrb[0].mxu1 %v564_v24  ;;  %34121 = vmatmul.mubr.f32.vlgmr.msra.gmra.mrb[0].mxu0 %v948_v25  ;;  %v5337_v24 = vcombine.high %v1929_v10, %v1929_v10  ;;  %v1340_v25 = vld [vmem:[%s37090_s19 + $0x2380] sm:$0x3] }
 0x5fd   : > { %19732 = vmatpush1.xpose.msra.mxu1 %v3668_v8  ;;  %34132 = vmatpush1.xpose.msra.mxu0 %v5300_v9  ;;  %v5336_v8 = vcombine.high %v5334_v1, %v5334_v1  ;;  %v1833_v9 = vld [vmem:[%s37084_s27 + $0x2e8] sm:$0xff]  ;;  %v580_v10 = vld [vmem:[%s37090_s19 + $0xbc0] sm:$0xff] }
 0x5fe   : > { %19725 = vmatprep.mubr.f32.mxu1 %v1333_v26  ;;  %34125 = vmatprep.mubr.f32.mxu0 %v1717_v27  ;;  %v3712_v15 = vrot.slane %v1833_v9, %v37096_v5  ;;  %v1724_v26 = vld [vmem:[%s37090_s19 + $0x2f80] sm:$0x3]  ;;  %v575_v27 = vld [vmem:[%s37090_s19 + $0xb98] sm:$0xff]  ;;  %v5351_v30 = vrot.slane %v5337_v24, %v37096_v5  ;;  %v582_v24 = vld [vmem:[%s37090_s19 + $0xbd0] sm:$0xff] }
 0x5ff   : > { %19806 = vmatprep.subr.mxu1 %v3686_v28  ;;  %34206 = vmatprep.subr.mxu0 %v5318_v29  ;;  %v959_v28 = vld [vmem:[%s37090_s19 + $0x1798] sm:$0xff] }
 0x600   : > { %19726 = vmatmul.mubr.f32.gmra.mrb[2].mxu1 %v1332_v32  ;;  %34126 = vmatmul.mubr.f32.gmra.mrb[2].mxu0 %v1716_v33  ;;  %v3720_v21 = vcombine.high %v3712_v15, %v3712_v15  ;;  %v958_v32 = vld [vmem:[%s37090_s19 + $0x1790] sm:$0xff]  ;;  %v1343_v33 = vld [vmem:[%s37090_s19 + $0x2398] sm:$0x3] }
 0x601   : > { %19795 = vmatprep.mubr.f32.mxu1 %v567_v34  ;;  %34195 = vmatprep.mubr.f32.mxu0 %v951_v35  ;;  %v1727_v34 = vld [vmem:[%s37090_s19 + $0x2f98] sm:$0x3] }
 0x604   : > { %19796 = vmatmul.mubr.f32.vlgmr.msra.gmra.mrb[0].mxu1 %v566_v38  ;;  %34196 = vmatmul.mubr.f32.vlgmr.msra.gmra.mrb[0].mxu0 %v950_v39  ;;  %v1930_v38 = vld [vmem:[%s37084_s27 + $0x5f0] sm:$0xff] }
 0x605   : > { %19807 = vmatpush1.xpose.msra.mxu1 %v3678_v22  ;;  %34207 = vmatpush1.xpose.msra.mxu0 %v5310_v23  ;;  %v5352_v22 = vcombine.high %v5344_v16, %v5344_v16  ;;  %v3705_v23 = vcombine.high %v1833_v9, %v1833_v9  ;;  %v1342_v39 = vld [vmem:[%s37090_s19 + $0x2390] sm:$0x3]  ;;  %v5361_v44 = vrot.slane %v1930_v38, %v37096_v5 }
 0x606   : > { %19800 = vmatprep.mubr.f32.mxu1 %v1335_v40  ;;  %34200 = vmatprep.mubr.f32.mxu0 %v1719_v41  ;;  %v1726_v40 = vld [vmem:[%s37090_s19 + $0x2f90] sm:$0x3]  ;;  %v577_v41 = vld [vmem:[%s37090_s19 + $0xba8] sm:$0xff] }
 0x607   : > { %19881 = vmatprep.subr.mxu1 %v3687_v42  ;;  %34281 = vmatprep.subr.mxu0 %v5319_v43  ;;  %v3719_v29 = vrot.slane %v3705_v23, %v37096_v5  ;;  %v961_v42 = vld [vmem:[%s37090_s19 + $0x17a8] sm:$0xff] }
 0x608   : > { %19801 = vmatmul.mubr.f32.gmra.mrb[2].mxu1 %v1334_v46  ;;  %34201 = vmatmul.mubr.f32.gmra.mrb[2].mxu0 %v1718_v47  ;;  %v960_v46 = vld [vmem:[%s37090_s19 + $0x17a0] sm:$0xff]  ;;  %v1345_v47 = vld [vmem:[%s37090_s19 + $0x23a8] sm:$0x3] }
 0x609   : > { %19870 = vmatprep.mubr.f32.mxu1 %v569_v48  ;;  %34270 = vmatprep.mubr.f32.mxu0 %v953_v49  ;;  %v3721_v35 = vcombine.high %v3719_v29, %v3719_v29  ;;  %v1729_v48 = vld [vmem:[%s37090_s19 + $0x2fa8] sm:$0x3] }
 0x60c   : > { %19871 = vmatmul.mubr.f32.vlgmr.msra.gmra.mrb[0].mxu1 %v568_v52  ;;  %34271 = vmatmul.mubr.f32.vlgmr.msra.gmra.mrb[0].mxu0 %v952_v53  ;;  %v5354_v52 = vcombine.high %v1930_v38, %v1930_v38  ;;  %v1344_v53 = vld [vmem:[%s37090_s19 + $0x23a0] sm:$0x3] }
 0x60d   : > { %19882 = vmatpush1.xpose.msra.mxu1 %v3685_v36  ;;  %34282 = vmatpush1.xpose.msra.mxu0 %v5317_v37  ;;  %v5353_v36 = vcombine.high %v5351_v30, %v5351_v30  ;;  %v1834_v37 = vld [vmem:[%s37084_s27 + $0x2f0] sm:$0xff]  ;;  %v1736_v38 = vld [vmem:[%s37090_s19 + $0x2fe0] sm:$0x3] }
 0x60e   : > { %19875 = vmatprep.mubr.f32.mxu1 %v1337_v54  ;;  %34275 = vmatprep.mubr.f32.mxu0 %v1721_v55  ;;  %v3729_v43 = vrot.slane %v1834_v37, %v37096_v5  ;;  %v1728_v54 = vld [vmem:[%s37090_s19 + $0x2fa0] sm:$0x3]  ;;  %v579_v55 = vld [vmem:[%s37090_s19 + $0xbb8] sm:$0xff]  ;;  %v5368_v58 = vrot.slane %v5354_v52, %v37096_v5 }
 0x60f   : > { %19956 = vmatprep.subr.mxu1 %v3703_v56  ;;  %34356 = vmatprep.subr.mxu0 %v5335_v57  ;;  %v963_v56 = vld [vmem:[%s37090_s19 + $0x17b8] sm:$0xff] }
 0x610   : > { %19876 = vmatmul.mubr.f32.gmra.mrb[2].mxu1 %v1336_v60  ;;  %34276 = vmatmul.mubr.f32.gmra.mrb[2].mxu0 %v1720_v61  ;;  %v3737_v49 = vcombine.high %v3729_v43, %v3729_v43  ;;  %v962_v60 = vld [vmem:[%s37090_s19 + $0x17b0] sm:$0xff]  ;;  %v1347_v61 = vld [vmem:[%s37090_s19 + $0x23b8] sm:$0x3] }
 0x611   : > { %19945 = vmatprep.mubr.f32.mxu1 %v571_v62  ;;  %34345 = vmatprep.mubr.f32.mxu0 %v955_v63  ;;  %v1731_v62 = vld [vmem:[%s37090_s19 + $0x2fb8] sm:$0x3] }
 0x614   : > { %19946 = vmatmul.mubr.f32.vlgmr.msra.gmra.mrb[0].mxu1 %v570_v2  ;;  %34346 = vmatmul.mubr.f32.vlgmr.msra.gmra.mrb[0].mxu0 %v954_v3  ;;  %v1931_v2 = vld [vmem:[%s37084_s27 + $0x5f8] sm:$0xff]  ;;  %v1346_v3 = vld [vmem:[%s37090_s19 + $0x23b0] sm:$0x3] }
 0x615   : > { %19957 = vmatpush1.xpose.msra.mxu1 %v3695_v50  ;;  %34357 = vmatpush1.xpose.msra.mxu0 %v5327_v51  ;;  %v5369_v50 = vcombine.high %v5361_v44, %v5361_v44  ;;  %v3722_v51 = vcombine.high %v1834_v37, %v1834_v37  ;;  %v5378_v9 = vrot.slane %v1931_v2, %v37096_v5  ;;  %v1352_v37 = vld [vmem:[%s37090_s19 + $0x23e0] sm:$0x3] }
 0x616   : > { %19950 = vmatprep.mubr.f32.mxu1 %v1339_v4  ;;  %34350 = vmatprep.mubr.f32.mxu0 %v1723_v6  ;;  %v1730_v4 = vld [vmem:[%s37090_s19 + $0x2fb0] sm:$0x3]  ;;  %v581_v6 = vld [vmem:[%s37090_s19 + $0xbc8] sm:$0xff] }
 0x617   : > { %20031 = vmatprep.subr.mxu1 %v3704_v7  ;;  %34431 = vmatprep.subr.mxu0 %v5336_v8  ;;  %v3736_v57 = vrot.slane %v3722_v51, %v37096_v5  ;;  %v965_v7 = vld [vmem:[%s37090_s19 + $0x17c8] sm:$0xff] }
 0x618   : > { %19951 = vmatmul.mubr.f32.gmra.mrb[2].mxu1 %v1338_v11  ;;  %34351 = vmatmul.mubr.f32.gmra.mrb[2].mxu0 %v1722_v12  ;;  %v964_v11 = vld [vmem:[%s37090_s19 + $0x17c0] sm:$0xff]  ;;  %v1349_v12 = vld [vmem:[%s37090_s19 + $0x23c8] sm:$0x3] }
 0x619   : > { %20020 = vmatprep.mubr.f32.mxu1 %v573_v13  ;;  %34420 = vmatprep.mubr.f32.mxu0 %v957_v14  ;;  %v3738_v63 = vcombine.high %v3736_v57, %v3736_v57  ;;  %v1733_v13 = vld [vmem:[%s37090_s19 + $0x2fc8] sm:$0x3] }
 0x61c   : > { %20021 = vmatmul.mubr.f32.vlgmr.msra.gmra.mrb[0].mxu1 %v572_v17  ;;  %34421 = vmatmul.mubr.f32.vlgmr.msra.gmra.mrb[0].mxu0 %v956_v18  ;;  %v5371_v17 = vcombine.high %v1931_v2, %v1931_v2  ;;  %v1348_v18 = vld [vmem:[%s37090_s19 + $0x23c0] sm:$0x3] }
 0x61d   : > { %20032 = vmatpush1.xpose.msra.mxu1 %v3702_v0  ;;  %34432 = vmatpush1.xpose.msra.mxu0 %v5334_v1  ;;  %v5370_v0 = vcombine.high %v5368_v58, %v5368_v58  ;;  %v1835_v1 = vld [vmem:[%s37084_s27 + $0x2f8] sm:$0xff] }
 0x61e   : > { %20025 = vmatprep.mubr.f32.mxu1 %v1341_v19  ;;  %34425 = vmatprep.mubr.f32.mxu0 %v1725_v20  ;;  %v3746_v8 = vrot.slane %v1835_v1, %v37096_v5  ;;  %v1732_v19 = vld [vmem:[%s37090_s19 + $0x2fc0] sm:$0x3]  ;;  %v583_v20 = vld [vmem:[%s37090_s19 + $0xbd8] sm:$0xff]  ;;  %v5385_v23 = vrot.slane %v5371_v17, %v37096_v5 }
 0x61f   : > { %20106 = vmatprep.subr.mxu1 %v3720_v21  ;;  %34506 = vmatprep.subr.mxu0 %v5352_v22  ;;  %v967_v21 = vld [vmem:[%s37090_s19 + $0x17d8] sm:$0xff] }
 0x620   : > { %20026 = vmatmul.mubr.f32.gmra.mrb[2].mxu1 %v1340_v25  ;;  %34426 = vmatmul.mubr.f32.gmra.mrb[2].mxu0 %v1724_v26  ;;  %v3754_v14 = vcombine.high %v3746_v8, %v3746_v8  ;;  %v966_v25 = vld [vmem:[%s37090_s19 + $0x17d0] sm:$0xff]  ;;  %v1351_v26 = vld [vmem:[%s37090_s19 + $0x23d8] sm:$0x3] }
 0x621   : > { %20095 = vmatprep.mubr.f32.mxu1 %v575_v27  ;;  %34495 = vmatprep.mubr.f32.mxu0 %v959_v28  ;;  %v1735_v27 = vld [vmem:[%s37090_s19 + $0x2fd8] sm:$0x3] }
 0x624   : > { %20096 = vmatmul.mubr.f32.vlgmr.msra.gmra.mrb[0].mxu1 %v574_v31  ;;  %34496 = vmatmul.mubr.f32.vlgmr.msra.gmra.mrb[0].mxu0 %v958_v32  ;;  %v585_v31 = vld [vmem:[%s37090_s19 + $0xbe8] sm:$0xff] }
 0x625   : > { %20107 = vmatpush1.xpose.msra.mxu1 %v3712_v15  ;;  %34507 = vmatpush1.xpose.msra.mxu0 %v5344_v16  ;;  %v5386_v15 = vcombine.high %v5378_v9, %v5378_v9  ;;  %v3739_v16 = vcombine.high %v1835_v1, %v1835_v1  ;;  %v969_v32 = vld [vmem:[%s37090_s19 + $0x17e8] sm:$0xff] }
 0x626   : > { %20100 = vmatprep.mubr.f32.mxu1 %v1343_v33  ;;  %34500 = vmatprep.mubr.f32.mxu0 %v1727_v34  ;;  %v584_v33 = vld [vmem:[%s37090_s19 + $0xbe0] sm:$0xff] }
 0x627   : > { %20181 = vmatprep.subr.mxu1 %v3721_v35  ;;  %34581 = vmatprep.subr.mxu0 %v5353_v36  ;;  %v3753_v22 = vrot.slane %v3739_v16, %v37096_v5  ;;  %v1350_v5 = vld [vmem:[%s37090_s19 + $0x23d0] sm:$0x3]  ;;  %v968_v34 = vld [vmem:[%s37090_s19 + $0x17e0] sm:$0xff]  ;;  %v1353_v35 = vld [vmem:[%s37090_s19 + $0x23e8] sm:$0x3] }
 0x628   : > { %20101 = vmatmul.mubr.f32.gmra.mrb[2].mxu1 %v1342_v39  ;;  %34501 = vmatmul.mubr.f32.gmra.mrb[2].mxu0 %v1726_v40  ;;  %v1737_v36 = vld [vmem:[%s37090_s19 + $0x2fe8] sm:$0x3]  ;;  %v587_v39 = vld [vmem:[%s37090_s19 + $0xbf8] sm:$0xff] }
 0x629   : > { %20170 = vmatprep.mubr.f32.mxu1 %v577_v41  ;;  %34570 = vmatprep.mubr.f32.mxu0 %v961_v42  ;;  %v3755_v28 = vcombine.high %v3753_v22, %v3753_v22  ;;  %v971_v40 = vld [vmem:[%s37090_s19 + $0x17f8] sm:$0xff]  ;;  %v586_v41 = vld [vmem:[%s37090_s19 + $0xbf0] sm:$0xff] }
 0x62a   : > { %v970_v42 = vld [vmem:[%s37090_s19 + $0x17f0] sm:$0xff] }
 0x62c   : > { %20171 = vmatmul.mubr.f32.vlgmr.msra.gmra.mrb[0].mxu1 %v576_v45  ;;  %34571 = vmatmul.mubr.f32.vlgmr.msra.gmra.mrb[0].mxu0 %v960_v46  ;;  %v1354_v45 = vld [vmem:[%s37090_s19 + $0x23f0] sm:$0x3] }
 0x62d   : > { %20182 = vmatpush1.xpose.msra.mxu1 %v3719_v29  ;;  %34582 = vmatpush1.xpose.msra.mxu0 %v5351_v30  ;;  %v5387_v29 = vcombine.high %v5385_v23, %v5385_v23  ;;  %v1734_v30 = vld [vmem:[%s37090_s19 + $0x2fd0] sm:$0x3] }
 0x62e   : > { %20175 = vmatprep.mubr.f32.mxu1 %v1345_v47  ;;  %34575 = vmatprep.mubr.f32.mxu0 %v1729_v48  ;;  %v1738_v46 = vld [vmem:[%s37090_s19 + $0x2ff0] sm:$0x3] }
 0x62f   : > { %20256 = vmatprep.subr.mxu1 %v3737_v49  ;;  %34656 = vmatprep.subr.mxu0 %v5369_v50 }
 0x630   : > { %20176 = vmatmul.mubr.f32.gmra.mrb[2].mxu1 %v1344_v53  ;;  %34576 = vmatmul.mubr.f32.gmra.mrb[2].mxu0 %v1728_v54 }
 0x631   : > { %20245 = vmatprep.mubr.f32.mxu1 %v579_v55  ;;  %34645 = vmatprep.mubr.f32.mxu0 %v963_v56 }
 0x634   : > { %20246 = vmatmul.mubr.f32.vlgmr.msra.gmra.mrb[0].mxu1 %v578_v59  ;;  %34646 = vmatmul.mubr.f32.vlgmr.msra.gmra.mrb[0].mxu0 %v962_v60 }
 0x635   : > { %20257 = vmatpush1.xpose.msra.mxu1 %v3729_v43  ;;  %34657 = vmatpush1.xpose.msra.mxu0 %v5361_v44  ;;  %v1355_v43 = vld [vmem:[%s37090_s19 + $0x23f8] sm:$0x3] }
 0x636   : > { %20250 = vmatprep.mubr.f32.mxu1 %v1347_v61  ;;  %34650 = vmatprep.mubr.f32.mxu0 %v1731_v62  ;;  %v1739_v44 = vld [vmem:[%s37090_s19 + $0x2ff8] sm:$0x3] }
 0x637   : > { %20331 = vmatprep.subr.mxu1 %v3738_v63  ;;  %34731 = vmatprep.subr.mxu0 %v5370_v0 }
 0x638   : > { %20251 = vmatmul.mubr.f32.gmra.mrb[2].mxu1 %v1346_v3  ;;  %34651 = vmatmul.mubr.f32.gmra.mrb[2].mxu0 %v1730_v4 }
 0x639   : > { %20320 = vmatprep.mubr.f32.mxu1 %v581_v6  ;;  %34720 = vmatprep.mubr.f32.mxu0 %v965_v7 }
 0x63c   : > { %20321 = vmatmul.mubr.f32.vlgmr.msra.gmra.mrb[0].mxu1 %v580_v10  ;;  %34721 = vmatmul.mubr.f32.vlgmr.msra.gmra.mrb[0].mxu0 %v964_v11 }
 0x63d   : > { %20332 = vmatpush1.xpose.msra.mxu1 %v3736_v57  ;;  %34732 = vmatpush1.xpose.msra.mxu0 %v5368_v58 }
 0x63e   : > { %20325 = vmatprep.mubr.f32.mxu1 %v1349_v12  ;;  %34725 = vmatprep.mubr.f32.mxu0 %v1733_v13 }
 0x63f   : > { %20406 = vmatprep.subr.mxu1 %v3754_v14  ;;  %34806 = vmatprep.subr.mxu0 %v5386_v15 }
 0x640   : > { %20326 = vmatmul.mubr.f32.gmra.mrb[2].mxu1 %v1348_v18  ;;  %34726 = vmatmul.mubr.f32.gmra.mrb[2].mxu0 %v1732_v19 }
 0x641   : > { %20395 = vmatprep.mubr.f32.mxu1 %v583_v20  ;;  %34795 = vmatprep.mubr.f32.mxu0 %v967_v21 }
 0x644   : > { %20396 = vmatmul.mubr.f32.vlgmr.msra.gmra.mrb[0].mxu1 %v582_v24  ;;  %34796 = vmatmul.mubr.f32.vlgmr.msra.gmra.mrb[0].mxu0 %v966_v25 }
 0x645   : > { %20407 = vmatpush1.xpose.msra.mxu1 %v3746_v8  ;;  %34807 = vmatpush1.xpose.msra.mxu0 %v5378_v9 }
 0x646   : > { %20400 = vmatprep.mubr.f32.mxu1 %v1351_v26  ;;  %34800 = vmatprep.mubr.f32.mxu0 %v1735_v27 }
 0x647   : > { %20481 = vmatprep.subr.mxu1 %v3755_v28  ;;  %34881 = vmatprep.subr.mxu0 %v5387_v29 }
 0x648   : > { %20401 = vmatmul.mubr.f32.gmra.mrb[2].mxu1 %v1350_v5  ;;  %34801 = vmatmul.mubr.f32.gmra.mrb[2].mxu0 %v1734_v30 }
 0x649   : > { %20470 = vmatprep.mubr.f32.mxu1 %v585_v31  ;;  %34870 = vmatprep.mubr.f32.mxu0 %v969_v32 }
 0x64c   : > { %20471 = vmatmul.mubr.f32.vlgmr.msra.gmra.mrb[0].mxu1 %v584_v33  ;;  %34871 = vmatmul.mubr.f32.vlgmr.msra.gmra.mrb[0].mxu0 %v968_v34 }
 0x64d   : > { %20482 = vmatpush1.xpose.msra.mxu1 %v3753_v22  ;;  %34882 = vmatpush1.xpose.msra.mxu0 %v5385_v23 }
 0x64e   : > { %20475 = vmatprep.mubr.f32.mxu1 %v1353_v35  ;;  %34875 = vmatprep.mubr.f32.mxu0 %v1737_v36 }
 0x650   : > { %20476 = vmatmul.mubr.f32.gmra.mrb[2].mxu1 %v1352_v37  ;;  %34876 = vmatmul.mubr.f32.gmra.mrb[2].mxu0 %v1736_v38 }
 0x651   : > { %20545 = vmatprep.mubr.f32.mxu1 %v587_v39  ;;  %34945 = vmatprep.mubr.f32.mxu0 %v971_v40 }
 0x654   : > { %20546 = vmatmul.mubr.f32.vlgmr.msra.gmra.mrb[0].mxu1 %v586_v41  ;;  %34946 = vmatmul.mubr.f32.vlgmr.msra.gmra.mrb[0].mxu0 %v970_v42 }
 0x655   : > { %20550 = vmatprep.mubr.f32.mxu1 %v1355_v43  ;;  %34950 = vmatprep.mubr.f32.mxu0 %v1739_v44 }
 0x658   : > { %20551 = vmatmul.mubr.f32.gmra.mrb[2].mxu1 %v1354_v45  ;;  %34951 = vmatmul.mubr.f32.gmra.mrb[2].mxu0 %v1738_v46 }
 0x727   : > { %v20547_v47 = vpop.f32.mrb[0].mxu1  ;;  %v34947_v48 = vpop.f32.mrb[0].mxu0 }
 0x728   : > { %v35063_v49 = vadd.f32 %v34947_v48, %v20547_v47  ;;  %v20549_v50 = vpop.f32.mrb[1].mxu1  ;;  %v34949_v51 = vpop.f32.mrb[1].mxu0 }
 0x72a   : > { %34957 = vst.msk [vmem:[%s203_s30] sm:$0xff] %vm34956_vm0, %v35063_v49 }
 0x72b   : > { %v20552_v52 = vpop.f32.mrb[2].mxu1  ;;  %v34952_v53 = vpop.f32.mrb[2].mxu0 }
 0x72c   : > { %v35064_v54 = vadd.f32 %v34952_v53, %v20552_v52  ;;  %v20554_v55 = vpop.f32.mrb[3].mxu1  ;;  %v34954_v56 = vpop.f32.mrb[3].mxu0 }
 0x72e   : > { %34959 = vst.msk [vmem:[%s203_s30 + $0x8] sm:$0x3] %vm34958_vm1, %v35064_v54 }
 0x72f PF: > { %p15_p10 = scmp.ge.s32.totalorder %s36980_s14, 4   ;;  %s39236_s9 = smov %s36927_s10 }
 0x730   : > { %s39237_s10 = smov %s36931_s11  ;;  %s39238_s11 = smov %s36990_s17 }
 0x731   : > { %s39239_s12 = smov %s36980_s14  ;;  %17 = sbr.rel (!%p15_p10) target bundleno = 5 (0x5), region = 81 }
 0x738   :  { %34981 = vsyncpa [#allocation3], 1 }
 0x739   :  { %34983 = vsyncpa [#allocation3 + $0x1], 1 }
 0x73a   :  { %34984 = vsyncpa [#allocation5], 1 }
 0x73b   :  { %34986 = vsyncpa [#allocation5 + $0x1], 1 }

</bundles_post_ra>
